<compile_context>
chip_gen: v5e
topology: v5e:2x2
jax: 0.10.0
libtpu: 0.0.40
codegen_flags: <defaults>
</compile_context>

<pallas_src>
import math

import numpy as np
import jax
import jax.numpy as jnp
from jax.experimental import pallas as pl
from jax.experimental.pallas import tpu as pltpu

# ---------------- config (small, consistent with the module) ----------------
B, C = 2, 4
BC = B * C
SEQ_LEN = 16
PRED_LEN = 8
E_LAYERS = 1
LAYERS_NUM = 1
HIDDEN_CHANNELS = 8
OUT_CHANNELS = 8
STRIDES = (2, 4, 8)
KERNELS = tuple(2 * s for s in STRIDES)
D_MODEL = 32
N_HEADS = 4
DK = D_MODEL // N_HEADS
D_FF = 64
DROPOUT = 0.0  # identity at inference
LN_EPS = 1e-5

# the in-kernel block-diagonal mask uses (row & (BC-1)); BC must be a power of 2
assert BC & (BC - 1) == 0, "BC must be a power of two for the iota batch mask"


# ---------------- helpers ported from the PyTorch module ----------------
def get_P(seq_len, kernel_size, stride):
    if seq_len < kernel_size:
        return kernel_size - seq_len
    return (stride - (seq_len - kernel_size) % stride) % stride


def get_N(i, seq_len, kernel_size, stride):
    P = get_P(seq_len, kernel_size, stride)
    N = int((seq_len + P - kernel_size) / stride + 1)
    if i == 0:
        return N
    return get_N(i - 1, N, kernel_size, stride)


N_SETS = [get_N(LAYERS_NUM - 1, SEQ_LEN, KERNELS[i], STRIDES[i]) for i in range(3)]
N_TOKENS = sum(N_SETS)        # 7 + 3 + 1 = 11
S_ROWS = N_TOKENS * BC        # 88 slab rows, n-major: row = t*BC + b


def sincos_positional_encoding(q_len, d_model):
    pe = np.zeros((q_len, d_model), dtype=np.float64)
    position = np.arange(0, q_len).reshape(-1, 1)
    div_term = np.exp(np.arange(0, d_model, 2) * -(math.log(10000.0) / d_model))
    pe[:, 0::2] = np.sin(position * div_term)
    pe[:, 1::2] = np.cos(position * div_term)
    pe = pe * d_model / q_len
    pe = pe - pe.mean()
    pe = pe / (pe.std(ddof=1) * 10)  # torch.std is unbiased
    return jnp.asarray(pe, dtype=jnp.float32)


# ---------------- in-kernel math helpers ----------------
_ERF_COEFFS = (1.00002368, 0.37409196, 0.09678418, -0.18628806,
               0.27886807, -1.13520398, 1.48851587, -0.82215223, 0.17087277)
_INV_SQRT2 = 1.0 / math.sqrt(2.0)


def _erf(x):
    # Rational/exp approximation of erf (|err| < 1.2e-7 ~= f32 precision),
    # built only from ops guaranteed to lower in Mosaic.
    z = jnp.abs(x)
    t = 1.0 / (1.0 + 0.5 * z)
    poly = jnp.float32(_ERF_COEFFS[-1])
    for c in reversed(_ERF_COEFFS[:-1]):
        poly = c + t * poly
    poly = -1.26551223 + t * poly
    erfc_z = t * jnp.exp(-z * z + poly)
    return jnp.where(x >= 0.0, 1.0 - erfc_z, erfc_z - 1.0)


def _gelu_exact(x):
    return 0.5 * x * (1.0 + _erf(x * _INV_SQRT2))


def _sigmoid(x):
    return 1.0 / (1.0 + jnp.exp(-x))


def _ln(x, g, b):
    mu = jnp.mean(x, axis=-1, keepdims=True)
    var = jnp.mean(jnp.square(x - mu), axis=-1, keepdims=True)
    return (x - mu) * jax.lax.rsqrt(var + LN_EPS) * g + b


def _softmax_last(x):
    # exact division (numerical parity with torch softmax)
    x = x - jnp.max(x, axis=-1, keepdims=True)
    p = jnp.exp(x)
    return p / jnp.sum(p, axis=-1, keepdims=True)


# ================= the single fused X_Layer kernel =================
def _x_layer_kernel(x_ref, wfe_ref, bfe_ref, gmat_ref, gb_ref, rmat_ref, wpos_ref,
                    wqkv_ref, bqkv_ref, wo_ref, bo_ref, n1g_ref, n1b_ref,
                    w1_ref, b1_ref, w2_ref, b2_ref, n2g_ref, n2b_ref,
                    ng_ref, nb_ref, wl3_ref, lb_ref, o_ref):
    bc = x_ref.shape[0]            # B*C
    n_tok = wfe_ref.shape[0]       # N_TOKENS
    d = wfe_ref.shape[2]           # D_MODEL
    s_rows = n_tok * bc            # slab rows (n-major: row = t*bc + b)

    x2 = x_ref[...]                                               # (BC, SEQ_LEN)

    # ---- multi-scale conv + embedding (trace-time folded per token) ----
    e = jnp.concatenate(
        [jnp.dot(x2, wfe_ref[t], preferred_element_type=jnp.float32)
         for t in range(n_tok)], axis=0) + bfe_ref[...]           # (S, D)

    # ---- gate: Linear(N_tokens, 1) -> sigmoid -> softmax over d_model ----
    glog = jnp.dot(gmat_ref[...], e, preferred_element_type=jnp.float32) + gb_ref[...]  # (BC, D)
    gate = _softmax_last(_sigmoid(glog))                                                # (BC, D)
    gate_slab = jnp.dot(rmat_ref[...], gate, preferred_element_type=jnp.float32)        # (S, D)
    h = e * gate_slab + wpos_ref[...]                             # gated + positional encoding

    # ---- static block-diagonal attention mask (same (batch,channel) row) ----
    ri = jax.lax.broadcasted_iota(jnp.int32, (s_rows, s_rows), 0)
    ci = jax.lax.broadcasted_iota(jnp.int32, (s_rows, s_rows), 1)
    neg = jnp.where((ri & (bc - 1)) == (ci & (bc - 1)), 0.0, -1e30).astype(jnp.float32)

    # ---- Transformer encoder layers (fully unrolled, all resident in VMEM) ----
    for l in range(E_LAYERS):
        qkv = jnp.dot(h, wqkv_ref[l], preferred_element_type=jnp.float32) + bqkv_ref[l]  # (S, 3D)
        kt_all = qkv[:, d:2 * d].T                                # single transpose -> (D, S)
        wo_l = wo_ref[l]                                          # (D, D)
        acc = jnp.zeros((s_rows, d), jnp.float32)
        for hd in range(N_HEADS):                                 # 1/sqrt(dk) folded into Wq/bq
            q = qkv[:, hd * DK:(hd + 1) * DK]                     # (S, DK)
            kt = kt_all[hd * DK:(hd + 1) * DK, :]                 # (DK, S) sublane slice
            v = qkv[:, 2 * d + hd * DK:2 * d + (hd + 1) * DK]     # (S, DK)
            s = jnp.dot(q, kt, preferred_element_type=jnp.float32) + neg   # (S, S)
            p = _softmax_last(s)                                  # masked rows exp to exactly 0
            oh = jnp.dot(p, v, preferred_element_type=jnp.float32)         # (S, DK)
            acc = acc + jnp.dot(oh, wo_l[hd * DK:(hd + 1) * DK, :],
                                preferred_element_type=jnp.float32)
        x1 = _ln(h + acc + bo_ref[l], n1g_ref[l], n1b_ref[l])     # dropout(p=0)=id
        y = _gelu_exact(jnp.dot(x1, w1_ref[l], preferred_element_type=jnp.float32) + b1_ref[l])
        y = jnp.dot(y, w2_ref[l], preferred_element_type=jnp.float32) + b2_ref[l]
        h = _ln(x1 + y, n2g_ref[l], n2b_ref[l])

    # ---- final encoder LayerNorm (one vectorized pass over all 88 rows) ----
    xn = _ln(h, ng_ref[...], nb_ref[...])                         # (S, D)

    # ---- prediction head: flatten(N*D) @ W as per-token aligned 8-row chunks ----
    out = jnp.zeros((bc, PRED_LEN), jnp.float32)
    for t in range(n_tok):
        out = out + jnp.dot(xn[t * bc:(t + 1) * bc, :], wl3_ref[t],
                            preferred_element_type=jnp.float32)
    o_ref[...] = out + lb_ref[...]


def fused_forward_call(x2, f):
    bc = x2.shape[0]

    def full(a):
        nd = a.ndim
        return pl.BlockSpec(a.shape, lambda i, nd=nd: (0,) * nd)

    args = (x2, f["w_fe"], f["b_fe_slab"], f["gmat"], f["gb_row"], f["rmat"], f["wpos_slab"],
            f["wqkv"], f["bqkv"], f["wo"], f["bo"], f["n1_g"], f["n1_b"],
            f["w1"], f["b1"], f["w2"], f["b2"], f["n2_g"], f["n2_b"],
            f["ng"], f["nb"], f["wl3"], f["lb"])
    return pl.pallas_call(
        _x_layer_kernel,
        out_shape=jax.ShapeDtypeStruct((bc, PRED_LEN), jnp.float32),
        grid=(1,),
        in_specs=[full(a) for a in args],
        out_specs=pl.BlockSpec((bc, PRED_LEN), lambda i: (0, 0)),
        compiler_params=pltpu.CompilerParams(dimension_semantics=("arbitrary",)),
    )(*args)


# ---------------- full X_Layer forward (single pallas_call) ----------------
@jax.jit
def x_layer_forward(x, fused):
    Bb, Cc, L = x.shape
    x2 = x.reshape(Bb * Cc, L)                     # only wrapper ops: two reshapes
    out = fused_forward_call(x2, fused)            # (B*C, PRED_LEN)
    return out.reshape(Bb, Cc, PRED_LEN)


# ---------------- deterministic parameter init (module-shaped) ----------------
def init_params(key):
    keys = jax.random.split(key, 64)
    it = iter(keys)

    def lin(in_f, out_f):
        w = jax.random.normal(next(it), (in_f, out_f), jnp.float32) / math.sqrt(in_f)
        b = jax.random.normal(next(it), (out_f,), jnp.float32) * 0.01
        return w, b

    params = {"models": []}
    for m in range(3):
        k_sz = KERNELS[m]
        layers = []
        for i in range(LAYERS_NUM):
            if i == 0 and LAYERS_NUM == 1:
                in_c, out_c = 1, OUT_CHANNELS
            elif i == 0:
                in_c, out_c = 1, HIDDEN_CHANNELS
            elif i == LAYERS_NUM - 1:
                in_c, out_c = HIDDEN_CHANNELS, OUT_CHANNELS
            else:
                in_c, out_c = HIDDEN_CHANNELS, HIDDEN_CHANNELS
            w = jax.random.normal(next(it), (out_c, in_c, k_sz), jnp.float32)
            w = w / math.sqrt(in_c * k_sz)
            bb = jax.random.normal(next(it), (out_c,), jnp.float32) * 0.01
            layers.append((w, bb))
        params["models"].append(layers)

    params["emb"] = lin(OUT_CHANNELS, D_MODEL)
    params["gate"] = lin(N_TOKENS, 1)
    params["W_pos"] = sincos_positional_encoding(N_TOKENS, D_MODEL)

    enc_layers = []
    for _ in range(E_LAYERS):
        p = {}
        p["wq"], p["bq"] = lin(D_MODEL, D_MODEL)
        p["wk"], p["bk"] = lin(D_MODEL, D_MODEL)
        p["wv"], p["bv"] = lin(D_MODEL, D_MODEL)
        p["wo"], p["bo"] = lin(D_MODEL, D_MODEL)
        p["w1"], p["b1"] = lin(D_MODEL, D_FF)
        p["w2"], p["b2"] = lin(D_FF, D_MODEL)
        p["n1_g"] = jnp.ones((D_MODEL,), jnp.float32)
        p["n1_b"] = jnp.zeros((D_MODEL,), jnp.float32)
        p["n2_g"] = jnp.ones((D_MODEL,), jnp.float32)
        p["n2_b"] = jnp.zeros((D_MODEL,), jnp.float32)
        enc_layers.append(p)
    params["enc_layers"] = enc_layers
    params["enc_norm_g"] = jnp.ones((D_MODEL,), jnp.float32)
    params["enc_norm_b"] = jnp.zeros((D_MODEL,), jnp.float32)

    params["linear"] = lin(N_TOKENS * D_MODEL, PRED_LEN)
    return params


# ---------------- trace-time weight folding into kernel-ready tensors ----------------
def prepare_fused(params):
    """All weight folding happens once, host-side (numpy) / eagerly."""
    fused = {}
    emb_w, emb_b = params["emb"]                            # (OUT_C, D), (D,)
    emb_w_np = np.asarray(emb_w)
    emb_b_np = np.asarray(emb_b)

    # ---- conv ⊗ embedding fold: per-token (SEQ_LEN, D_MODEL) matrix + bias ----
    # im2col (with replicate-pad clamp, exercised only if P>0) folded into the
    # weight, so the kernel consumes the raw series directly.
    w_fe = []
    b_fe = []
    for s in range(3):
        K, st = KERNELS[s], STRIDES[s]
        w, bb = params["models"][s][0]                      # (OUT_C, 1, K), (OUT_C,)
        wk_np = np.asarray(w).reshape(OUT_CHANNELS, K).T    # (K, OUT_C)
        wkd = wk_np @ emb_w_np                              # (K, D) conv -> embedding
        btok = np.asarray(bb) @ emb_w_np + emb_b_np         # (D,)  conv bias -> embedding + emb bias
        for n in range(N_SETS[s]):
            m = np.zeros((SEQ_LEN, D_MODEL), np.float32)
            for k in range(K):
                src = min(n * st + k, SEQ_LEN - 1)          # replicate-pad clamp
                m[src, :] += wkd[k, :]
            w_fe.append(m)
            b_fe.append(btok.astype(np.float32))
    fused["w_fe"] = jnp.asarray(np.stack(w_fe, axis=0))                 # (N, SEQ_LEN, D)
    fused["b_fe_slab"] = jnp.asarray(np.repeat(np.stack(b_fe, 0), BC, axis=0))  # (S, D)

    # ---- gate reduction / broadcast selection matrices (n-major slab) ----
    gate_w, gate_b = params["gate"]                          # (N, 1), (1,)
    gw = np.asarray(gate_w).reshape(-1)
    gmat = np.zeros((BC, S_ROWS), np.float32)                # glog = gmat @ e_slab
    rmat = np.zeros((S_ROWS, BC), np.float32)                # slab-broadcast of gate scores
    for t in range(N_TOKENS):
        for b in range(BC):
            gmat[b, t * BC + b] = gw[t]
            rmat[t * BC + b, b] = 1.0
    fused["gmat"] = jnp.asarray(gmat)
    fused["rmat"] = jnp.asarray(rmat)
    fused["gb_row"] = jnp.tile(gate_b.reshape(1, 1), (1, D_MODEL))

    # ---- positional encoding tiled to the n-major slab ----
    fused["wpos_slab"] = jnp.repeat(params["W_pos"], BC, axis=0)         # (S, D)

    # ---- encoder layers: merged QKV (1/sqrt(dk) folded), stacked over layers ----
    scale = 1.0 / math.sqrt(DK)

    def stack(fn):
        return jnp.stack([fn(p) for p in params["enc_layers"]], axis=0)

    fused["wqkv"] = stack(lambda p: jnp.concatenate([p["wq"] * scale, p["wk"], p["wv"]], axis=1))
    fused["bqkv"] = stack(lambda p: jnp.concatenate(
        [p["bq"] * scale, p["bk"], p["bv"]]).reshape(1, 3 * D_MODEL))
    fused["wo"] = stack(lambda p: p["wo"])
    fused["bo"] = stack(lambda p: p["bo"].reshape(1, D_MODEL))
    fused["n1_g"] = stack(lambda p: p["n1_g"].reshape(1, D_MODEL))
    fused["n1_b"] = stack(lambda p: p["n1_b"].reshape(1, D_MODEL))
    fused["w1"] = stack(lambda p: p["w1"])
    fused["b1"] = stack(lambda p: p["b1"].reshape(1, D_FF))
    fused["w2"] = stack(lambda p: p["w2"])
    fused["b2"] = stack(lambda p: p["b2"].reshape(1, D_MODEL))
    fused["n2_g"] = stack(lambda p: p["n2_g"].reshape(1, D_MODEL))
    fused["n2_b"] = stack(lambda p: p["n2_b"].reshape(1, D_MODEL))

    # ---- final encoder norm + prediction head ----
    fused["ng"] = params["enc_norm_g"].reshape(1, D_MODEL)
    fused["nb"] = params["enc_norm_b"].reshape(1, D_MODEL)
    lin_w, lin_b = params["linear"]                          # (N*D, PRED_LEN)
    fused["wl3"] = lin_w.reshape(N_TOKENS, D_MODEL, PRED_LEN)
    fused["lb"] = lin_b.reshape(1, PRED_LEN)
    return fused


if __name__ == "__main__":
    key = jax.random.PRNGKey(0)
    pkey, xkey = jax.random.split(key)
    params = init_params(pkey)
    fused = prepare_fused(params)
    x = jax.random.normal(xkey, (B, C, SEQ_LEN), jnp.float32)

    out = x_layer_forward(x, fused)
    out = jax.block_until_ready(out)

    assert out.shape == (B, C, PRED_LEN), out.shape
    assert bool(jnp.all(jnp.isfinite(out)))
    print("KERNEL_OK")
</pallas_src>

<mosaic_0001>
module attributes {stable_mosaic.version = 11 : i64} {
  func.func @_x_layer_kernel(%arg0: i32, %arg1: memref<8x16xf32, #tpu.memory_space<vmem>>, %arg2: memref<11x16x32xf32, #tpu.memory_space<vmem>>, %arg3: memref<88x32xf32, #tpu.memory_space<vmem>>, %arg4: memref<8x88xf32, #tpu.memory_space<vmem>>, %arg5: memref<1x32xf32, #tpu.memory_space<vmem>>, %arg6: memref<88x8xf32, #tpu.memory_space<vmem>>, %arg7: memref<88x32xf32, #tpu.memory_space<vmem>>, %arg8: memref<1x32x96xf32, #tpu.memory_space<vmem>>, %arg9: memref<1x1x96xf32, #tpu.memory_space<vmem>>, %arg10: memref<1x32x32xf32, #tpu.memory_space<vmem>>, %arg11: memref<1x1x32xf32, #tpu.memory_space<vmem>>, %arg12: memref<1x1x32xf32, #tpu.memory_space<vmem>>, %arg13: memref<1x1x32xf32, #tpu.memory_space<vmem>>, %arg14: memref<1x32x64xf32, #tpu.memory_space<vmem>>, %arg15: memref<1x1x64xf32, #tpu.memory_space<vmem>>, %arg16: memref<1x64x32xf32, #tpu.memory_space<vmem>>, %arg17: memref<1x1x32xf32, #tpu.memory_space<vmem>>, %arg18: memref<1x1x32xf32, #tpu.memory_space<vmem>>, %arg19: memref<1x1x32xf32, #tpu.memory_space<vmem>>, %arg20: memref<1x32xf32, #tpu.memory_space<vmem>>, %arg21: memref<1x32xf32, #tpu.memory_space<vmem>>, %arg22: memref<11x32x8xf32, #tpu.memory_space<vmem>>, %arg23: memref<1x8xf32, #tpu.memory_space<vmem>>, %arg24: memref<8x8xf32, #tpu.memory_space<vmem>>) attributes {dimension_semantics = [#tpu.dimension_semantics<arbitrary>], iteration_bounds = array<i64: 1>, scalar_prefetch = 0 : i64, scratch_operands = 0 : i64, tpu.core_type = #tpu.core_type<tc>, window_params = [{pipeline_mode = #tpu.pipeline_mode<synchronous>, transform_indices = @transform_0, window_bounds = array<i64: 8, 16>}, {pipeline_mode = #tpu.pipeline_mode<synchronous>, transform_indices = @transform_1, window_bounds = array<i64: 11, 16, 32>}, {pipeline_mode = #tpu.pipeline_mode<synchronous>, transform_indices = @transform_2, window_bounds = array<i64: 88, 32>}, {pipeline_mode = #tpu.pipeline_mode<synchronous>, transform_indices = @transform_3, window_bounds = array<i64: 8, 88>}, {pipeline_mode = #tpu.pipeline_mode<synchronous>, transform_indices = @transform_4, window_bounds = array<i64: 1, 32>}, {pipeline_mode = #tpu.pipeline_mode<synchronous>, transform_indices = @transform_5, window_bounds = array<i64: 88, 8>}, {pipeline_mode = #tpu.pipeline_mode<synchronous>, transform_indices = @transform_6, window_bounds = array<i64: 88, 32>}, {pipeline_mode = #tpu.pipeline_mode<synchronous>, transform_indices = @transform_7, window_bounds = array<i64: 1, 32, 96>}, {pipeline_mode = #tpu.pipeline_mode<synchronous>, transform_indices = @transform_8, window_bounds = array<i64: 1, 1, 96>}, {pipeline_mode = #tpu.pipeline_mode<synchronous>, transform_indices = @transform_9, window_bounds = array<i64: 1, 32, 32>}, {pipeline_mode = #tpu.pipeline_mode<synchronous>, transform_indices = @transform_10, window_bounds = array<i64: 1, 1, 32>}, {pipeline_mode = #tpu.pipeline_mode<synchronous>, transform_indices = @transform_11, window_bounds = array<i64: 1, 1, 32>}, {pipeline_mode = #tpu.pipeline_mode<synchronous>, transform_indices = @transform_12, window_bounds = array<i64: 1, 1, 32>}, {pipeline_mode = #tpu.pipeline_mode<synchronous>, transform_indices = @transform_13, window_bounds = array<i64: 1, 32, 64>}, {pipeline_mode = #tpu.pipeline_mode<synchronous>, transform_indices = @transform_14, window_bounds = array<i64: 1, 1, 64>}, {pipeline_mode = #tpu.pipeline_mode<synchronous>, transform_indices = @transform_15, window_bounds = array<i64: 1, 64, 32>}, {pipeline_mode = #tpu.pipeline_mode<synchronous>, transform_indices = @transform_16, window_bounds = array<i64: 1, 1, 32>}, {pipeline_mode = #tpu.pipeline_mode<synchronous>, transform_indices = @transform_17, window_bounds = array<i64: 1, 1, 32>}, {pipeline_mode = #tpu.pipeline_mode<synchronous>, transform_indices = @transform_18, window_bounds = array<i64: 1, 1, 32>}, {pipeline_mode = #tpu.pipeline_mode<synchronous>, transform_indices = @transform_19, window_bounds = array<i64: 1, 32>}, {pipeline_mode = #tpu.pipeline_mode<synchronous>, transform_indices = @transform_20, window_bounds = array<i64: 1, 32>}, {pipeline_mode = #tpu.pipeline_mode<synchronous>, transform_indices = @transform_21, window_bounds = array<i64: 11, 32, 8>}, {pipeline_mode = #tpu.pipeline_mode<synchronous>, transform_indices = @transform_22, window_bounds = array<i64: 1, 8>}, {pipeline_mode = #tpu.pipeline_mode<synchronous>, transform_indices = @transform_23, window_bounds = array<i64: 8, 8>}]} {
    %c0 = arith.constant 0 : index
    %c0_0 = arith.constant 0 : index
    %0 = vector.load %arg1[%c0, %c0_0] : memref<8x16xf32, #tpu.memory_space<vmem>>, vector<8x16xf32>
    %c0_1 = arith.constant 0 : index
    %c0_2 = arith.constant 0 : index
    %c0_3 = arith.constant 0 : index
    %1 = vector.load %arg2[%c0_1, %c0_2, %c0_3] : memref<11x16x32xf32, #tpu.memory_space<vmem>>, vector<1x16x32xf32>
    %2 = vector.shape_cast %1 : vector<1x16x32xf32> to vector<16x32xf32>
    %cst = arith.constant dense<0.000000e+00> : vector<8x32xf32>
    %3 = tpu.matmul %0, %2, %cst {dimension_numbers = #tpu.dot_dimension_numbers<[1], [0], [0], [1], [0, 0, 1, 1], [], []>} : vector<8x16xf32>, vector<16x32xf32>, vector<8x32xf32> -> vector<8x32xf32>
    %c1 = arith.constant 1 : index
    %c0_4 = arith.constant 0 : index
    %c0_5 = arith.constant 0 : index
    %4 = vector.load %arg2[%c1, %c0_4, %c0_5] : memref<11x16x32xf32, #tpu.memory_space<vmem>>, vector<1x16x32xf32>
    %5 = vector.shape_cast %4 : vector<1x16x32xf32> to vector<16x32xf32>
    %cst_6 = arith.constant dense<0.000000e+00> : vector<8x32xf32>
    %6 = tpu.matmul %0, %5, %cst_6 {dimension_numbers = #tpu.dot_dimension_numbers<[1], [0], [0], [1], [0, 0, 1, 1], [], []>} : vector<8x16xf32>, vector<16x32xf32>, vector<8x32xf32> -> vector<8x32xf32>
    %c2 = arith.constant 2 : index
    %c0_7 = arith.constant 0 : index
    %c0_8 = arith.constant 0 : index
    %7 = vector.load %arg2[%c2, %c0_7, %c0_8] : memref<11x16x32xf32, #tpu.memory_space<vmem>>, vector<1x16x32xf32>
    %8 = vector.shape_cast %7 : vector<1x16x32xf32> to vector<16x32xf32>
    %cst_9 = arith.constant dense<0.000000e+00> : vector<8x32xf32>
    %9 = tpu.matmul %0, %8, %cst_9 {dimension_numbers = #tpu.dot_dimension_numbers<[1], [0], [0], [1], [0, 0, 1, 1], [], []>} : vector<8x16xf32>, vector<16x32xf32>, vector<8x32xf32> -> vector<8x32xf32>
    %c3 = arith.constant 3 : index
    %c0_10 = arith.constant 0 : index
    %c0_11 = arith.constant 0 : index
    %10 = vector.load %arg2[%c3, %c0_10, %c0_11] : memref<11x16x32xf32, #tpu.memory_space<vmem>>, vector<1x16x32xf32>
    %11 = vector.shape_cast %10 : vector<1x16x32xf32> to vector<16x32xf32>
    %cst_12 = arith.constant dense<0.000000e+00> : vector<8x32xf32>
    %12 = tpu.matmul %0, %11, %cst_12 {dimension_numbers = #tpu.dot_dimension_numbers<[1], [0], [0], [1], [0, 0, 1, 1], [], []>} : vector<8x16xf32>, vector<16x32xf32>, vector<8x32xf32> -> vector<8x32xf32>
    %c4 = arith.constant 4 : index
    %c0_13 = arith.constant 0 : index
    %c0_14 = arith.constant 0 : index
    %13 = vector.load %arg2[%c4, %c0_13, %c0_14] : memref<11x16x32xf32, #tpu.memory_space<vmem>>, vector<1x16x32xf32>
    %14 = vector.shape_cast %13 : vector<1x16x32xf32> to vector<16x32xf32>
    %cst_15 = arith.constant dense<0.000000e+00> : vector<8x32xf32>
    %15 = tpu.matmul %0, %14, %cst_15 {dimension_numbers = #tpu.dot_dimension_numbers<[1], [0], [0], [1], [0, 0, 1, 1], [], []>} : vector<8x16xf32>, vector<16x32xf32>, vector<8x32xf32> -> vector<8x32xf32>
    %c5 = arith.constant 5 : index
    %c0_16 = arith.constant 0 : index
    %c0_17 = arith.constant 0 : index
    %16 = vector.load %arg2[%c5, %c0_16, %c0_17] : memref<11x16x32xf32, #tpu.memory_space<vmem>>, vector<1x16x32xf32>
    %17 = vector.shape_cast %16 : vector<1x16x32xf32> to vector<16x32xf32>
    %cst_18 = arith.constant dense<0.000000e+00> : vector<8x32xf32>
    %18 = tpu.matmul %0, %17, %cst_18 {dimension_numbers = #tpu.dot_dimension_numbers<[1], [0], [0], [1], [0, 0, 1, 1], [], []>} : vector<8x16xf32>, vector<16x32xf32>, vector<8x32xf32> -> vector<8x32xf32>
    %c6 = arith.constant 6 : index
    %c0_19 = arith.constant 0 : index
    %c0_20 = arith.constant 0 : index
    %19 = vector.load %arg2[%c6, %c0_19, %c0_20] : memref<11x16x32xf32, #tpu.memory_space<vmem>>, vector<1x16x32xf32>
    %20 = vector.shape_cast %19 : vector<1x16x32xf32> to vector<16x32xf32>
    %cst_21 = arith.constant dense<0.000000e+00> : vector<8x32xf32>
    %21 = tpu.matmul %0, %20, %cst_21 {dimension_numbers = #tpu.dot_dimension_numbers<[1], [0], [0], [1], [0, 0, 1, 1], [], []>} : vector<8x16xf32>, vector<16x32xf32>, vector<8x32xf32> -> vector<8x32xf32>
    %c7 = arith.constant 7 : index
    %c0_22 = arith.constant 0 : index
    %c0_23 = arith.constant 0 : index
    %22 = vector.load %arg2[%c7, %c0_22, %c0_23] : memref<11x16x32xf32, #tpu.memory_space<vmem>>, vector<1x16x32xf32>
    %23 = vector.shape_cast %22 : vector<1x16x32xf32> to vector<16x32xf32>
    %cst_24 = arith.constant dense<0.000000e+00> : vector<8x32xf32>
    %24 = tpu.matmul %0, %23, %cst_24 {dimension_numbers = #tpu.dot_dimension_numbers<[1], [0], [0], [1], [0, 0, 1, 1], [], []>} : vector<8x16xf32>, vector<16x32xf32>, vector<8x32xf32> -> vector<8x32xf32>
    %c8 = arith.constant 8 : index
    %c0_25 = arith.constant 0 : index
    %c0_26 = arith.constant 0 : index
    %25 = vector.load %arg2[%c8, %c0_25, %c0_26] : memref<11x16x32xf32, #tpu.memory_space<vmem>>, vector<1x16x32xf32>
    %26 = vector.shape_cast %25 : vector<1x16x32xf32> to vector<16x32xf32>
    %cst_27 = arith.constant dense<0.000000e+00> : vector<8x32xf32>
    %27 = tpu.matmul %0, %26, %cst_27 {dimension_numbers = #tpu.dot_dimension_numbers<[1], [0], [0], [1], [0, 0, 1, 1], [], []>} : vector<8x16xf32>, vector<16x32xf32>, vector<8x32xf32> -> vector<8x32xf32>
    %c9 = arith.constant 9 : index
    %c0_28 = arith.constant 0 : index
    %c0_29 = arith.constant 0 : index
    %28 = vector.load %arg2[%c9, %c0_28, %c0_29] : memref<11x16x32xf32, #tpu.memory_space<vmem>>, vector<1x16x32xf32>
    %29 = vector.shape_cast %28 : vector<1x16x32xf32> to vector<16x32xf32>
    %cst_30 = arith.constant dense<0.000000e+00> : vector<8x32xf32>
    %30 = tpu.matmul %0, %29, %cst_30 {dimension_numbers = #tpu.dot_dimension_numbers<[1], [0], [0], [1], [0, 0, 1, 1], [], []>} : vector<8x16xf32>, vector<16x32xf32>, vector<8x32xf32> -> vector<8x32xf32>
    %c10 = arith.constant 10 : index
    %c0_31 = arith.constant 0 : index
    %c0_32 = arith.constant 0 : index
    %31 = vector.load %arg2[%c10, %c0_31, %c0_32] : memref<11x16x32xf32, #tpu.memory_space<vmem>>, vector<1x16x32xf32>
    %32 = vector.shape_cast %31 : vector<1x16x32xf32> to vector<16x32xf32>
    %cst_33 = arith.constant dense<0.000000e+00> : vector<8x32xf32>
    %33 = tpu.matmul %0, %32, %cst_33 {dimension_numbers = #tpu.dot_dimension_numbers<[1], [0], [0], [1], [0, 0, 1, 1], [], []>} : vector<8x16xf32>, vector<16x32xf32>, vector<8x32xf32> -> vector<8x32xf32>
    %34 = tpu.concatenate %3, %6, %9, %12, %15, %18, %21, %24, %27, %30, %33 in 0 : vector<8x32xf32>, vector<8x32xf32>, vector<8x32xf32>, vector<8x32xf32>, vector<8x32xf32>, vector<8x32xf32>, vector<8x32xf32>, vector<8x32xf32>, vector<8x32xf32>, vector<8x32xf32>, vector<8x32xf32> -> vector<88x32xf32>
    %c0_34 = arith.constant 0 : index
    %c0_35 = arith.constant 0 : index
    %35 = vector.load %arg3[%c0_34, %c0_35] : memref<88x32xf32, #tpu.memory_space<vmem>>, vector<88x32xf32>
    %36 = arith.addf %34, %35 : vector<88x32xf32>
    %c0_36 = arith.constant 0 : index
    %c0_37 = arith.constant 0 : index
    %37 = vector.load %arg4[%c0_36, %c0_37] : memref<8x88xf32, #tpu.memory_space<vmem>>, vector<8x88xf32>
    %cst_38 = arith.constant dense<0.000000e+00> : vector<8x32xf32>
    %38 = tpu.matmul %37, %36, %cst_38 {dimension_numbers = #tpu.dot_dimension_numbers<[1], [0], [0], [1], [0, 0, 1, 1], [], []>} : vector<8x88xf32>, vector<88x32xf32>, vector<8x32xf32> -> vector<8x32xf32>
    %c0_39 = arith.constant 0 : index
    %c0_40 = arith.constant 0 : index
    %39 = vector.load %arg5[%c0_39, %c0_40] : memref<1x32xf32, #tpu.memory_space<vmem>>, vector<1x32xf32>
    %40 = vector.broadcast %39 : vector<1x32xf32> to vector<8x32xf32>
    %41 = arith.addf %38, %40 : vector<8x32xf32>
    %cst_41 = arith.constant 0.000000e+00 : f32
    %42 = vector.broadcast %cst_41 : f32 to vector<8x32xf32>
    %43 = arith.subf %42, %41 : vector<8x32xf32>
    %44 = math.exp %43 : vector<8x32xf32>
    %cst_42 = arith.constant 1.000000e+00 : f32
    %45 = vector.broadcast %cst_42 : f32 to vector<8x32xf32>
    %46 = arith.addf %45, %44 : vector<8x32xf32>
    %cst_43 = arith.constant 1.000000e+00 : f32
    %47 = vector.broadcast %cst_43 : f32 to vector<8x32xf32>
    %48 = arith.divf %47, %46 : vector<8x32xf32>
    %cst_44 = arith.constant dense<0xFF800000> : vector<8xf32>
    %49 = vector.multi_reduction <maximumf>, %48, %cst_44 [1] : vector<8x32xf32> to vector<8xf32>
    %50 = vector.shape_cast %49 : vector<8xf32> to vector<8x1xf32>
    %51 = vector.broadcast %50 : vector<8x1xf32> to vector<8x32xf32>
    %52 = arith.subf %48, %51 : vector<8x32xf32>
    %53 = math.exp %52 : vector<8x32xf32>
    %cst_45 = arith.constant dense<0.000000e+00> : vector<8xf32>
    %54 = vector.multi_reduction <add>, %53, %cst_45 [1] : vector<8x32xf32> to vector<8xf32>
    %55 = vector.shape_cast %54 : vector<8xf32> to vector<8x1xf32>
    %56 = vector.broadcast %55 : vector<8x1xf32> to vector<8x32xf32>
    %57 = arith.divf %53, %56 : vector<8x32xf32>
    %c0_46 = arith.constant 0 : index
    %c0_47 = arith.constant 0 : index
    %58 = vector.load %arg6[%c0_46, %c0_47] : memref<88x8xf32, #tpu.memory_space<vmem>>, vector<88x8xf32>
    %cst_48 = arith.constant dense<0.000000e+00> : vector<88x32xf32>
    %59 = tpu.matmul %58, %57, %cst_48 {dimension_numbers = #tpu.dot_dimension_numbers<[1], [0], [0], [1], [0, 0, 1, 1], [], []>} : vector<88x8xf32>, vector<8x32xf32>, vector<88x32xf32> -> vector<88x32xf32>
    %60 = arith.mulf %36, %59 : vector<88x32xf32>
    %c0_49 = arith.constant 0 : index
    %c0_50 = arith.constant 0 : index
    %61 = vector.load %arg7[%c0_49, %c0_50] : memref<88x32xf32, #tpu.memory_space<vmem>>, vector<88x32xf32>
    %62 = arith.addf %60, %61 : vector<88x32xf32>
    %63 = tpu.iota {dimensions = array<i32: 0>} : vector<88x88xi32>
    %64 = tpu.iota {dimensions = array<i32: 1>} : vector<88x88xi32>
    %c7_i32 = arith.constant 7 : i32
    %65 = vector.broadcast %c7_i32 : i32 to vector<88x88xi32>
    %66 = arith.andi %63, %65 : vector<88x88xi32>
    %c7_i32_51 = arith.constant 7 : i32
    %67 = vector.broadcast %c7_i32_51 : i32 to vector<88x88xi32>
    %68 = arith.andi %64, %67 : vector<88x88xi32>
    %69 = arith.cmpi eq, %66, %68 : vector<88x88xi32>
    %cst_52 = arith.constant 0.000000e+00 : f32
    %cst_53 = arith.constant -1.000000e+30 : f32
    %70 = vector.broadcast %cst_52 : f32 to vector<88x88xf32>
    %71 = vector.broadcast %cst_53 : f32 to vector<88x88xf32>
    %72 = arith.select %69, %70, %71 : vector<88x88xi1>, vector<88x88xf32>
    %c0_54 = arith.constant 0 : index
    %c0_55 = arith.constant 0 : index
    %c0_56 = arith.constant 0 : index
    %73 = vector.load %arg8[%c0_54, %c0_55, %c0_56] : memref<1x32x96xf32, #tpu.memory_space<vmem>>, vector<1x32x96xf32>
    %74 = vector.shape_cast %73 : vector<1x32x96xf32> to vector<32x96xf32>
    %cst_57 = arith.constant dense<0.000000e+00> : vector<88x96xf32>
    %75 = tpu.matmul %62, %74, %cst_57 {dimension_numbers = #tpu.dot_dimension_numbers<[1], [0], [0], [1], [0, 0, 1, 1], [], []>} : vector<88x32xf32>, vector<32x96xf32>, vector<88x96xf32> -> vector<88x96xf32>
    %c0_58 = arith.constant 0 : index
    %c0_59 = arith.constant 0 : index
    %c0_60 = arith.constant 0 : index
    %76 = vector.load %arg9[%c0_58, %c0_59, %c0_60] : memref<1x1x96xf32, #tpu.memory_space<vmem>>, vector<1x1x96xf32>
    %77 = vector.shape_cast %76 : vector<1x1x96xf32> to vector<1x96xf32>
    %78 = vector.broadcast %77 : vector<1x96xf32> to vector<88x96xf32>
    %79 = arith.addf %75, %78 : vector<88x96xf32>
    %80 = vector.extract_strided_slice %79 {offsets = [0, 32], sizes = [88, 32], strides = [1, 1]} : vector<88x96xf32> to vector<88x32xf32>
    %81 = tpu.transpose %80, [1, 0] : vector<88x32xf32> -> vector<32x88xf32>
    %c0_61 = arith.constant 0 : index
    %c0_62 = arith.constant 0 : index
    %c0_63 = arith.constant 0 : index
    %82 = vector.load %arg10[%c0_61, %c0_62, %c0_63] : memref<1x32x32xf32, #tpu.memory_space<vmem>>, vector<1x32x32xf32>
    %83 = vector.shape_cast %82 : vector<1x32x32xf32> to vector<32x32xf32>
    %cst_64 = arith.constant 0.000000e+00 : f32
    %84 = vector.broadcast %cst_64 : f32 to vector<88x32xf32>
    %85 = vector.extract_strided_slice %79 {offsets = [0, 0], sizes = [88, 8], strides = [1, 1]} : vector<88x96xf32> to vector<88x8xf32>
    %86 = vector.extract_strided_slice %81 {offsets = [0, 0], sizes = [8, 88], strides = [1, 1]} : vector<32x88xf32> to vector<8x88xf32>
    %87 = vector.extract_strided_slice %79 {offsets = [0, 64], sizes = [88, 8], strides = [1, 1]} : vector<88x96xf32> to vector<88x8xf32>
    %cst_65 = arith.constant dense<0.000000e+00> : vector<88x88xf32>
    %88 = tpu.matmul %85, %86, %cst_65 {dimension_numbers = #tpu.dot_dimension_numbers<[1], [0], [0], [1], [0, 0, 1, 1], [], []>} : vector<88x8xf32>, vector<8x88xf32>, vector<88x88xf32> -> vector<88x88xf32>
    %89 = arith.addf %88, %72 : vector<88x88xf32>
    %cst_66 = arith.constant dense<0xFF800000> : vector<88xf32>
    %90 = vector.multi_reduction <maximumf>, %89, %cst_66 [1] : vector<88x88xf32> to vector<88xf32>
    %91 = vector.shape_cast %90 : vector<88xf32> to vector<88x1xf32>
    %92 = vector.broadcast %91 : vector<88x1xf32> to vector<88x88xf32>
    %93 = arith.subf %89, %92 : vector<88x88xf32>
    %94 = math.exp %93 : vector<88x88xf32>
    %cst_67 = arith.constant dense<0.000000e+00> : vector<88xf32>
    %95 = vector.multi_reduction <add>, %94, %cst_67 [1] : vector<88x88xf32> to vector<88xf32>
    %96 = vector.shape_cast %95 : vector<88xf32> to vector<88x1xf32>
    %97 = vector.broadcast %96 : vector<88x1xf32> to vector<88x88xf32>
    %98 = arith.divf %94, %97 : vector<88x88xf32>
    %cst_68 = arith.constant dense<0.000000e+00> : vector<88x8xf32>
    %99 = tpu.matmul %98, %87, %cst_68 {dimension_numbers = #tpu.dot_dimension_numbers<[1], [0], [0], [1], [0, 0, 1, 1], [], []>} : vector<88x88xf32>, vector<88x8xf32>, vector<88x8xf32> -> vector<88x8xf32>
    %100 = vector.extract_strided_slice %83 {offsets = [0, 0], sizes = [8, 32], strides = [1, 1]} : vector<32x32xf32> to vector<8x32xf32>
    %cst_69 = arith.constant dense<0.000000e+00> : vector<88x32xf32>
    %101 = tpu.matmul %99, %100, %cst_69 {dimension_numbers = #tpu.dot_dimension_numbers<[1], [0], [0], [1], [0, 0, 1, 1], [], []>} : vector<88x8xf32>, vector<8x32xf32>, vector<88x32xf32> -> vector<88x32xf32>
    %102 = arith.addf %84, %101 : vector<88x32xf32>
    %103 = vector.extract_strided_slice %79 {offsets = [0, 8], sizes = [88, 8], strides = [1, 1]} : vector<88x96xf32> to vector<88x8xf32>
    %104 = vector.extract_strided_slice %81 {offsets = [8, 0], sizes = [8, 88], strides = [1, 1]} : vector<32x88xf32> to vector<8x88xf32>
    %105 = vector.extract_strided_slice %79 {offsets = [0, 72], sizes = [88, 8], strides = [1, 1]} : vector<88x96xf32> to vector<88x8xf32>
    %cst_70 = arith.constant dense<0.000000e+00> : vector<88x88xf32>
    %106 = tpu.matmul %103, %104, %cst_70 {dimension_numbers = #tpu.dot_dimension_numbers<[1], [0], [0], [1], [0, 0, 1, 1], [], []>} : vector<88x8xf32>, vector<8x88xf32>, vector<88x88xf32> -> vector<88x88xf32>
    %107 = arith.addf %106, %72 : vector<88x88xf32>
    %cst_71 = arith.constant dense<0xFF800000> : vector<88xf32>
    %108 = vector.multi_reduction <maximumf>, %107, %cst_71 [1] : vector<88x88xf32> to vector<88xf32>
    %109 = vector.shape_cast %108 : vector<88xf32> to vector<88x1xf32>
    %110 = vector.broadcast %109 : vector<88x1xf32> to vector<88x88xf32>
    %111 = arith.subf %107, %110 : vector<88x88xf32>
    %112 = math.exp %111 : vector<88x88xf32>
    %cst_72 = arith.constant dense<0.000000e+00> : vector<88xf32>
    %113 = vector.multi_reduction <add>, %112, %cst_72 [1] : vector<88x88xf32> to vector<88xf32>
    %114 = vector.shape_cast %113 : vector<88xf32> to vector<88x1xf32>
    %115 = vector.broadcast %114 : vector<88x1xf32> to vector<88x88xf32>
    %116 = arith.divf %112, %115 : vector<88x88xf32>
    %cst_73 = arith.constant dense<0.000000e+00> : vector<88x8xf32>
    %117 = tpu.matmul %116, %105, %cst_73 {dimension_numbers = #tpu.dot_dimension_numbers<[1], [0], [0], [1], [0, 0, 1, 1], [], []>} : vector<88x88xf32>, vector<88x8xf32>, vector<88x8xf32> -> vector<88x8xf32>
    %118 = vector.extract_strided_slice %83 {offsets = [8, 0], sizes = [8, 32], strides = [1, 1]} : vector<32x32xf32> to vector<8x32xf32>
    %cst_74 = arith.constant dense<0.000000e+00> : vector<88x32xf32>
    %119 = tpu.matmul %117, %118, %cst_74 {dimension_numbers = #tpu.dot_dimension_numbers<[1], [0], [0], [1], [0, 0, 1, 1], [], []>} : vector<88x8xf32>, vector<8x32xf32>, vector<88x32xf32> -> vector<88x32xf32>
    %120 = arith.addf %102, %119 : vector<88x32xf32>
    %121 = vector.extract_strided_slice %79 {offsets = [0, 16], sizes = [88, 8], strides = [1, 1]} : vector<88x96xf32> to vector<88x8xf32>
    %122 = vector.extract_strided_slice %81 {offsets = [16, 0], sizes = [8, 88], strides = [1, 1]} : vector<32x88xf32> to vector<8x88xf32>
    %123 = vector.extract_strided_slice %79 {offsets = [0, 80], sizes = [88, 8], strides = [1, 1]} : vector<88x96xf32> to vector<88x8xf32>
    %cst_75 = arith.constant dense<0.000000e+00> : vector<88x88xf32>
    %124 = tpu.matmul %121, %122, %cst_75 {dimension_numbers = #tpu.dot_dimension_numbers<[1], [0], [0], [1], [0, 0, 1, 1], [], []>} : vector<88x8xf32>, vector<8x88xf32>, vector<88x88xf32> -> vector<88x88xf32>
    %125 = arith.addf %124, %72 : vector<88x88xf32>
    %cst_76 = arith.constant dense<0xFF800000> : vector<88xf32>
    %126 = vector.multi_reduction <maximumf>, %125, %cst_76 [1] : vector<88x88xf32> to vector<88xf32>
    %127 = vector.shape_cast %126 : vector<88xf32> to vector<88x1xf32>
    %128 = vector.broadcast %127 : vector<88x1xf32> to vector<88x88xf32>
    %129 = arith.subf %125, %128 : vector<88x88xf32>
    %130 = math.exp %129 : vector<88x88xf32>
    %cst_77 = arith.constant dense<0.000000e+00> : vector<88xf32>
    %131 = vector.multi_reduction <add>, %130, %cst_77 [1] : vector<88x88xf32> to vector<88xf32>
    %132 = vector.shape_cast %131 : vector<88xf32> to vector<88x1xf32>
    %133 = vector.broadcast %132 : vector<88x1xf32> to vector<88x88xf32>
    %134 = arith.divf %130, %133 : vector<88x88xf32>
    %cst_78 = arith.constant dense<0.000000e+00> : vector<88x8xf32>
    %135 = tpu.matmul %134, %123, %cst_78 {dimension_numbers = #tpu.dot_dimension_numbers<[1], [0], [0], [1], [0, 0, 1, 1], [], []>} : vector<88x88xf32>, vector<88x8xf32>, vector<88x8xf32> -> vector<88x8xf32>
    %136 = vector.extract_strided_slice %83 {offsets = [16, 0], sizes = [8, 32], strides = [1, 1]} : vector<32x32xf32> to vector<8x32xf32>
    %cst_79 = arith.constant dense<0.000000e+00> : vector<88x32xf32>
    %137 = tpu.matmul %135, %136, %cst_79 {dimension_numbers = #tpu.dot_dimension_numbers<[1], [0], [0], [1], [0, 0, 1, 1], [], []>} : vector<88x8xf32>, vector<8x32xf32>, vector<88x32xf32> -> vector<88x32xf32>
    %138 = arith.addf %120, %137 : vector<88x32xf32>
    %139 = vector.extract_strided_slice %79 {offsets = [0, 24], sizes = [88, 8], strides = [1, 1]} : vector<88x96xf32> to vector<88x8xf32>
    %140 = vector.extract_strided_slice %81 {offsets = [24, 0], sizes = [8, 88], strides = [1, 1]} : vector<32x88xf32> to vector<8x88xf32>
    %141 = vector.extract_strided_slice %79 {offsets = [0, 88], sizes = [88, 8], strides = [1, 1]} : vector<88x96xf32> to vector<88x8xf32>
    %cst_80 = arith.constant dense<0.000000e+00> : vector<88x88xf32>
    %142 = tpu.matmul %139, %140, %cst_80 {dimension_numbers = #tpu.dot_dimension_numbers<[1], [0], [0], [1], [0, 0, 1, 1], [], []>} : vector<88x8xf32>, vector<8x88xf32>, vector<88x88xf32> -> vector<88x88xf32>
    %143 = arith.addf %142, %72 : vector<88x88xf32>
    %cst_81 = arith.constant dense<0xFF800000> : vector<88xf32>
    %144 = vector.multi_reduction <maximumf>, %143, %cst_81 [1] : vector<88x88xf32> to vector<88xf32>
    %145 = vector.shape_cast %144 : vector<88xf32> to vector<88x1xf32>
    %146 = vector.broadcast %145 : vector<88x1xf32> to vector<88x88xf32>
    %147 = arith.subf %143, %146 : vector<88x88xf32>
    %148 = math.exp %147 : vector<88x88xf32>
    %cst_82 = arith.constant dense<0.000000e+00> : vector<88xf32>
    %149 = vector.multi_reduction <add>, %148, %cst_82 [1] : vector<88x88xf32> to vector<88xf32>
    %150 = vector.shape_cast %149 : vector<88xf32> to vector<88x1xf32>
    %151 = vector.broadcast %150 : vector<88x1xf32> to vector<88x88xf32>
    %152 = arith.divf %148, %151 : vector<88x88xf32>
    %cst_83 = arith.constant dense<0.000000e+00> : vector<88x8xf32>
    %153 = tpu.matmul %152, %141, %cst_83 {dimension_numbers = #tpu.dot_dimension_numbers<[1], [0], [0], [1], [0, 0, 1, 1], [], []>} : vector<88x88xf32>, vector<88x8xf32>, vector<88x8xf32> -> vector<88x8xf32>
    %154 = vector.extract_strided_slice %83 {offsets = [24, 0], sizes = [8, 32], strides = [1, 1]} : vector<32x32xf32> to vector<8x32xf32>
    %cst_84 = arith.constant dense<0.000000e+00> : vector<88x32xf32>
    %155 = tpu.matmul %153, %154, %cst_84 {dimension_numbers = #tpu.dot_dimension_numbers<[1], [0], [0], [1], [0, 0, 1, 1], [], []>} : vector<88x8xf32>, vector<8x32xf32>, vector<88x32xf32> -> vector<88x32xf32>
    %156 = arith.addf %138, %155 : vector<88x32xf32>
    %157 = arith.addf %62, %156 : vector<88x32xf32>
    %c0_85 = arith.constant 0 : index
    %c0_86 = arith.constant 0 : index
    %c0_87 = arith.constant 0 : index
    %158 = vector.load %arg11[%c0_85, %c0_86, %c0_87] : memref<1x1x32xf32, #tpu.memory_space<vmem>>, vector<1x1x32xf32>
    %159 = vector.shape_cast %158 : vector<1x1x32xf32> to vector<1x32xf32>
    %160 = vector.broadcast %159 : vector<1x32xf32> to vector<88x32xf32>
    %161 = arith.addf %157, %160 : vector<88x32xf32>
    %c0_88 = arith.constant 0 : index
    %c0_89 = arith.constant 0 : index
    %c0_90 = arith.constant 0 : index
    %162 = vector.load %arg12[%c0_88, %c0_89, %c0_90] : memref<1x1x32xf32, #tpu.memory_space<vmem>>, vector<1x1x32xf32>
    %163 = vector.shape_cast %162 : vector<1x1x32xf32> to vector<1x32xf32>
    %c0_91 = arith.constant 0 : index
    %c0_92 = arith.constant 0 : index
    %c0_93 = arith.constant 0 : index
    %164 = vector.load %arg13[%c0_91, %c0_92, %c0_93] : memref<1x1x32xf32, #tpu.memory_space<vmem>>, vector<1x1x32xf32>
    %165 = vector.shape_cast %164 : vector<1x1x32xf32> to vector<1x32xf32>
    %cst_94 = arith.constant dense<0.000000e+00> : vector<88xf32>
    %166 = vector.multi_reduction <add>, %161, %cst_94 [1] : vector<88x32xf32> to vector<88xf32>
    %167 = vector.shape_cast %166 : vector<88xf32> to vector<88x1xf32>
    %cst_95 = arith.constant 3.200000e+01 : f32
    %168 = vector.broadcast %cst_95 : f32 to vector<88x1xf32>
    %169 = arith.divf %167, %168 : vector<88x1xf32>
    %170 = vector.broadcast %169 : vector<88x1xf32> to vector<88x32xf32>
    %171 = arith.subf %161, %170 : vector<88x32xf32>
    %172 = arith.mulf %171, %171 : vector<88x32xf32>
    %cst_96 = arith.constant dense<0.000000e+00> : vector<88xf32>
    %173 = vector.multi_reduction <add>, %172, %cst_96 [1] : vector<88x32xf32> to vector<88xf32>
    %174 = vector.shape_cast %173 : vector<88xf32> to vector<88x1xf32>
    %cst_97 = arith.constant 3.200000e+01 : f32
    %175 = vector.broadcast %cst_97 : f32 to vector<88x1xf32>
    %176 = arith.divf %174, %175 : vector<88x1xf32>
    %177 = vector.broadcast %169 : vector<88x1xf32> to vector<88x32xf32>
    %178 = arith.subf %161, %177 : vector<88x32xf32>
    %cst_98 = arith.constant 9.99999974E-6 : f32
    %179 = vector.broadcast %cst_98 : f32 to vector<88x1xf32>
    %180 = arith.addf %176, %179 : vector<88x1xf32>
    %181 = math.rsqrt %180 : vector<88x1xf32>
    %182 = vector.broadcast %181 : vector<88x1xf32> to vector<88x32xf32>
    %183 = arith.mulf %178, %182 : vector<88x32xf32>
    %184 = vector.broadcast %163 : vector<1x32xf32> to vector<88x32xf32>
    %185 = arith.mulf %183, %184 : vector<88x32xf32>
    %186 = vector.broadcast %165 : vector<1x32xf32> to vector<88x32xf32>
    %187 = arith.addf %185, %186 : vector<88x32xf32>
    %c0_99 = arith.constant 0 : index
    %c0_100 = arith.constant 0 : index
    %c0_101 = arith.constant 0 : index
    %188 = vector.load %arg14[%c0_99, %c0_100, %c0_101] : memref<1x32x64xf32, #tpu.memory_space<vmem>>, vector<1x32x64xf32>
    %189 = vector.shape_cast %188 : vector<1x32x64xf32> to vector<32x64xf32>
    %cst_102 = arith.constant dense<0.000000e+00> : vector<88x64xf32>
    %190 = tpu.matmul %187, %189, %cst_102 {dimension_numbers = #tpu.dot_dimension_numbers<[1], [0], [0], [1], [0, 0, 1, 1], [], []>} : vector<88x32xf32>, vector<32x64xf32>, vector<88x64xf32> -> vector<88x64xf32>
    %c0_103 = arith.constant 0 : index
    %c0_104 = arith.constant 0 : index
    %c0_105 = arith.constant 0 : index
    %191 = vector.load %arg15[%c0_103, %c0_104, %c0_105] : memref<1x1x64xf32, #tpu.memory_space<vmem>>, vector<1x1x64xf32>
    %192 = vector.shape_cast %191 : vector<1x1x64xf32> to vector<1x64xf32>
    %193 = vector.broadcast %192 : vector<1x64xf32> to vector<88x64xf32>
    %194 = arith.addf %190, %193 : vector<88x64xf32>
    %cst_106 = arith.constant 5.000000e-01 : f32
    %195 = vector.broadcast %cst_106 : f32 to vector<88x64xf32>
    %196 = arith.mulf %195, %194 : vector<88x64xf32>
    %cst_107 = arith.constant 0.707106769 : f32
    %197 = vector.broadcast %cst_107 : f32 to vector<88x64xf32>
    %198 = arith.mulf %194, %197 : vector<88x64xf32>
    %199 = math.absf %198 : vector<88x64xf32>
    %cst_108 = arith.constant 5.000000e-01 : f32
    %200 = vector.broadcast %cst_108 : f32 to vector<88x64xf32>
    %201 = arith.mulf %200, %199 : vector<88x64xf32>
    %cst_109 = arith.constant 1.000000e+00 : f32
    %202 = vector.broadcast %cst_109 : f32 to vector<88x64xf32>
    %203 = arith.addf %202, %201 : vector<88x64xf32>
    %cst_110 = arith.constant 1.000000e+00 : f32
    %204 = vector.broadcast %cst_110 : f32 to vector<88x64xf32>
    %205 = arith.divf %204, %203 : vector<88x64xf32>
    %cst_111 = arith.constant 0.170872763 : f32
    %206 = vector.broadcast %cst_111 : f32 to vector<88x64xf32>
    %207 = arith.mulf %205, %206 : vector<88x64xf32>
    %cst_112 = arith.constant -0.822152256 : f32
    %208 = vector.broadcast %cst_112 : f32 to vector<88x64xf32>
    %209 = arith.addf %208, %207 : vector<88x64xf32>
    %210 = arith.mulf %205, %209 : vector<88x64xf32>
    %cst_113 = arith.constant 1.48851585 : f32
    %211 = vector.broadcast %cst_113 : f32 to vector<88x64xf32>
    %212 = arith.addf %211, %210 : vector<88x64xf32>
    %213 = arith.mulf %205, %212 : vector<88x64xf32>
    %cst_114 = arith.constant -1.13520396 : f32
    %214 = vector.broadcast %cst_114 : f32 to vector<88x64xf32>
    %215 = arith.addf %214, %213 : vector<88x64xf32>
    %216 = arith.mulf %205, %215 : vector<88x64xf32>
    %cst_115 = arith.constant 0.278868079 : f32
    %217 = vector.broadcast %cst_115 : f32 to vector<88x64xf32>
    %218 = arith.addf %217, %216 : vector<88x64xf32>
    %219 = arith.mulf %205, %218 : vector<88x64xf32>
    %cst_116 = arith.constant -0.186288059 : f32
    %220 = vector.broadcast %cst_116 : f32 to vector<88x64xf32>
    %221 = arith.addf %220, %219 : vector<88x64xf32>
    %222 = arith.mulf %205, %221 : vector<88x64xf32>
    %cst_117 = arith.constant 0.0967841818 : f32
    %223 = vector.broadcast %cst_117 : f32 to vector<88x64xf32>
    %224 = arith.addf %223, %222 : vector<88x64xf32>
    %225 = arith.mulf %205, %224 : vector<88x64xf32>
    %cst_118 = arith.constant 0.374091953 : f32
    %226 = vector.broadcast %cst_118 : f32 to vector<88x64xf32>
    %227 = arith.addf %226, %225 : vector<88x64xf32>
    %228 = arith.mulf %205, %227 : vector<88x64xf32>
    %cst_119 = arith.constant 1.00002372 : f32
    %229 = vector.broadcast %cst_119 : f32 to vector<88x64xf32>
    %230 = arith.addf %229, %228 : vector<88x64xf32>
    %231 = arith.mulf %205, %230 : vector<88x64xf32>
    %cst_120 = arith.constant -1.26551223 : f32
    %232 = vector.broadcast %cst_120 : f32 to vector<88x64xf32>
    %233 = arith.addf %232, %231 : vector<88x64xf32>
    %cst_121 = arith.constant 0.000000e+00 : f32
    %234 = vector.broadcast %cst_121 : f32 to vector<88x64xf32>
    %235 = arith.subf %234, %199 : vector<88x64xf32>
    %236 = arith.mulf %235, %199 : vector<88x64xf32>
    %237 = arith.addf %236, %233 : vector<88x64xf32>
    %238 = math.exp %237 : vector<88x64xf32>
    %239 = arith.mulf %205, %238 : vector<88x64xf32>
    %cst_122 = arith.constant 0.000000e+00 : f32
    %240 = vector.broadcast %cst_122 : f32 to vector<88x64xf32>
    %241 = arith.cmpf oge, %198, %240 : vector<88x64xf32>
    %cst_123 = arith.constant 1.000000e+00 : f32
    %242 = vector.broadcast %cst_123 : f32 to vector<88x64xf32>
    %243 = arith.subf %242, %239 : vector<88x64xf32>
    %cst_124 = arith.constant 1.000000e+00 : f32
    %244 = vector.broadcast %cst_124 : f32 to vector<88x64xf32>
    %245 = arith.subf %239, %244 : vector<88x64xf32>
    %246 = arith.select %241, %243, %245 : vector<88x64xi1>, vector<88x64xf32>
    %cst_125 = arith.constant 1.000000e+00 : f32
    %247 = vector.broadcast %cst_125 : f32 to vector<88x64xf32>
    %248 = arith.addf %247, %246 : vector<88x64xf32>
    %249 = arith.mulf %196, %248 : vector<88x64xf32>
    %c0_126 = arith.constant 0 : index
    %c0_127 = arith.constant 0 : index
    %c0_128 = arith.constant 0 : index
    %250 = vector.load %arg16[%c0_126, %c0_127, %c0_128] : memref<1x64x32xf32, #tpu.memory_space<vmem>>, vector<1x64x32xf32>
    %251 = vector.shape_cast %250 : vector<1x64x32xf32> to vector<64x32xf32>
    %cst_129 = arith.constant dense<0.000000e+00> : vector<88x32xf32>
    %252 = tpu.matmul %249, %251, %cst_129 {dimension_numbers = #tpu.dot_dimension_numbers<[1], [0], [0], [1], [0, 0, 1, 1], [], []>} : vector<88x64xf32>, vector<64x32xf32>, vector<88x32xf32> -> vector<88x32xf32>
    %c0_130 = arith.constant 0 : index
    %c0_131 = arith.constant 0 : index
    %c0_132 = arith.constant 0 : index
    %253 = vector.load %arg17[%c0_130, %c0_131, %c0_132] : memref<1x1x32xf32, #tpu.memory_space<vmem>>, vector<1x1x32xf32>
    %254 = vector.shape_cast %253 : vector<1x1x32xf32> to vector<1x32xf32>
    %255 = vector.broadcast %254 : vector<1x32xf32> to vector<88x32xf32>
    %256 = arith.addf %252, %255 : vector<88x32xf32>
    %257 = arith.addf %187, %256 : vector<88x32xf32>
    %c0_133 = arith.constant 0 : index
    %c0_134 = arith.constant 0 : index
    %c0_135 = arith.constant 0 : index
    %258 = vector.load %arg18[%c0_133, %c0_134, %c0_135] : memref<1x1x32xf32, #tpu.memory_space<vmem>>, vector<1x1x32xf32>
    %259 = vector.shape_cast %258 : vector<1x1x32xf32> to vector<1x32xf32>
    %c0_136 = arith.constant 0 : index
    %c0_137 = arith.constant 0 : index
    %c0_138 = arith.constant 0 : index
    %260 = vector.load %arg19[%c0_136, %c0_137, %c0_138] : memref<1x1x32xf32, #tpu.memory_space<vmem>>, vector<1x1x32xf32>
    %261 = vector.shape_cast %260 : vector<1x1x32xf32> to vector<1x32xf32>
    %cst_139 = arith.constant dense<0.000000e+00> : vector<88xf32>
    %262 = vector.multi_reduction <add>, %257, %cst_139 [1] : vector<88x32xf32> to vector<88xf32>
    %263 = vector.shape_cast %262 : vector<88xf32> to vector<88x1xf32>
    %cst_140 = arith.constant 3.200000e+01 : f32
    %264 = vector.broadcast %cst_140 : f32 to vector<88x1xf32>
    %265 = arith.divf %263, %264 : vector<88x1xf32>
    %266 = vector.broadcast %265 : vector<88x1xf32> to vector<88x32xf32>
    %267 = arith.subf %257, %266 : vector<88x32xf32>
    %268 = arith.mulf %267, %267 : vector<88x32xf32>
    %cst_141 = arith.constant dense<0.000000e+00> : vector<88xf32>
    %269 = vector.multi_reduction <add>, %268, %cst_141 [1] : vector<88x32xf32> to vector<88xf32>
    %270 = vector.shape_cast %269 : vector<88xf32> to vector<88x1xf32>
    %cst_142 = arith.constant 3.200000e+01 : f32
    %271 = vector.broadcast %cst_142 : f32 to vector<88x1xf32>
    %272 = arith.divf %270, %271 : vector<88x1xf32>
    %273 = vector.broadcast %265 : vector<88x1xf32> to vector<88x32xf32>
    %274 = arith.subf %257, %273 : vector<88x32xf32>
    %cst_143 = arith.constant 9.99999974E-6 : f32
    %275 = vector.broadcast %cst_143 : f32 to vector<88x1xf32>
    %276 = arith.addf %272, %275 : vector<88x1xf32>
    %277 = math.rsqrt %276 : vector<88x1xf32>
    %278 = vector.broadcast %277 : vector<88x1xf32> to vector<88x32xf32>
    %279 = arith.mulf %274, %278 : vector<88x32xf32>
    %280 = vector.broadcast %259 : vector<1x32xf32> to vector<88x32xf32>
    %281 = arith.mulf %279, %280 : vector<88x32xf32>
    %282 = vector.broadcast %261 : vector<1x32xf32> to vector<88x32xf32>
    %283 = arith.addf %281, %282 : vector<88x32xf32>
    %c0_144 = arith.constant 0 : index
    %c0_145 = arith.constant 0 : index
    %284 = vector.load %arg20[%c0_144, %c0_145] : memref<1x32xf32, #tpu.memory_space<vmem>>, vector<1x32xf32>
    %c0_146 = arith.constant 0 : index
    %c0_147 = arith.constant 0 : index
    %285 = vector.load %arg21[%c0_146, %c0_147] : memref<1x32xf32, #tpu.memory_space<vmem>>, vector<1x32xf32>
    %cst_148 = arith.constant dense<0.000000e+00> : vector<88xf32>
    %286 = vector.multi_reduction <add>, %283, %cst_148 [1] : vector<88x32xf32> to vector<88xf32>
    %287 = vector.shape_cast %286 : vector<88xf32> to vector<88x1xf32>
    %cst_149 = arith.constant 3.200000e+01 : f32
    %288 = vector.broadcast %cst_149 : f32 to vector<88x1xf32>
    %289 = arith.divf %287, %288 : vector<88x1xf32>
    %290 = vector.broadcast %289 : vector<88x1xf32> to vector<88x32xf32>
    %291 = arith.subf %283, %290 : vector<88x32xf32>
    %292 = arith.mulf %291, %291 : vector<88x32xf32>
    %cst_150 = arith.constant dense<0.000000e+00> : vector<88xf32>
    %293 = vector.multi_reduction <add>, %292, %cst_150 [1] : vector<88x32xf32> to vector<88xf32>
    %294 = vector.shape_cast %293 : vector<88xf32> to vector<88x1xf32>
    %cst_151 = arith.constant 3.200000e+01 : f32
    %295 = vector.broadcast %cst_151 : f32 to vector<88x1xf32>
    %296 = arith.divf %294, %295 : vector<88x1xf32>
    %297 = vector.broadcast %289 : vector<88x1xf32> to vector<88x32xf32>
    %298 = arith.subf %283, %297 : vector<88x32xf32>
    %cst_152 = arith.constant 9.99999974E-6 : f32
    %299 = vector.broadcast %cst_152 : f32 to vector<88x1xf32>
    %300 = arith.addf %296, %299 : vector<88x1xf32>
    %301 = math.rsqrt %300 : vector<88x1xf32>
    %302 = vector.broadcast %301 : vector<88x1xf32> to vector<88x32xf32>
    %303 = arith.mulf %298, %302 : vector<88x32xf32>
    %304 = vector.broadcast %284 : vector<1x32xf32> to vector<88x32xf32>
    %305 = arith.mulf %303, %304 : vector<88x32xf32>
    %306 = vector.broadcast %285 : vector<1x32xf32> to vector<88x32xf32>
    %307 = arith.addf %305, %306 : vector<88x32xf32>
    %cst_153 = arith.constant 0.000000e+00 : f32
    %308 = vector.broadcast %cst_153 : f32 to vector<8x8xf32>
    %309 = vector.extract_strided_slice %307 {offsets = [0, 0], sizes = [8, 32], strides = [1, 1]} : vector<88x32xf32> to vector<8x32xf32>
    %c0_154 = arith.constant 0 : index
    %c0_155 = arith.constant 0 : index
    %c0_156 = arith.constant 0 : index
    %310 = vector.load %arg22[%c0_154, %c0_155, %c0_156] : memref<11x32x8xf32, #tpu.memory_space<vmem>>, vector<1x32x8xf32>
    %311 = vector.shape_cast %310 : vector<1x32x8xf32> to vector<32x8xf32>
    %cst_157 = arith.constant dense<0.000000e+00> : vector<8x8xf32>
    %312 = tpu.matmul %309, %311, %cst_157 {dimension_numbers = #tpu.dot_dimension_numbers<[1], [0], [0], [1], [0, 0, 1, 1], [], []>} : vector<8x32xf32>, vector<32x8xf32>, vector<8x8xf32> -> vector<8x8xf32>
    %313 = arith.addf %308, %312 : vector<8x8xf32>
    %314 = vector.extract_strided_slice %307 {offsets = [8, 0], sizes = [8, 32], strides = [1, 1]} : vector<88x32xf32> to vector<8x32xf32>
    %c1_158 = arith.constant 1 : index
    %c0_159 = arith.constant 0 : index
    %c0_160 = arith.constant 0 : index
    %315 = vector.load %arg22[%c1_158, %c0_159, %c0_160] : memref<11x32x8xf32, #tpu.memory_space<vmem>>, vector<1x32x8xf32>
    %316 = vector.shape_cast %315 : vector<1x32x8xf32> to vector<32x8xf32>
    %cst_161 = arith.constant dense<0.000000e+00> : vector<8x8xf32>
    %317 = tpu.matmul %314, %316, %cst_161 {dimension_numbers = #tpu.dot_dimension_numbers<[1], [0], [0], [1], [0, 0, 1, 1], [], []>} : vector<8x32xf32>, vector<32x8xf32>, vector<8x8xf32> -> vector<8x8xf32>
    %318 = arith.addf %313, %317 : vector<8x8xf32>
    %319 = vector.extract_strided_slice %307 {offsets = [16, 0], sizes = [8, 32], strides = [1, 1]} : vector<88x32xf32> to vector<8x32xf32>
    %c2_162 = arith.constant 2 : index
    %c0_163 = arith.constant 0 : index
    %c0_164 = arith.constant 0 : index
    %320 = vector.load %arg22[%c2_162, %c0_163, %c0_164] : memref<11x32x8xf32, #tpu.memory_space<vmem>>, vector<1x32x8xf32>
    %321 = vector.shape_cast %320 : vector<1x32x8xf32> to vector<32x8xf32>
    %cst_165 = arith.constant dense<0.000000e+00> : vector<8x8xf32>
    %322 = tpu.matmul %319, %321, %cst_165 {dimension_numbers = #tpu.dot_dimension_numbers<[1], [0], [0], [1], [0, 0, 1, 1], [], []>} : vector<8x32xf32>, vector<32x8xf32>, vector<8x8xf32> -> vector<8x8xf32>
    %323 = arith.addf %318, %322 : vector<8x8xf32>
    %324 = vector.extract_strided_slice %307 {offsets = [24, 0], sizes = [8, 32], strides = [1, 1]} : vector<88x32xf32> to vector<8x32xf32>
    %c3_166 = arith.constant 3 : index
    %c0_167 = arith.constant 0 : index
    %c0_168 = arith.constant 0 : index
    %325 = vector.load %arg22[%c3_166, %c0_167, %c0_168] : memref<11x32x8xf32, #tpu.memory_space<vmem>>, vector<1x32x8xf32>
    %326 = vector.shape_cast %325 : vector<1x32x8xf32> to vector<32x8xf32>
    %cst_169 = arith.constant dense<0.000000e+00> : vector<8x8xf32>
    %327 = tpu.matmul %324, %326, %cst_169 {dimension_numbers = #tpu.dot_dimension_numbers<[1], [0], [0], [1], [0, 0, 1, 1], [], []>} : vector<8x32xf32>, vector<32x8xf32>, vector<8x8xf32> -> vector<8x8xf32>
    %328 = arith.addf %323, %327 : vector<8x8xf32>
    %329 = vector.extract_strided_slice %307 {offsets = [32, 0], sizes = [8, 32], strides = [1, 1]} : vector<88x32xf32> to vector<8x32xf32>
    %c4_170 = arith.constant 4 : index
    %c0_171 = arith.constant 0 : index
    %c0_172 = arith.constant 0 : index
    %330 = vector.load %arg22[%c4_170, %c0_171, %c0_172] : memref<11x32x8xf32, #tpu.memory_space<vmem>>, vector<1x32x8xf32>
    %331 = vector.shape_cast %330 : vector<1x32x8xf32> to vector<32x8xf32>
    %cst_173 = arith.constant dense<0.000000e+00> : vector<8x8xf32>
    %332 = tpu.matmul %329, %331, %cst_173 {dimension_numbers = #tpu.dot_dimension_numbers<[1], [0], [0], [1], [0, 0, 1, 1], [], []>} : vector<8x32xf32>, vector<32x8xf32>, vector<8x8xf32> -> vector<8x8xf32>
    %333 = arith.addf %328, %332 : vector<8x8xf32>
    %334 = vector.extract_strided_slice %307 {offsets = [40, 0], sizes = [8, 32], strides = [1, 1]} : vector<88x32xf32> to vector<8x32xf32>
    %c5_174 = arith.constant 5 : index
    %c0_175 = arith.constant 0 : index
    %c0_176 = arith.constant 0 : index
    %335 = vector.load %arg22[%c5_174, %c0_175, %c0_176] : memref<11x32x8xf32, #tpu.memory_space<vmem>>, vector<1x32x8xf32>
    %336 = vector.shape_cast %335 : vector<1x32x8xf32> to vector<32x8xf32>
    %cst_177 = arith.constant dense<0.000000e+00> : vector<8x8xf32>
    %337 = tpu.matmul %334, %336, %cst_177 {dimension_numbers = #tpu.dot_dimension_numbers<[1], [0], [0], [1], [0, 0, 1, 1], [], []>} : vector<8x32xf32>, vector<32x8xf32>, vector<8x8xf32> -> vector<8x8xf32>
    %338 = arith.addf %333, %337 : vector<8x8xf32>
    %339 = vector.extract_strided_slice %307 {offsets = [48, 0], sizes = [8, 32], strides = [1, 1]} : vector<88x32xf32> to vector<8x32xf32>
    %c6_178 = arith.constant 6 : index
    %c0_179 = arith.constant 0 : index
    %c0_180 = arith.constant 0 : index
    %340 = vector.load %arg22[%c6_178, %c0_179, %c0_180] : memref<11x32x8xf32, #tpu.memory_space<vmem>>, vector<1x32x8xf32>
    %341 = vector.shape_cast %340 : vector<1x32x8xf32> to vector<32x8xf32>
    %cst_181 = arith.constant dense<0.000000e+00> : vector<8x8xf32>
    %342 = tpu.matmul %339, %341, %cst_181 {dimension_numbers = #tpu.dot_dimension_numbers<[1], [0], [0], [1], [0, 0, 1, 1], [], []>} : vector<8x32xf32>, vector<32x8xf32>, vector<8x8xf32> -> vector<8x8xf32>
    %343 = arith.addf %338, %342 : vector<8x8xf32>
    %344 = vector.extract_strided_slice %307 {offsets = [56, 0], sizes = [8, 32], strides = [1, 1]} : vector<88x32xf32> to vector<8x32xf32>
    %c7_182 = arith.constant 7 : index
    %c0_183 = arith.constant 0 : index
    %c0_184 = arith.constant 0 : index
    %345 = vector.load %arg22[%c7_182, %c0_183, %c0_184] : memref<11x32x8xf32, #tpu.memory_space<vmem>>, vector<1x32x8xf32>
    %346 = vector.shape_cast %345 : vector<1x32x8xf32> to vector<32x8xf32>
    %cst_185 = arith.constant dense<0.000000e+00> : vector<8x8xf32>
    %347 = tpu.matmul %344, %346, %cst_185 {dimension_numbers = #tpu.dot_dimension_numbers<[1], [0], [0], [1], [0, 0, 1, 1], [], []>} : vector<8x32xf32>, vector<32x8xf32>, vector<8x8xf32> -> vector<8x8xf32>
    %348 = arith.addf %343, %347 : vector<8x8xf32>
    %349 = vector.extract_strided_slice %307 {offsets = [64, 0], sizes = [8, 32], strides = [1, 1]} : vector<88x32xf32> to vector<8x32xf32>
    %c8_186 = arith.constant 8 : index
    %c0_187 = arith.constant 0 : index
    %c0_188 = arith.constant 0 : index
    %350 = vector.load %arg22[%c8_186, %c0_187, %c0_188] : memref<11x32x8xf32, #tpu.memory_space<vmem>>, vector<1x32x8xf32>
    %351 = vector.shape_cast %350 : vector<1x32x8xf32> to vector<32x8xf32>
    %cst_189 = arith.constant dense<0.000000e+00> : vector<8x8xf32>
    %352 = tpu.matmul %349, %351, %cst_189 {dimension_numbers = #tpu.dot_dimension_numbers<[1], [0], [0], [1], [0, 0, 1, 1], [], []>} : vector<8x32xf32>, vector<32x8xf32>, vector<8x8xf32> -> vector<8x8xf32>
    %353 = arith.addf %348, %352 : vector<8x8xf32>
    %354 = vector.extract_strided_slice %307 {offsets = [72, 0], sizes = [8, 32], strides = [1, 1]} : vector<88x32xf32> to vector<8x32xf32>
    %c9_190 = arith.constant 9 : index
    %c0_191 = arith.constant 0 : index
    %c0_192 = arith.constant 0 : index
    %355 = vector.load %arg22[%c9_190, %c0_191, %c0_192] : memref<11x32x8xf32, #tpu.memory_space<vmem>>, vector<1x32x8xf32>
    %356 = vector.shape_cast %355 : vector<1x32x8xf32> to vector<32x8xf32>
    %cst_193 = arith.constant dense<0.000000e+00> : vector<8x8xf32>
    %357 = tpu.matmul %354, %356, %cst_193 {dimension_numbers = #tpu.dot_dimension_numbers<[1], [0], [0], [1], [0, 0, 1, 1], [], []>} : vector<8x32xf32>, vector<32x8xf32>, vector<8x8xf32> -> vector<8x8xf32>
    %358 = arith.addf %353, %357 : vector<8x8xf32>
    %359 = vector.extract_strided_slice %307 {offsets = [80, 0], sizes = [8, 32], strides = [1, 1]} : vector<88x32xf32> to vector<8x32xf32>
    %c10_194 = arith.constant 10 : index
    %c0_195 = arith.constant 0 : index
    %c0_196 = arith.constant 0 : index
    %360 = vector.load %arg22[%c10_194, %c0_195, %c0_196] : memref<11x32x8xf32, #tpu.memory_space<vmem>>, vector<1x32x8xf32>
    %361 = vector.shape_cast %360 : vector<1x32x8xf32> to vector<32x8xf32>
    %cst_197 = arith.constant dense<0.000000e+00> : vector<8x8xf32>
    %362 = tpu.matmul %359, %361, %cst_197 {dimension_numbers = #tpu.dot_dimension_numbers<[1], [0], [0], [1], [0, 0, 1, 1], [], []>} : vector<8x32xf32>, vector<32x8xf32>, vector<8x8xf32> -> vector<8x8xf32>
    %363 = arith.addf %358, %362 : vector<8x8xf32>
    %c0_198 = arith.constant 0 : index
    %c0_199 = arith.constant 0 : index
    %364 = vector.load %arg23[%c0_198, %c0_199] : memref<1x8xf32, #tpu.memory_space<vmem>>, vector<1x8xf32>
    %365 = vector.broadcast %364 : vector<1x8xf32> to vector<8x8xf32>
    %366 = arith.addf %363, %365 : vector<8x8xf32>
    %c0_200 = arith.constant 0 : index
    %c0_201 = arith.constant 0 : index
    %367 = vector.load %arg24[%c0_200, %c0_201] : memref<8x8xf32, #tpu.memory_space<vmem>>, vector<8x8xf32>
    tpu.vector_store %arg24[%c0_200, %c0_201], %366 {strides = array<i32>} : memref<8x8xf32, #tpu.memory_space<vmem>>, vector<8x8xf32>,
    return
  }
  func.func @transform_0(%arg0: i32) -> (i32, i32) {
    %c0_i32 = arith.constant 0 : i32
    %c0_i32_0 = arith.constant 0 : i32
    %c0_i32_1 = arith.constant 0 : i32
    return %c0_i32, %c0_i32_0 : i32, i32
  }
  func.func @transform_1(%arg0: i32) -> (i32, i32, i32) {
    %c0_i32 = arith.constant 0 : i32
    %c0_i32_0 = arith.constant 0 : i32
    %c0_i32_1 = arith.constant 0 : i32
    %c0_i32_2 = arith.constant 0 : i32
    return %c0_i32, %c0_i32_0, %c0_i32_1 : i32, i32, i32
  }
  func.func @transform_2(%arg0: i32) -> (i32, i32) {
    %c0_i32 = arith.constant 0 : i32
    %c0_i32_0 = arith.constant 0 : i32
    %c0_i32_1 = arith.constant 0 : i32
    return %c0_i32, %c0_i32_0 : i32, i32
  }
  func.func @transform_3(%arg0: i32) -> (i32, i32) {
    %c0_i32 = arith.constant 0 : i32
    %c0_i32_0 = arith.constant 0 : i32
    %c0_i32_1 = arith.constant 0 : i32
    return %c0_i32, %c0_i32_0 : i32, i32
  }
  func.func @transform_4(%arg0: i32) -> (i32, i32) {
    %c0_i32 = arith.constant 0 : i32
    %c0_i32_0 = arith.constant 0 : i32
    %c0_i32_1 = arith.constant 0 : i32
    return %c0_i32, %c0_i32_0 : i32, i32
  }
  func.func @transform_5(%arg0: i32) -> (i32, i32) {
    %c0_i32 = arith.constant 0 : i32
    %c0_i32_0 = arith.constant 0 : i32
    %c0_i32_1 = arith.constant 0 : i32
    return %c0_i32, %c0_i32_0 : i32, i32
  }
  func.func @transform_6(%arg0: i32) -> (i32, i32) {
    %c0_i32 = arith.constant 0 : i32
    %c0_i32_0 = arith.constant 0 : i32
    %c0_i32_1 = arith.constant 0 : i32
    return %c0_i32, %c0_i32_0 : i32, i32
  }
  func.func @transform_7(%arg0: i32) -> (i32, i32, i32) {
    %c0_i32 = arith.constant 0 : i32
    %c0_i32_0 = arith.constant 0 : i32
    %c0_i32_1 = arith.constant 0 : i32
    %c0_i32_2 = arith.constant 0 : i32
    return %c0_i32, %c0_i32_0, %c0_i32_1 : i32, i32, i32
  }
  func.func @transform_8(%arg0: i32) -> (i32, i32, i32) {
    %c0_i32 = arith.constant 0 : i32
    %c0_i32_0 = arith.constant 0 : i32
    %c0_i32_1 = arith.constant 0 : i32
    %c0_i32_2 = arith.constant 0 : i32
    return %c0_i32, %c0_i32_0, %c0_i32_1 : i32, i32, i32
  }
  func.func @transform_9(%arg0: i32) -> (i32, i32, i32) {
    %c0_i32 = arith.constant 0 : i32
    %c0_i32_0 = arith.constant 0 : i32
    %c0_i32_1 = arith.constant 0 : i32
    %c0_i32_2 = arith.constant 0 : i32
    return %c0_i32, %c0_i32_0, %c0_i32_1 : i32, i32, i32
  }
  func.func @transform_10(%arg0: i32) -> (i32, i32, i32) {
    %c0_i32 = arith.constant 0 : i32
    %c0_i32_0 = arith.constant 0 : i32
    %c0_i32_1 = arith.constant 0 : i32
    %c0_i32_2 = arith.constant 0 : i32
    return %c0_i32, %c0_i32_0, %c0_i32_1 : i32, i32, i32
  }
  func.func @transform_11(%arg0: i32) -> (i32, i32, i32) {
    %c0_i32 = arith.constant 0 : i32
    %c0_i32_0 = arith.constant 0 : i32
    %c0_i32_1 = arith.constant 0 : i32
    %c0_i32_2 = arith.constant 0 : i32
    return %c0_i32, %c0_i32_0, %c0_i32_1 : i32, i32, i32
  }
  func.func @transform_12(%arg0: i32) -> (i32, i32, i32) {
    %c0_i32 = arith.constant 0 : i32
    %c0_i32_0 = arith.constant 0 : i32
    %c0_i32_1 = arith.constant 0 : i32
    %c0_i32_2 = arith.constant 0 : i32
    return %c0_i32, %c0_i32_0, %c0_i32_1 : i32, i32, i32
  }
  func.func @transform_13(%arg0: i32) -> (i32, i32, i32) {
    %c0_i32 = arith.constant 0 : i32
    %c0_i32_0 = arith.constant 0 : i32
    %c0_i32_1 = arith.constant 0 : i32
    %c0_i32_2 = arith.constant 0 : i32
    return %c0_i32, %c0_i32_0, %c0_i32_1 : i32, i32, i32
  }
  func.func @transform_14(%arg0: i32) -> (i32, i32, i32) {
    %c0_i32 = arith.constant 0 : i32
    %c0_i32_0 = arith.constant 0 : i32
    %c0_i32_1 = arith.constant 0 : i32
    %c0_i32_2 = arith.constant 0 : i32
    return %c0_i32, %c0_i32_0, %c0_i32_1 : i32, i32, i32
  }
  func.func @transform_15(%arg0: i32) -> (i32, i32, i32) {
    %c0_i32 = arith.constant 0 : i32
    %c0_i32_0 = arith.constant 0 : i32
    %c0_i32_1 = arith.constant 0 : i32
    %c0_i32_2 = arith.constant 0 : i32
    return %c0_i32, %c0_i32_0, %c0_i32_1 : i32, i32, i32
  }
  func.func @transform_16(%arg0: i32) -> (i32, i32, i32) {
    %c0_i32 = arith.constant 0 : i32
    %c0_i32_0 = arith.constant 0 : i32
    %c0_i32_1 = arith.constant 0 : i32
    %c0_i32_2 = arith.constant 0 : i32
    return %c0_i32, %c0_i32_0, %c0_i32_1 : i32, i32, i32
  }
  func.func @transform_17(%arg0: i32) -> (i32, i32, i32) {
    %c0_i32 = arith.constant 0 : i32
    %c0_i32_0 = arith.constant 0 : i32
    %c0_i32_1 = arith.constant 0 : i32
    %c0_i32_2 = arith.constant 0 : i32
    return %c0_i32, %c0_i32_0, %c0_i32_1 : i32, i32, i32
  }
  func.func @transform_18(%arg0: i32) -> (i32, i32, i32) {
    %c0_i32 = arith.constant 0 : i32
    %c0_i32_0 = arith.constant 0 : i32
    %c0_i32_1 = arith.constant 0 : i32
    %c0_i32_2 = arith.constant 0 : i32
    return %c0_i32, %c0_i32_0, %c0_i32_1 : i32, i32, i32
  }
  func.func @transform_19(%arg0: i32) -> (i32, i32) {
    %c0_i32 = arith.constant 0 : i32
    %c0_i32_0 = arith.constant 0 : i32
    %c0_i32_1 = arith.constant 0 : i32
    return %c0_i32, %c0_i32_0 : i32, i32
  }
  func.func @transform_20(%arg0: i32) -> (i32, i32) {
    %c0_i32 = arith.constant 0 : i32
    %c0_i32_0 = arith.constant 0 : i32
    %c0_i32_1 = arith.constant 0 : i32
    return %c0_i32, %c0_i32_0 : i32, i32
  }
  func.func @transform_21(%arg0: i32) -> (i32, i32, i32) {
    %c0_i32 = arith.constant 0 : i32
    %c0_i32_0 = arith.constant 0 : i32
    %c0_i32_1 = arith.constant 0 : i32
    %c0_i32_2 = arith.constant 0 : i32
    return %c0_i32, %c0_i32_0, %c0_i32_1 : i32, i32, i32
  }
  func.func @transform_22(%arg0: i32) -> (i32, i32) {
    %c0_i32 = arith.constant 0 : i32
    %c0_i32_0 = arith.constant 0 : i32
    %c0_i32_1 = arith.constant 0 : i32
    return %c0_i32, %c0_i32_0 : i32, i32
  }
  func.func @transform_23(%arg0: i32) -> (i32, i32) {
    %c0_i32 = arith.constant 0 : i32
    %c0_i32_0 = arith.constant 0 : i32
    %c0_i32_1 = arith.constant 0 : i32
    return %c0_i32, %c0_i32_0 : i32, i32
  }
}

</mosaic_0001>

<bundles_post_ra>
// kernel: x_layer_forward.1
= control target key start
LH: loop header
LB: loop body
LE: loop exit
PB: predicated region body
PF: predicated region fallthrough
CT: control target
= control target key end

     0   :  { %s8869_s0 = inlined_call_operand.vmem [shape: f32[8,16], index: 0, kind: input, shape index: {}]   ;;  %s8870_s1 = inlined_call_operand.vmem [shape: f32[11,16,32], index: 1, kind: input, shape index: {}]   ;;  %s8871_s2 = inlined_call_operand.vmem [shape: f32[88,32], index: 2, kind: input, shape index: {}]   ;;  %s8872_s3 = inlined_call_operand.vmem [shape: f32[8,88], index: 3, kind: input, shape index: {}]   ;;  %s8873_s4 = inlined_call_operand.vmem [shape: f32[1,32], index: 4, kind: input, shape index: {}]   ;;  %s8874_s5 = inlined_call_operand.vmem [shape: f32[88,8], index: 5, kind: input, shape index: {}]   ;;  %s8875_s6 = inlined_call_operand.vmem [shape: f32[88,32], index: 6, kind: input, shape index: {}]   ;;  %s8876_s7 = inlined_call_operand.vmem [shape: f32[1,32,96], index: 7, kind: input, shape index: {}]   ;;  %s8877_s8 = inlined_call_operand.vmem [shape: f32[1,1,96], index: 8, kind: input, shape index: {}]   ;;  %s8878_s9 = inlined_call_operand.vmem [shape: f32[1,32,32], index: 9, kind: input, shape index: {}]   ;;  %s8879_s10 = inlined_call_operand.vmem [shape: f32[1,1,32], index: 10, kind: input, shape index: {}]   ;;  %s8880_s11 = inlined_call_operand.vmem [shape: f32[1,1,32], index: 11, kind: input, shape index: {}]   ;;  %s8881_s12 = inlined_call_operand.vmem [shape: f32[1,1,32], index: 12, kind: input, shape index: {}]   ;;  %s8882_s13 = inlined_call_operand.vmem [shape: f32[1,32,64], index: 13, kind: input, shape index: {}]   ;;  %s8883_s14 = inlined_call_operand.vmem [shape: f32[1,1,64], index: 14, kind: input, shape index: {}]   ;;  %s8884_s15 = inlined_call_operand.vmem [shape: f32[1,64,32], index: 15, kind: input, shape index: {}]   ;;  %s8885_s16 = inlined_call_operand.vmem [shape: f32[1,1,32], index: 16, kind: input, shape index: {}]   ;;  %s8886_s17 = inlined_call_operand.vmem [shape: f32[1,1,32], index: 17, kind: input, shape index: {}]   ;;  %s8887_s18 = inlined_call_operand.vmem [shape: f32[1,1,32], index: 18, kind: input, shape index: {}]   ;;  %s8888_s19 = inlined_call_operand.vmem [shape: f32[1,32], index: 19, kind: input, shape index: {}]   ;;  %s8889_s20 = inlined_call_operand.vmem [shape: f32[1,32], index: 20, kind: input, shape index: {}]   ;;  %s8890_s21 = inlined_call_operand.vmem [shape: f32[11,32,8], index: 21, kind: input, shape index: {}]   ;;  %s8891_s22 = inlined_call_operand.vmem [shape: f32[1,8], index: 22, kind: input, shape index: {}]   ;;  %s8892_s23 = inlined_call_operand.hbm [shape: f32[8,8], index: 23, kind: output, shape index: {}]  }
   0x1   :  { %8910 = sst [smem:[#allocation20_spill]] %s8869_s0 }
   0x2   :  { %8911 = sst [smem:[#allocation21_spill]] %s8870_s1 }
   0x3   :  { %8912 = sst [smem:[#allocation22_spill]] %s8871_s2 }
   0x4   :  { %8913 = sst [smem:[#allocation23_spill]] %s8872_s3 }
   0x5   :  { %8914 = sst [smem:[#allocation24_spill]] %s8873_s4 }
   0x6   :  { %8915 = sst [smem:[#allocation25_spill]] %s8874_s5 }
   0x7   :  { %8916 = sst [smem:[#allocation26_spill]] %s8875_s6 }
   0x8   :  { %8917 = sst [smem:[#allocation27_spill]] %s8876_s7 }
   0x9   :  { %s8918_s24 = sld [smem:[#allocation21_spill]]  ;;  %vm78_vm0 = vcmask 130048  }
   0xa   :  { %s8919_s2 = sld [smem:[#allocation20_spill]] }
   0xf   :  { %v5053_v0 = vld [vmem:[%s8918_s24 + $0x28] sm:$0xff]  ;;  %v5052_v1 = vld [vmem:[%s8918_s24 + $0x20] sm:$0xff]  ;;  %v5050_v3 = vld [vmem:[%s8918_s24 + $0x18] sm:$0xff] }
  0x10   :  { %142 = vmatpush.msra.mxu2 %v5053_v0  ;;  %v75_v2 = vld [vmem:[%s8919_s2] sm:$0xff]  ;;  %v77_v4 = vld [vmem:[%s8918_s24 + $0x8] sm:$0xff]  ;;  %119 = vmatpush.msra.mxu1 %v5050_v3  ;;  %v5049_v6 = vld [vmem:[%s8918_s24 + $0x10] sm:$0xff] }
  0x11   :  { %v5065_v5 = vld [vmem:[%s8918_s24 + $0x68] sm:$0xff]  ;;  %96 = vmatpush.msra.mxu0 %v77_v4  ;;  %v76_v7 = vld [vmem:[%s8918_s24] sm:$0xff]  ;;  %v5056_v8 = vld [vmem:[%s8918_s24 + $0x38] sm:$0xff] }
  0x12   :  { %143 = vmatpush.msra.mxu2 %v5052_v1  ;;  %120 = vmatpush.msra.mxu1 %v5049_v6  ;;  %v5064_v9 = vld [vmem:[%s8918_s24 + $0x60] sm:$0xff]  ;;  %v5055_v10 = vld [vmem:[%s8918_s24 + $0x30] sm:$0xff]  ;;  %v5062_v11 = vld [vmem:[%s8918_s24 + $0x58] sm:$0xff] }
  0x13   :  { %5054 = vmatmul.msk.f32.vlgmr.msra.gmra.mxu2 %vm78_vm0, %v75_v2  ;;  %5051 = vmatmul.msk.f32.vlgmr.msra.gmra.mxu1 %vm78_vm0, %v75_v2  ;;  %v5077_v12 = vld [vmem:[%s8918_s24 + $0xa8] sm:$0xff]  ;;  %v5061_v14 = vld [vmem:[%s8918_s24 + $0x50] sm:$0xff]  ;;  %v5076_v15 = vld [vmem:[%s8918_s24 + $0xa0] sm:$0xff] }
  0x14   :  { %234 = vmatpush.msrb.mxu2 %v5065_v5  ;;  %97 = vmatpush.msra.mxu0 %v76_v7  ;;  %v5059_v13 = vld [vmem:[%s8918_s24 + $0x48] sm:$0xff]  ;;  %v5058_v16 = vld [vmem:[%s8918_s24 + $0x40] sm:$0xff]  ;;  %v5068_v17 = vld [vmem:[%s8918_s24 + $0x78] sm:$0xff] }
  0x15   :  { %165 = vmatpush.msra.mxu3 %v5056_v8  ;;  %5048 = vmatmul.msk.f32.vlgmr.msra.gmra.mxu0 %vm78_vm0, %v75_v2  ;;  %v5067_v18 = vld [vmem:[%s8918_s24 + $0x70] sm:$0xff]  ;;  %v5074_v19 = vld [vmem:[%s8918_s24 + $0x98] sm:$0xff]  ;;  %v5071_v20 = vld [vmem:[%s8918_s24 + $0x88] sm:$0xff] }
  0x16   :  { %235 = vmatpush.msrb.mxu2 %v5064_v9  ;;  %211 = vmatpush.msrb.mxu1 %v5062_v11 }
  0x17   :  { %166 = vmatpush.msra.mxu3 %v5055_v10  ;;  %188 = vmatpush.msrb.mxu0 %v5059_v13 }
  0x18   :  { %326 = vmatpush.msra.mxu2 %v5077_v12  ;;  %5057 = vmatmul.msk.f32.vlgmr.msra.gmra.mxu3 %vm78_vm0, %v75_v2 }
  0x19   :  { %212 = vmatpush.msrb.mxu1 %v5061_v14  ;;  %257 = vmatpush.msrb.mxu3 %v5068_v17 }
  0x1a   :  { %327 = vmatpush.msra.mxu2 %v5076_v15 }
  0x1b   :  { %28 = vsyncpa [#allocation3], 0  ;;  %5066 = vmatmul.msk.f32.vlgmr.msrb.gmra.mxu2 %vm78_vm0, %v75_v2  ;;  %189 = vmatpush.msrb.mxu0 %v5058_v16  ;;  %v5073_v21 = vld [vmem:[%s8918_s24 + $0x90] sm:$0xff]  ;;  %v5070_v22 = vld [vmem:[%s8918_s24 + $0x80] sm:$0xff]  ;;  %s8920_s2 = sld [smem:[#allocation22_spill]]  ;;  %vm359_vm1 = vcmask 719872  }
  0x1c   :  { %5063 = vmatmul.msk.f32.vlgmr.msrb.gmra.mxu1 %vm78_vm0, %v75_v2  ;;  %258 = vmatpush.msrb.mxu3 %v5067_v18  ;;  %s8921_s30 = sld [smem:[#allocation23_spill]]  ;;  %vm402_vm5 = vcmask 261120   ;;  %vm438_vm11 = vcmask 64512   ;;  %s5814_s1 = smov 120  }
  0x1d   :  { %303 = vmatpush.msra.mxu1 %v5074_v19  ;;  %280 = vmatpush.msra.mxu0 %v5071_v20  ;;  %s8923_s26 = sld [smem:[#allocation25_spill]]  ;;  %s5815_s24 = smov 72  }
  0x1e   :  { %5060 = vmatmul.msk.f32.vlgmr.msrb.gmra.mxu0 %vm78_vm0, %v75_v2  ;;  %s8924_s6 = sld [smem:[#allocation27_spill]]  ;;  %s5816_s27 = smov 80  }
  0x1f   :  { %304 = vmatpush.msra.mxu1 %v5073_v21  ;;  %281 = vmatpush.msra.mxu0 %v5070_v22  ;;  %s8925_s28 = sld [smem:[#allocation26_spill]]  ;;  %s5817_s7 = smov 104  }
  0x20   :  { %5069 = vmatmul.msk.f32.vlgmr.msrb.gmra.mxu3 %vm78_vm0, %v75_v2  ;;  %s5820_s0 = smov 40   ;;  %s5821_s4 = smov 48  }
  0x21   :  { %v342_v30 = vld [vmem:[%s8920_s2 + $0x50] sm:$0xff]  ;;  %v341_v32 = vld [vmem:[%s8920_s2 + $0x48] sm:$0xff]  ;;  %v340_v35 = vld [vmem:[%s8920_s2 + $0x40] sm:$0xff] }
  0x22   :  { %v339_v39 = vld [vmem:[%s8920_s2 + $0x38] sm:$0xff]  ;;  %v338_v42 = vld [vmem:[%s8920_s2 + $0x30] sm:$0xff]  ;;  %v337_v43 = vld [vmem:[%s8920_s2 + $0x28] sm:$0xff] }
  0x23   :  { %5078 = vmatmul.msk.f32.vlgmr.msra.gmra.mxu2 %vm78_vm0, %v75_v2  ;;  %v336_v45 = vld [vmem:[%s8920_s2 + $0x20] sm:$0xff]  ;;  %v335_v47 = vld [vmem:[%s8920_s2 + $0x18] sm:$0xff]  ;;  %v334_v49 = vld [vmem:[%s8920_s2 + $0x10] sm:$0xff] }
  0x24   :  { %5075 = vmatmul.msk.f32.vlgmr.msra.gmra.mxu1 %vm78_vm0, %v75_v2  ;;  %v333_v51 = vld [vmem:[%s8920_s2 + $0x8] sm:$0xff]  ;;  %v332_v53 = vld [vmem:[%s8920_s2] sm:$0xff]  ;;  %s8922_s2 = sld [smem:[#allocation24_spill]] }
  0x25   :  { %v354_v56 = vld [vmem:[%s8921_s30] sm:$0xff] }
  0x26   :  { %5072 = vmatmul.msk.f32.vlgmr.msra.gmra.mxu0 %vm78_vm0, %v75_v2 }
  0x2a   :  { %v5476_v57 = vld [vmem:[%s8922_s2] ss:$0 sm:$0xff]  ;;  %s5812_s2 = smov 88  }
  0x90   :  { %v122_v23 = vpop.f32.mrf.mxu1 }
  0x91   :  { %v6083_v54 = vadd.f32 %v333_v51, %v122_v23 }
  0x92   :  { %v99_v24 = vpop.f32.mrf.mxu0 }
  0x93   :  { %v6086_v55 = vadd.f32 %v332_v53, %v99_v24  ;;  %v533_v53 = vld [vmem:[%s8925_s28] sm:$0xff] }
  0x96   :  { %v145_v25 = vpop.f32.mrf.mxu2 }
  0x97   :  { %v6077_v52 = vadd.f32 %v334_v49, %v145_v25  ;;  %v603_v49 = vld [vmem:[%s8924_s6] sm:$0xff] }
  0x99   :  { %v214_v26 = vpop.f32.mrf.mxu1 }
  0x9a   :  { %v6059_v46 = vadd.f32 %v337_v43, %v214_v26  ;;  %v437_v43 = vld [vmem:[%s8923_s26 + $0x50] sm:$0xff] }
  0x9b   :  { %v191_v27 = vpop.f32.mrf.mxu0  ;;  %v168_v29 = vpop.f32.mrf.mxu3 }
  0x9c   :  { %v6065_v48 = vadd.f32 %v336_v45, %v191_v27  ;;  %v6071_v50 = vadd.f32 %v335_v47, %v168_v29  ;;  %v428_v29 = vld [vmem:[%s8923_s26 + $0x8] sm:$0xff]  ;;  %v605_v45 = vld [vmem:[%s8924_s6 + $0x10] sm:$0xff] }
  0x9d   :  { %v604_v47 = vld [vmem:[%s8924_s6 + $0x8] sm:$0xff] }
  0x9e   :  { %v237_v28 = vpop.f32.mrf.mxu2 }
  0x9f   :  { %v6053_v44 = vadd.f32 %v338_v42, %v237_v28  ;;  %v427_v28 = vld [vmem:[%s8923_s26] sm:$0xff]  ;;  %v436_v42 = vld [vmem:[%s8923_s26 + $0x48] sm:$0xff] }
  0xa1   :  { %v306_v31 = vpop.f32.mrf.mxu1 }
  0xa2   :  { %v6035_v37 = vadd.f32 %v341_v32, %v306_v31  ;;  %v430_v31 = vld [vmem:[%s8923_s26 + $0x18] sm:$0xff]  ;;  %v431_v32 = vld [vmem:[%s8923_s26 + $0x20] sm:$0xff] }
  0xa3   :  { %v283_v34 = vpop.f32.mrf.mxu0  ;;  %v260_v38 = vpop.f32.mrf.mxu3 }
  0xa4   :  { %v6041_v40 = vadd.f32 %v340_v35, %v283_v34  ;;  %v6044_v41 = vadd.f32 %v339_v39, %v260_v38  ;;  %v433_v34 = vld [vmem:[%s8923_s26 + $0x30] sm:$0xff]  ;;  %v606_v35 = vld [vmem:[%s8924_s6 + $0x18] sm:$0xff]  ;;  %v435_v39 = vld [vmem:[%s8923_s26 + $0x40] sm:$0xff]  ;;  %s5819_s6 = smov 56  }
  0xa5   :  { %656 = vmatpush.msrb.mxu1 %v606_v35  ;;  %v434_v38 = vld [vmem:[%s8923_s26 + $0x38] sm:$0xff] }
  0xa6   :  { %v329_v33 = vpop.f32.mrf.mxu2 }
  0xa7   :  { %v6033_v36 = vadd.f32 %v342_v30, %v329_v33  ;;  %v429_v30 = vld [vmem:[%s8923_s26 + $0x10] sm:$0xff]  ;;  %v432_v33 = vld [vmem:[%s8923_s26 + $0x28] sm:$0xff]  ;;  %657 = vmatpush.msrb.mxu1 %v605_v45  ;;  %s5818_s26 = smov 112  }
  0xa9   :  { %368 = vmatpush.msra.mxu3 %v6033_v36  ;;  %658 = vmatpush.msrb.mxu1 %v604_v47 }
  0xab   :  { %369 = vmatpush.msra.mxu3 %v6035_v37  ;;  %659 = vmatpush.msrb.mxu1 %v603_v49 }
  0xad   :  { %370 = vmatpush.msra.mxu3 %v6041_v40 }
  0xaf   :  { %371 = vmatpush.msra.mxu3 %v6044_v41 }
  0xb1   :  { %372 = vmatpush.msra.mxu3 %v6053_v44 }
  0xb3   :  { %373 = vmatpush.msra.mxu3 %v6059_v46 }
  0xb5   :  { %374 = vmatpush.msra.mxu3 %v6065_v48 }
  0xb7   :  { %375 = vmatpush.msra.mxu3 %v6071_v50 }
  0xb9   :  { %376 = vmatpush.msra.mxu3 %v6077_v52 }
  0xbb   :  { %377 = vmatpush.msra.mxu3 %v6083_v54 }
  0xbd   :  { %378 = vmatpush.msra.mxu3 %v6086_v55 }
  0xbe   :  { %5079 = vmatmul.msk.f32.vlgmr.msra.gmra.mxu3 %vm359_vm1, %v354_v56 }
 0x141   :  { %v380_v58 = vpop.f32.mrf.mxu3 }
 0x142   :  { %v381_v59 = vadd.f32 %v5476_v57, %v380_v58 }
 0x144   :  { %v383_v60 = vsub.f32 0.0, %v381_v59  ;;  %v534_v59 = vld [vmem:[%s8925_s28 + $0x8] sm:$0xff] }
 0x146   :  { %v384_v61 = vmul.f32 1.442695, %v383_v60 }
 0x148   :  { %5488 = vpow2.f32 %v384_v61 }
 0x14e   :  { %v5489_v62 = vpop.eup %5488 }
 0x14f   :  { %v386_v63 = vadd.f32 1.0, %v5489_v62 }
 0x151   :  { %5490 = vrcp.f32 %v386_v63  ;;  %v398_v3 = vand.u32 2147483648, %v386_v63  ;;  %v396_v5 = vand.u32 2147483647, %v386_v63  ;;  %vm392_vm3 = vweird.f32 %v386_v63 }
 0x153   :  { %v399_v7 = vor.u32 1.1754944e-38, %v398_v3  ;;  %vm397_vm6 = vcmp.eq.f32.partialorder %v396_v5, 8.507059e+37 }
 0x157   :  { %v5491_v0 = vpop.eup %5490 }
 0x158   :  { %v388_v1 = vmul.f32 %v5491_v0, %v386_v63  ;;  %vm393_vm2 = vweird.f32 %v5491_v0 }
 0x159   :  { %vm394_vm4 = vmor %vm392_vm3, %vm393_vm2 }
 0x15a   :  { %v389_v2 = vsub.f32 1.0, %v388_v1 }
 0x15c   :  { %v390_v4 = vmul.f32 %v5491_v0, %v389_v2 }
 0x15e   :  { %v391_v6 = vadd.f32 %v5491_v0, %v390_v4 }
 0x160   :  { %v395_v8 = vsel %vm394_vm4, %v5491_v0, %v391_v6 }
 0x161   :  { %v400_v9 = vsel %vm397_vm6, %v399_v7, %v395_v8 }
 0x162   :  { %v403_v10 = vsel %vm402_vm5, %v400_v9, -inf }
 0x163   :  { %404 = vmax.xlane.f32.xlu0 %v403_v10 }
 0x1d6   :  { %v405_v11 = vpop.xlane.xlu0 %404 }
 0x1d7   :  { %v406_v12 = vsub.f32 %v400_v9, %v405_v11 }
 0x1d9   :  { %v407_v13 = vmul.f32 1.442695, %v406_v12 }
 0x1db   :  { %5492 = vpow2.f32 %v407_v13 }
 0x1e1   :  { %v5493_v14 = vpop.eup %5492 }
 0x1e2   :  { %v409_v15 = vsel %vm402_vm5, %v5493_v14, 0.0 }
 0x1e3   :  { %410 = vadd.xlane.f32.xlu0 %v409_v15 }
 0x256   :  { %v411_v16 = vpop.xlane.xlu0 %410 }
 0x257   :  { %5494 = vrcp.f32 %v411_v16  ;;  %v423_v20 = vand.u32 2147483648, %v411_v16  ;;  %v421_v22 = vand.u32 2147483647, %v411_v16  ;;  %vm417_vm8 = vweird.f32 %v411_v16 }
 0x259   :  { %v424_v24 = vor.u32 1.1754944e-38, %v423_v20  ;;  %vm422_vm10 = vcmp.eq.f32.partialorder %v421_v22, 8.507059e+37 }
 0x25d   :  { %v5495_v17 = vpop.eup %5494 }
 0x25e   :  { %v413_v18 = vmul.f32 %v5495_v17, %v411_v16  ;;  %vm418_vm7 = vweird.f32 %v5495_v17 }
 0x25f   :  { %vm419_vm9 = vmor %vm417_vm8, %vm418_vm7 }
 0x260   :  { %v414_v19 = vsub.f32 1.0, %v413_v18 }
 0x262   :  { %v415_v21 = vmul.f32 %v5495_v17, %v414_v19 }
 0x264   :  { %v416_v23 = vadd.f32 %v5495_v17, %v415_v21 }
 0x266   :  { %v420_v25 = vsel %vm419_vm9, %v5495_v17, %v416_v23 }
 0x267   :  { %v425_v26 = vsel %vm422_vm10, %v424_v24, %v420_v25 }
 0x268   :  { %v426_v27 = vmul.f32 %v5493_v14, %v425_v26 }
 0x26a   :  { %487 = vmatpush.msrb.mxu0 %v426_v27 }
 0x26b   :  { %5080 = vmatmul.msk.f32.vlgmr.msrb.gmra.mxu0 %vm438_vm11, %v427_v28 }
 0x273   :  { %5081 = vmatmul.msk.f32.gmra.mxu0 %vm438_vm11, %v428_v29  ;;  %v5477_v29 = vld [vmem:[%s8877_s8] ss:$0 sm:$0xff]  ;;  %s5811_s8 = smov 64  }
 0x27b   :  { %5082 = vmatmul.msk.f32.gmra.mxu0 %vm438_vm11, %v429_v30 }
 0x283   :  { %5083 = vmatmul.msk.f32.gmra.mxu0 %vm438_vm11, %v430_v31 }
 0x28b   :  { %5084 = vmatmul.msk.f32.gmra.mxu0 %vm438_vm11, %v431_v32 }
 0x293   :  { %5085 = vmatmul.msk.f32.gmra.mxu0 %vm438_vm11, %v432_v33 }
 0x29b   :  { %5086 = vmatmul.msk.f32.gmra.mxu0 %vm438_vm11, %v433_v34 }
 0x2a3   :  { %5087 = vmatmul.msk.f32.gmra.mxu0 %vm438_vm11, %v434_v38 }
 0x2ab   :  { %5088 = vmatmul.msk.f32.gmra.mxu0 %vm438_vm11, %v435_v39 }
 0x2b3   :  { %5089 = vmatmul.msk.f32.gmra.mxu0 %vm438_vm11, %v436_v42 }
 0x2bb   :  { %5090 = vmatmul.msk.f32.gmra.mxu0 %vm438_vm11, %v437_v43 }
 0x2e8   :  { %v489_v51 = vpop.f32.mrf.mxu0 }
 0x2e9   :  { %v522_v56 = vmul.f32 %v489_v51, %v6086_v55  ;;  %v535_v55 = vld [vmem:[%s8925_s28 + $0x10] sm:$0xff] }
 0x2eb   :  { %v6159_v57 = vadd.f32 %v533_v53, %v522_v56 }
 0x2ed   :  { %8926 = vst [vmem:[#allocation5_spill] sm:$0xff] %v6159_v57  ;;  %5091 = vmatmul.msk.f32.vlgmr.msrb.gmra.mxu1 %vm402_vm5, %v6159_v57 }
 0x2f0   :  { %v492_v58 = vpop.f32.mrf.mxu0 }
 0x2f1   :  { %v523_v60 = vmul.f32 %v492_v58, %v6083_v54  ;;  %v536_v54 = vld [vmem:[%s8925_s28 + $0x18] sm:$0xff] }
 0x2f3   :  { %v6167_v61 = vadd.f32 %v534_v59, %v523_v60 }
 0x2f5   :  { %8927 = vst [vmem:[#allocation6_spill] sm:$0xff] %v6167_v61  ;;  %5092 = vmatmul.msk.f32.gmra.mxu1 %vm402_vm5, %v6167_v61 }
 0x2f8   :  { %v495_v62 = vpop.f32.mrf.mxu0 }
 0x2f9   :  { %v524_v63 = vmul.f32 %v495_v62, %v6077_v52  ;;  %v537_v52 = vld [vmem:[%s8925_s28 + $0x20] sm:$0xff] }
 0x2fb   :  { %v6175_v0 = vadd.f32 %v535_v55, %v524_v63 }
 0x2fd   :  { %8928 = vst [vmem:[#allocation7_spill] sm:$0xff] %v6175_v0  ;;  %5093 = vmatmul.msk.f32.gmra.mxu1 %vm402_vm5, %v6175_v0 }
 0x300   :  { %v498_v1 = vpop.f32.mrf.mxu0 }
 0x301   :  { %v525_v2 = vmul.f32 %v498_v1, %v6071_v50  ;;  %v538_v50 = vld [vmem:[%s8925_s28 + $0x28] sm:$0xff] }
 0x303   :  { %v6183_v3 = vadd.f32 %v536_v54, %v525_v2 }
 0x305   :  { %8929 = vst [vmem:[#allocation8_spill] sm:$0xff] %v6183_v3  ;;  %5094 = vmatmul.msk.f32.gmra.mxu1 %vm402_vm5, %v6183_v3 }
 0x308   :  { %v501_v4 = vpop.f32.mrf.mxu0 }
 0x309   :  { %v526_v5 = vmul.f32 %v501_v4, %v6065_v48  ;;  %v539_v48 = vld [vmem:[%s8925_s28 + $0x30] sm:$0xff] }
 0x30b   :  { %v6191_v6 = vadd.f32 %v537_v52, %v526_v5 }
 0x30d   :  { %8930 = vst [vmem:[#allocation9_spill] sm:$0xff] %v6191_v6  ;;  %5095 = vmatmul.msk.f32.gmra.mxu1 %vm402_vm5, %v6191_v6 }
 0x310   :  { %v504_v7 = vpop.f32.mrf.mxu0 }
 0x311   :  { %v527_v8 = vmul.f32 %v504_v7, %v6059_v46  ;;  %v540_v46 = vld [vmem:[%s8925_s28 + $0x38] sm:$0xff] }
 0x313   :  { %v6199_v9 = vadd.f32 %v538_v50, %v527_v8 }
 0x315   :  { %8931 = vst [vmem:[#allocation10_spill] sm:$0xff] %v6199_v9  ;;  %5096 = vmatmul.msk.f32.gmra.mxu1 %vm402_vm5, %v6199_v9 }
 0x318   :  { %v507_v10 = vpop.f32.mrf.mxu0 }
 0x319   :  { %v528_v11 = vmul.f32 %v507_v10, %v6053_v44  ;;  %v541_v44 = vld [vmem:[%s8925_s28 + $0x40] sm:$0xff] }
 0x31b   :  { %v6207_v12 = vadd.f32 %v539_v48, %v528_v11 }
 0x31d   :  { %8932 = vst [vmem:[#allocation11_spill] sm:$0xff] %v6207_v12  ;;  %5097 = vmatmul.msk.f32.gmra.mxu1 %vm402_vm5, %v6207_v12 }
 0x320   :  { %v510_v13 = vpop.f32.mrf.mxu0 }
 0x321   :  { %v529_v14 = vmul.f32 %v510_v13, %v6044_v41  ;;  %v542_v41 = vld [vmem:[%s8925_s28 + $0x48] sm:$0xff] }
 0x323   :  { %v6215_v15 = vadd.f32 %v540_v46, %v529_v14 }
 0x325   :  { %8933 = vst [vmem:[#allocation12_spill] sm:$0xff] %v6215_v15  ;;  %5098 = vmatmul.msk.f32.gmra.mxu1 %vm402_vm5, %v6215_v15 }
 0x328   :  { %v513_v16 = vpop.f32.mrf.mxu0 }
 0x329   :  { %v530_v17 = vmul.f32 %v513_v16, %v6041_v40  ;;  %v543_v40 = vld [vmem:[%s8925_s28 + $0x50] sm:$0xff]  ;;  %s5810_s28 = smov 96  }
 0x32b   :  { %v6223_v18 = vadd.f32 %v541_v44, %v530_v17 }
 0x32d   :  { %8934 = vst [vmem:[#allocation13_spill] sm:$0xff] %v6223_v18  ;;  %5099 = vmatmul.msk.f32.gmra.mxu1 %vm402_vm5, %v6223_v18 }
 0x330   :  { %v516_v19 = vpop.f32.mrf.mxu0 }
 0x331   :  { %v531_v20 = vmul.f32 %v516_v19, %v6035_v37 }
 0x333   :  { %v6231_v21 = vadd.f32 %v542_v41, %v531_v20 }
 0x335   :  { %8935 = vst [vmem:[#allocation14_spill] sm:$0xff] %v6231_v21  ;;  %5100 = vmatmul.msk.f32.gmra.mxu1 %vm402_vm5, %v6231_v21 }
 0x338   :  { %v519_v22 = vpop.f32.mrf.mxu0 }
 0x339   :  { %v532_v23 = vmul.f32 %v519_v22, %v6033_v36 }
 0x33b   :  { %v6239_v24 = vadd.f32 %v543_v40, %v532_v23 }
 0x33d   :  { %8936 = vst [vmem:[#allocation15_spill] sm:$0xff] %v6239_v24  ;;  %5101 = vmatmul.msk.f32.gmra.mxu1 %vm402_vm5, %v6239_v24 }
 0x36a   :  { %v661_v25 = vpop.f32.mrf.mxu1 }
 0x36b   :  { %v6314_v59 = vadd.f32 %v5477_v29, %v661_v25 }
 0x372   :  { %v664_v26 = vpop.f32.mrf.mxu1 }
 0x373   :  { %v6260_v38 = vadd.f32 %v5477_v29, %v664_v26 }
 0x37a   :  { %v667_v37 = vpop.f32.mrf.mxu1 }
 0x37b   :  { %v6282_v47 = vadd.f32 %v5477_v29, %v667_v37 }
 0x37d   :  { %v6286_v49 = vpack.i.bf16 %v6260_v38, %v6282_v47 }
 0x382   :  { %v670_v27 = vpop.f32.mrf.mxu1 }
 0x383   :  { %v6250_v32 = vadd.f32 %v5477_v29, %v670_v27 }
 0x38a   :  { %v673_v28 = vpop.f32.mrf.mxu1 }
 0x38b   :  { %v6258_v34 = vadd.f32 %v5477_v29, %v673_v28 }
 0x38d   :  { %v6264_v39 = vpack.i.bf16 %v6250_v32, %v6258_v34 }
 0x392   :  { %v676_v30 = vpop.f32.mrf.mxu1 }
 0x393   :  { %v6246_v31 = vadd.f32 %v5477_v29, %v676_v30 }
 0x395   :  { %719 = vrot.lane.b32.xlu1 %v6246_v31, %s5810_s28 }
 0x39a   :  { %v679_v36 = vpop.f32.mrf.mxu1 }
 0x39b   :  { %v6252_v33 = vadd.f32 %v5477_v29, %v679_v36 }
 0x39d   :  { %715 = vrot.lane.b32.xlu1 %v6250_v32, %s5810_s28  ;;  %721 = vrot.lane.b32.xlu0 %v6252_v33, %s5810_s28  ;;  %v6274_v45 = vpack.i.bf16 %v6246_v31, %v6252_v33 }
 0x3a2   :  { %v682_v35 = vpop.f32.mrf.mxu1 }
 0x3a3   :  { %v6288_v51 = vadd.f32 %v5477_v29, %v682_v35 }
 0x3a5   :  { %711 = vrot.lane.b32.xlu1 %v6260_v38, %s5810_s28  ;;  %5382 = vrot.lane.b32.xlu0 %v6264_v39, %s5811_s8 }
 0x3aa   :  { %v685_v42 = vpop.f32.mrf.mxu1 }
 0x3ab   :  { %v6270_v43 = vadd.f32 %v5477_v29, %v685_v42 }
 0x3ad   :  { %5377 = vrot.lane.b32.xlu1 %v6274_v45, %s5811_s8  ;;  %1239 = vrot.lane.b32.xlu0 %v6252_v33, %s5812_s2  ;;  %v6304_v53 = vpack.i.bf16 %v6288_v51, %v6270_v43 }
 0x3ae   :  { %725 = vrot.lane.b32.xlu2 %v6270_v43, %s5810_s28 }
 0x3b2   :  { %v688_v56 = vpop.f32.mrf.mxu1 }
 0x3b3   :  { %v6312_v58 = vadd.f32 %v5477_v29, %v688_v56 }
 0x3b5   :  { %5387 = vrot.lane.b32.xlu1 %v6286_v49, %s5811_s8  ;;  %1235 = vrot.lane.b32.xlu0 %v6258_v34, %s5812_s2 }
 0x3b6   :  { %723 = vrot.lane.b32.xlu2 %v6288_v51, %s5810_s28 }
 0x3ba   :  { %v691_v60 = vpop.f32.mrf.mxu1 }
 0x3bb   :  { %v6326_v62 = vadd.f32 %v5477_v29, %v691_v60 }
 0x3bd   :  { %1229 = vrot.lane.b32.xlu0 %v6260_v38, %s5812_s2  ;;  %1241 = vrot.lane.b32.xlu1 %v6288_v51, %s5812_s2  ;;  %v6338_v55 = vpack.i.bf16 %v6312_v58, %v6326_v62 }
 0x3be   :  { %717 = vrot.lane.b32.xlu2 %v6258_v34, %s5810_s28 }
 0x3c5   :  { %1237 = vrot.lane.b32.xlu1 %v6246_v31, %s5812_s2  ;;  %5392 = vrot.lane.b32.xlu0 %v6304_v53, %s5811_s8 }
 0x3c6   :  { %713 = vrot.lane.b32.xlu2 %v6282_v47, %s5810_s28 }
 0x3cd   :  { %1231 = vrot.lane.b32.xlu1 %v6282_v47, %s5812_s2  ;;  %1245 = vrot.lane.b32.xlu0 %v6312_v58, %s5812_s2 }
 0x3ce   :  { %709 = vrot.lane.b32.xlu2 %v6314_v59, %s5810_s28 }
 0x3d5   :  { %727 = vrot.lane.b32.xlu1 %v6312_v58, %s5810_s28 }
 0x3d6   :  { %1089 = vrot.lane.b32.xlu2 %v6314_v59, %s5811_s8 }
 0x3dd   :  { %729 = vrot.lane.b32.xlu1 %v6326_v62, %s5810_s28 }
 0x3de   :  { %1233 = vrot.lane.b32.xlu2 %v6250_v32, %s5812_s2 }
 0x3e5   :  { %1247 = vrot.lane.b32.xlu1 %v6326_v62, %s5812_s2 }
 0x3e6   :  { %1243 = vrot.lane.b32.xlu2 %v6270_v43, %s5812_s2 }
 0x3ee   :  { %5397 = vrot.lane.b32.xlu2 %v6338_v55, %s5811_s8 }
 0x407   :  { %v720_v63 = vpop.permute.xlu1 %719 }
 0x408   :  { %v726_v1 = vpop.permute.xlu2 %725 }
 0x40f   :  { %v716_v54 = vpop.permute.xlu1 %715  ;;  %v722_v52 = vpop.permute.xlu0 %721 }
 0x410   :  { %v724_v2 = vpop.permute.xlu2 %723 }
 0x417   :  { %v712_v4 = vpop.permute.xlu1 %711  ;;  %v5383_v8 = vpop.permute.xlu0 %5382 }
 0x418   :  { %v718_v5 = vpop.permute.xlu2 %717  ;;  %v5384_v30 = vunpack.i.l.bf16 %v5383_v8  ;;  %v5385_v36 = vunpack.i.h.bf16 %v5383_v8 }
 0x41f   :  { %v5378_v7 = vpop.permute.xlu1 %5377  ;;  %v1240_v11 = vpop.permute.xlu0 %1239 }
 0x420   :  { %v714_v50 = vpop.permute.xlu2 %713  ;;  %v5379_v28 = vunpack.i.l.bf16 %v5378_v7  ;;  %v5380_v29 = vunpack.i.h.bf16 %v5378_v7 }
 0x427   :  { %v5388_v10 = vpop.permute.xlu1 %5387  ;;  %v1236_v14 = vpop.permute.xlu0 %1235 }
 0x428   :  { %v710_v48 = vpop.permute.xlu2 %709  ;;  %v5389_v42 = vunpack.i.l.bf16 %v5388_v10  ;;  %v5390_v56 = vunpack.i.h.bf16 %v5388_v10 }
 0x42f   :  { %v1242_v13 = vpop.permute.xlu1 %1241  ;;  %v1230_v19 = vpop.permute.xlu0 %1229 }
 0x430   :  { %v1090_v46 = vpop.permute.xlu2 %1089 }
 0x437   :  { %v1238_v16 = vpop.permute.xlu1 %1237  ;;  %v5393_v23 = vpop.permute.xlu0 %5392 }
 0x438   :  { %v1234_v44 = vpop.permute.xlu2 %1233  ;;  %v5394_v26 = vunpack.i.l.bf16 %v5393_v23  ;;  %v5395_v37 = vunpack.i.h.bf16 %v5393_v23 }
 0x43f   :  { %v1232_v17 = vpop.permute.xlu1 %1231  ;;  %v1246_v60 = vpop.permute.xlu0 %1245 }
 0x440   :  { %v1244_v41 = vpop.permute.xlu2 %1243 }
 0x447   :  { %v728_v20 = vpop.permute.xlu1 %727 }
 0x448   :  { %v5398_v22 = vpop.permute.xlu2 %5397 }
 0x449   :  { %v5399_v40 = vunpack.i.l.bf16 %v5398_v22  ;;  %v5400_v25 = vunpack.i.h.bf16 %v5398_v22 }
 0x44b   :  { %1160 = vmatpush.msrb.mxu3 %v5399_v40 }
 0x44d   :  { %1161 = vmatpush.msrb.mxu3 %v5400_v25 }
 0x44f   :  { %1162 = vmatpush.msrb.mxu3 %v5394_v26  ;;  %v730_v27 = vpop.permute.xlu1 %729 }
 0x450   :  { %5102 = vmatpush.xpose.msk.msrb.mxu2 %vm438_vm11, %v730_v27 }
 0x451   :  { %1163 = vmatpush.msrb.mxu3 %v5395_v37 }
 0x453   :  { %1164 = vmatpush.msrb.mxu3 %v5379_v28 }
 0x454   :  { %5103 = vmatpush.xpose.msk.msrb.mxu2 %vm438_vm11, %v728_v20 }
 0x455   :  { %1165 = vmatpush.msrb.mxu3 %v5380_v29 }
 0x457   :  { %1166 = vmatpush.msrb.mxu3 %v5384_v30  ;;  %v1248_v35 = vpop.permute.xlu1 %1247 }
 0x458   :  { %5104 = vmatpush.xpose.msk.msrb.mxu2 %vm438_vm11, %v726_v1  ;;  %5135 = vmatpush.xpose.msk.msra.mxu0 %vm438_vm11, %v1248_v35 }
 0x459   :  { %1167 = vmatpush.msrb.mxu3 %v5385_v36 }
 0x45b   :  { %1168 = vmatpush.msrb.mxu3 %v5389_v42 }
 0x45c   :  { %5105 = vmatpush.xpose.msk.msrb.mxu2 %vm438_vm11, %v724_v2  ;;  %5136 = vmatpush.xpose.msk.msra.mxu0 %vm438_vm11, %v1246_v60 }
 0x45d   :  { %1169 = vmatpush.msrb.mxu3 %v5390_v56 }
 0x45f   :  { %1170 = vmatpush.msrb.mxu3 %v1090_v46 }
 0x460   :  { %5106 = vmatpush.xpose.msk.msrb.mxu2 %vm438_vm11, %v722_v52  ;;  %5137 = vmatpush.xpose.msk.msra.mxu0 %vm438_vm11, %v1244_v41 }
 0x464   :  { %5107 = vmatpush.xpose.msk.msrb.mxu2 %vm438_vm11, %v720_v63  ;;  %5138 = vmatpush.xpose.msk.msra.mxu0 %vm438_vm11, %v1242_v13  ;;  %v555_v63 = vlaneseq }
 0x466   :  { %v6385_v1 = vshrl.u32 %v555_v63, 7 }
 0x468   :  { %5108 = vmatpush.xpose.msk.msrb.mxu2 %vm438_vm11, %v718_v5  ;;  %5139 = vmatpush.xpose.msk.msra.mxu0 %vm438_vm11, %v1240_v11  ;;  %v569_v2 = vand.u32 7, %v6385_v1  ;;  %v557_v52 = vadd.s32 8, %v6385_v1  ;;  %v5813_v5 = vmov -1e+30   ;;  %v558_v11 = vadd.s32 16, %v6385_v1 }
 0x469   :  { %v560_v23 = vadd.s32 32, %v6385_v1  ;;  %v561_v60 = vadd.s32 40, %v6385_v1 }
 0x46a   :  { %v571_v46 = vand.u32 7, %v558_v11 }
 0x46b   :  { %v573_v26 = vand.u32 7, %v560_v23 }
 0x46c   :  { %5109 = vmatpush.xpose.msk.msrb.mxu2 %vm438_vm11, %v716_v54  ;;  %5140 = vmatpush.xpose.msk.msra.mxu0 %vm438_vm11, %v1238_v16  ;;  %v568_v54 = vand.u32 127, %v555_v63 }
 0x470   :  { %5110 = vmatpush.xpose.msk.msrb.mxu2 %vm438_vm11, %v714_v50  ;;  %5141 = vmatpush.xpose.msk.msra.mxu0 %vm438_vm11, %v1236_v14  ;;  %v570_v50 = vand.u32 7, %v557_v52 }
 0x474   :  { %5111 = vmatpush.xpose.msk.msrb.mxu2 %vm438_vm11, %v712_v4  ;;  %5142 = vmatpush.xpose.msk.msra.mxu0 %vm438_vm11, %v1234_v44  ;;  %v6388_v4 = vand.u32 7, %v568_v54  ;;  %v574_v54 = vand.u32 7, %v561_v60 }
 0x476   :  { %vm581_vm12 = vcmp.eq.s32.totalorder %v569_v2, %v6388_v4  ;;  %vm582_vm13 = vcmp.eq.s32.totalorder %v570_v50, %v6388_v4  ;;  %vm583_vm14 = vcmp.eq.s32.totalorder %v571_v46, %v6388_v4  ;;  %vm585_vm0 = vcmp.eq.s32.totalorder %v573_v26, %v6388_v4 }
 0x477   :  { %v6393_v7 = vsel %vm581_vm12, 0.0, %v5813_v5  ;;  %v6403_v13 = vsel %vm582_vm13, 0.0, %v5813_v5  ;;  %v6432_v29 = vsel %vm585_vm0, 0.0, %v5813_v5  ;;  %vm586_vm2 = vcmp.eq.s32.totalorder %v574_v54, %v6388_v4 }
 0x478   :  { %5112 = vmatpush.xpose.msk.msrb.mxu2 %vm438_vm11, %v710_v48  ;;  %5143 = vmatpush.xpose.msk.msra.mxu0 %vm438_vm11, %v1232_v17  ;;  %v559_v17 = vadd.s32 24, %v6385_v1  ;;  %v563_v2 = vadd.s32 56, %v6385_v1  ;;  %v6449_v52 = vsel %vm586_vm2, 0.0, %v5813_v5  ;;  %v562_v50 = vadd.s32 48, %v6385_v1 }
 0x47a   :  { %v572_v41 = vand.u32 7, %v559_v17  ;;  %v575_v46 = vand.u32 7, %v562_v50  ;;  %v564_v17 = vadd.s32 64, %v6385_v1 }
 0x47b   :  { %5113 = vmatmul.msk.f32.vlgmr.msrb.gmra.mxu2 %vm438_vm11, %v6314_v59 }
 0x47c   :  { %5144 = vmatpush.xpose.msk.msra.mxu0 %vm438_vm11, %v1230_v19  ;;  %v6413_v19 = vsel %vm583_vm14, 0.0, %v5813_v5  ;;  %vm584_vm15 = vcmp.eq.s32.totalorder %v572_v41, %v6388_v4  ;;  %vm587_vm4 = vcmp.eq.s32.totalorder %v575_v46, %v6388_v4  ;;  %v577_v23 = vand.u32 7, %v564_v17 }
 0x47d   :  { %v6423_v25 = vsel %vm584_vm15, 0.0, %v5813_v5  ;;  %v6464_v41 = vsel %vm587_vm4, 0.0, %v5813_v5 }
 0x47e   :  { %vm589_vm6 = vcmp.eq.s32.totalorder %v577_v23, %v6388_v4 }
 0x47f   :  { %v6480_v60 = vsel %vm589_vm6, 0.0, %v5813_v5 }
 0x483   :  { %5114 = vmatmul.msk.f32.gmra.mxu2 %vm438_vm11, %v6260_v38 }
 0x48b   :  { %5115 = vmatmul.msk.f32.gmra.mxu2 %vm438_vm11, %v6282_v47 }
 0x493   :  { %5116 = vmatmul.msk.f32.gmra.mxu2 %vm438_vm11, %v6250_v32 }
 0x49b   :  { %5117 = vmatmul.msk.f32.gmra.mxu2 %vm438_vm11, %v6258_v34 }
 0x4a3   :  { %5118 = vmatmul.msk.f32.gmra.mxu2 %vm438_vm11, %v6246_v31 }
 0x4ab   :  { %5119 = vmatmul.msk.f32.gmra.mxu2 %vm438_vm11, %v6252_v33 }
 0x4b3   :  { %5120 = vmatmul.msk.f32.gmra.mxu2 %vm438_vm11, %v6288_v51 }
 0x4bb   :  { %5121 = vmatmul.msk.f32.gmra.mxu2 %vm438_vm11, %v6270_v43 }
 0x4c3   :  { %5122 = vmatmul.msk.f32.gmra.mxu2 %vm438_vm11, %v6312_v58 }
 0x4cb   :  { %5123 = vmatmul.msk.f32.gmra.mxu2 %vm438_vm11, %v6326_v62 }
 0x4fe   :  { %v792_v8 = vpop.f32.mrf.mxu2 }
 0x4ff   :  { %v6396_v10 = vadd.f32 %v792_v8, %v6393_v7  ;;  %v576_v8 = vand.u32 7, %v563_v2 }
 0x501   :  { %v825_v48 = vsel %vm359_vm1, %v6396_v10, -inf  ;;  %vm588_vm3 = vcmp.eq.s32.totalorder %v576_v8, %v6388_v4 }
 0x502   :  { %826 = vmax.xlane.f32.xlu0 %v825_v48 }
 0x506   :  { %v795_v14 = vpop.f32.mrf.mxu2 }
 0x507   :  { %v6406_v16 = vadd.f32 %v795_v14, %v6403_v13 }
 0x509   :  { %v828_v44 = vsel %vm359_vm1, %v6406_v16, -inf }
 0x50a   :  { %829 = vmax.xlane.f32.xlu1 %v828_v44  ;;  %v6460_v44 = vsel %vm588_vm3, 0.0, %v5813_v5 }
 0x50e   :  { %v798_v20 = vpop.f32.mrf.mxu2 }
 0x50f   :  { %v6416_v22 = vadd.f32 %v798_v20, %v6413_v19 }
 0x511   :  { %v831_v40 = vsel %vm359_vm1, %v6416_v22, -inf }
 0x512   :  { %832 = vmax.xlane.f32.xlu2 %v831_v40  ;;  %v566_v40 = vadd.s32 80, %v6385_v1 }
 0x516   :  { %v801_v37 = vpop.f32.mrf.mxu2 }
 0x517   :  { %v6426_v27 = vadd.f32 %v801_v37, %v6423_v25 }
 0x519   :  { %v834_v28 = vsel %vm359_vm1, %v6426_v27, -inf }
 0x51a   :  { %835 = vmax.xlane.f32.xlu0 %v834_v28  ;;  %v579_v28 = vand.u32 7, %v566_v40 }
 0x51c   :  { %vm591_vm7 = vcmp.eq.s32.totalorder %v579_v28, %v6388_v4 }
 0x51d   :  { %v6487_v54 = vsel %vm591_vm7, 0.0, %v5813_v5 }
 0x51e   :  { %v804_v30 = vpop.f32.mrf.mxu2 }
 0x51f   :  { %v6435_v36 = vadd.f32 %v804_v30, %v6432_v29 }
 0x521   :  { %v837_v35 = vsel %vm359_vm1, %v6435_v36, -inf }
 0x522   :  { %838 = vmax.xlane.f32.xlu2 %v837_v35  ;;  %v565_v35 = vadd.s32 72, %v6385_v1 }
 0x523   :  { %1205 = vrot.lane.b32.xlu1 %v6314_v59, %s5814_s1 }
 0x526   :  { %v807_v42 = vpop.f32.mrf.mxu2 }
 0x527   :  { %v6453_v11 = vadd.f32 %v807_v42, %v6449_v52 }
 0x529   :  { %v840_v14 = vsel %vm359_vm1, %v6453_v11, -inf }
 0x52e   :  { %1207 = vrot.lane.b32.xlu0 %v6260_v38, %s5814_s1  ;;  %v810_v56 = vpop.f32.mrf.mxu2 }
 0x52f   :  { %v6471_v37 = vadd.f32 %v810_v56, %v6464_v41  ;;  %v578_v56 = vand.u32 7, %v565_v35 }
 0x531   :  { %v843_v42 = vsel %vm359_vm1, %v6471_v37, -inf  ;;  %vm590_vm8 = vcmp.eq.s32.totalorder %v578_v56, %v6388_v4 }
 0x532   :  { %v6496_v8 = vsel %vm590_vm8, 0.0, %v5813_v5 }
 0x536   :  { %v813_v63 = vpop.f32.mrf.mxu2 }
 0x537   :  { %v6467_v20 = vadd.f32 %v813_v63, %v6460_v44 }
 0x539   :  { %v846_v30 = vsel %vm359_vm1, %v6467_v20, -inf }
 0x53a   :  { %1227 = vrot.lane.b32.xlu2 %v6314_v59, %s5812_s2  ;;  %s5823_s2 = smov [#allocation2]  }
 0x53e   :  { %v816_v48 = vpop.f32.mrf.mxu2 }
 0x53f   :  { %v6484_v63 = vadd.f32 %v816_v48, %v6480_v60 }
 0x541   :  { %v849_v50 = vsel %vm359_vm1, %v6484_v63, -inf }
 0x546   :  { %v819_v26 = vpop.f32.mrf.mxu2 }
 0x547   :  { %v6501_v46 = vadd.f32 %v819_v26, %v6496_v8 }
 0x549   :  { %v852_v4 = vsel %vm359_vm1, %v6501_v46, -inf }
 0x54d   :  { %841 = vmax.xlane.f32.xlu1 %v840_v14 }
 0x54e   :  { %v822_v2 = vpop.f32.mrf.mxu2 }
 0x54f   :  { %v6491_v1 = vadd.f32 %v822_v2, %v6487_v54 }
 0x551   :  { %v855_v48 = vsel %vm359_vm1, %v6491_v1, -inf }
 0x555   :  { %847 = vmax.xlane.f32.xlu1 %v846_v30 }
 0x558   :  { %844 = vmax.xlane.f32.xlu0 %v843_v42 }
 0x560   :  { %850 = vmax.xlane.f32.xlu0 %v849_v50 }
 0x563   :  { %856 = vmax.xlane.f32.xlu2 %v855_v48 }
 0x568   :  { %853 = vmax.xlane.f32.xlu0 %v852_v4 }
 0x575   :  { %v827_v14 = vpop.xlane.xlu0 %826 }
 0x576   :  { %v858_v17 = vsub.f32 %v6396_v10, %v827_v14  ;;  %v694_v14 = vld [vmem:[%s8878_s9] sm:$0xff] }
 0x577   :  { %1854 = vmatpush.msra.mxu2 %v694_v14 }
 0x578   :  { %v869_v40 = vmul.f32 1.442695, %v858_v17 }
 0x57a   :  { %5496 = vpow2.f32 %v869_v40 }
 0x57c   :  { %1213 = vrot.lane.b32.xlu0 %v6258_v34, %s5814_s1 }
 0x57d   :  { %v830_v5 = vpop.xlane.xlu1 %829 }
 0x57e   :  { %v859_v23 = vsub.f32 %v6406_v16, %v830_v5 }
 0x580   :  { %v6509_v28 = vpop.eup %5496  ;;  %v871_v26 = vmul.f32 1.442695, %v859_v23 }
 0x581   :  { %v891_v30 = vsel %vm359_vm1, %v6509_v28, 0.0 }
 0x582   :  { %5498 = vpow2.f32 %v871_v26  ;;  %892 = vadd.xlane.f32.xlu1 %v891_v30 }
 0x584   :  { %2543 = vrot.lane.b32.xlu0 %v6326_v62, %s5815_s24 }
 0x585   :  { %v6521_v16 = vpop.xlane.xlu2 %832 }
 0x588   :  { %v6515_v10 = vpop.eup %5498 }
 0x589   :  { %v894_v35 = vsel %vm359_vm1, %v6515_v10, 0.0 }
 0x58a   :  { %895 = vadd.xlane.f32.xlu2 %v894_v35 }
 0x58c   :  { %2541 = vrot.lane.b32.xlu0 %v6312_v58, %s5815_s24 }
 0x58d   :  { %v836_v2 = vpop.xlane.xlu0 %835 }
 0x58e   :  { %v861_v30 = vsub.f32 %v6426_v27, %v836_v2 }
 0x594   :  { %1219 = vrot.lane.b32.xlu0 %v6288_v51, %s5814_s1 }
 0x595   :  { %v6525_v42 = vpop.xlane.xlu2 %838  ;;  %v1206_v50 = vpop.permute.xlu1 %1205 }
 0x596   :  { %v862_v24 = vsub.f32 %v6435_v36, %v6525_v42 }
 0x59b   :  { %1211 = vrot.lane.b32.xlu1 %v6250_v32, %s5814_s1 }
 0x59c   :  { %1923 = vrot.lane.b32.xlu0 %v6252_v33, %s5816_s27 }
 0x59d   :  { %v1228_v56 = vpop.permute.xlu2 %1227 }
 0x59e   :  { %5145 = vmatpush.xpose.msk.msra.mxu0 %vm438_vm11, %v1228_v56 }
 0x5a0   :  { %v1208_v48 = vpop.permute.xlu0 %1207 }
 0x5a1   :  { %5146 = vmatmul.msk.f32.vlgmr.msra.gmra.mxu0 %vm438_vm11, %v1206_v50 }
 0x5a2   :  { %1209 = vrot.lane.b32.xlu2 %v6282_v47, %s5814_s1 }
 0x5a3   :  { %1931 = vrot.lane.b32.xlu1 %v6326_v62, %s5816_s27 }
 0x5a4   :  { %1921 = vrot.lane.b32.xlu0 %v6246_v31, %s5816_s27 }
 0x5a9   :  { %5147 = vmatmul.msk.f32.gmra.mxu0 %vm438_vm11, %v1208_v48  ;;  %v875_v48 = vmul.f32 1.442695, %v861_v30 }
 0x5aa   :  { %1215 = vrot.lane.b32.xlu2 %v6246_v31, %s5814_s1 }
 0x5ab   :  { %1929 = vrot.lane.b32.xlu1 %v6312_v58, %s5816_s27 }
 0x5ac   :  { %2531 = vrot.lane.b32.xlu0 %v6258_v34, %s5815_s24 }
 0x5b2   :  { %1217 = vrot.lane.b32.xlu2 %v6252_v33, %s5814_s1 }
 0x5b3   :  { %2539 = vrot.lane.b32.xlu1 %v6270_v43, %s5815_s24 }
 0x5b4   :  { %2529 = vrot.lane.b32.xlu0 %v6250_v32, %s5815_s24 }
 0x5ba   :  { %1927 = vrot.lane.b32.xlu2 %v6270_v43, %s5816_s27 }
 0x5bb   :  { %2537 = vrot.lane.b32.xlu1 %v6288_v51, %s5815_s24 }
 0x5bc   :  { %1225 = vrot.lane.b32.xlu0 %v6326_v62, %s5814_s1 }
 0x5c0   :  { %v6591_v40 = vpop.xlane.xlu1 %841 }
 0x5c2   :  { %1925 = vrot.lane.b32.xlu2 %v6288_v51, %s5816_s27 }
 0x5c3   :  { %1221 = vrot.lane.b32.xlu1 %v6270_v43, %s5814_s1 }
 0x5c4   :  { %1911 = vrot.lane.b32.xlu0 %v6314_v59, %s5816_s27 }
 0x5c8   :  { %v6601_v23 = vpop.xlane.xlu1 %847 }
 0x5ca   :  { %2535 = vrot.lane.b32.xlu2 %v6252_v33, %s5815_s24 }
 0x5cb   :  { %1919 = vrot.lane.b32.xlu1 %v6258_v34, %s5816_s27  ;;  %v6570_v4 = vpop.xlane.xlu0 %844 }
 0x5cc   :  { %2501 = vrot.lane.b32.xlu0 %v6314_v59, %s5817_s7 }
 0x5d2   :  { %2533 = vrot.lane.b32.xlu2 %v6246_v31, %s5815_s24 }
 0x5d3   :  { %1917 = vrot.lane.b32.xlu1 %v6250_v32, %s5816_s27  ;;  %v6585_v17 = vpop.xlane.xlu0 %850 }
 0x5d4   :  { %1893 = vrot.lane.b32.xlu0 %v6282_v47, %s5818_s26 }
 0x5d6   :  { %v6610_v35 = vpop.xlane.xlu2 %856 }
 0x5da   :  { %1223 = vrot.lane.b32.xlu2 %v6312_v58, %s5814_s1 }
 0x5db   :  { %2527 = vrot.lane.b32.xlu1 %v6282_v47, %s5815_s24  ;;  %v6595_v5 = vpop.xlane.xlu0 %853 }
 0x5dc   :  { %2507 = vrot.lane.b32.xlu0 %v6250_v32, %s5817_s7 }
 0x5e2   :  { %1915 = vrot.lane.b32.xlu2 %v6282_v47, %s5816_s27 }
 0x5e3   :  { %2525 = vrot.lane.b32.xlu1 %v6260_v38, %s5815_s24 }
 0x5ea   :  { %1913 = vrot.lane.b32.xlu2 %v6260_v38, %s5816_s27 }
 0x5eb   :  { %1889 = vrot.lane.b32.xlu1 %v6314_v59, %s5818_s26 }
 0x5ee   :  { %v6603_v26 = vpop.permute.xlu0 %1213 }
 0x5f2   :  { %2523 = vrot.lane.b32.xlu2 %v6314_v59, %s5815_s24  ;;  %s5039_s24 = sshll.u32 %s8892_s23, 4  ;;  %s5040_s24 = int_to_ptr.hbm [resolvable:$true] %s5039_s24 }
 0x5f3   :  { %2503 = vrot.lane.b32.xlu1 %v6260_v38, %s5817_s7 }
 0x5f5   :  { %v893_v56 = vpop.xlane.xlu1 %892 }
 0x5f6   :  { %5500 = vrcp.f32 %v893_v56  ;;  %v2544_v50 = vpop.permute.xlu0 %2543  ;;  %v935_v30 = vand.u32 2147483648, %v893_v56  ;;  %vm929_vm10 = vweird.f32 %v893_v56 }
 0x5f7   :  { %5234 = vmatpush.xpose.msk.msrb.mxu2 %vm438_vm11, %v2544_v50  ;;  %5502 = vpow2.f32 %v875_v48  ;;  %v877_v50 = vmul.f32 1.442695, %v862_v24 }
 0x5f8   :  { %v936_v24 = vor.u32 1.1754944e-38, %v935_v30 }
 0x5fa   :  { %1891 = vrot.lane.b32.xlu2 %v6260_v38, %s5818_s26  ;;  %v933_v38 = vand.u32 2147483647, %v893_v56 }
 0x5fb   :  { %1895 = vrot.lane.b32.xlu1 %v6250_v32, %s5818_s26 }
 0x5fc   :  { %v5501_v14 = vpop.eup %5500  ;;  %vm934_vm13 = vcmp.eq.f32.partialorder %v933_v38, 8.507059e+37  ;;  %v866_v38 = vsub.f32 %v6484_v63, %v6585_v17 }
 0x5fd   :  { %v925_v27 = vmul.f32 %v5501_v14, %v893_v56  ;;  %v896_v2 = vpop.xlane.xlu2 %895  ;;  %vm930_vm9 = vweird.f32 %v5501_v14  ;;  %v6620_v12 = vpop.eup %5502 }
 0x5fe   :  { %5504 = vrcp.f32 %v896_v2  ;;  %v2542_v21 = vpop.permute.xlu0 %2541  ;;  %vm931_vm12 = vmor %vm929_vm10, %vm930_vm9  ;;  %v950_v9 = vand.u32 2147483648, %v896_v2  ;;  %vm944_vm15 = vweird.f32 %v896_v2 }
 0x5ff   :  { %v926_v18 = vsub.f32 1.0, %v925_v27  ;;  %5235 = vmatpush.xpose.msk.msrb.mxu2 %vm438_vm11, %v2542_v21  ;;  %5506 = vpow2.f32 %v877_v50  ;;  %v864_v21 = vsub.f32 %v6471_v37, %v6570_v4  ;;  %v900_v27 = vsel %vm359_vm1, %v6620_v12, 0.0 }
 0x600   :  { %v948_v4 = vand.u32 2147483647, %v896_v2 }
 0x601   :  { %v927_v15 = vmul.f32 %v5501_v14, %v926_v18  ;;  %v881_v50 = vmul.f32 1.442695, %v864_v21 }
 0x602   :  { %2505 = vrot.lane.b32.xlu2 %v6282_v47, %s5817_s7  ;;  %vm949_vm2 = vcmp.eq.f32.partialorder %v948_v4, 8.507059e+37 }
 0x603   :  { %v928_v32 = vadd.f32 %v5501_v14, %v927_v15  ;;  %2509 = vrot.lane.b32.xlu1 %v6258_v34, %s5817_s7  ;;  %5508 = vpow2.f32 %v881_v50 }
 0x604   :  { %v5505_v36 = vpop.eup %5504 }
 0x605   :  { %v932_v18 = vsel %vm931_vm12, %v5501_v14, %v928_v32  ;;  %v940_v42 = vmul.f32 %v5505_v36, %v896_v2  ;;  %v1210_v48 = vpop.permute.xlu2 %1209  ;;  %vm945_vm14 = vweird.f32 %v5505_v36  ;;  %v6633_v14 = vpop.eup %5506  ;;  %v885_v2 = vmul.f32 1.442695, %v866_v38 }
 0x606   :  { %901 = vadd.xlane.f32.xlu0 %v900_v27  ;;  %5148 = vmatmul.msk.f32.gmra.mxu0 %vm438_vm11, %v1210_v48  ;;  %v937_v15 = vsel %vm934_vm13, %v936_v24, %v932_v18  ;;  %vm946_vm0 = vmor %vm944_vm15, %vm945_vm14  ;;  %v903_v24 = vsel %vm359_vm1, %v6633_v14, 0.0  ;;  %v1220_v63 = vpop.permute.xlu0 %1219  ;;  %v860_v27 = vsub.f32 %v6416_v22, %v6521_v16 }
 0x607   :  { %v941_v47 = vsub.f32 1.0, %v940_v42  ;;  %v938_v56 = vmul.f32 %v6509_v28, %v937_v15  ;;  %v951_v28 = vor.u32 1.1754944e-38, %v950_v9  ;;  %5510 = vpow2.f32 %v885_v2 }
 0x609   :  { %5124 = vmatmul.msk.f32.vlgmr.msrb.gmra.mxu3 %vm359_vm1, %v938_v56  ;;  %v942_v37 = vmul.f32 %v5505_v36, %v941_v47  ;;  %v6644_v48 = vpop.eup %5508 }
 0x60a   :  { %1897 = vrot.lane.b32.xlu2 %v6258_v34, %s5818_s26 }
 0x60b   :  { %v943_v30 = vadd.f32 %v5505_v36, %v942_v37  ;;  %v863_v37 = vsub.f32 %v6453_v11, %v6591_v40 }
 0x60d   :  { %v1216_v32 = vpop.permute.xlu2 %1215  ;;  %v1212_v21 = vpop.permute.xlu1 %1211  ;;  %v947_v18 = vsel %vm946_vm0, %v5505_v36, %v943_v30  ;;  %v909_v36 = vsel %vm359_vm1, %v6644_v48, 0.0  ;;  %v879_v30 = vmul.f32 1.442695, %v863_v37 }
 0x60e   :  { %904 = vadd.xlane.f32.xlu0 %v903_v24  ;;  %5149 = vmatmul.msk.f32.gmra.mxu0 %vm438_vm11, %v1212_v21  ;;  %v952_v42 = vsel %vm949_vm2, %v951_v28, %v947_v18  ;;  %v1924_v15 = vpop.permute.xlu0 %1923  ;;  %v865_v28 = vsub.f32 %v6467_v20, %v6601_v23 }
 0x60f   :  { %v953_v34 = vmul.f32 %v6515_v10, %v952_v42  ;;  %v6653_v10 = vpop.eup %5510 }
 0x610   :  { %v915_v50 = vsel %vm359_vm1, %v6653_v10, 0.0  ;;  %v883_v21 = vmul.f32 1.442695, %v865_v28 }
 0x611   :  { %5125 = vmatmul.msk.f32.gmra.mxu3 %vm359_vm1, %v953_v34 }
 0x612   :  { %2511 = vrot.lane.b32.xlu2 %v6246_v31, %s5817_s7 }
 0x615   :  { %v1218_v9 = vpop.permute.xlu2 %1217  ;;  %v1932_v17 = vpop.permute.xlu1 %1931 }
 0x616   :  { %910 = vadd.xlane.f32.xlu0 %v909_v36  ;;  %5150 = vmatmul.msk.f32.gmra.mxu0 %vm438_vm11, %v6603_v26  ;;  %v873_v26 = vmul.f32 1.442695, %v860_v27  ;;  %v1922_v4 = vpop.permute.xlu0 %1921 }
 0x617   :  { %5190 = vmatpush.xpose.msk.msrb.mxu0 %vm438_vm11, %v1932_v17 }
 0x618   :  { %5512 = vpow2.f32 %v873_v26 }
 0x619   :  { %5514 = vpow2.f32 %v879_v30 }
 0x61a   :  { %1903 = vrot.lane.b32.xlu2 %v6288_v51, %s5818_s26  ;;  %5516 = vpow2.f32 %v883_v21 }
 0x61d   :  { %v1928_v47 = vpop.permute.xlu2 %1927  ;;  %v1930_v56 = vpop.permute.xlu1 %1929 }
 0x61e   :  { %916 = vadd.xlane.f32.xlu0 %v915_v50  ;;  %5151 = vmatmul.msk.f32.gmra.mxu0 %vm438_vm11, %v1216_v32  ;;  %v6671_v38 = vpop.eup %5512  ;;  %v2532_v24 = vpop.permute.xlu0 %2531 }
 0x61f   :  { %5191 = vmatpush.xpose.msk.msrb.mxu0 %vm438_vm11, %v1930_v56  ;;  %v897_v11 = vsel %vm359_vm1, %v6671_v38, 0.0  ;;  %v6681_v18 = vpop.eup %5514  ;;  %v1310_v17 = vpop.f32.mrf.mxu0  ;;  %v868_v56 = vsub.f32 %v6491_v1, %v6610_v35 }
 0x620   :  { %v906_v20 = vsel %vm359_vm1, %v6681_v18, 0.0  ;;  %v6690_v34 = vpop.eup %5516 }
 0x622   :  { %2517 = vrot.lane.b32.xlu2 %v6270_v43, %s5817_s7 }
 0x623   :  { %5192 = vmatpush.xpose.msk.msrb.mxu0 %vm438_vm11, %v1928_v47  ;;  %v6699_v47 = vadd.f32 %v1310_v17, %v6393_v7 }
 0x625   :  { %v1926_v22 = vpop.permute.xlu2 %1925  ;;  %v2540_v16 = vpop.permute.xlu1 %2539  ;;  %v1343_v50 = vsel %vm359_vm1, %v6699_v47, -inf }
 0x626   :  { %5152 = vmatmul.msk.f32.gmra.mxu0 %vm438_vm11, %v1218_v9  ;;  %5236 = vmatpush.xpose.msk.msrb.mxu2 %vm438_vm11, %v2540_v16  ;;  %v2530_v2 = vpop.permute.xlu0 %2529 }
 0x627   :  { %5193 = vmatpush.xpose.msk.msrb.mxu0 %vm438_vm11, %v1926_v22  ;;  %v889_v22 = vmul.f32 1.442695, %v868_v56 }
 0x629   :  { %5518 = vpow2.f32 %v889_v22 }
 0x62b   :  { %5194 = vmatpush.xpose.msk.msrb.mxu0 %vm438_vm11, %v1924_v15 }
 0x62d   :  { %898 = vadd.xlane.f32.xlu1 %v897_v11  ;;  %v2536_v40 = vpop.permute.xlu2 %2535  ;;  %v2538_v32 = vpop.permute.xlu1 %2537 }
 0x62e   :  { %5153 = vmatmul.msk.f32.gmra.mxu0 %vm438_vm11, %v1220_v63  ;;  %5237 = vmatpush.xpose.msk.msrb.mxu2 %vm438_vm11, %v2538_v32  ;;  %v1226_v36 = vpop.permute.xlu0 %1225 }
 0x62f   :  { %5195 = vmatpush.xpose.msk.msrb.mxu0 %vm438_vm11, %v1922_v4  ;;  %v6714_v1 = vpop.eup %5518 }
 0x630   :  { %v921_v30 = vsel %vm359_vm1, %v6714_v1, 0.0 }
 0x632   :  { %1899 = vrot.lane.b32.xlu0 %v6246_v31, %s5818_s26  ;;  %5238 = vmatpush.xpose.msk.msrb.mxu2 %vm438_vm11, %v2536_v40  ;;  %v912_v31 = vsel %vm359_vm1, %v6690_v34, 0.0 }
 0x635   :  { %v2534_v23 = vpop.permute.xlu2 %2533  ;;  %907 = vadd.xlane.f32.xlu1 %v906_v20  ;;  %v1222_v42 = vpop.permute.xlu1 %1221 }
 0x636   :  { %5154 = vmatmul.msk.f32.gmra.mxu0 %vm438_vm11, %v1222_v42  ;;  %5239 = vmatpush.xpose.msk.msrb.mxu2 %vm438_vm11, %v2534_v23  ;;  %v1912_v16 = vpop.permute.xlu0 %1911 }
 0x63a   :  { %5240 = vmatpush.xpose.msk.msrb.mxu2 %vm438_vm11, %v2532_v24  ;;  %v867_v24 = vsub.f32 %v6501_v46, %v6595_v5 }
 0x63c   :  { %v887_v20 = vmul.f32 1.442695, %v867_v24 }
 0x63d   :  { %v1224_v63 = vpop.permute.xlu2 %1223  ;;  %913 = vadd.xlane.f32.xlu1 %v912_v31  ;;  %v1920_v9 = vpop.permute.xlu1 %1919 }
 0x63e   :  { %5155 = vmatmul.msk.f32.gmra.mxu0 %vm438_vm11, %v1224_v63  ;;  %5241 = vmatpush.xpose.msk.msrb.mxu2 %vm438_vm11, %v2530_v2  ;;  %v6720_v11 = vpop.permute.xlu0 %2501  ;;  %5520 = vpow2.f32 %v887_v20  ;;  %v6737_v31 = vpop.f32.mrf.mxu0 }
 0x63f   :  { %5196 = vmatpush.xpose.msk.msrb.mxu0 %vm438_vm11, %v1920_v9 }
 0x644   :  { %v6739_v46 = vpop.eup %5520 }
 0x645   :  { %v1916_v27 = vpop.permute.xlu2 %1915  ;;  %v1918_v15 = vpop.permute.xlu1 %1917 }
 0x646   :  { %5156 = vmatmul.msk.f32.gmra.mxu0 %vm438_vm11, %v1226_v36  ;;  %v1894_v21 = vpop.permute.xlu0 %1893 }
 0x647   :  { %5197 = vmatpush.xpose.msk.msrb.mxu0 %vm438_vm11, %v1918_v15 }
 0x64b   :  { %5198 = vmatpush.xpose.msk.msrb.mxu0 %vm438_vm11, %v1916_v27  ;;  %1344 = vmax.xlane.f32.xlu2 %v1343_v50 }
 0x64d   :  { %v1914_v26 = vpop.permute.xlu2 %1913  ;;  %v2528_v37 = vpop.permute.xlu1 %2527 }
 0x64e   :  { %5242 = vmatpush.xpose.msk.msrb.mxu2 %vm438_vm11, %v2528_v37  ;;  %v6732_v2 = vpop.permute.xlu0 %2507 }
 0x64f   :  { %5199 = vmatpush.xpose.msk.msrb.mxu0 %vm438_vm11, %v1914_v26 }
 0x653   :  { %5200 = vmatpush.xpose.msk.msrb.mxu0 %vm438_vm11, %v1912_v16 }
 0x655   :  { %v2526_v4 = vpop.permute.xlu1 %2525  ;;  %v2524_v35 = vpop.permute.xlu2 %2523 }
 0x656   :  { %1901 = vrot.lane.b32.xlu1 %v6252_v33, %s5818_s26  ;;  %5243 = vmatpush.xpose.msk.msrb.mxu2 %vm438_vm11, %v2526_v4 }
 0x65a   :  { %5244 = vmatpush.xpose.msk.msrb.mxu2 %vm438_vm11, %v2524_v35 }
 0x65c   :  { %922 = vadd.xlane.f32.xlu0 %v921_v30 }
 0x65d   :  { %v1890_v28 = vpop.permute.xlu1 %1889  ;;  %v1892_v40 = vpop.permute.xlu2 %1891 }
 0x65e   :  { %5201 = vmatmul.msk.f32.vlgmr.msrb.gmra.mxu0 %vm438_vm11, %v1890_v28 }
 0x665   :  { %v6723_v32 = vpop.permute.xlu1 %2503  ;;  %v6730_v23 = vpop.permute.xlu2 %2505 }
 0x666   :  { %5202 = vmatmul.msk.f32.gmra.mxu0 %vm438_vm11, %v1892_v40 }
 0x66d   :  { %v1896_v42 = vpop.permute.xlu1 %1895  ;;  %v1898_v5 = vpop.permute.xlu2 %1897 }
 0x66e   :  { %5203 = vmatmul.msk.f32.gmra.mxu0 %vm438_vm11, %v1894_v21 }
 0x670   :  { %2513 = vrot.lane.b32.xlu0 %v6252_v33, %s5817_s7  ;;  %v918_v33 = vsel %vm359_vm1, %v6739_v46, 0.0 }
 0x675   :  { %v6766_v16 = vpop.permute.xlu1 %2509 }
 0x676   :  { %5204 = vmatmul.msk.f32.gmra.mxu0 %vm438_vm11, %v1896_v42 }
 0x678   :  { %1905 = vrot.lane.b32.xlu0 %v6270_v43, %s5818_s26 }
 0x679   :  { %v6741_v63 = vpop.xlane.xlu0 %901 }
 0x67a   :  { %5522 = vrcp.f32 %v6741_v63  ;;  %vm974_vm9 = vweird.f32 %v6741_v63 }
 0x67e   :  { %5205 = vmatmul.msk.f32.gmra.mxu0 %vm438_vm11, %v1898_v5 }
 0x680   :  { %2519 = vrot.lane.b32.xlu0 %v6312_v58, %s5817_s7  ;;  %919 = vadd.xlane.f32.xlu1 %v918_v33  ;;  %v5523_v35 = vpop.eup %5522 }
 0x681   :  { %v6748_v17 = vpop.xlane.xlu0 %904  ;;  %v970_v28 = vmul.f32 %v5523_v35, %v6741_v63  ;;  %vm975_vm7 = vweird.f32 %v5523_v35 }
 0x682   :  { %vm976_vm10 = vmor %vm974_vm9, %vm975_vm7  ;;  %vm989_vm14 = vweird.f32 %v6748_v17 }
 0x683   :  { %v1316_v9 = vpop.f32.mrf.mxu0  ;;  %v971_v24 = vsub.f32 1.0, %v970_v28 }
 0x688   :  { %2521 = vrot.lane.b32.xlu0 %v6326_v62, %s5817_s7 }
 0x689   :  { %v6758_v56 = vpop.xlane.xlu0 %910 }
 0x68b   :  { %v1319_v43 = vpop.f32.mrf.mxu0 }
 0x68c   :  { %v6753_v36 = vadd.f32 %v1319_v43, %v6423_v25  ;;  %v1172_v27 = vpop.f32.mrf.mxu3  ;;  %v972_v43 = vmul.f32 %v5523_v35, %v971_v24 }
 0x68d   :  { %5179 = vmatmul.msk.f32.vlgmr.msra.gmra.mxu2 %vm438_vm11, %v1172_v27 }
 0x68e   :  { %v1352_v15 = vsel %vm359_vm1, %v6753_v36, -inf  ;;  %v973_v24 = vadd.f32 %v5523_v35, %v972_v43 }
 0x68f   :  { %1353 = vmax.xlane.f32.xlu2 %v1352_v15 }
 0x690   :  { %v977_v43 = vsel %vm976_vm10, %v5523_v35, %v973_v24  ;;  %v995_v35 = vand.u32 2147483648, %v6748_v17  ;;  %v993_v24 = vand.u32 2147483647, %v6748_v17 }
 0x691   :  { %v6771_v4 = vpop.xlane.xlu0 %916 }
 0x692   :  { %vm994_vm0 = vcmp.eq.f32.partialorder %v993_v24, 8.507059e+37 }
 0x693   :  { %v1322_v50 = vpop.f32.mrf.mxu0 }
 0x694   :  { %v6761_v26 = vadd.f32 %v1322_v50, %v6432_v29  ;;  %v1175_v37 = vpop.f32.mrf.mxu3 }
 0x695   :  { %5180 = vmatmul.msk.f32.gmra.mxu2 %vm438_vm11, %v1175_v37  ;;  %v6790_v37 = vadd.f32 %v1316_v9, %v6413_v19  ;;  %v980_v9 = vand.u32 2147483648, %v6741_v63 }
 0x696   :  { %v1355_v22 = vsel %vm359_vm1, %v6761_v26, -inf }
 0x697   :  { %1356 = vmax.xlane.f32.xlu2 %v1355_v22 }
 0x699   :  { %2515 = vrot.lane.b32.xlu1 %v6288_v51, %s5817_s7 }
 0x69b   :  { %v6778_v51 = vpop.f32.mrf.mxu0 }
 0x6a0   :  { %v899_v30 = vpop.xlane.xlu1 %898 }
 0x6a1   :  { %5524 = vrcp.f32 %v899_v30  ;;  %1907 = vrot.lane.b32.xlu1 %v6312_v58, %s5818_s26  ;;  %v965_v33 = vand.u32 2147483648, %v899_v30  ;;  %v963_v50 = vand.u32 2147483647, %v899_v30  ;;  %vm959_vm4 = vweird.f32 %v899_v30 }
 0x6a2   :  { %5526 = vrcp.f32 %v6748_v17 }
 0x6a3   :  { %vm964_vm8 = vcmp.eq.f32.partialorder %v963_v50, 8.507059e+37 }
 0x6a4   :  { %v1900_v40 = vpop.permute.xlu0 %1899 }
 0x6a5   :  { %5206 = vmatmul.msk.f32.gmra.mxu0 %vm438_vm11, %v1900_v40 }
 0x6a7   :  { %v5525_v21 = vpop.eup %5524 }
 0x6a8   :  { %v955_v20 = vmul.f32 %v5525_v21, %v899_v30  ;;  %v6780_v42 = vpop.xlane.xlu1 %907  ;;  %v6782_v5 = vpop.eup %5526  ;;  %vm960_vm3 = vweird.f32 %v5525_v21 }
 0x6a9   :  { %1909 = vrot.lane.b32.xlu1 %v6326_v62, %s5818_s26  ;;  %5528 = vrcp.f32 %v6780_v42  ;;  %v985_v27 = vmul.f32 %v6782_v5, %v6748_v17  ;;  %vm961_vm6 = vmor %vm959_vm4, %vm960_vm3  ;;  %v966_v62 = vor.u32 1.1754944e-38, %v965_v33  ;;  %v1328_v30 = vpop.f32.mrf.mxu0  ;;  %v978_v33 = vand.u32 2147483647, %v6741_v63 }
 0x6aa   :  { %v956_v58 = vsub.f32 1.0, %v955_v20  ;;  %5530 = vrcp.f32 %v6758_v56  ;;  %v6808_v50 = vadd.f32 %v1328_v30, %v6464_v41  ;;  %vm990_vm13 = vweird.f32 %v6782_v5 }
 0x6ab   :  { %v986_v28 = vsub.f32 1.0, %v985_v27  ;;  %vm979_vm12 = vcmp.eq.f32.partialorder %v978_v33, 8.507059e+37  ;;  %vm991_vm15 = vmor %vm989_vm14, %vm990_vm13  ;;  %v1010_v17 = vand.u32 2147483648, %v6780_v42  ;;  %vm1004_vm3 = vweird.f32 %v6780_v42 }
 0x6ac   :  { %v957_v15 = vmul.f32 %v5525_v21, %v956_v58  ;;  %v1349_v58 = vsel %vm359_vm1, %v6790_v37, -inf }
 0x6ad   :  { %v987_v27 = vmul.f32 %v6782_v5, %v986_v28 }
 0x6ae   :  { %v958_v22 = vadd.f32 %v5525_v21, %v957_v15  ;;  %v6797_v15 = vpop.permute.xlu2 %2511 }
 0x6af   :  { %5402 = vrot.lane.b32.xlu2 %v6338_v55, %s5819_s6  ;;  %v5529_v20 = vpop.eup %5528  ;;  %v988_v63 = vadd.f32 %v6782_v5, %v987_v27 }
 0x6b0   :  { %v962_v40 = vsel %vm961_vm6, %v5525_v21, %v958_v22  ;;  %v1000_v21 = vmul.f32 %v5529_v20, %v6780_v42  ;;  %v981_v22 = vor.u32 1.1754944e-38, %v980_v9  ;;  %vm1005_vm2 = vweird.f32 %v5529_v20 }
 0x6b1   :  { %v967_v6 = vsel %vm964_vm8, %v966_v62, %v962_v40  ;;  %v6810_v62 = vpop.xlane.xlu1 %913  ;;  %v5531_v40 = vpop.eup %5530  ;;  %v992_v30 = vsel %vm991_vm15, %v6782_v5, %v988_v63  ;;  %vm1006_vm4 = vmor %vm1004_vm3, %vm1005_vm2  ;;  %vm1019_vm8 = vweird.f32 %v6758_v56  ;;  %vm1049_vm2 = vweird.f32 %v6771_v4 }
 0x6b2   :  { %1350 = vmax.xlane.f32.xlu0 %v1349_v58  ;;  %v968_v3 = vmul.f32 %v6671_v38, %v967_v6  ;;  %v982_v6 = vsel %vm979_vm12, %v981_v22, %v977_v43  ;;  %v1001_v38 = vsub.f32 1.0, %v1000_v21  ;;  %5532 = vrcp.f32 %v6810_v62 }
 0x6b3   :  { %v983_v28 = vmul.f32 %v6620_v12, %v982_v6  ;;  %v1015_v9 = vmul.f32 %v5531_v40, %v6758_v56  ;;  %v996_v21 = vor.u32 1.1754944e-38, %v995_v35  ;;  %5534 = vrcp.f32 %v6771_v4 }
 0x6b4   :  { %5126 = vmatmul.msk.f32.gmra.mxu3 %vm359_vm1, %v968_v3  ;;  %v1361_v3 = vsel %vm359_vm1, %v6808_v50, -inf  ;;  %v1002_v33 = vmul.f32 %v5529_v20, %v1001_v38  ;;  %v1011_v35 = vor.u32 1.1754944e-38, %v1010_v17  ;;  %vm1020_vm7 = vweird.f32 %v5531_v40 }
 0x6b5   :  { %v997_v43 = vsel %vm994_vm0, %v996_v21, %v992_v30  ;;  %v1016_v27 = vsub.f32 1.0, %v1015_v9  ;;  %vm1021_vm9 = vmor %vm1019_vm8, %vm1020_vm7  ;;  %vm1034_vm13 = vweird.f32 %v6810_v62 }
 0x6b6   :  { %v1904_v58 = vpop.permute.xlu2 %1903  ;;  %v1003_v12 = vadd.f32 %v5529_v20, %v1002_v33  ;;  %v998_v6 = vmul.f32 %v6633_v14, %v997_v43 }
 0x6b7   :  { %v1017_v63 = vmul.f32 %v5531_v40, %v1016_v27 }
 0x6b8   :  { %v5533_v22 = vpop.eup %5532  ;;  %v1007_v38 = vsel %vm1006_vm4, %v5529_v20, %v1003_v12  ;;  %v1023_v20 = vand.u32 2147483647, %v6758_v56 }
 0x6b9   :  { %v1030_v5 = vmul.f32 %v5533_v22, %v6810_v62  ;;  %v1018_v30 = vadd.f32 %v5531_v40, %v1017_v63  ;;  %v5535_v33 = vpop.eup %5534  ;;  %vm1035_vm12 = vweird.f32 %v5533_v22 }
 0x6ba   :  { %1362 = vmax.xlane.f32.xlu0 %v1361_v3  ;;  %v1008_v3 = vand.u32 2147483647, %v6780_v42  ;;  %v1025_v42 = vand.u32 2147483648, %v6758_v56  ;;  %v1045_v43 = vmul.f32 %v5535_v33, %v6771_v4  ;;  %vm1024_vm10 = vcmp.eq.f32.partialorder %v1023_v20, 8.507059e+37  ;;  %vm1036_vm14 = vmor %vm1034_vm13, %vm1035_vm12 }
 0x6bb   :  { %v1031_v9 = vsub.f32 1.0, %v1030_v5  ;;  %v1022_v27 = vsel %vm1021_vm9, %v5531_v40, %v1018_v30  ;;  %v1040_v40 = vand.u32 2147483648, %v6810_v62  ;;  %vm1050_vm0 = vweird.f32 %v5535_v33 }
 0x6bc   :  { %5127 = vmatmul.msk.f32.gmra.mxu3 %vm359_vm1, %v983_v28  ;;  %vm1009_vm6 = vcmp.eq.f32.partialorder %v1008_v3, 8.507059e+37  ;;  %v1026_v17 = vor.u32 1.1754944e-38, %v1025_v42  ;;  %v1046_v5 = vsub.f32 1.0, %v1045_v43  ;;  %vm1051_vm3 = vmor %vm1049_vm2, %vm1050_vm0 }
 0x6bd   :  { %v1012_v24 = vsel %vm1009_vm6, %v1011_v35, %v1007_v38  ;;  %v1032_v12 = vmul.f32 %v5533_v22, %v1031_v9  ;;  %v1038_v35 = vand.u32 2147483647, %v6810_v62  ;;  %v1055_v62 = vand.u32 2147483648, %v6771_v4 }
 0x6be   :  { %v6831_v28 = vpop.permute.xlu2 %2517  ;;  %v1013_v21 = vmul.f32 %v6681_v18, %v1012_v24  ;;  %v1027_v18 = vsel %vm1024_vm10, %v1026_v17, %v1022_v27  ;;  %v1047_v9 = vmul.f32 %v5535_v33, %v1046_v5 }
 0x6bf   :  { %v1033_v56 = vadd.f32 %v5533_v22, %v1032_v12  ;;  %vm1039_vm15 = vcmp.eq.f32.partialorder %v1038_v35, 8.507059e+37  ;;  %v1056_v43 = vor.u32 1.1754944e-38, %v1055_v62 }
 0x6c0   :  { %v1048_v30 = vadd.f32 %v5535_v33, %v1047_v9 }
 0x6c1   :  { %v1037_v24 = vsel %vm1036_vm14, %v5533_v22, %v1033_v56 }
 0x6c2   :  { %v1052_v20 = vsel %vm1051_vm3, %v5535_v33, %v1048_v30 }
 0x6c4   :  { %5128 = vmatmul.msk.f32.gmra.mxu3 %vm359_vm1, %v998_v6  ;;  %v6842_v6 = vadd.f32 %v6737_v31, %v6403_v13  ;;  %v1028_v31 = vmul.f32 %v6644_v48, %v1027_v18  ;;  %v1331_v18 = vpop.f32.mrf.mxu0 }
 0x6c6   :  { %v1345_v3 = vpop.xlane.xlu2 %1344  ;;  %v1346_v63 = vsel %vm359_vm1, %v6842_v6, -inf }
 0x6c7   :  { %v1376_v38 = vsub.f32 %v6699_v47, %v1345_v3 }
 0x6c8   :  { %v1902_v14 = vpop.permute.xlu1 %1901 }
 0x6c9   :  { %5207 = vmatmul.msk.f32.gmra.mxu0 %vm438_vm11, %v1902_v14  ;;  %v1387_v47 = vmul.f32 1.442695, %v1376_v38  ;;  %v1041_v14 = vor.u32 1.1754944e-38, %v1040_v40 }
 0x6cb   :  { %v1042_v48 = vsel %vm1039_vm15, %v1041_v14, %v1037_v24  ;;  %5536 = vpow2.f32 %v1387_v47 }
 0x6cc   :  { %5129 = vmatmul.msk.f32.gmra.mxu3 %vm359_vm1, %v1013_v21  ;;  %v1043_v21 = vmul.f32 %v6690_v34, %v1042_v48 }
 0x6ce   :  { %5407 = vrot.lane.b32.xlu0 %v6304_v53, %s5819_s6 }
 0x6cf   :  { %v6862_v42 = vpop.xlane.xlu0 %922 }
 0x6d0   :  { %5538 = vrcp.f32 %v6862_v42  ;;  %vm1079_vm12 = vweird.f32 %v6862_v42 }
 0x6d1   :  { %5208 = vmatmul.msk.f32.gmra.mxu0 %vm438_vm11, %v1904_v58  ;;  %v6857_v58 = vadd.f32 %v6778_v51, %v6449_v52  ;;  %v1053_v51 = vand.u32 2147483647, %v6771_v4  ;;  %v6870_v27 = vpop.eup %5536  ;;  %v6879_v4 = vadd.f32 %v1331_v18, %v6460_v44 }
 0x6d2   :  { %v1409_v3 = vsel %vm359_vm1, %v6870_v27, 0.0 }
 0x6d3   :  { %1347 = vmax.xlane.f32.xlu1 %v1346_v63  ;;  %v1358_v22 = vsel %vm359_vm1, %v6857_v58, -inf  ;;  %vm1054_vm4 = vcmp.eq.f32.partialorder %v1053_v51, 8.507059e+37  ;;  %v1364_v5 = vsel %vm359_vm1, %v6879_v4, -inf }
 0x6d4   :  { %5130 = vmatmul.msk.f32.gmra.mxu3 %vm359_vm1, %v1028_v31  ;;  %v1057_v12 = vsel %vm1054_vm4, %v1056_v43, %v1052_v20 }
 0x6d5   :  { %v1058_v34 = vmul.f32 %v6653_v10, %v1057_v12  ;;  %v1334_v10 = vpop.f32.mrf.mxu0 }
 0x6d6   :  { %5417 = vrot.lane.b32.xlu0 %v6264_v39, %s5819_s6  ;;  %v5539_v38 = vpop.eup %5538  ;;  %v6887_v31 = vadd.f32 %v1334_v10, %v6480_v60  ;;  %v1083_v10 = vand.u32 2147483647, %v6862_v42 }
 0x6d7   :  { %v1075_v40 = vmul.f32 %v5539_v38, %v6862_v42  ;;  %vm1080_vm9 = vweird.f32 %v5539_v38 }
 0x6d8   :  { %v1367_v47 = vsel %vm359_vm1, %v6887_v31, -inf  ;;  %vm1081_vm13 = vmor %vm1079_vm12, %vm1080_vm9  ;;  %vm1084_vm14 = vcmp.eq.f32.partialorder %v1083_v10, 8.507059e+37 }
 0x6d9   :  { %v1076_v35 = vsub.f32 1.0, %v1075_v40 }
 0x6db   :  { %1359 = vmax.xlane.f32.xlu1 %v1358_v22  ;;  %v1077_v22 = vmul.f32 %v5539_v38, %v1076_v35 }
 0x6dc   :  { %5131 = vmatmul.msk.f32.gmra.mxu3 %vm359_vm1, %v1043_v21 }
 0x6dd   :  { %v1337_v48 = vpop.f32.mrf.mxu0 }
 0x6de   :  { %v6892_v51 = vadd.f32 %v1337_v48, %v6496_v8 }
 0x6e2   :  { %v6872_v17 = vpop.permute.xlu0 %2513 }
 0x6e3   :  { %1410 = vadd.xlane.f32.xlu1 %v1409_v3 }
 0x6e4   :  { %5132 = vmatmul.msk.f32.gmra.mxu3 %vm359_vm1, %v1058_v34  ;;  %v1078_v34 = vadd.f32 %v5539_v38, %v1077_v22 }
 0x6e6   :  { %v1082_v40 = vsel %vm1081_vm13, %v5539_v38, %v1078_v34 }
 0x6ea   :  { %v1906_v33 = vpop.permute.xlu0 %1905 }
 0x6eb   :  { %1365 = vmax.xlane.f32.xlu1 %v1364_v5  ;;  %5209 = vmatmul.msk.f32.gmra.mxu0 %vm438_vm11, %v1906_v33  ;;  %v1085_v33 = vand.u32 2147483648, %v6862_v42 }
 0x6f3   :  { %v920_v56 = vpop.xlane.xlu1 %919 }
 0x6f4   :  { %5540 = vrcp.f32 %v920_v56  ;;  %v1070_v14 = vand.u32 2147483648, %v920_v56  ;;  %v1068_v62 = vand.u32 2147483647, %v920_v56  ;;  %vm1064_vm7 = vweird.f32 %v920_v56 }
 0x6f6   :  { %v1071_v43 = vor.u32 1.1754944e-38, %v1070_v14  ;;  %vm1069_vm10 = vcmp.eq.f32.partialorder %v1068_v62, 8.507059e+37 }
 0x6fa   :  { %v5541_v63 = vpop.eup %5540 }
 0x6fb   :  { %v1060_v24 = vmul.f32 %v5541_v63, %v920_v56  ;;  %vm1065_vm6 = vweird.f32 %v5541_v63 }
 0x6fc   :  { %vm1066_vm8 = vmor %vm1064_vm7, %vm1065_vm6 }
 0x6fd   :  { %v1061_v9 = vsub.f32 1.0, %v1060_v24 }
 0x6ff   :  { %v1062_v30 = vmul.f32 %v5541_v63, %v1061_v9 }
 0x700   :  { %1368 = vmax.xlane.f32.xlu0 %v1367_v47 }
 0x701   :  { %v1063_v21 = vadd.f32 %v5541_v63, %v1062_v30  ;;  %v6915_v30 = vpop.permute.xlu0 %2519 }
 0x702   :  { %v1354_v20 = vpop.xlane.xlu2 %1353 }
 0x703   :  { %v1379_v12 = vsub.f32 %v6753_v36, %v1354_v20  ;;  %v1067_v3 = vsel %vm1066_vm8, %v5541_v63, %v1063_v21  ;;  %v1370_v36 = vsel %vm359_vm1, %v6892_v51, -inf  ;;  %v1086_v63 = vor.u32 1.1754944e-38, %v1085_v33 }
 0x704   :  { %5412 = vrot.lane.b32.xlu1 %v6274_v45, %s5819_s6  ;;  %v1072_v18 = vsel %vm1069_vm10, %v1071_v43, %v1067_v3 }
 0x705   :  { %v1393_v5 = vmul.f32 1.442695, %v1379_v12  ;;  %v1073_v56 = vmul.f32 %v6739_v46, %v1072_v18  ;;  %v1087_v24 = vsel %vm1084_vm14, %v1086_v63, %v1082_v40  ;;  %v6925_v12 = vpop.f32.mrf.mxu0 }
 0x706   :  { %v1088_v14 = vmul.f32 %v6714_v1, %v1087_v24 }
 0x707   :  { %5542 = vpow2.f32 %v1393_v5  ;;  %5133 = vmatmul.msk.f32.gmra.mxu3 %vm359_vm1, %v1073_v56 }
 0x708   :  { %1371 = vmax.xlane.f32.xlu0 %v1370_v36 }
 0x709   :  { %v6923_v43 = vpop.permute.xlu0 %2521 }
 0x70a   :  { %v1357_v35 = vpop.xlane.xlu2 %1356 }
 0x70b   :  { %v1380_v9 = vsub.f32 %v6761_v26, %v1357_v35  ;;  %v6905_v46 = vpop.permute.xlu1 %2515 }
 0x70c   :  { %5422 = vrot.lane.b32.xlu1 %v6286_v49, %s5819_s6 }
 0x70d   :  { %v6909_v42 = vpop.eup %5542  ;;  %v1395_v47 = vmul.f32 1.442695, %v1380_v9  ;;  %v1994_v33 = vpop.f32.mrf.mxu0 }
 0x70e   :  { %v1418_v38 = vsel %vm359_vm1, %v6909_v42, 0.0  ;;  %v6934_v63 = vadd.f32 %v1994_v33, %v6393_v7 }
 0x70f   :  { %5544 = vpow2.f32 %v1395_v47  ;;  %5134 = vmatmul.msk.f32.gmra.mxu3 %vm359_vm1, %v1088_v14 }
 0x710   :  { %1419 = vadd.xlane.f32.xlu0 %v1418_v38 }
 0x712   :  { %v5403_v48 = vpop.permute.xlu2 %5402 }
 0x713   :  { %v5404_v26 = vunpack.i.l.bf16 %v5403_v48  ;;  %v1908_v62 = vpop.permute.xlu1 %1907  ;;  %v5405_v21 = vunpack.i.h.bf16 %v5403_v48 }
 0x714   :  { %5210 = vmatmul.msk.f32.gmra.mxu0 %vm438_vm11, %v1908_v62 }
 0x715   :  { %v6918_v22 = vpop.eup %5544  ;;  %1678 = vmatpush.msra.mxu1 %v5404_v26  ;;  %v1997_v10 = vpop.f32.mrf.mxu0 }
 0x716   :  { %v1421_v1 = vsel %vm359_vm1, %v6918_v22, 0.0  ;;  %v6941_v38 = vadd.f32 %v1997_v10, %v6403_v13 }
 0x717   :  { %1679 = vmatpush.msra.mxu1 %v5405_v21 }
 0x718   :  { %1422 = vadd.xlane.f32.xlu0 %v1421_v1 }
 0x71b   :  { %v1910_v20 = vpop.permute.xlu1 %1909 }
 0x71c   :  { %5211 = vmatmul.msk.f32.gmra.mxu0 %vm438_vm11, %v1910_v20 }
 0x71d   :  { %v2000_v9 = vpop.f32.mrf.mxu0 }
 0x725   :  { %v1351_v3 = vpop.xlane.xlu0 %1350 }
 0x726   :  { %v1378_v34 = vsub.f32 %v6790_v37, %v1351_v3  ;;  %v2027_v37 = vsel %vm359_vm1, %v6934_v63, -inf }
 0x728   :  { %v1391_v18 = vmul.f32 1.442695, %v1378_v34  ;;  %v2003_v34 = vpop.f32.mrf.mxu0 }
 0x72a   :  { %5546 = vpow2.f32 %v1391_v18 }
 0x72d   :  { %v1363_v40 = vpop.xlane.xlu0 %1362 }
 0x72e   :  { %v1382_v35 = vsub.f32 %v6808_v50, %v1363_v40  ;;  %v2030_v50 = vsel %vm359_vm1, %v6941_v38, -inf }
 0x730   :  { %v6928_v5 = vpop.eup %5546  ;;  %v1399_v47 = vmul.f32 1.442695, %v1382_v35 }
 0x731   :  { %v1415_v56 = vsel %vm359_vm1, %v6928_v5, 0.0 }
 0x732   :  { %5548 = vpow2.f32 %v1399_v47 }
 0x736   :  { %1416 = vadd.xlane.f32.xlu1 %v1415_v56 }
 0x737   :  { %v1178_v36 = vpop.f32.mrf.mxu3 }
 0x738   :  { %5181 = vmatmul.msk.f32.gmra.mxu2 %vm438_vm11, %v1178_v36  ;;  %v6947_v3 = vpop.eup %5548 }
 0x739   :  { %v1427_v18 = vsel %vm359_vm1, %v6947_v3, 0.0 }
 0x73e   :  { %2028 = vmax.xlane.f32.xlu1 %v2027_v37  ;;  %v2006_v37 = vpop.f32.mrf.mxu0 }
 0x73f   :  { %v1181_v24 = vpop.f32.mrf.mxu3 }
 0x740   :  { %v5408_v14 = vpop.permute.xlu0 %5407  ;;  %5182 = vmatmul.msk.f32.gmra.mxu2 %vm438_vm11, %v1181_v24 }
 0x741   :  { %v5409_v48 = vunpack.i.l.bf16 %v5408_v14  ;;  %v5410_v26 = vunpack.i.h.bf16 %v5408_v14 }
 0x743   :  { %1680 = vmatpush.msra.mxu1 %v5409_v48  ;;  %v6968_v48 = vadd.f32 %v2006_v37, %v6432_v29 }
 0x745   :  { %1681 = vmatpush.msra.mxu1 %v5410_v26 }
 0x746   :  { %2031 = vmax.xlane.f32.xlu1 %v2030_v50  ;;  %v1348_v62 = vpop.xlane.xlu1 %1347  ;;  %v2009_v50 = vpop.f32.mrf.mxu0 }
 0x747   :  { %v1377_v21 = vsub.f32 %v6842_v6, %v1348_v62  ;;  %v1184_v1 = vpop.f32.mrf.mxu3  ;;  %v6956_v6 = vadd.f32 %v2003_v34, %v6423_v25  ;;  %v2039_v62 = vsel %vm359_vm1, %v6968_v48, -inf }
 0x748   :  { %5183 = vmatmul.msk.f32.gmra.mxu2 %vm438_vm11, %v1184_v1 }
 0x749   :  { %v1389_v20 = vmul.f32 1.442695, %v1377_v21  ;;  %v2036_v24 = vsel %vm359_vm1, %v6956_v6, -inf  ;;  %v6975_v21 = vadd.f32 %v2000_v9, %v6413_v19 }
 0x74b   :  { %5550 = vpow2.f32 %v1389_v20 }
 0x74e   :  { %1428 = vadd.xlane.f32.xlu1 %v1427_v18  ;;  %v1360_v33 = vpop.xlane.xlu1 %1359  ;;  %v6980_v18 = vadd.f32 %v2009_v50, %v6449_v52 }
 0x74f   :  { %v1381_v56 = vsub.f32 %v6857_v58, %v1360_v33  ;;  %v1187_v10 = vpop.f32.mrf.mxu3 }
 0x750   :  { %5184 = vmatmul.msk.f32.gmra.mxu2 %vm438_vm11, %v1187_v10  ;;  %v2012_v10 = vpop.f32.mrf.mxu0  ;;  %v2042_v9 = vsel %vm359_vm1, %v6980_v18, -inf }
 0x751   :  { %v6953_v36 = vpop.eup %5550  ;;  %v1397_v40 = vmul.f32 1.442695, %v1381_v56  ;;  %v2033_v56 = vsel %vm359_vm1, %v6975_v21, -inf }
 0x752   :  { %v1412_v35 = vsel %vm359_vm1, %v6953_v36, 0.0 }
 0x753   :  { %5552 = vpow2.f32 %v1397_v40  ;;  %1413 = vadd.xlane.f32.xlu2 %v1412_v35  ;;  %v6990_v35 = vadd.f32 %v2012_v10, %v6464_v41 }
 0x756   :  { %2037 = vmax.xlane.f32.xlu1 %v2036_v24  ;;  %v6962_v58 = vpop.xlane.xlu1 %1410  ;;  %v5418_v24 = vpop.permute.xlu0 %5417 }
 0x757   :  { %v1190_v47 = vpop.f32.mrf.mxu3  ;;  %vm1447_vm0 = vweird.f32 %v6962_v58 }
 0x758   :  { %5185 = vmatmul.msk.f32.gmra.mxu2 %vm438_vm11, %v1190_v47  ;;  %v2045_v47 = vsel %vm359_vm1, %v6990_v35, -inf }
 0x759   :  { %v6965_v14 = vpop.eup %5552 }
 0x75a   :  { %v1424_v26 = vsel %vm359_vm1, %v6965_v14, 0.0 }
 0x75b   :  { %1425 = vadd.xlane.f32.xlu0 %v1424_v26  ;;  %v2015_v26 = vpop.f32.mrf.mxu0 }
 0x75c   :  { %v6999_v50 = vadd.f32 %v2015_v26, %v6460_v44 }
 0x75e   :  { %2040 = vmax.xlane.f32.xlu1 %v2039_v62  ;;  %v1366_v1 = vpop.xlane.xlu1 %1365 }
 0x75f   :  { %v1383_v20 = vsub.f32 %v6879_v4, %v1366_v1  ;;  %v1193_v34 = vpop.f32.mrf.mxu3 }
 0x760   :  { %5186 = vmatmul.msk.f32.gmra.mxu2 %vm438_vm11, %v1193_v34 }
 0x761   :  { %v1401_v33 = vmul.f32 1.442695, %v1383_v20  ;;  %v2048_v20 = vsel %vm359_vm1, %v6999_v50, -inf }
 0x763   :  { %5554 = vpow2.f32 %v1401_v33  ;;  %2034 = vmax.xlane.f32.xlu0 %v2033_v56 }
 0x766   :  { %2043 = vmax.xlane.f32.xlu1 %v2042_v9  ;;  %v5419_v9 = vunpack.i.l.bf16 %v5418_v24 }
 0x767   :  { %v1196_v40 = vpop.f32.mrf.mxu3 }
 0x768   :  { %5187 = vmatmul.msk.f32.gmra.mxu2 %vm438_vm11, %v1196_v40 }
 0x769   :  { %v6987_v4 = vpop.eup %5554 }
 0x76a   :  { %v1430_v37 = vsel %vm359_vm1, %v6987_v4, 0.0 }
 0x76b   :  { %1607 = vrot.lane.b32.xlu2 %v6314_v59, %s5819_s6  ;;  %1431 = vadd.xlane.f32.xlu0 %v1430_v37 }
 0x76e   :  { %2046 = vmax.xlane.f32.xlu1 %v2045_v47  ;;  %v5420_v47 = vunpack.i.h.bf16 %v5418_v24 }
 0x773   :  { %v1369_v62 = vpop.xlane.xlu0 %1368 }
 0x774   :  { %v1384_v1 = vsub.f32 %v6887_v31, %v1369_v62 }
 0x776   :  { %v1403_v34 = vmul.f32 1.442695, %v1384_v1  ;;  %2049 = vmax.xlane.f32.xlu1 %v2048_v20  ;;  %v5413_v33 = vpop.permute.xlu1 %5412 }
 0x777   :  { %v5414_v56 = vunpack.i.l.bf16 %v5413_v33  ;;  %v5415_v10 = vunpack.i.h.bf16 %v5413_v33  ;;  %v7016_v33 = vadd.f32 %v6925_v12, %v6487_v54 }
 0x778   :  { %5556 = vpow2.f32 %v1403_v34 }
 0x779   :  { %1682 = vmatpush.msra.mxu1 %v5414_v56 }
 0x77b   :  { %v1372_v40 = vpop.xlane.xlu0 %1371  ;;  %1683 = vmatpush.msra.mxu1 %v5415_v10 }
 0x77c   :  { %v1385_v37 = vsub.f32 %v6892_v51, %v1372_v40 }
 0x77d   :  { %1684 = vmatpush.msra.mxu1 %v5419_v9  ;;  %v7042_v9 = vpop.f32.mrf.mxu2 }
 0x77e   :  { %v7005_v26 = vpop.eup %5556  ;;  %v1405_v31 = vmul.f32 1.442695, %v1385_v37  ;;  %v5423_v62 = vpop.permute.xlu1 %5422  ;;  %8937 = vst [vmem:[#allocation16_spill] sm:$0xff] %v7042_v9 }
 0x77f   :  { %v5424_v0 = vunpack.i.l.bf16 %v5423_v62  ;;  %1685 = vmatpush.msra.mxu1 %v5420_v47  ;;  %v1433_v1 = vsel %vm359_vm1, %v7005_v26, 0.0  ;;  %v5425_v20 = vunpack.i.h.bf16 %v5423_v62 }
 0x780   :  { %5558 = vpow2.f32 %v1405_v31  ;;  %1434 = vadd.xlane.f32.xlu0 %v1433_v1 }
 0x781   :  { %1686 = vmatpush.msra.mxu1 %v5424_v0  ;;  %v1373_v0 = vsel %vm359_vm1, %v7016_v33, -inf  ;;  %5560 = vrcp.f32 %v6962_v58 }
 0x783   :  { %1687 = vmatpush.msra.mxu1 %v5425_v20  ;;  %v7047_v40 = vpop.xlane.xlu0 %1419  ;;  %v1453_v20 = vand.u32 2147483648, %v6962_v58 }
 0x785   :  { %v7053_v31 = vpop.f32.mrf.mxu2 }
 0x786   :  { %v7009_v34 = vpop.eup %5558  ;;  %8938 = vst [vmem:[#allocation17_spill] sm:$0xff] %v7053_v31 }
 0x787   :  { %v1436_v51 = vsel %vm359_vm1, %v7009_v34, 0.0 }
 0x788   :  { %1437 = vadd.xlane.f32.xlu0 %v1436_v51 }
 0x78a   :  { %v1199_v24 = vpop.f32.mrf.mxu3 }
 0x78b   :  { %5188 = vmatmul.msk.f32.gmra.mxu2 %vm438_vm11, %v1199_v24  ;;  %v7063_v51 = vpop.xlane.xlu0 %1422 }
 0x78f   :  { %5442 = vrot.lane.b32.xlu1 %v6338_v55, %s5820_s0 }
 0x792   :  { %v1202_v56 = vpop.f32.mrf.mxu3 }
 0x793   :  { %5189 = vmatmul.msk.f32.gmra.mxu2 %vm438_vm11, %v1202_v56 }
 0x794   :  { %1374 = vmax.xlane.f32.xlu2 %v1373_v0 }
 0x797   :  { %5447 = vrot.lane.b32.xlu1 %v6264_v39, %s5821_s4 }
 0x79b   :  { %5245 = vmatmul.msk.f32.vlgmr.msrb.gmra.mxu2 %vm438_vm11, %v6720_v11  ;;  %v5561_v11 = vpop.eup %5560 }
 0x79c   :  { %vm1448_vm15 = vweird.f32 %v5561_v11 }
 0x79d   :  { %vm1449_vm2 = vmor %vm1447_vm0, %vm1448_vm15  ;;  %vm1492_vm15 = vweird.f32 %v7047_v40 }
 0x79f   :  { %5452 = vrot.lane.b32.xlu1 %v6304_v53, %s5820_s0 }
 0x7a3   :  { %5246 = vmatmul.msk.f32.gmra.mxu2 %vm438_vm11, %v6723_v32  ;;  %v1443_v32 = vmul.f32 %v5561_v11, %v6962_v58 }
 0x7a9   :  { %v7031_v12 = vpop.xlane.xlu1 %1416 }
 0x7aa   :  { %5562 = vrcp.f32 %v7031_v12  ;;  %vm1477_vm10 = vweird.f32 %v7031_v12 }
 0x7ab   :  { %5247 = vmatmul.msk.f32.gmra.mxu2 %vm438_vm11, %v6730_v23  ;;  %v1444_v23 = vsub.f32 1.0, %v1443_v32  ;;  %v1454_v32 = vor.u32 1.1754944e-38, %v1453_v20 }
 0x7ac   :  { %5432 = vrot.lane.b32.xlu2 %v6304_v53, %s5821_s4 }
 0x7ad   :  { %v1445_v47 = vmul.f32 %v5561_v11, %v1444_v23 }
 0x7af   :  { %v1446_v1 = vadd.f32 %v5561_v11, %v1445_v47 }
 0x7b0   :  { %v7065_v56 = vpop.eup %5562 }
 0x7b1   :  { %v2029_v10 = vpop.xlane.xlu1 %2028  ;;  %vm1478_vm9 = vweird.f32 %v7065_v56 }
 0x7b2   :  { %v2060_v37 = vsub.f32 %v6934_v63, %v2029_v10  ;;  %v1451_v63 = vand.u32 2147483647, %v6962_v58  ;;  %v1473_v58 = vmul.f32 %v7065_v56, %v7031_v12  ;;  %vm1479_vm12 = vmor %vm1477_vm10, %vm1478_vm9 }
 0x7b3   :  { %5248 = vmatmul.msk.f32.gmra.mxu2 %vm438_vm11, %v6732_v2  ;;  %v2018_v2 = vpop.f32.mrf.mxu0 }
 0x7b4   :  { %5457 = vrot.lane.b32.xlu2 %v6286_v49, %s5821_s4  ;;  %v2071_v62 = vmul.f32 1.442695, %v2060_v37  ;;  %vm1452_vm3 = vcmp.eq.f32.partialorder %v1451_v63, 8.507059e+37 }
 0x7b6   :  { %5564 = vpow2.f32 %v2071_v62  ;;  %v1474_v62 = vsub.f32 1.0, %v1473_v58 }
 0x7b9   :  { %v7049_v53 = vpop.xlane.xlu1 %2031 }
 0x7bb   :  { %5249 = vmatmul.msk.f32.gmra.mxu2 %vm438_vm11, %v6766_v16  ;;  %v7058_v16 = vadd.f32 %v2018_v2, %v6480_v60  ;;  %v7074_v23 = vpop.f32.mrf.mxu2 }
 0x7bc   :  { %8940 = vst [vmem:[#allocation19_spill] sm:$0xff] %v7074_v23  ;;  %v7078_v47 = vpop.eup %5564  ;;  %v1475_v23 = vmul.f32 %v7065_v56, %v1474_v62 }
 0x7bd   :  { %8939 = vst [vmem:[#allocation18_spill] sm:$0xff] %v7058_v16  ;;  %v2051_v10 = vsel %vm359_vm1, %v7058_v16, -inf }
 0x7c1   :  { %v7067_v0 = vpop.xlane.xlu1 %1428 }
 0x7c3   :  { %5250 = vmatmul.msk.f32.gmra.mxu2 %vm438_vm11, %v6797_v15  ;;  %v1450_v15 = vsel %vm1449_vm2, %v5561_v11, %v1446_v1 }
 0x7c4   :  { %v1455_v37 = vsel %vm1452_vm3, %v1454_v32, %v1450_v15  ;;  %v2093_v15 = vsel %vm359_vm1, %v7078_v47, 0.0 }
 0x7c5   :  { %v1456_v63 = vmul.f32 %v6870_v27, %v1455_v37  ;;  %v7096_v27 = vpop.f32.mrf.mxu2 }
 0x7c6   :  { %v1414_v24 = vpop.xlane.xlu2 %1413 }
 0x7c7   :  { %5566 = vrcp.f32 %v1414_v24  ;;  %v1468_v32 = vand.u32 2147483648, %v1414_v24  ;;  %vm1462_vm6 = vweird.f32 %v1414_v24 }
 0x7c8   :  { %5568 = vrcp.f32 %v7047_v40 }
 0x7c9   :  { %2052 = vmax.xlane.f32.xlu1 %v2051_v10  ;;  %5570 = vrcp.f32 %v7063_v51  ;;  %v7091_v58 = vpop.xlane.xlu1 %2037 }
 0x7cb   :  { %5251 = vmatmul.msk.f32.gmra.mxu2 %vm438_vm11, %v6872_v17 }
 0x7cd   :  { %v5567_v11 = vpop.eup %5566 }
 0x7ce   :  { %v7080_v2 = vpop.eup %5568  ;;  %v1458_v1 = vmul.f32 %v5567_v11, %v1414_v24  ;;  %v1608_v61 = vpop.permute.xlu2 %1607  ;;  %vm1463_vm4 = vweird.f32 %v5567_v11 }
 0x7cf   :  { %v7082_v20 = vpop.xlane.xlu0 %1425  ;;  %1688 = vmatpush.msra.mxu1 %v1608_v61  ;;  %v1488_v17 = vmul.f32 %v7080_v2, %v7047_v40  ;;  %v1466_v61 = vand.u32 2147483647, %v1414_v24  ;;  %vm1464_vm7 = vmor %vm1462_vm6, %vm1463_vm4  ;;  %v7100_v62 = vpop.eup %5570  ;;  %v1481_v24 = vand.u32 2147483647, %v7031_v12  ;;  %vm1493_vm14 = vweird.f32 %v7080_v2 }
 0x7d0   :  { %v1459_v10 = vsub.f32 1.0, %v1458_v1  ;;  %5157 = vmatmul.msk.f32.vlgmr.msra.gmra.mxu1 %vm359_vm1, %v1456_v63  ;;  %v1469_v63 = vor.u32 1.1754944e-38, %v1468_v32  ;;  %5572 = vrcp.f32 %v7082_v20  ;;  %vm1494_vm0 = vmor %vm1492_vm15, %vm1493_vm14  ;;  %vm1508_vm3 = vweird.f32 %v7100_v62 }
 0x7d1   :  { %2094 = vadd.xlane.f32.xlu1 %v2093_v15  ;;  %v1489_v1 = vsub.f32 1.0, %v1488_v17  ;;  %vm1467_vm8 = vcmp.eq.f32.partialorder %v1466_v61, 8.507059e+37  ;;  %v1476_v15 = vadd.f32 %v7065_v56, %v1475_v23  ;;  %v1503_v17 = vmul.f32 %v7100_v62, %v7063_v51 }
 0x7d2   :  { %v1460_v31 = vmul.f32 %v5567_v11, %v1459_v10  ;;  %v1483_v10 = vand.u32 2147483648, %v7031_v12  ;;  %vm1482_vm13 = vcmp.eq.f32.partialorder %v1481_v24, 8.507059e+37  ;;  %vm1507_vm4 = vweird.f32 %v7063_v51 }
 0x7d3   :  { %5252 = vmatmul.msk.f32.gmra.mxu2 %vm438_vm11, %v6905_v46  ;;  %v1490_v23 = vmul.f32 %v7080_v2, %v1489_v1  ;;  %v1504_v12 = vsub.f32 1.0, %v1503_v17  ;;  %v1496_v1 = vand.u32 2147483647, %v7047_v40  ;;  %vm1509_vm6 = vmor %vm1507_vm4, %vm1508_vm3  ;;  %vm1522_vm9 = vweird.f32 %v7082_v20 }
 0x7d4   :  { %v1461_v37 = vadd.f32 %v5567_v11, %v1460_v31  ;;  %vm1537_vm14 = vweird.f32 %v7067_v0 }
 0x7d5   :  { %v1491_v32 = vadd.f32 %v7080_v2, %v1490_v23  ;;  %vm1497_vm2 = vcmp.eq.f32.partialorder %v1496_v1, 8.507059e+37 }
 0x7d6   :  { %v1465_v9 = vsel %vm1464_vm7, %v5567_v11, %v1461_v37  ;;  %v5573_v61 = vpop.eup %5572  ;;  %v1498_v37 = vand.u32 2147483648, %v7047_v40 }
 0x7d7   :  { %v2035_v57 = vpop.xlane.xlu0 %2034  ;;  %v1470_v16 = vsel %vm1467_vm8, %v1469_v63, %v1465_v9  ;;  %v7113_v9 = vpop.xlane.xlu1 %2040  ;;  %vm1523_vm8 = vweird.f32 %v5573_v61 }
 0x7d8   :  { %v2062_v46 = vsub.f32 %v6975_v21, %v2035_v57  ;;  %v1471_v31 = vmul.f32 %v6953_v36, %v1470_v16  ;;  %v1480_v57 = vsel %vm1479_vm12, %v7065_v56, %v1476_v15  ;;  %v1484_v21 = vor.u32 1.1754944e-38, %v1483_v10  ;;  %v7117_v16 = vpop.f32.mrf.mxu2  ;;  %vm1524_vm10 = vmor %vm1522_vm9, %vm1523_vm8 }
 0x7d9   :  { %v1518_v15 = vmul.f32 %v5573_v61, %v7082_v20 }
 0x7da   :  { %v2075_v11 = vmul.f32 1.442695, %v2062_v46  ;;  %5158 = vmatmul.msk.f32.gmra.mxu1 %vm359_vm1, %v1471_v31  ;;  %v1485_v36 = vsel %vm1482_vm13, %v1484_v21, %v1480_v57  ;;  %v1495_v46 = vsel %vm1494_vm0, %v7080_v2, %v1491_v32  ;;  %v1499_v31 = vor.u32 1.1754944e-38, %v1498_v37 }
 0x7db   :  { %5253 = vmatmul.msk.f32.gmra.mxu2 %vm438_vm11, %v6831_v28  ;;  %v1486_v56 = vmul.f32 %v6928_v5, %v1485_v36  ;;  %v1505_v28 = vmul.f32 %v7100_v62, %v1504_v12  ;;  %v1519_v24 = vsub.f32 1.0, %v1518_v15  ;;  %v1513_v57 = vand.u32 2147483648, %v7063_v51 }
 0x7dc   :  { %5574 = vpow2.f32 %v2075_v11  ;;  %v1500_v40 = vsel %vm1497_vm2, %v1499_v31, %v1495_v46  ;;  %v1511_v21 = vand.u32 2147483647, %v7063_v51 }
 0x7dd   :  { %5576 = vrcp.f32 %v7067_v0  ;;  %v1506_v23 = vadd.f32 %v7100_v62, %v1505_v28  ;;  %v1520_v12 = vmul.f32 %v5573_v61, %v1519_v24  ;;  %v1514_v37 = vor.u32 1.1754944e-38, %v1513_v57 }
 0x7de   :  { %vm1512_vm7 = vcmp.eq.f32.partialorder %v1511_v21, 8.507059e+37  ;;  %v1528_v28 = vand.u32 2147483648, %v7082_v20 }
 0x7df   :  { %v7136_v5 = vpop.xlane.xlu1 %2043  ;;  %v7138_v11 = vpop.xlane.xlu0 %1431  ;;  %v1510_v32 = vsel %vm1509_vm6, %v7100_v62, %v1506_v23  ;;  %v1526_v62 = vand.u32 2147483647, %v7082_v20 }
 0x7e0   :  { %v7144_v2 = vpop.f32.mrf.mxu2  ;;  %5578 = vrcp.f32 %v7138_v11  ;;  %v1529_v24 = vor.u32 1.1754944e-38, %v1528_v28  ;;  %vm1552_vm3 = vweird.f32 %v7138_v11 }
 0x7e1   :  { %vm1527_vm12 = vcmp.eq.f32.partialorder %v1526_v62, 8.507059e+37  ;;  %v1556_v62 = vand.u32 2147483647, %v7138_v11 }
 0x7e2   :  { %v7125_v63 = vpop.eup %5574  ;;  %5159 = vmatmul.msk.f32.gmra.mxu1 %vm359_vm1, %v1486_v56  ;;  %v1521_v56 = vadd.f32 %v5573_v61, %v1520_v12 }
 0x7e3   :  { %v2099_v10 = vsel %vm359_vm1, %v7125_v63, 0.0  ;;  %5254 = vmatmul.msk.f32.gmra.mxu2 %vm438_vm11, %v6915_v30  ;;  %v5577_v17 = vpop.eup %5576  ;;  %v1501_v30 = vmul.f32 %v6909_v42, %v1500_v40  ;;  %v1515_v42 = vsel %vm1512_vm7, %v1514_v37, %v1510_v32  ;;  %vm1557_vm6 = vcmp.eq.f32.partialorder %v1556_v62, 8.507059e+37 }
 0x7e4   :  { %2100 = vadd.xlane.f32.xlu2 %v2099_v10  ;;  %v1533_v36 = vmul.f32 %v5577_v17, %v7067_v0  ;;  %v1516_v10 = vmul.f32 %v6918_v22, %v1515_v42  ;;  %v1525_v40 = vsel %vm1524_vm10, %v5573_v61, %v1521_v56  ;;  %vm1538_vm13 = vweird.f32 %v5577_v17 }
 0x7e5   :  { %v1530_v22 = vsel %vm1527_vm12, %v1529_v24, %v1525_v40  ;;  %vm1539_vm15 = vmor %vm1537_vm14, %vm1538_vm13 }
 0x7e6   :  { %v1534_v51 = vsub.f32 1.0, %v1533_v36  ;;  %v5579_v1 = vpop.eup %5578  ;;  %v1531_v21 = vmul.f32 %v6965_v14, %v1530_v22 }
 0x7e7   :  { %v7157_v15 = vpop.xlane.xlu1 %2046  ;;  %vm1553_vm2 = vweird.f32 %v5579_v1 }
 0x7e8   :  { %v1535_v46 = vmul.f32 %v5577_v17, %v1534_v51  ;;  %v7162_v31 = vpop.f32.mrf.mxu2  ;;  %vm1554_vm4 = vmor %vm1552_vm3, %vm1553_vm2 }
 0x7ea   :  { %2291 = vrot.lane.b32.xlu1 %v6314_v59, %s5821_s4  ;;  %5160 = vmatmul.msk.f32.gmra.mxu1 %vm359_vm1, %v1501_v30  ;;  %v1536_v57 = vadd.f32 %v5577_v17, %v1535_v46  ;;  %v1543_v30 = vand.u32 2147483648, %v7067_v0 }
 0x7eb   :  { %5255 = vmatmul.msk.f32.gmra.mxu2 %vm438_vm11, %v6923_v43  ;;  %v1548_v43 = vmul.f32 %v5579_v1, %v7138_v11 }
 0x7ec   :  { %v1540_v32 = vsel %vm1539_vm15, %v5577_v17, %v1536_v57  ;;  %v1544_v37 = vor.u32 1.1754944e-38, %v1543_v30 }
 0x7ed   :  { %v1549_v20 = vsub.f32 1.0, %v1548_v43 }
 0x7ef   :  { %v7175_v36 = vpop.xlane.xlu1 %2049  ;;  %v1550_v12 = vmul.f32 %v5579_v1, %v1549_v20 }
 0x7f0   :  { %v7181_v56 = vpop.f32.mrf.mxu2 }
 0x7f1   :  { %v1551_v28 = vadd.f32 %v5579_v1, %v1550_v12 }
 0x7f2   :  { %5467 = vrot.lane.b32.xlu1 %v6264_v39, %s5820_s0  ;;  %5161 = vmatmul.msk.f32.gmra.mxu1 %vm359_vm1, %v1516_v10  ;;  %v1541_v39 = vand.u32 2147483647, %v7067_v0  ;;  %v1558_v10 = vand.u32 2147483648, %v7138_v11 }
 0x7f3   :  { %v7168_v23 = vpop.xlane.xlu0 %1434  ;;  %v1555_v22 = vsel %vm1554_vm4, %v5579_v1, %v1551_v28 }
 0x7f4   :  { %5580 = vrcp.f32 %v7168_v23  ;;  %vm1542_vm0 = vcmp.eq.f32.partialorder %v1541_v39, 8.507059e+37  ;;  %v1559_v20 = vor.u32 1.1754944e-38, %v1558_v10  ;;  %v1573_v12 = vand.u32 2147483648, %v7168_v23 }
 0x7f5   :  { %v1545_v14 = vsel %vm1542_vm0, %v1544_v37, %v1540_v32  ;;  %vm1567_vm8 = vweird.f32 %v7168_v23 }
 0x7f6   :  { %v1546_v17 = vmul.f32 %v6947_v3, %v1545_v14 }
 0x7f8   :  { %v7190_v39 = vpop.f32.mrf.mxu2 }
 0x7fa   :  { %v5581_v61 = vpop.eup %5580  ;;  %5162 = vmatmul.msk.f32.gmra.mxu1 %vm359_vm1, %v1531_v21  ;;  %v1560_v21 = vsel %vm1557_vm6, %v1559_v20, %v1555_v22 }
 0x7fb   :  { %v1563_v42 = vmul.f32 %v5581_v61, %v7168_v23  ;;  %v7179_v51 = vpop.xlane.xlu0 %1437  ;;  %vm1568_vm7 = vweird.f32 %v5581_v61  ;;  %v1561_v37 = vmul.f32 %v6987_v4, %v1560_v21 }
 0x7fc   :  { %5582 = vrcp.f32 %v7179_v51  ;;  %vm1569_vm9 = vmor %vm1567_vm8, %vm1568_vm7  ;;  %v1588_v4 = vand.u32 2147483648, %v7179_v51  ;;  %vm1582_vm13 = vweird.f32 %v7179_v51 }
 0x7fd   :  { %v1564_v0 = vsub.f32 1.0, %v1563_v42  ;;  %v1571_v42 = vand.u32 2147483647, %v7168_v23  ;;  %v1586_v23 = vand.u32 2147483647, %v7179_v51 }
 0x7ff   :  { %v1565_v40 = vmul.f32 %v5581_v61, %v1564_v0  ;;  %vm1572_vm10 = vcmp.eq.f32.partialorder %v1571_v42, 8.507059e+37  ;;  %vm1587_vm15 = vcmp.eq.f32.partialorder %v1586_v23, 8.507059e+37 }
 0x801   :  { %v5443_v46 = vpop.permute.xlu1 %5442  ;;  %v1566_v11 = vadd.f32 %v5581_v61, %v1565_v40 }
 0x802   :  { %v5583_v43 = vpop.eup %5582  ;;  %v5444_v24 = vunpack.i.l.bf16 %v5443_v46  ;;  %5163 = vmatmul.msk.f32.gmra.mxu1 %vm359_vm1, %v1546_v17  ;;  %v5445_v30 = vunpack.i.h.bf16 %v5443_v46  ;;  %v1574_v17 = vor.u32 1.1754944e-38, %v1573_v12 }
 0x803   :  { %v1578_v57 = vmul.f32 %v5583_v43, %v7179_v51  ;;  %v1570_v10 = vsel %vm1569_vm9, %v5581_v61, %v1566_v11  ;;  %vm1583_vm12 = vweird.f32 %v5583_v43 }
 0x804   :  { %2974 = vmatpush.msra.mxu0 %v5444_v24  ;;  %v1575_v62 = vsel %vm1572_vm10, %v1574_v17, %v1570_v10  ;;  %vm1584_vm14 = vmor %vm1582_vm13, %vm1583_vm12 }
 0x805   :  { %v1579_v3 = vsub.f32 1.0, %v1578_v57  ;;  %v1589_v57 = vor.u32 1.1754944e-38, %v1588_v4  ;;  %v2021_v4 = vpop.f32.mrf.mxu0 }
 0x806   :  { %2975 = vmatpush.msra.mxu0 %v5445_v30 }
 0x807   :  { %v1375_v32 = vpop.xlane.xlu2 %1374  ;;  %v1580_v0 = vmul.f32 %v5583_v43, %v1579_v3 }
 0x808   :  { %v1386_v1 = vsub.f32 %v7016_v33, %v1375_v32  ;;  %v1576_v33 = vmul.f32 %v7005_v26, %v1575_v62 }
 0x809   :  { %v7197_v14 = vpop.permute.xlu1 %5447  ;;  %v1581_v40 = vadd.f32 %v5583_v43, %v1580_v0 }
 0x80a   :  { %v1407_v28 = vmul.f32 1.442695, %v1386_v1  ;;  %5164 = vmatmul.msk.f32.gmra.mxu1 %vm359_vm1, %v1561_v37  ;;  %v695_v1 = vld [vmem:[%s8878_s9 + $0x8] sm:$0xff] }
 0x80b   :  { %v1585_v20 = vsel %vm1584_vm14, %v5583_v43, %v1581_v40  ;;  %1771 = vmatpush.msra.mxu3 %v695_v1 }
 0x80c   :  { %5584 = vpow2.f32 %v1407_v28  ;;  %v1590_v3 = vsel %vm1587_vm15, %v1589_v57, %v1585_v20 }
 0x80d   :  { %v1591_v51 = vmul.f32 %v7009_v34, %v1590_v3 }
 0x80e   :  { %v7200_v46 = vpop.f32.mrf.mxu2 }
 0x811   :  { %v5453_v24 = vpop.permute.xlu1 %5452 }
 0x812   :  { %v7206_v22 = vpop.eup %5584  ;;  %v5454_v61 = vunpack.i.l.bf16 %v5453_v24  ;;  %5165 = vmatmul.msk.f32.gmra.mxu1 %vm359_vm1, %v1576_v33  ;;  %v5455_v21 = vunpack.i.h.bf16 %v5453_v24  ;;  %v7252_v33 = vadd.f32 %v2021_v4, %v6496_v8 }
 0x813   :  { %v1439_v30 = vsel %vm359_vm1, %v7206_v22, 0.0 }
 0x814   :  { %1440 = vadd.xlane.f32.xlu0 %v1439_v30  ;;  %2976 = vmatpush.msra.mxu0 %v5454_v61 }
 0x816   :  { %v7211_v26 = vpop.f32.mrf.mxu2  ;;  %2977 = vmatpush.msra.mxu0 %v5455_v21 }
 0x81a   :  { %5166 = vmatmul.msk.f32.gmra.mxu1 %vm359_vm1, %v1591_v51 }
 0x81e   :  { %v2606_v11 = vpop.f32.mrf.mxu2 }
 0x81f   :  { %v7263_v24 = vadd.f32 %v2606_v11, %v6393_v7 }
 0x821   :  { %v2639_v20 = vsel %vm359_vm1, %v7263_v24, -inf }
 0x826   :  { %v2609_v12 = vpop.f32.mrf.mxu2 }
 0x827   :  { %v7216_v43 = vadd.f32 %v2609_v12, %v6403_v13 }
 0x828   :  { %5427 = vrot.lane.b32.xlu0 %v6338_v55, %s5821_s4 }
 0x829   :  { %v2642_v32 = vsel %vm359_vm1, %v7216_v43, -inf }
 0x82a   :  { %2643 = vmax.xlane.f32.xlu1 %v2642_v32 }
 0x82e   :  { %v2612_v37 = vpop.f32.mrf.mxu2 }
 0x82f   :  { %v7226_v34 = vadd.f32 %v2612_v37, %v6413_v19  ;;  %v5433_v37 = vpop.permute.xlu2 %5432 }
 0x830   :  { %5437 = vrot.lane.b32.xlu0 %v6274_v45, %s5821_s4 }
 0x831   :  { %v2645_v13 = vsel %vm359_vm1, %v7226_v34, -inf }
 0x832   :  { %2646 = vmax.xlane.f32.xlu2 %v2645_v13 }
 0x836   :  { %v2615_v55 = vpop.f32.mrf.mxu2 }
 0x837   :  { %v7233_v42 = vadd.f32 %v2615_v55, %v6423_v25  ;;  %v2061_v25 = vsub.f32 %v6941_v38, %v7049_v53 }
 0x839   :  { %v2648_v0 = vsel %vm359_vm1, %v7233_v42, -inf }
 0x83a   :  { %2649 = vmax.xlane.f32.xlu2 %v2648_v0 }
 0x83c   :  { %v7278_v11 = vpop.xlane.xlu1 %2052 }
 0x83e   :  { %v2618_v28 = vpop.f32.mrf.mxu2 }
 0x83f   :  { %v7238_v10 = vadd.f32 %v2618_v28, %v6432_v29  ;;  %v2073_v29 = vmul.f32 1.442695, %v2061_v25 }
 0x841   :  { %v2651_v19 = vsel %vm359_vm1, %v7238_v10, -inf  ;;  %5586 = vpow2.f32 %v2073_v29 }
 0x842   :  { %2652 = vmax.xlane.f32.xlu2 %v2651_v19 }
 0x843   :  { %5472 = vrot.lane.b32.xlu1 %v6286_v49, %s5820_s0  ;;  %v2054_v49 = vsel %vm359_vm1, %v7252_v33, -inf }
 0x844   :  { %v7284_v1 = vpop.xlane.xlu1 %2094 }
 0x845   :  { %vm2131_vm7 = vweird.f32 %v7284_v1 }
 0x846   :  { %v2621_v17 = vpop.f32.mrf.mxu2 }
 0x847   :  { %v7245_v62 = vadd.f32 %v2621_v17, %v6449_v52  ;;  %v7257_v52 = vpop.eup %5586 }
 0x848   :  { %v2096_v53 = vsel %vm359_vm1, %v7257_v52, 0.0 }
 0x849   :  { %v2654_v40 = vsel %vm359_vm1, %v7245_v62, -inf }
 0x84a   :  { %2655 = vmax.xlane.f32.xlu2 %v2654_v40  ;;  %v7290_v40 = vpop.permute.xlu2 %5457 }
 0x84d   :  { %v1690_v23 = vpop.f32.mrf.mxu1 }
 0x84e   :  { %5168 = vmatmul.msk.f32.vlgmr.msra.gmra.mxu3 %vm438_vm11, %v1690_v23  ;;  %v2624_v57 = vpop.f32.mrf.mxu2 }
 0x84f   :  { %v7269_v21 = vadd.f32 %v2624_v57, %v6464_v41 }
 0x851   :  { %v2657_v3 = vsel %vm359_vm1, %v7269_v21, -inf }
 0x852   :  { %2055 = vmax.xlane.f32.xlu2 %v2054_v49 }
 0x856   :  { %v2627_v25 = vpop.f32.mrf.mxu2 }
 0x857   :  { %v1693_v38 = vpop.f32.mrf.mxu1 }
 0x858   :  { %5169 = vmatmul.msk.f32.gmra.mxu3 %vm438_vm11, %v1693_v38 }
 0x85a   :  { %2097 = vadd.xlane.f32.xlu0 %v2096_v53 }
 0x85c   :  { %v7288_v0 = vpop.permute.xlu1 %2291 }
 0x85f   :  { %v1696_v61 = vpop.f32.mrf.mxu1 }
 0x860   :  { %5170 = vmatmul.msk.f32.gmra.mxu3 %vm438_vm11, %v1696_v61 }
 0x862   :  { %2640 = vmax.xlane.f32.xlu0 %v2639_v20 }
 0x867   :  { %v1699_v30 = vpop.f32.mrf.mxu1 }
 0x868   :  { %5171 = vmatmul.msk.f32.gmra.mxu3 %vm438_vm11, %v1699_v30  ;;  %v7296_v30 = vadd.f32 %v2627_v25, %v6460_v44 }
 0x86a   :  { %v2660_v44 = vsel %vm359_vm1, %v7296_v30, -inf }
 0x86d   :  { %2658 = vmax.xlane.f32.xlu1 %v2657_v3  ;;  %v7298_v3 = vpop.permute.xlu1 %5467 }
 0x86f   :  { %v1702_v7 = vpop.f32.mrf.mxu1 }
 0x870   :  { %5172 = vmatmul.msk.f32.gmra.mxu3 %vm438_vm11, %v1702_v7 }
 0x876   :  { %5462 = vrot.lane.b32.xlu0 %v6274_v45, %s5820_s0 }
 0x877   :  { %v1705_v51 = vpop.f32.mrf.mxu1 }
 0x878   :  { %5173 = vmatmul.msk.f32.gmra.mxu3 %vm438_vm11, %v1705_v51  ;;  %v7301_v51 = vpop.xlane.xlu2 %2100 }
 0x87f   :  { %v1708_v12 = vpop.f32.mrf.mxu1 }
 0x880   :  { %5174 = vmatmul.msk.f32.gmra.mxu3 %vm438_vm11, %v1708_v12 }
 0x886   :  { %2903 = vrot.lane.b32.xlu1 %v6314_v59, %s5820_s0 }
 0x887   :  { %v1441_v41 = vpop.xlane.xlu0 %1440  ;;  %v1711_v32 = vpop.f32.mrf.mxu1 }
 0x888   :  { %5588 = vrcp.f32 %v1441_v41  ;;  %5175 = vmatmul.msk.f32.gmra.mxu3 %vm438_vm11, %v1711_v32  ;;  %v1603_v19 = vand.u32 2147483648, %v1441_v41  ;;  %v1601_v17 = vand.u32 2147483647, %v1441_v41  ;;  %vm1597_vm2 = vweird.f32 %v1441_v41 }
 0x889   :  { %5590 = vrcp.f32 %v7284_v1 }
 0x88a   :  { %v1604_v29 = vor.u32 1.1754944e-38, %v1603_v19  ;;  %vm1602_vm4 = vcmp.eq.f32.partialorder %v1601_v17, 8.507059e+37 }
 0x88e   :  { %v5589_v45 = vpop.eup %5588 }
 0x88f   :  { %v1593_v13 = vmul.f32 %v5589_v45, %v1441_v41  ;;  %v1714_v55 = vpop.f32.mrf.mxu1  ;;  %vm1598_vm0 = vweird.f32 %v5589_v45  ;;  %v5591_v23 = vpop.eup %5590  ;;  %v2064_v41 = vsub.f32 %v6968_v48, %v7113_v9 }
 0x890   :  { %5176 = vmatmul.msk.f32.gmra.mxu3 %vm438_vm11, %v1714_v55  ;;  %vm1599_vm3 = vmor %vm1597_vm2, %vm1598_vm0  ;;  %v2127_v20 = vmul.f32 %v5591_v23, %v7284_v1  ;;  %vm2132_vm6 = vweird.f32 %v5591_v23  ;;  %vm2161_vm0 = vweird.f32 %v7301_v51 }
 0x891   :  { %v1594_v28 = vsub.f32 1.0, %v1593_v13  ;;  %v5435_v13 = vunpack.i.h.bf16 %v5433_v37  ;;  %v2079_v55 = vmul.f32 1.442695, %v2064_v41  ;;  %vm2133_vm8 = vmor %vm2131_vm7, %vm2132_vm6 }
 0x892   :  { %v2128_v32 = vsub.f32 1.0, %v2127_v20 }
 0x893   :  { %v1595_v59 = vmul.f32 %v5589_v45, %v1594_v28  ;;  %5592 = vpow2.f32 %v2079_v55 }
 0x894   :  { %v2129_v28 = vmul.f32 %v5591_v23, %v2128_v32 }
 0x895   :  { %v1596_v4 = vadd.f32 %v5589_v45, %v1595_v59 }
 0x897   :  { %v1717_v49 = vpop.f32.mrf.mxu1  ;;  %v1600_v38 = vsel %vm1599_vm3, %v5589_v45, %v1596_v4  ;;  %v5434_v45 = vunpack.i.l.bf16 %v5433_v37  ;;  %v2130_v4 = vadd.f32 %v5591_v23, %v2129_v28  ;;  %v5449_v37 = vunpack.i.l.bf16 %v7197_v14 }
 0x898   :  { %5177 = vmatmul.msk.f32.gmra.mxu3 %vm438_vm11, %v1717_v49  ;;  %v1605_v53 = vsel %vm1602_vm4, %v1604_v29, %v1600_v38  ;;  %v2137_v49 = vand.u32 2147483648, %v7284_v1  ;;  %v2135_v38 = vand.u32 2147483647, %v7284_v1  ;;  %v5460_v1 = vunpack.i.h.bf16 %v7290_v40 }
 0x899   :  { %v1606_v61 = vmul.f32 %v7206_v22, %v1605_v53  ;;  %v2630_v22 = vpop.f32.mrf.mxu2  ;;  %v2134_v20 = vsel %vm2133_vm8, %v5591_v23, %v2130_v4  ;;  %v7322_v41 = vpop.eup %5592 }
 0x89a   :  { %v5428_v57 = vpop.permute.xlu0 %5427  ;;  %v7308_v59 = vadd.f32 %v2630_v22, %v6480_v60  ;;  %vm2136_vm9 = vcmp.eq.f32.partialorder %v2135_v38, 8.507059e+37 }
 0x89b   :  { %v5429_v7 = vunpack.i.l.bf16 %v5428_v57  ;;  %5167 = vmatmul.msk.f32.gmra.mxu1 %vm359_vm1, %v1606_v61  ;;  %v5430_v12 = vunpack.i.h.bf16 %v5428_v57  ;;  %v5450_v61 = vunpack.i.h.bf16 %v7197_v14  ;;  %v5459_v57 = vunpack.i.l.bf16 %v7290_v40 }
 0x89c   :  { %v2663_v60 = vsel %vm359_vm1, %v7308_v59, -inf }
 0x89d   :  { %2362 = vmatpush.msrb.mxu1 %v5429_v7  ;;  %v2644_v17 = vpop.xlane.xlu1 %2643  ;;  %v2138_v7 = vor.u32 1.1754944e-38, %v2137_v49 }
 0x89e   :  { %v2673_v29 = vsub.f32 %v7216_v43, %v2644_v17 }
 0x89f   :  { %2363 = vmatpush.msrb.mxu1 %v5430_v12  ;;  %v2139_v32 = vsel %vm2136_vm9, %v2138_v7, %v2134_v20 }
 0x8a0   :  { %2661 = vmax.xlane.f32.xlu0 %v2660_v44  ;;  %v2685_v43 = vmul.f32 1.442695, %v2673_v29 }
 0x8a1   :  { %2364 = vmatpush.msrb.mxu1 %v5434_v45  ;;  %v2633_v53 = vpop.f32.mrf.mxu2  ;;  %v2140_v45 = vmul.f32 %v7078_v47, %v2139_v32 }
 0x8a2   :  { %v5438_v19 = vpop.permute.xlu0 %5437  ;;  %v7320_v12 = vadd.f32 %v2633_v53, %v6496_v8  ;;  %5594 = vpow2.f32 %v2685_v43  ;;  %v2105_v8 = vsel %vm359_vm1, %v7322_v41, 0.0 }
 0x8a3   :  { %v5439_v25 = vunpack.i.l.bf16 %v5438_v19  ;;  %2365 = vmatpush.msrb.mxu1 %v5435_v13  ;;  %v5440_v48 = vunpack.i.h.bf16 %v5438_v19 }
 0x8a4   :  { %v2666_v23 = vsel %vm359_vm1, %v7320_v12, -inf }
 0x8a5   :  { %v2647_v9 = vpop.xlane.xlu2 %2646  ;;  %2366 = vmatpush.msrb.mxu1 %v5439_v25 }
 0x8a6   :  { %v2674_v14 = vsub.f32 %v7226_v34, %v2647_v9 }
 0x8a7   :  { %2367 = vmatpush.msrb.mxu1 %v5440_v48 }
 0x8a8   :  { %2664 = vmax.xlane.f32.xlu0 %v2663_v60  ;;  %v2687_v40 = vmul.f32 1.442695, %v2674_v14  ;;  %v7335_v44 = vpop.eup %5594 }
 0x8a9   :  { %2368 = vmatpush.msrb.mxu1 %v5449_v37  ;;  %v2708_v34 = vsel %vm359_vm1, %v7335_v44, 0.0  ;;  %v2636_v19 = vpop.f32.mrf.mxu2 }
 0x8aa   :  { %5596 = vpow2.f32 %v2687_v40  ;;  %v7345_v25 = vadd.f32 %v2636_v19, %v6487_v54  ;;  %v2165_v19 = vand.u32 2147483647, %v7301_v51 }
 0x8ab   :  { %2369 = vmatpush.msrb.mxu1 %v5450_v61 }
 0x8ac   :  { %v2669_v9 = vsel %vm359_vm1, %v7345_v25, -inf  ;;  %vm2166_vm3 = vcmp.eq.f32.partialorder %v2165_v19, 8.507059e+37 }
 0x8ad   :  { %2370 = vmatpush.msrb.mxu1 %v5459_v57  ;;  %v7326_v22 = vpop.xlane.xlu2 %2649 }
 0x8af   :  { %2371 = vmatpush.msrb.mxu1 %v5460_v1  ;;  %v2063_v1 = vsub.f32 %v6956_v6, %v7091_v58  ;;  %v2167_v6 = vand.u32 2147483648, %v7301_v51 }
 0x8b0   :  { %2667 = vmax.xlane.f32.xlu0 %v2666_v23  ;;  %2106 = vadd.xlane.f32.xlu1 %v2105_v8  ;;  %v7339_v55 = vpop.eup %5596 }
 0x8b1   :  { %2372 = vmatpush.msrb.mxu1 %v7288_v0  ;;  %v2711_v47 = vsel %vm359_vm1, %v7339_v55, 0.0 }
 0x8b2   :  { %5212 = vmatmul.msk.f32.vlgmr.msrb.gmra.mxu1 %vm359_vm1, %v2140_v45 }
 0x8b5   :  { %v2653_v13 = vpop.xlane.xlu2 %2652  ;;  %v7363_v32 = vpop.permute.xlu1 %5472 }
 0x8b6   :  { %v2676_v28 = vsub.f32 %v7238_v10, %v2653_v13 }
 0x8b8   :  { %2709 = vadd.xlane.f32.xlu0 %v2708_v34  ;;  %v2691_v0 = vmul.f32 1.442695, %v2676_v28 }
 0x8ba   :  { %5598 = vpow2.f32 %v2691_v0 }
 0x8bb   :  { %5600 = vrcp.f32 %v7301_v51 }
 0x8bd   :  { %v2656_v17 = vpop.xlane.xlu2 %2655 }
 0x8be   :  { %v2677_v48 = vsub.f32 %v7245_v62, %v2656_v17 }
 0x8c0   :  { %2712 = vadd.xlane.f32.xlu0 %v2711_v47  ;;  %v2693_v10 = vmul.f32 1.442695, %v2677_v48  ;;  %v7351_v4 = vpop.eup %5598 }
 0x8c1   :  { %v5601_v37 = vpop.eup %5600  ;;  %v2717_v49 = vsel %vm359_vm1, %v7351_v4, 0.0 }
 0x8c2   :  { %5602 = vpow2.f32 %v2693_v10  ;;  %v2157_v62 = vmul.f32 %v5601_v37, %v7301_v51  ;;  %vm2162_vm14 = vweird.f32 %v5601_v37 }
 0x8c3   :  { %vm2163_vm2 = vmor %vm2161_vm0, %vm2162_vm14 }
 0x8c4   :  { %v2158_v53 = vsub.f32 1.0, %v2157_v62 }
 0x8c5   :  { %v2056_v19 = vpop.xlane.xlu2 %2055 }
 0x8c6   :  { %v2159_v8 = vmul.f32 %v5601_v37, %v2158_v53  ;;  %v2675_v53 = vsub.f32 %v7233_v42, %v7326_v22  ;;  %v5469_v42 = vunpack.i.l.bf16 %v7298_v3  ;;  %v5470_v22 = vunpack.i.h.bf16 %v7298_v3 }
 0x8c7   :  { %v2066_v3 = vsub.f32 %v6990_v35, %v7157_v15  ;;  %v8941_v35 = vld [vmem:[#allocation18_spill] sm:$0xff] }
 0x8c8   :  { %2670 = vmax.xlane.f32.xlu0 %v2669_v9  ;;  %v7356_v60 = vpop.eup %5602  ;;  %v2160_v28 = vadd.f32 %v5601_v37, %v2159_v8  ;;  %v2068_v15 = vsub.f32 %v8941_v35, %v7278_v11 }
 0x8c9   :  { %v2720_v7 = vsel %vm359_vm1, %v7356_v60, 0.0 }
 0x8cd   :  { %v2098_v29 = vpop.xlane.xlu0 %2097 }
 0x8ce   :  { %5604 = vrcp.f32 %v2098_v29  ;;  %v2152_v14 = vand.u32 2147483648, %v2098_v29  ;;  %v2150_v40 = vand.u32 2147483647, %v2098_v29  ;;  %vm2146_vm12 = vweird.f32 %v2098_v29 }
 0x8d0   :  { %2718 = vadd.xlane.f32.xlu0 %v2717_v49  ;;  %v2153_v13 = vor.u32 1.1754944e-38, %v2152_v14  ;;  %vm2151_vm15 = vcmp.eq.f32.partialorder %v2150_v40, 8.507059e+37  ;;  %v2168_v49 = vor.u32 1.1754944e-38, %v2167_v6  ;;  %v2065_v14 = vsub.f32 %v6980_v18, %v7136_v5 }
 0x8d4   :  { %v5605_v38 = vpop.eup %5604 }
 0x8d5   :  { %v2142_v61 = vmul.f32 %v5605_v38, %v2098_v29  ;;  %v2641_v20 = vpop.xlane.xlu0 %2640  ;;  %vm2147_vm10 = vweird.f32 %v5605_v38  ;;  %v2164_v29 = vsel %vm2163_vm2, %v5601_v37, %v2160_v28 }
 0x8d6   :  { %v2672_v43 = vsub.f32 %v7263_v24, %v2641_v20  ;;  %v2077_v24 = vmul.f32 1.442695, %v2063_v1  ;;  %vm2148_vm13 = vmor %vm2146_vm12, %vm2147_vm10  ;;  %v2169_v51 = vsel %vm2166_vm3, %v2168_v49, %v2164_v29  ;;  %v2024_v20 = vpop.f32.mrf.mxu0 }
 0x8d7   :  { %v2143_v57 = vsub.f32 1.0, %v2142_v61  ;;  %v7388_v1 = vadd.f32 %v2024_v20, %v6487_v54  ;;  %v5475_v54 = vunpack.i.h.bf16 %v7363_v32 }
 0x8d8   :  { %v2683_v23 = vmul.f32 1.442695, %v2672_v43  ;;  %2721 = vadd.xlane.f32.xlu0 %v2720_v7  ;;  %v2689_v7 = vmul.f32 1.442695, %v2675_v53 }
 0x8d9   :  { %v2144_v45 = vmul.f32 %v5605_v38, %v2143_v57  ;;  %v2057_v8 = vsel %vm359_vm1, %v7388_v1, -inf }
 0x8da   :  { %5606 = vpow2.f32 %v2683_v23  ;;  %v5474_v23 = vunpack.i.l.bf16 %v7363_v32  ;;  %v2067_v32 = vsub.f32 %v6999_v50, %v7175_v36  ;;  %v2069_v50 = vsub.f32 %v7252_v33, %v2056_v19  ;;  %v696_v36 = vld [vmem:[%s8878_s9 + $0x10] sm:$0xff] }
 0x8db   :  { %v2145_v34 = vadd.f32 %v5605_v38, %v2144_v45  ;;  %5608 = vpow2.f32 %v2077_v24  ;;  %v2081_v45 = vmul.f32 1.442695, %v2065_v14  ;;  %2455 = vmatpush.msrb.mxu3 %v696_v36 }
 0x8dc   :  { %v2085_v28 = vmul.f32 1.442695, %v2067_v32  ;;  %v2089_v11 = vmul.f32 1.442695, %v2069_v50 }
 0x8dd   :  { %v2149_v47 = vsel %vm2148_vm13, %v5605_v38, %v2145_v34  ;;  %v2170_v38 = vmul.f32 %v7125_v63, %v2169_v51  ;;  %v2083_v34 = vmul.f32 1.442695, %v2066_v3 }
 0x8de   :  { %v2154_v58 = vsel %vm2151_vm15, %v2153_v13, %v2149_v47 }
 0x8df   :  { %v2155_v0 = vmul.f32 %v7257_v52, %v2154_v58  ;;  %v2087_v58 = vmul.f32 1.442695, %v2068_v15 }
 0x8e0   :  { %v7369_v17 = vpop.eup %5606  ;;  %v2659_v48 = vpop.xlane.xlu1 %2658 }
 0x8e1   :  { %v2678_v9 = vsub.f32 %v7269_v21, %v2659_v48  ;;  %5213 = vmatmul.msk.f32.gmra.mxu1 %vm359_vm1, %v2155_v0  ;;  %v2705_v10 = vsel %vm359_vm1, %v7369_v17, 0.0  ;;  %v7375_v52 = vpop.eup %5608 }
 0x8e2   :  { %2706 = vadd.xlane.f32.xlu2 %v2705_v10  ;;  %v2102_v37 = vsel %vm359_vm1, %v7375_v52, 0.0 }
 0x8e3   :  { %v2695_v62 = vmul.f32 1.442695, %v2678_v9 }
 0x8e5   :  { %5610 = vpow2.f32 %v2695_v62 }
 0x8e6   :  { %5612 = vpow2.f32 %v2689_v7 }
 0x8e7   :  { %5614 = vpow2.f32 %v2081_v45 }
 0x8e8   :  { %v5463_v21 = vpop.permute.xlu0 %5462  ;;  %5616 = vpow2.f32 %v2083_v34 }
 0x8e9   :  { %v5464_v61 = vunpack.i.l.bf16 %v5463_v21  ;;  %5214 = vmatmul.msk.f32.gmra.mxu1 %vm359_vm1, %v2170_v38  ;;  %v5465_v57 = vunpack.i.h.bf16 %v5463_v21  ;;  %5618 = vpow2.f32 %v2085_v28 }
 0x8ea   :  { %2103 = vadd.xlane.f32.xlu2 %v2102_v37  ;;  %5620 = vpow2.f32 %v2087_v58 }
 0x8eb   :  { %v7383_v43 = vpop.eup %5610  ;;  %2978 = vmatpush.msra.mxu0 %v5464_v61  ;;  %5622 = vpow2.f32 %v2089_v11 }
 0x8ec   :  { %v2723_v63 = vsel %vm359_vm1, %v7383_v43, 0.0  ;;  %v7398_v40 = vpop.eup %5612 }
 0x8ed   :  { %2724 = vadd.xlane.f32.xlu0 %v2723_v63  ;;  %2979 = vmatpush.msra.mxu0 %v5465_v57  ;;  %v2714_v5 = vsel %vm359_vm1, %v7398_v40, 0.0  ;;  %v7404_v24 = vpop.eup %5614 }
 0x8ee   :  { %v2108_v13 = vsel %vm359_vm1, %v7404_v24, 0.0  ;;  %v7410_v47 = vpop.eup %5616 }
 0x8ef   :  { %2980 = vmatpush.msra.mxu0 %v5469_v42  ;;  %v2111_v6 = vsel %vm359_vm1, %v7410_v47, 0.0  ;;  %v7416_v0 = vpop.eup %5618 }
 0x8f0   :  { %v2114_v48 = vsel %vm359_vm1, %v7416_v0, 0.0  ;;  %v7425_v29 = vpop.eup %5620 }
 0x8f1   :  { %2981 = vmatpush.msra.mxu0 %v5470_v22  ;;  %v2117_v62 = vsel %vm359_vm1, %v7425_v29, 0.0  ;;  %v7431_v53 = vpop.eup %5622 }
 0x8f2   :  { %2058 = vmax.xlane.f32.xlu2 %v2057_v8  ;;  %v2120_v37 = vsel %vm359_vm1, %v7431_v53, 0.0 }
 0x8f3   :  { %2982 = vmatpush.msra.mxu0 %v5474_v23 }
 0x8f5   :  { %2983 = vmatpush.msra.mxu0 %v5475_v54 }
 0x8f8   :  { %v2904_v18 = vpop.permute.xlu1 %2903 }
 0x8f9   :  { %2984 = vmatpush.msra.mxu0 %v2904_v18 }
 0x8fa   :  { %2715 = vadd.xlane.f32.xlu2 %v2714_v5 }
 0x902   :  { %2109 = vadd.xlane.f32.xlu2 %v2108_v13 }
 0x90a   :  { %2112 = vadd.xlane.f32.xlu2 %v2111_v6 }
 0x912   :  { %2115 = vadd.xlane.f32.xlu2 %v2114_v48 }
 0x913   :  { %v2662_v9 = vpop.xlane.xlu0 %2661 }
 0x914   :  { %v2679_v10 = vsub.f32 %v7296_v30, %v2662_v9 }
 0x916   :  { %v2697_v49 = vmul.f32 1.442695, %v2679_v10 }
 0x918   :  { %5624 = vpow2.f32 %v2697_v49  ;;  %v1720_v33 = vpop.f32.mrf.mxu1 }
 0x919   :  { %5178 = vmatmul.msk.f32.gmra.mxu3 %vm438_vm11, %v1720_v33 }
 0x91a   :  { %2118 = vadd.xlane.f32.xlu2 %v2117_v62 }
 0x91b   :  { %v2665_v51 = vpop.xlane.xlu0 %2664 }
 0x91c   :  { %v2680_v38 = vsub.f32 %v7308_v59, %v2665_v51 }
 0x91e   :  { %v7433_v21 = vpop.eup %5624  ;;  %v2699_v30 = vmul.f32 1.442695, %v2680_v38 }
 0x91f   :  { %v2726_v61 = vsel %vm359_vm1, %v7433_v21, 0.0 }
 0x920   :  { %5626 = vpow2.f32 %v2699_v30  ;;  %2727 = vadd.xlane.f32.xlu0 %v2726_v61 }
 0x922   :  { %2121 = vadd.xlane.f32.xlu2 %v2120_v37 }
 0x923   :  { %v2668_v20 = vpop.xlane.xlu0 %2667  ;;  %v7461_v32 = vpop.xlane.xlu1 %2106 }
 0x924   :  { %v2681_v57 = vsub.f32 %v7320_v12, %v2668_v20 }
 0x926   :  { %v7440_v7 = vpop.eup %5626  ;;  %v2701_v59 = vmul.f32 1.442695, %v2681_v57 }
 0x927   :  { %v2729_v63 = vsel %vm359_vm1, %v7440_v7, 0.0 }
 0x928   :  { %5628 = vpow2.f32 %v2701_v59  ;;  %2730 = vadd.xlane.f32.xlu1 %v2729_v63 }
 0x92b   :  { %v7444_v42 = vpop.xlane.xlu0 %2709 }
 0x92c   :  { %vm2758_vm9 = vweird.f32 %v7444_v42  ;;  %v2764_v63 = vand.u32 2147483648, %v7444_v42 }
 0x92e   :  { %v7446_v22 = vpop.eup %5628 }
 0x92f   :  { %v2374_v14 = vpop.f32.mrf.mxu1  ;;  %v2732_v23 = vsel %vm359_vm1, %v7446_v22, 0.0 }
 0x930   :  { %2733 = vadd.xlane.f32.xlu2 %v2732_v23  ;;  %5223 = vmatmul.msk.f32.vlgmr.msrb.gmra.mxu3 %vm438_vm11, %v2374_v14 }
 0x933   :  { %v7451_v12 = vpop.xlane.xlu0 %2712 }
 0x93b   :  { %v2671_v8 = vpop.xlane.xlu0 %2670 }
 0x93c   :  { %v2682_v54 = vsub.f32 %v7345_v25, %v2671_v8 }
 0x93e   :  { %v2703_v45 = vmul.f32 1.442695, %v2682_v54 }
 0x940   :  { %5630 = vpow2.f32 %v2703_v45  ;;  %v2762_v45 = vand.u32 2147483647, %v7444_v42 }
 0x941   :  { %5632 = vrcp.f32 %v7444_v42 }
 0x942   :  { %vm2763_vm14 = vcmp.eq.f32.partialorder %v2762_v45, 8.507059e+37 }
 0x943   :  { %v7482_v30 = vpop.xlane.xlu0 %2718 }
 0x946   :  { %v7454_v3 = vpop.eup %5630 }
 0x947   :  { %v2735_v18 = vsel %vm359_vm1, %v7454_v3, 0.0  ;;  %v7459_v5 = vpop.eup %5632 }
 0x948   :  { %2736 = vadd.xlane.f32.xlu1 %v2735_v18  ;;  %v2754_v25 = vmul.f32 %v7459_v5, %v7444_v42  ;;  %vm2759_vm7 = vweird.f32 %v7459_v5  ;;  %v2765_v42 = vor.u32 1.1754944e-38, %v2764_v63 }
 0x949   :  { %vm7490_vm12 = vmor %vm2758_vm9, %vm2759_vm7  ;;  %vm2191_vm7 = vweird.f32 %v7461_v32 }
 0x94a   :  { %v2755_v28 = vsub.f32 1.0, %v2754_v25 }
 0x94c   :  { %v2756_v36 = vmul.f32 %v7459_v5, %v2755_v28 }
 0x94e   :  { %v2757_v51 = vadd.f32 %v7459_v5, %v2756_v36 }
 0x955   :  { %v2707_v34 = vpop.xlane.xlu2 %2706 }
 0x956   :  { %5634 = vrcp.f32 %v2707_v34  ;;  %v2749_v11 = vand.u32 2147483648, %v2707_v34  ;;  %v2747_v10 = vand.u32 2147483647, %v2707_v34  ;;  %vm2743_vm6 = vweird.f32 %v2707_v34 }
 0x957   :  { %5636 = vrcp.f32 %v7451_v12 }
 0x958   :  { %5638 = vrcp.f32 %v7461_v32  ;;  %v2750_v61 = vor.u32 1.1754944e-38, %v2749_v11  ;;  %vm2748_vm10 = vcmp.eq.f32.partialorder %v2747_v10, 8.507059e+37 }
 0x95c   :  { %v5635_v13 = vpop.eup %5634 }
 0x95d   :  { %v7467_v35 = vpop.eup %5636  ;;  %v2739_v15 = vmul.f32 %v5635_v13, %v2707_v34  ;;  %v7469_v6 = vpop.xlane.xlu2 %2103  ;;  %vm2744_vm4 = vweird.f32 %v5635_v13 }
 0x95e   :  { %5640 = vrcp.f32 %v7469_v6  ;;  %v2377_v58 = vpop.f32.mrf.mxu1  ;;  %v7472_v19 = vpop.eup %5638  ;;  %v2769_v48 = vmul.f32 %v7467_v35, %v7451_v12  ;;  %vm2745_vm8 = vmor %vm2743_vm6, %vm2744_vm4  ;;  %vm2176_vm15 = vweird.f32 %v7469_v6  ;;  %vm2774_vm3 = vweird.f32 %v7467_v35 }
 0x95f   :  { %v2740_v50 = vsub.f32 1.0, %v2739_v15  ;;  %5224 = vmatmul.msk.f32.gmra.mxu3 %vm438_vm11, %v2377_v58  ;;  %v2187_v49 = vmul.f32 %v7472_v19, %v7461_v32  ;;  %5642 = vrcp.f32 %v7482_v30  ;;  %v2182_v15 = vand.u32 2147483648, %v7469_v6 }
 0x960   :  { %v2770_v38 = vsub.f32 1.0, %v2769_v48  ;;  %v2180_v58 = vand.u32 2147483647, %v7469_v6  ;;  %vm2192_vm0 = vweird.f32 %v7472_v19  ;;  %vm2773_vm6 = vweird.f32 %v7451_v12 }
 0x961   :  { %v2741_v9 = vmul.f32 %v5635_v13, %v2740_v50  ;;  %v2188_v59 = vsub.f32 1.0, %v2187_v49  ;;  %vm7539_vm9 = vmor %vm2191_vm7, %vm2192_vm0 }
 0x962   :  { %v2771_v25 = vmul.f32 %v7467_v35, %v2770_v38  ;;  %vm2181_vm4 = vcmp.eq.f32.partialorder %v2180_v58, 8.507059e+37 }
 0x963   :  { %v2742_v33 = vadd.f32 %v5635_v13, %v2741_v9  ;;  %v2183_v9 = vor.u32 1.1754944e-38, %v2182_v15 }
 0x964   :  { %v5641_v62 = vpop.eup %5640  ;;  %v2772_v11 = vadd.f32 %v7467_v35, %v2771_v25 }
 0x965   :  { %v2746_v37 = vsel %vm2745_vm8, %v5635_v13, %v2742_v33  ;;  %v2172_v20 = vmul.f32 %v5641_v62, %v7469_v6  ;;  %v2059_v57 = vpop.xlane.xlu2 %2058  ;;  %vm2177_vm13 = vweird.f32 %v5641_v62  ;;  %v2779_v33 = vand.u32 2147483648, %v7451_v12  ;;  %v7521_v38 = vpop.eup %5642  ;;  %vm7532_vm8 = vmor %vm2773_vm6, %vm2774_vm3 }
 0x966   :  { %v2751_v14 = vsel %vm2748_vm10, %v2750_v61, %v2746_v37  ;;  %v2070_v23 = vsub.f32 %v7388_v1, %v2059_v57  ;;  %v2380_v8 = vpop.f32.mrf.mxu1  ;;  %v2761_v1 = vsel %vm7490_vm12, %v7459_v5, %v2757_v51  ;;  %v2197_v5 = vand.u32 2147483648, %v7461_v32  ;;  %vm7509_vm2 = vmor %vm2176_vm15, %vm2177_vm13  ;;  %v7519_v51 = vpop.xlane.xlu0 %2721 }
 0x967   :  { %v2752_v18 = vmul.f32 %v7369_v17, %v2751_v14  ;;  %v2173_v34 = vsub.f32 1.0, %v2172_v20  ;;  %5225 = vmatmul.msk.f32.gmra.mxu3 %vm438_vm11, %v2380_v8  ;;  %v2189_v17 = vmul.f32 %v7472_v19, %v2188_v59  ;;  %v2766_v48 = vsel %vm2763_vm14, %v2765_v42, %v2761_v1 }
 0x968   :  { %v2091_v13 = vmul.f32 1.442695, %v2070_v23  ;;  %v2777_v61 = vand.u32 2147483647, %v7451_v12  ;;  %v2767_v20 = vmul.f32 %v7335_v44, %v2766_v48  ;;  %v2780_v14 = vor.u32 1.1754944e-38, %v2779_v33 }
 0x969   :  { %v2174_v28 = vmul.f32 %v5641_v62, %v2173_v34  ;;  %5256 = vmatmul.msk.f32.vlgmr.msra.gmra.mxu0 %vm359_vm1, %v2752_v18  ;;  %v2190_v6 = vadd.f32 %v7472_v19, %v2189_v17  ;;  %v2198_v8 = vor.u32 1.1754944e-38, %v2197_v5  ;;  %vm2804_vm0 = vweird.f32 %v7521_v38 }
 0x96a   :  { %5644 = vpow2.f32 %v2091_v13  ;;  %vm2778_vm10 = vcmp.eq.f32.partialorder %v2777_v61, 8.507059e+37  ;;  %v2809_v61 = vand.u32 2147483648, %v7482_v30  ;;  %vm2803_vm3 = vweird.f32 %v7482_v30 }
 0x96b   :  { %v2175_v50 = vadd.f32 %v5641_v62, %v2174_v28  ;;  %v2194_v23 = vsel %vm7539_vm9, %v7472_v19, %v2190_v6 }
 0x96d   :  { %v2716_v10 = vpop.xlane.xlu2 %2715  ;;  %v2179_v49 = vsel %vm7509_vm2, %v5641_v62, %v2175_v50  ;;  %v2195_v62 = vand.u32 2147483647, %v7461_v32  ;;  %v2776_v32 = vsel %vm7532_vm8, %v7467_v35, %v2772_v11 }
 0x96e   :  { %5646 = vrcp.f32 %v2716_v10  ;;  %v2184_v37 = vsel %vm2181_vm4, %v2183_v9, %v2179_v49  ;;  %v2781_v45 = vsel %vm2778_vm10, %v2780_v14, %v2776_v32  ;;  %v7556_v13 = vpop.xlane.xlu0 %2724  ;;  %v2794_v42 = vand.u32 2147483648, %v2716_v10  ;;  %vm7581_vm4 = vmor %vm2803_vm3, %vm2804_vm0 }
 0x96f   :  { %v2185_v63 = vmul.f32 %v7375_v52, %v2184_v37  ;;  %5648 = vrcp.f32 %v7519_v51  ;;  %v2799_v52 = vmul.f32 %v7521_v38, %v7482_v30  ;;  %vm2196_vm12 = vcmp.eq.f32.partialorder %v2195_v62, 8.507059e+37 }
 0x970   :  { %v7526_v57 = vpop.eup %5644  ;;  %v2199_v25 = vsel %vm2196_vm12, %v2198_v8, %v2194_v23  ;;  %v2782_v15 = vmul.f32 %v7339_v55, %v2781_v45  ;;  %v2792_v5 = vand.u32 2147483647, %v2716_v10  ;;  %vm2788_vm14 = vweird.f32 %v2716_v10 }
 0x971   :  { %5257 = vmatmul.msk.f32.gmra.mxu0 %vm359_vm1, %v2767_v20  ;;  %v2123_v44 = vsel %vm359_vm1, %v7526_v57, 0.0  ;;  %5215 = vmatmul.msk.f32.gmra.mxu1 %vm359_vm1, %v2185_v63  ;;  %v2800_v35 = vsub.f32 1.0, %v2799_v52  ;;  %v2200_v17 = vmul.f32 %v7322_v41, %v2199_v25  ;;  %v2795_v41 = vor.u32 1.1754944e-38, %v2794_v42 }
 0x972   :  { %2124 = vadd.xlane.f32.xlu0 %v2123_v44  ;;  %vm2793_vm2 = vcmp.eq.f32.partialorder %v2792_v5, 8.507059e+37  ;;  %v2807_v20 = vand.u32 2147483647, %v7482_v30  ;;  %v2810_v30 = vor.u32 1.1754944e-38, %v2809_v61 }
 0x973   :  { %v2801_v58 = vmul.f32 %v7521_v38, %v2800_v35 }
 0x974   :  { %v5647_v54 = vpop.eup %5646  ;;  %vm2808_vm8 = vcmp.eq.f32.partialorder %v2807_v20, 8.507059e+37 }
 0x975   :  { %v2784_v18 = vmul.f32 %v5647_v54, %v2716_v10  ;;  %v2110_v34 = vpop.xlane.xlu2 %2109  ;;  %v7558_v1 = vpop.eup %5648  ;;  %vm2789_vm13 = vweird.f32 %v5647_v54  ;;  %v2802_v49 = vadd.f32 %v7521_v38, %v2801_v58 }
 0x976   :  { %5650 = vrcp.f32 %v2110_v34  ;;  %v2814_v50 = vmul.f32 %v7558_v1, %v7519_v51  ;;  %vm2790_vm15 = vmor %vm2788_vm14, %vm2789_vm13  ;;  %v2212_v12 = vand.u32 2147483648, %v2110_v34  ;;  %v2210_v14 = vand.u32 2147483647, %v2110_v34 }
 0x977   :  { %v2785_v28 = vsub.f32 1.0, %v2784_v18  ;;  %5652 = vrcp.f32 %v7556_v13  ;;  %vm2206_vm7 = vweird.f32 %v2110_v34  ;;  %vm2819_vm9 = vweird.f32 %v7558_v1 }
 0x978   :  { %v2815_v6 = vsub.f32 1.0, %v2814_v50  ;;  %v2213_v8 = vor.u32 1.1754944e-38, %v2212_v12  ;;  %vm2211_vm12 = vcmp.eq.f32.partialorder %v2210_v14, 8.507059e+37  ;;  %vm2818_vm13 = vweird.f32 %v7519_v51 }
 0x979   :  { %v2786_v19 = vmul.f32 %v5647_v54, %v2785_v28  ;;  %5258 = vmatmul.msk.f32.gmra.mxu0 %vm359_vm1, %v2782_v15  ;;  %5216 = vmatmul.msk.f32.gmra.mxu1 %vm359_vm1, %v2200_v17  ;;  %v2822_v17 = vand.u32 2147483647, %v7519_v51  ;;  %vm7605_vm14 = vmor %vm2818_vm13, %vm2819_vm9 }
 0x97a   :  { %v2816_v44 = vmul.f32 %v7558_v1, %v2815_v6 }
 0x97b   :  { %v2787_v36 = vadd.f32 %v5647_v54, %v2786_v19 }
 0x97c   :  { %v5651_v55 = vpop.eup %5650  ;;  %v2817_v35 = vadd.f32 %v7558_v1, %v2816_v44 }
 0x97d   :  { %v2202_v48 = vmul.f32 %v5651_v55, %v2110_v34  ;;  %v7569_v11 = vpop.xlane.xlu2 %2112  ;;  %v2791_v9 = vsel %vm2790_vm15, %v5647_v54, %v2787_v36  ;;  %v7573_v33 = vpop.eup %5652  ;;  %vm2207_vm6 = vweird.f32 %v5651_v55 }
 0x97e   :  { %5654 = vrcp.f32 %v7569_v11  ;;  %v2796_v37 = vsel %vm2793_vm2, %v2795_v41, %v2791_v9  ;;  %v2829_v32 = vmul.f32 %v7573_v33, %v7556_v13  ;;  %vm2208_vm10 = vmor %vm2206_vm7, %vm2207_vm6  ;;  %v2227_v5 = vand.u32 2147483648, %v7569_v11 }
 0x97f   :  { %v2203_v10 = vsub.f32 1.0, %v2202_v48  ;;  %v2797_v62 = vmul.f32 %v7398_v40, %v2796_v37  ;;  %v2806_v40 = vsel %vm7581_vm4, %v7521_v38, %v2802_v49  ;;  %v2824_v38 = vand.u32 2147483648, %v7519_v51 }
 0x980   :  { %v2811_v25 = vsel %vm2808_vm8, %v2810_v30, %v2806_v40  ;;  %v2830_v28 = vsub.f32 1.0, %v2829_v32  ;;  %vm2221_vm0 = vweird.f32 %v7569_v11  ;;  %vm2823_vm2 = vcmp.eq.f32.partialorder %v2822_v17, 8.507059e+37  ;;  %v697_v32 = vld [vmem:[%s8878_s9 + $0x18] sm:$0xff]  ;;  %s5037_s9 = sshll.u32 %s5823_s2, 4  ;;  %s5038_s9 = int_to_ptr.vmem [resolvable:$true] %s5037_s9 }
 0x981   :  { %v2204_v63 = vmul.f32 %v5651_v55, %v2203_v10  ;;  %5259 = vmatmul.msk.f32.gmra.mxu0 %vm359_vm1, %v2797_v62  ;;  %v2812_v42 = vmul.f32 %v7351_v4, %v2811_v25  ;;  %v2821_v4 = vsel %vm7605_vm14, %v7558_v1, %v2817_v35  ;;  %v2228_v48 = vor.u32 1.1754944e-38, %v2227_v5  ;;  %3067 = vmatpush.msra.mxu1 %v697_v32 }
 0x982   :  { %v2831_v36 = vmul.f32 %v7573_v33, %v2830_v28  ;;  %vm2834_vm4 = vweird.f32 %v7573_v33  ;;  %v2839_v1 = vand.u32 2147483648, %v7556_v13  ;;  %vm2833_vm7 = vweird.f32 %v7556_v13 }
 0x983   :  { %v2205_v52 = vadd.f32 %v5651_v55, %v2204_v63  ;;  %vm7626_vm8 = vmor %vm2833_vm7, %vm2834_vm4 }
 0x984   :  { %v5655_v23 = vpop.eup %5654  ;;  %v2832_v10 = vadd.f32 %v7573_v33, %v2831_v36 }
 0x985   :  { %v2217_v54 = vmul.f32 %v5655_v23, %v7569_v11  ;;  %v7594_v45 = vpop.xlane.xlu2 %2115  ;;  %v2209_v18 = vsel %vm2208_vm10, %v5651_v55, %v2205_v52  ;;  %vm2222_vm15 = vweird.f32 %v5655_v23  ;;  %v2225_v55 = vand.u32 2147483647, %v7569_v11 }
 0x986   :  { %5656 = vrcp.f32 %v7594_v45  ;;  %v2214_v15 = vsel %vm2211_vm12, %v2213_v8, %v2209_v18  ;;  %vm2223_vm3 = vmor %vm2221_vm0, %vm2222_vm15  ;;  %v2837_v11 = vand.u32 2147483647, %v7556_v13  ;;  %v2242_v44 = vand.u32 2147483648, %v7594_v45 }
 0x987   :  { %v2218_v34 = vsub.f32 1.0, %v2217_v54  ;;  %v2215_v19 = vmul.f32 %v7404_v24, %v2214_v15  ;;  %v2825_v24 = vor.u32 1.1754944e-38, %v2824_v38  ;;  %vm2226_vm6 = vcmp.eq.f32.partialorder %v2225_v55, 8.507059e+37 }
 0x988   :  { %v2240_v14 = vand.u32 2147483647, %v7594_v45  ;;  %vm2236_vm10 = vweird.f32 %v7594_v45  ;;  %vm2838_vm12 = vcmp.eq.f32.partialorder %v2837_v11, 8.507059e+37  ;;  %v2243_v52 = vor.u32 1.1754944e-38, %v2242_v44 }
 0x989   :  { %v2219_v50 = vmul.f32 %v5655_v23, %v2218_v34  ;;  %5217 = vmatmul.msk.f32.gmra.mxu1 %vm359_vm1, %v2215_v19  ;;  %5260 = vmatmul.msk.f32.gmra.mxu0 %vm359_vm1, %v2812_v42  ;;  %v2826_v61 = vsel %vm2823_vm2, %v2825_v24, %v2821_v4 }
 0x98a   :  { %v2827_v59 = vmul.f32 %v7356_v60, %v2826_v61  ;;  %v2836_v60 = vsel %vm7626_vm8, %v7573_v33, %v2832_v10  ;;  %vm2241_vm14 = vcmp.eq.f32.partialorder %v2240_v14, 8.507059e+37 }
 0x98b   :  { %v2220_v51 = vadd.f32 %v5655_v23, %v2219_v50 }
 0x98c   :  { %v5657_v41 = vpop.eup %5656 }
 0x98d   :  { %v2232_v9 = vmul.f32 %v5657_v41, %v7594_v45  ;;  %v2119_v49 = vpop.xlane.xlu2 %2118  ;;  %v2224_v6 = vsel %vm2223_vm3, %v5655_v23, %v2220_v51  ;;  %vm2237_vm9 = vweird.f32 %v5657_v41 }
 0x98e   :  { %5658 = vrcp.f32 %v2119_v49  ;;  %v2229_v20 = vsel %vm2226_vm6, %v2228_v48, %v2224_v6  ;;  %vm2238_vm13 = vmor %vm2236_vm10, %vm2237_vm9  ;;  %v2257_v38 = vand.u32 2147483648, %v2119_v49  ;;  %v2255_v15 = vand.u32 2147483647, %v2119_v49 }
 0x98f   :  { %v2233_v37 = vsub.f32 1.0, %v2232_v9  ;;  %v2230_v62 = vmul.f32 %v7410_v47, %v2229_v20  ;;  %v2840_v47 = vor.u32 1.1754944e-38, %v2839_v1  ;;  %vm2251_vm0 = vweird.f32 %v2119_v49 }
 0x990   :  { %v2258_v50 = vor.u32 1.1754944e-38, %v2257_v38  ;;  %vm2256_vm3 = vcmp.eq.f32.partialorder %v2255_v15, 8.507059e+37 }
 0x991   :  { %v2234_v12 = vmul.f32 %v5657_v41, %v2233_v37  ;;  %5218 = vmatmul.msk.f32.gmra.mxu1 %vm359_vm1, %v2230_v62  ;;  %5261 = vmatmul.msk.f32.gmra.mxu0 %vm359_vm1, %v2827_v59  ;;  %v2841_v18 = vsel %vm2838_vm12, %v2840_v47, %v2836_v60 }
 0x992   :  { %v2842_v28 = vmul.f32 %v7383_v43, %v2841_v18 }
 0x993   :  { %v2235_v13 = vadd.f32 %v5657_v41, %v2234_v12  ;;  %v2728_v40 = vpop.xlane.xlu0 %2727 }
 0x994   :  { %v5659_v30 = vpop.eup %5658  ;;  %5660 = vrcp.f32 %v2728_v40  ;;  %v2854_v43 = vand.u32 2147483648, %v2728_v40  ;;  %vm2848_vm6 = vweird.f32 %v2728_v40  ;;  %v2852_v51 = vand.u32 2147483647, %v2728_v40 }
 0x995   :  { %v2247_v23 = vmul.f32 %v5659_v30, %v2119_v49  ;;  %v2122_v8 = vpop.xlane.xlu2 %2121  ;;  %v2239_v54 = vsel %vm2238_vm13, %v5657_v41, %v2235_v13  ;;  %vm2252_vm15 = vweird.f32 %v5659_v30 }
 0x996   :  { %5662 = vrcp.f32 %v2122_v8  ;;  %v2244_v35 = vsel %vm2241_vm14, %v2243_v52, %v2239_v54  ;;  %vm2253_vm2 = vmor %vm2251_vm0, %vm2252_vm15  ;;  %v2272_v41 = vand.u32 2147483648, %v2122_v8  ;;  %v2270_v49 = vand.u32 2147483647, %v2122_v8 }
 0x997   :  { %v2248_v25 = vsub.f32 1.0, %v2247_v23  ;;  %v2245_v33 = vmul.f32 %v7416_v0, %v2244_v35  ;;  %v2855_v10 = vor.u32 1.1754944e-38, %v2854_v43  ;;  %vm2266_vm9 = vweird.f32 %v2122_v8 }
 0x998   :  { %vm2853_vm10 = vcmp.eq.f32.partialorder %v2852_v51, 8.507059e+37  ;;  %v2273_v62 = vor.u32 1.1754944e-38, %v2272_v41  ;;  %vm2271_vm13 = vcmp.eq.f32.partialorder %v2270_v49, 8.507059e+37 }
 0x999   :  { %v2249_v45 = vmul.f32 %v5659_v30, %v2248_v25  ;;  %5219 = vmatmul.msk.f32.gmra.mxu1 %vm359_vm1, %v2245_v33  ;;  %5262 = vmatmul.msk.f32.gmra.mxu0 %vm359_vm1, %v2842_v28 }
 0x99a   :  { %v5661_v34 = vpop.eup %5660 }
 0x99b   :  { %v2250_v17 = vadd.f32 %v5659_v30, %v2249_v45  ;;  %v2844_v19 = vmul.f32 %v5661_v34, %v2728_v40  ;;  %v2731_v42 = vpop.xlane.xlu1 %2730  ;;  %vm2849_vm4 = vweird.f32 %v5661_v34 }
 0x99c   :  { %v5663_v58 = vpop.eup %5662  ;;  %5664 = vrcp.f32 %v2731_v42  ;;  %vm2850_vm8 = vmor %vm2848_vm6, %vm2849_vm4  ;;  %v2869_v12 = vand.u32 2147483648, %v2731_v42  ;;  %v2867_v60 = vand.u32 2147483647, %v2731_v42  ;;  %vm2863_vm15 = vweird.f32 %v2731_v42 }
 0x99d   :  { %v2845_v0 = vsub.f32 1.0, %v2844_v19  ;;  %v2262_v5 = vmul.f32 %v5663_v58, %v2122_v8  ;;  %v2254_v36 = vsel %vm2253_vm2, %v5659_v30, %v2250_v17  ;;  %vm2267_vm7 = vweird.f32 %v5663_v58 }
 0x99e   :  { %v2259_v24 = vsel %vm2256_vm3, %v2258_v50, %v2254_v36  ;;  %vm2268_vm12 = vmor %vm2266_vm9, %vm2267_vm7  ;;  %v2870_v30 = vor.u32 1.1754944e-38, %v2869_v12  ;;  %vm2868_vm2 = vcmp.eq.f32.partialorder %v2867_v60, 8.507059e+37 }
 0x99f   :  { %v2846_v55 = vmul.f32 %v5661_v34, %v2845_v0  ;;  %v2263_v4 = vsub.f32 1.0, %v2262_v5  ;;  %v2260_v48 = vmul.f32 %v7425_v29, %v2259_v24 }
 0x9a1   :  { %v2847_v9 = vadd.f32 %v5661_v34, %v2846_v55  ;;  %v2264_v6 = vmul.f32 %v5663_v58, %v2263_v4  ;;  %5220 = vmatmul.msk.f32.gmra.mxu1 %vm359_vm1, %v2260_v48 }
 0x9a2   :  { %v5665_v61 = vpop.eup %5664 }
 0x9a3   :  { %v2265_v1 = vadd.f32 %v5663_v58, %v2264_v6  ;;  %v2859_v37 = vmul.f32 %v5665_v61, %v2731_v42  ;;  %v2734_v20 = vpop.xlane.xlu2 %2733  ;;  %v2851_v11 = vsel %vm2850_vm8, %v5661_v34, %v2847_v9  ;;  %vm2864_vm14 = vweird.f32 %v5665_v61 }
 0x9a4   :  { %5666 = vrcp.f32 %v2734_v20  ;;  %v2856_v59 = vsel %vm2853_vm10, %v2855_v10, %v2851_v11  ;;  %vm2865_vm0 = vmor %vm2863_vm15, %vm2864_vm14  ;;  %v2884_v18 = vand.u32 2147483648, %v2734_v20  ;;  %vm2878_vm4 = vweird.f32 %v2734_v20 }
 0x9a5   :  { %v2860_v29 = vsub.f32 1.0, %v2859_v37  ;;  %v2269_v63 = vsel %vm2268_vm12, %v5663_v58, %v2265_v1  ;;  %v2857_v44 = vmul.f32 %v7433_v21, %v2856_v59 }
 0x9a6   :  { %v2274_v32 = vsel %vm2271_vm13, %v2273_v62, %v2269_v63  ;;  %v2885_v33 = vor.u32 1.1754944e-38, %v2884_v18 }
 0x9a7   :  { %v2861_v14 = vmul.f32 %v5665_v61, %v2860_v29  ;;  %v2275_v47 = vmul.f32 %v7431_v53, %v2274_v32  ;;  %5263 = vmatmul.msk.f32.gmra.mxu0 %vm359_vm1, %v2857_v44  ;;  %v2882_v53 = vand.u32 2147483647, %v2734_v20  ;;  %v1773_v29 = vpop.f32.mrf.mxu3 }
 0x9a9   :  { %v2862_v13 = vadd.f32 %v5665_v61, %v2861_v14  ;;  %5221 = vmatmul.msk.f32.gmra.mxu1 %vm359_vm1, %v2275_v47  ;;  %vm2883_vm7 = vcmp.eq.f32.partialorder %v2882_v53, 8.507059e+37 }
 0x9aa   :  { %v5667_v40 = vpop.eup %5666 }
 0x9ab   :  { %v2874_v52 = vmul.f32 %v5667_v40, %v2734_v20  ;;  %v2866_v23 = vsel %vm2865_vm0, %v5665_v61, %v2862_v13  ;;  %vm2879_vm3 = vweird.f32 %v5667_v40 }
 0x9ac   :  { %v2871_v8 = vsel %vm2868_vm2, %v2870_v30, %v2866_v23  ;;  %vm2880_vm6 = vmor %vm2878_vm4, %vm2879_vm3 }
 0x9ad   :  { %v2875_v21 = vsub.f32 1.0, %v2874_v52  ;;  %v2872_v54 = vmul.f32 %v7440_v7, %v2871_v8 }
 0x9af   :  { %v2876_v25 = vmul.f32 %v5667_v40, %v2875_v21  ;;  %5264 = vmatmul.msk.f32.gmra.mxu0 %vm359_vm1, %v2872_v54 }
 0x9b1   :  { %v2877_v35 = vadd.f32 %v5667_v40, %v2876_v25 }
 0x9b3   :  { %v2881_v28 = vsel %vm2880_vm6, %v5667_v40, %v2877_v35 }
 0x9b4   :  { %v2886_v45 = vsel %vm2883_vm7, %v2885_v33, %v2881_v28 }
 0x9b5   :  { %v2887_v38 = vmul.f32 %v7446_v22, %v2886_v45 }
 0x9b7   :  { %5265 = vmatmul.msk.f32.gmra.mxu0 %vm359_vm1, %v2887_v38  ;;  %v8956_v38 = vld [vmem:[#allocation16_spill] sm:$0xff] }
 0x9bb   :  { %v2737_v34 = vpop.xlane.xlu1 %2736 }
 0x9bc   :  { %5668 = vrcp.f32 %v2737_v34  ;;  %v2899_v19 = vand.u32 2147483648, %v2737_v34  ;;  %v2897_v58 = vand.u32 2147483647, %v2737_v34  ;;  %vm2893_vm9 = vweird.f32 %v2737_v34 }
 0x9be   :  { %v2900_v0 = vor.u32 1.1754944e-38, %v2899_v19  ;;  %vm2898_vm12 = vcmp.eq.f32.partialorder %v2897_v58, 8.507059e+37  ;;  %v8957_v58 = vld [vmem:[#allocation5_spill] sm:$0xff] }
 0x9c2   :  { %v5669_v7 = vpop.eup %5668 }
 0x9c3   :  { %v2889_v15 = vmul.f32 %v5669_v7, %v2737_v34  ;;  %vm2894_vm8 = vweird.f32 %v5669_v7  ;;  %v1857_v34 = vadd.f32 %v8956_v38, %v1773_v29 }
 0x9c4   :  { %vm2895_vm10 = vmor %vm2893_vm9, %vm2894_vm8 }
 0x9c5   :  { %v2890_v17 = vsub.f32 1.0, %v2889_v15 }
 0x9c7   :  { %v2891_v42 = vmul.f32 %v5669_v7, %v2890_v17 }
 0x9c9   :  { %v2892_v50 = vadd.f32 %v5669_v7, %v2891_v42  ;;  %v7692_v42 = vld [vmem:[%s8879_s10] ss:$0 sm:$0xff] }
 0x9cb   :  { %v2896_v5 = vsel %vm2895_vm10, %v5669_v7, %v2892_v50 }
 0x9cc   :  { %v2901_v43 = vsel %vm2898_vm12, %v2900_v0, %v2896_v5  ;;  %v8958_v0 = vld [vmem:[#allocation17_spill] sm:$0xff] }
 0x9cd   :  { %v2902_v22 = vmul.f32 %v7454_v3, %v2901_v43 }
 0x9cf   :  { %5266 = vmatmul.msk.f32.gmra.mxu0 %vm359_vm1, %v2902_v22 }
 0x9e5   :  { %v2125_v36 = vpop.xlane.xlu0 %2124 }
 0x9e6   :  { %5670 = vrcp.f32 %v2125_v36  ;;  %v2287_v41 = vand.u32 2147483648, %v2125_v36  ;;  %v2986_v48 = vpop.f32.mrf.mxu0  ;;  %v2285_v6 = vand.u32 2147483647, %v2125_v36  ;;  %vm2281_vm14 = vweird.f32 %v2125_v36 }
 0x9e8   :  { %v2288_v61 = vor.u32 1.1754944e-38, %v2287_v41  ;;  %vm2286_vm0 = vcmp.eq.f32.partialorder %v2285_v6, 8.507059e+37 }
 0x9ec   :  { %v5671_v55 = vpop.eup %5670 }
 0x9ed   :  { %v2277_v4 = vmul.f32 %v5671_v55, %v2125_v36  ;;  %vm2282_vm13 = vweird.f32 %v5671_v55 }
 0x9ee   :  { %v2383_v51 = vpop.f32.mrf.mxu1  ;;  %vm2283_vm15 = vmor %vm2281_vm14, %vm2282_vm13  ;;  %v2989_v20 = vpop.f32.mrf.mxu0 }
 0x9ef   :  { %v2278_v24 = vsub.f32 1.0, %v2277_v4  ;;  %5226 = vmatmul.msk.f32.gmra.mxu3 %vm438_vm11, %v2383_v51  ;;  %v8959_v51 = vld [vmem:[#allocation6_spill] sm:$0xff] }
 0x9f1   :  { %v2279_v9 = vmul.f32 %v5671_v55, %v2278_v24 }
 0x9f3   :  { %v2280_v49 = vadd.f32 %v5671_v55, %v2279_v9 }
 0x9f5   :  { %v2284_v3 = vsel %vm2283_vm15, %v5671_v55, %v2280_v49 }
 0x9f6   :  { %v2289_v10 = vsel %vm2286_vm0, %v2288_v61, %v2284_v3  ;;  %v2386_v1 = vpop.f32.mrf.mxu1  ;;  %v2992_v11 = vpop.f32.mrf.mxu0 }
 0x9f7   :  { %v2290_v37 = vmul.f32 %v7526_v57, %v2289_v10  ;;  %5227 = vmatmul.msk.f32.gmra.mxu3 %vm438_vm11, %v2386_v1  ;;  %v1776_v57 = vpop.f32.mrf.mxu3 }
 0x9f8   :  { %v1860_v5 = vadd.f32 %v8958_v0, %v1776_v57  ;;  %v8965_v0 = vld [vmem:[#allocation11_spill] sm:$0xff] }
 0x9f9   :  { %5222 = vmatmul.msk.f32.gmra.mxu1 %vm359_vm1, %v2290_v37  ;;  %v8961_v37 = vld [vmem:[#allocation7_spill] sm:$0xff] }
 0x9fe   :  { %v2995_v59 = vpop.f32.mrf.mxu0 }
 0x9ff   :  { %v1779_v32 = vpop.f32.mrf.mxu3 }
 0xa01   :  { %5267 = vmatmul.msk.f32.vlgmr.msra.gmra.mxu1 %vm438_vm11, %v2986_v48  ;;  %v8960_v48 = vld [vmem:[#allocation19_spill] sm:$0xff] }
 0xa02   :  { %v1863_v9 = vadd.f32 %v8960_v48, %v1779_v32 }
 0xa06   :  { %v2389_v62 = vpop.f32.mrf.mxu1  ;;  %v2998_v44 = vpop.f32.mrf.mxu0 }
 0xa07   :  { %5228 = vmatmul.msk.f32.gmra.mxu3 %vm438_vm11, %v2389_v62  ;;  %v1782_v13 = vpop.f32.mrf.mxu3 }
 0xa09   :  { %5268 = vmatmul.msk.f32.gmra.mxu1 %vm438_vm11, %v2989_v20 }
 0xa0e   :  { %v2392_v63 = vpop.f32.mrf.mxu1  ;;  %v3001_v60 = vpop.f32.mrf.mxu0 }
 0xa0f   :  { %5229 = vmatmul.msk.f32.gmra.mxu3 %vm438_vm11, %v2392_v63  ;;  %v1785_v30 = vpop.f32.mrf.mxu3 }
 0xa11   :  { %5269 = vmatmul.msk.f32.gmra.mxu1 %vm438_vm11, %v2992_v11  ;;  %v1866_v11 = vadd.f32 %v7096_v27, %v1782_v13 }
 0xa16   :  { %v2395_v12 = vpop.f32.mrf.mxu1  ;;  %v3004_v40 = vpop.f32.mrf.mxu0 }
 0xa17   :  { %5230 = vmatmul.msk.f32.gmra.mxu3 %vm438_vm11, %v2395_v12  ;;  %v1788_v23 = vpop.f32.mrf.mxu3 }
 0xa19   :  { %5270 = vmatmul.msk.f32.gmra.mxu1 %vm438_vm11, %v2995_v59 }
 0xa1e   :  { %v2398_v14 = vpop.f32.mrf.mxu1 }
 0xa1f   :  { %5231 = vmatmul.msk.f32.gmra.mxu3 %vm438_vm11, %v2398_v14  ;;  %v7675_v21 = vpop.f32.mrf.mxu3  ;;  %v1869_v14 = vadd.f32 %v7117_v16, %v1785_v30 }
 0xa21   :  { %5271 = vmatmul.msk.f32.gmra.mxu1 %vm438_vm11, %v2998_v44  ;;  %v8962_v44 = vld [vmem:[#allocation8_spill] sm:$0xff] }
 0xa24   :  { %v3007_v52 = vpop.f32.mrf.mxu0 }
 0xa26   :  { %v2401_v47 = vpop.f32.mrf.mxu1 }
 0xa27   :  { %5232 = vmatmul.msk.f32.gmra.mxu3 %vm438_vm11, %v2401_v47  ;;  %v7678_v18 = vpop.f32.mrf.mxu3 }
 0xa29   :  { %5272 = vmatmul.msk.f32.gmra.mxu1 %vm438_vm11, %v3001_v60 }
 0xa2c   :  { %v3010_v8 = vpop.f32.mrf.mxu0 }
 0xa2f   :  { %v7681_v53 = vpop.f32.mrf.mxu3 }
 0xa31   :  { %5273 = vmatmul.msk.f32.gmra.mxu1 %vm438_vm11, %v3004_v40 }
 0xa34   :  { %v3013_v54 = vpop.f32.mrf.mxu0 }
 0xa37   :  { %v7683_v35 = vpop.f32.mrf.mxu3 }
 0xa39   :  { %5274 = vmatmul.msk.f32.gmra.mxu1 %vm438_vm11, %v3007_v52 }
 0xa3f   :  { %v7685_v33 = vpop.f32.mrf.mxu3 }
 0xa41   :  { %5275 = vmatmul.msk.f32.gmra.mxu1 %vm438_vm11, %v3010_v8  ;;  %v8963_v8 = vld [vmem:[#allocation9_spill] sm:$0xff] }
 0xa47   :  { %v2457_v28 = vpop.f32.mrf.mxu3 }
 0xa48   :  { %v2490_v15 = vadd.f32 %v2457_v28, %v1857_v34  ;;  %v8964_v34 = vld [vmem:[#allocation10_spill] sm:$0xff] }
 0xa49   :  { %5276 = vmatmul.msk.f32.gmra.mxu1 %vm438_vm11, %v3013_v54 }
 0xa4c   :  { %v3016_v25 = vpop.f32.mrf.mxu0 }
 0xa4f   :  { %v2460_v7 = vpop.f32.mrf.mxu3 }
 0xa50   :  { %v2491_v22 = vadd.f32 %v2460_v7, %v1860_v5 }
 0xa51   :  { %5277 = vmatmul.msk.f32.gmra.mxu1 %vm438_vm11, %v3016_v25  ;;  %v1872_v25 = vadd.f32 %v7144_v2, %v1788_v23 }
 0xa57   :  { %v2463_v55 = vpop.f32.mrf.mxu3 }
 0xa58   :  { %v2492_v49 = vadd.f32 %v2463_v55, %v1863_v9 }
 0xa72   :  { %v2466_v3 = vpop.f32.mrf.mxu3 }
 0xa73   :  { %v2493_v29 = vadd.f32 %v2466_v3, %v1866_v11 }
 0xa76   :  { %v2404_v45 = vpop.f32.mrf.mxu1 }
 0xa77   :  { %5233 = vmatmul.msk.f32.gmra.mxu3 %vm438_vm11, %v2404_v45 }
 0xa7a   :  { %v2469_v12 = vpop.f32.mrf.mxu3 }
 0xa7b   :  { %v2494_v47 = vadd.f32 %v2469_v12, %v1869_v14 }
 0xa7e   :  { %v3069_v17 = vpop.f32.mrf.mxu1 }
 0xa7f   :  { %v3102_v19 = vadd.f32 %v3069_v17, %v2490_v15  ;;  %v1875_v17 = vadd.f32 %v7162_v31, %v7675_v21  ;;  %v5822_v31 = vmov 32.0  }
 0xa80   :  { %5672 = vrcp.f32 %v5822_v31 }
 0xa81   :  { %v3113_v50 = vadd.f32 %v3102_v19, %v8957_v58 }
 0xa83   :  { %v7697_v43 = vadd.f32 %v7692_v42, %v3113_v50 }
 0xa85   :  { %v3141_v36 = vsel %vm402_vm5, %v7697_v43, 0.0 }
 0xa86   :  { %v3072_v4 = vpop.f32.mrf.mxu1  ;;  %3142 = vadd.xlane.f32.xlu0 %v3141_v36  ;;  %v5673_v21 = vpop.eup %5672 }
 0xa87   :  { %v3103_v24 = vadd.f32 %v3072_v4, %v2491_v22  ;;  %v3175_v55 = vmul.f32 32.0, %v5673_v21  ;;  %vm3179_vm1 = vweird.f32 %v5673_v21 }
 0xa89   :  { %v3114_v41 = vadd.f32 %v3103_v24, %v8959_v51  ;;  %v3176_v4 = vsub.f32 1.0, %v3175_v55 }
 0xa8a   :  { %v2472_v52 = vpop.f32.mrf.mxu3 }
 0xa8b   :  { %v7704_v6 = vadd.f32 %v7692_v42, %v3114_v41  ;;  %v2495_v45 = vadd.f32 %v2472_v52, %v1872_v25  ;;  %v3177_v24 = vmul.f32 %v5673_v21, %v3176_v4 }
 0xa8d   :  { %v3144_v61 = vsel %vm402_vm5, %v7704_v6, 0.0  ;;  %v3178_v41 = vadd.f32 %v5673_v21, %v3177_v24 }
 0xa8e   :  { %v3075_v10 = vpop.f32.mrf.mxu1  ;;  %3145 = vadd.xlane.f32.xlu2 %v3144_v61 }
 0xa8f   :  { %v3104_v1 = vadd.f32 %v3075_v10, %v2492_v49  ;;  %v7743_v9 = vsel %vm3179_vm1, %v5673_v21, %v3178_v41  ;;  %v1878_v49 = vadd.f32 %v7181_v56, %v7678_v18 }
 0xa91   :  { %v3115_v20 = vadd.f32 %v3104_v1, %v8961_v37 }
 0xa92   :  { %v2475_v15 = vpop.f32.mrf.mxu3 }
 0xa93   :  { %v7711_v62 = vadd.f32 %v7692_v42, %v3115_v20  ;;  %v2496_v2 = vadd.f32 %v2475_v15, %v1875_v17 }
 0xa95   :  { %v3147_v59 = vsel %vm402_vm5, %v7711_v62, 0.0 }
 0xa96   :  { %v3078_v63 = vpop.f32.mrf.mxu1  ;;  %3148 = vadd.xlane.f32.xlu1 %v3147_v59  ;;  %v1881_v59 = vadd.f32 %v7190_v39, %v7681_v53  ;;  %v1884_v53 = vadd.f32 %v7200_v46, %v7683_v35 }
 0xa97   :  { %v3105_v57 = vadd.f32 %v3078_v63, %v2493_v29  ;;  %v8966_v63 = vld [vmem:[#allocation12_spill] sm:$0xff] }
 0xa99   :  { %v3116_v32 = vadd.f32 %v3105_v57, %v8962_v44 }
 0xa9a   :  { %v2478_v51 = vpop.f32.mrf.mxu3 }
 0xa9b   :  { %v7718_v60 = vadd.f32 %v7692_v42, %v3116_v32  ;;  %v2497_v3 = vadd.f32 %v2478_v51, %v1878_v49 }
 0xa9d   :  { %v3150_v27 = vsel %vm402_vm5, %v7718_v60, 0.0 }
 0xa9e   :  { %v3081_v13 = vpop.f32.mrf.mxu1  ;;  %3151 = vadd.xlane.f32.xlu0 %v3150_v27  ;;  %v8967_v27 = vld [vmem:[#allocation13_spill] sm:$0xff] }
 0xa9f   :  { %v3106_v40 = vadd.f32 %v3081_v13, %v2494_v47 }
 0xaa1   :  { %v3117_v54 = vadd.f32 %v3106_v40, %v8963_v8 }
 0xaa2   :  { %v2481_v1 = vpop.f32.mrf.mxu3 }
 0xaa3   :  { %v7725_v28 = vadd.f32 %v7692_v42, %v3117_v54  ;;  %v2498_v12 = vadd.f32 %v2481_v1, %v1881_v59  ;;  %v3420_v59 = vld [vmem:[%s8882_s13 + $0x10] sm:$0xff] }
 0xaa5   :  { %v3153_v16 = vsel %vm402_vm5, %v7725_v28, 0.0 }
 0xaa6   :  { %v3084_v30 = vpop.f32.mrf.mxu1  ;;  %3154 = vadd.xlane.f32.xlu2 %v3153_v16 }
 0xaa7   :  { %v3107_v38 = vadd.f32 %v3084_v30, %v2495_v45  ;;  %v1887_v30 = vadd.f32 %v7211_v26, %v7685_v33 }
 0xaa9   :  { %v3118_v7 = vadd.f32 %v3107_v38, %v8964_v34  ;;  %v8968_v34 = vld [vmem:[#allocation14_spill] sm:$0xff] }
 0xaaa   :  { %v2484_v47 = vpop.f32.mrf.mxu3 }
 0xaab   :  { %v7733_v19 = vadd.f32 %v7692_v42, %v3118_v7  ;;  %v2499_v54 = vadd.f32 %v2484_v47, %v1884_v53 }
 0xaad   :  { %v3156_v23 = vsel %vm402_vm5, %v7733_v19, 0.0 }
 0xaae   :  { %v3087_v58 = vpop.f32.mrf.mxu1  ;;  %3157 = vadd.xlane.f32.xlu1 %v3156_v23 }
 0xaaf   :  { %v3108_v50 = vadd.f32 %v3087_v58, %v2496_v2 }
 0xab1   :  { %v3119_v5 = vadd.f32 %v3108_v50, %v8965_v0 }
 0xab3   :  { %v7739_v22 = vadd.f32 %v7692_v42, %v3119_v5  ;;  %v8969_v5 = vld [vmem:[#allocation15_spill] sm:$0xff] }
 0xab5   :  { %v3159_v36 = vsel %vm402_vm5, %v7739_v22, 0.0 }
 0xab6   :  { %3160 = vadd.xlane.f32.xlu2 %v3159_v36  ;;  %v3090_v48 = vpop.f32.mrf.mxu1 }
 0xab7   :  { %v3109_v37 = vadd.f32 %v3090_v48, %v2497_v3 }
 0xab9   :  { %v3120_v57 = vadd.f32 %v3109_v37, %v8966_v63  ;;  %v3418_v63 = vld [vmem:[%s8882_s13] sm:$0xff] }
 0xabb   :  { %v7762_v14 = vadd.f32 %v7692_v42, %v3120_v57 }
 0xabd   :  { %v3162_v52 = vsel %vm402_vm5, %v7762_v14, 0.0 }
 0xabe   :  { %v3093_v29 = vpop.f32.mrf.mxu1 }
 0xabf   :  { %v3110_v32 = vadd.f32 %v3093_v29, %v2498_v12 }
 0xac1   :  { %v3121_v13 = vadd.f32 %v3110_v32, %v8967_v27 }
 0xac3   :  { %v7777_v46 = vadd.f32 %v7692_v42, %v3121_v13 }
 0xac5   :  { %v3165_v2 = vsel %vm402_vm5, %v7777_v46, 0.0 }
 0xac6   :  { %v3096_v8 = vpop.f32.mrf.mxu1 }
 0xac7   :  { %v3111_v45 = vadd.f32 %v3096_v8, %v2499_v54 }
 0xac9   :  { %v3122_v7 = vadd.f32 %v3111_v45, %v8968_v34 }
 0xacb   :  { %v7792_v33 = vadd.f32 %v7692_v42, %v3122_v7 }
 0xacd   :  { %v3168_v21 = vsel %vm402_vm5, %v7792_v33, 0.0 }
 0xace   :  { %v3099_v58 = vpop.f32.mrf.mxu1 }
 0xaf9   :  { %v3143_v61 = vpop.xlane.xlu0 %3142 }
 0xafa   :  { %v3181_v10 = vmul.f32 %v7743_v9, %v3143_v61  ;;  %v2487_v35 = vpop.f32.mrf.mxu3 }
 0xafb   :  { %v2500_v15 = vadd.f32 %v2487_v35, %v1887_v30 }
 0xafc   :  { %v7749_v20 = vsub.f32 %v7697_v43, %v3181_v10 }
 0xafd   :  { %v3112_v50 = vadd.f32 %v3099_v58, %v2500_v15 }
 0xafe   :  { %v3203_v11 = vmul.f32 %v7749_v20, %v7749_v20 }
 0xaff   :  { %v3123_v36 = vadd.f32 %v3112_v50, %v8969_v5 }
 0xb00   :  { %v3214_v56 = vsel %vm402_vm5, %v3203_v11, 0.0 }
 0xb01   :  { %v3146_v18 = vpop.xlane.xlu2 %3145  ;;  %3215 = vadd.xlane.f32.xlu0 %v3214_v56  ;;  %v7805_v24 = vadd.f32 %v7692_v42, %v3123_v36 }
 0xb02   :  { %v3182_v44 = vmul.f32 %v7743_v9, %v3146_v18 }
 0xb03   :  { %v3171_v48 = vsel %vm402_vm5, %v7805_v24, 0.0 }
 0xb04   :  { %v7759_v43 = vsub.f32 %v7704_v6, %v3182_v44 }
 0xb06   :  { %v3204_v39 = vmul.f32 %v7759_v43, %v7759_v43 }
 0xb08   :  { %v3217_v40 = vsel %vm402_vm5, %v3204_v39, 0.0 }
 0xb09   :  { %v3149_v6 = vpop.xlane.xlu1 %3148  ;;  %3218 = vadd.xlane.f32.xlu1 %v3217_v40  ;;  %3163 = vadd.xlane.f32.xlu0 %v3162_v52 }
 0xb0a   :  { %v3183_v25 = vmul.f32 %v7743_v9, %v3149_v6 }
 0xb0c   :  { %v7774_v16 = vsub.f32 %v7711_v62, %v3183_v25 }
 0xb0e   :  { %v3205_v38 = vmul.f32 %v7774_v16, %v7774_v16 }
 0xb10   :  { %v3220_v17 = vsel %vm402_vm5, %v3205_v38, 0.0 }
 0xb11   :  { %v3152_v62 = vpop.xlane.xlu0 %3151  ;;  %3221 = vadd.xlane.f32.xlu2 %v3220_v17  ;;  %3166 = vadd.xlane.f32.xlu1 %v3165_v2  ;;  %v7855_v17 = vld [vmem:[%s8880_s11] ss:$0 sm:$0xff] }
 0xb12   :  { %v3184_v23 = vmul.f32 %v7743_v9, %v3152_v62 }
 0xb14   :  { %v7789_v26 = vsub.f32 %v7718_v60, %v3184_v23 }
 0xb16   :  { %v3206_v0 = vmul.f32 %v7789_v26, %v7789_v26 }
 0xb18   :  { %v3223_v31 = vsel %vm402_vm5, %v3206_v0, 0.0 }
 0xb19   :  { %v3155_v55 = vpop.xlane.xlu2 %3154  ;;  %3224 = vadd.xlane.f32.xlu0 %v3223_v31  ;;  %3169 = vadd.xlane.f32.xlu2 %v3168_v21 }
 0xb1a   :  { %v3185_v4 = vmul.f32 %v7743_v9, %v3155_v55 }
 0xb1c   :  { %v7802_v60 = vsub.f32 %v7725_v28, %v3185_v4 }
 0xb1e   :  { %v3207_v51 = vmul.f32 %v7802_v60, %v7802_v60 }
 0xb20   :  { %v3226_v41 = vsel %vm402_vm5, %v3207_v51, 0.0 }
 0xb21   :  { %v3158_v49 = vpop.xlane.xlu1 %3157  ;;  %3227 = vadd.xlane.f32.xlu1 %v3226_v41  ;;  %3172 = vadd.xlane.f32.xlu0 %v3171_v48 }
 0xb22   :  { %v3186_v61 = vmul.f32 %v7743_v9, %v3158_v49 }
 0xb24   :  { %v7814_v3 = vsub.f32 %v7733_v19, %v3186_v61  ;;  %v3421_v19 = vld [vmem:[%s8882_s13 + $0x18] sm:$0xff] }
 0xb25   :  { %3471 = vmatpush.msra.mxu3 %v3421_v19 }
 0xb26   :  { %v3208_v42 = vmul.f32 %v7814_v3, %v7814_v3 }
 0xb27   :  { %3472 = vmatpush.msra.mxu3 %v3420_v59 }
 0xb28   :  { %v3229_v28 = vsel %vm402_vm5, %v3208_v42, 0.0 }
 0xb29   :  { %v3161_v10 = vpop.xlane.xlu2 %3160  ;;  %3230 = vadd.xlane.f32.xlu2 %v3229_v28 }
 0xb2a   :  { %v3187_v1 = vmul.f32 %v7743_v9, %v3161_v10 }
 0xb2c   :  { %v7821_v37 = vsub.f32 %v7739_v22, %v3187_v1  ;;  %v3419_v22 = vld [vmem:[%s8882_s13 + $0x8] sm:$0xff] }
 0xb2d   :  { %3473 = vmatpush.msra.mxu3 %v3419_v22 }
 0xb2e   :  { %v3209_v11 = vmul.f32 %v7821_v37, %v7821_v37 }
 0xb2f   :  { %3474 = vmatpush.msra.mxu3 %v3418_v63 }
 0xb30   :  { %v3232_v29 = vsel %vm402_vm5, %v3209_v11, 0.0 }
 0xb31   :  { %3233 = vadd.xlane.f32.xlu1 %v3232_v29 }
 0xb74   :  { %v3216_v57 = vpop.xlane.xlu0 %3215 }
 0xb75   :  { %v3247_v56 = vmul.f32 %v3216_v57, %v7743_v9 }
 0xb77   :  { %v3258_v18 = vadd.f32 1e-05, %v3247_v56 }
 0xb79   :  { %5674 = vrsqrt.f32 %v3258_v18  ;;  %vm3275_vm3 = vweird.f32 %v3258_v18 }
 0xb7c   :  { %v3219_v12 = vpop.xlane.xlu1 %3218  ;;  %v3164_v44 = vpop.xlane.xlu0 %3163 }
 0xb7d   :  { %v3248_v32 = vmul.f32 %v3219_v12, %v7743_v9  ;;  %v3188_v47 = vmul.f32 %v7743_v9, %v3164_v44 }
 0xb7f   :  { %v5675_v39 = vpop.eup %5674  ;;  %v3259_v53 = vadd.f32 1e-05, %v3248_v32  ;;  %v7842_v27 = vsub.f32 %v7762_v14, %v3188_v47 }
 0xb80   :  { %v3270_v13 = vmul.f32 %v5675_v39, %v3258_v18  ;;  %vm3276_vm2 = vweird.f32 %v5675_v39 }
 0xb81   :  { %5676 = vrsqrt.f32 %v3259_v53  ;;  %v3210_v40 = vmul.f32 %v7842_v27, %v7842_v27  ;;  %vm3277_vm4 = vmor %vm3275_vm3, %vm3276_vm2  ;;  %vm3285_vm7 = vweird.f32 %v3259_v53 }
 0xb82   :  { %v3271_v52 = vmul.f32 %v5675_v39, %v3270_v13 }
 0xb83   :  { %v3235_v8 = vsel %vm402_vm5, %v3210_v40, 0.0 }
 0xb84   :  { %v3272_v6 = vmul.f32 0.5, %v3271_v52  ;;  %v3222_v54 = vpop.xlane.xlu2 %3221  ;;  %v3167_v25 = vpop.xlane.xlu1 %3166  ;;  %3236 = vadd.xlane.f32.xlu0 %v3235_v8 }
 0xb85   :  { %v3249_v45 = vmul.f32 %v3222_v54, %v7743_v9  ;;  %v3189_v35 = vmul.f32 %v7743_v9, %v3167_v25 }
 0xb86   :  { %v3273_v30 = vsub.f32 1.5, %v3272_v6 }
 0xb87   :  { %v5677_v14 = vpop.eup %5676  ;;  %v3260_v38 = vadd.f32 1e-05, %v3249_v45  ;;  %v7850_v34 = vsub.f32 %v7777_v46, %v3189_v35  ;;  %v7862_v46 = vld [vmem:[%s8881_s12] ss:$0 sm:$0xff] }
 0xb88   :  { %v3274_v7 = vmul.f32 %v5675_v39, %v3273_v30  ;;  %v3280_v15 = vmul.f32 %v5677_v14, %v3259_v53  ;;  %vm3286_vm6 = vweird.f32 %v5677_v14 }
 0xb89   :  { %5678 = vrsqrt.f32 %v3260_v38  ;;  %v3211_v2 = vmul.f32 %v7850_v34, %v7850_v34  ;;  %vm3287_vm8 = vmor %vm3285_vm7, %vm3286_vm6  ;;  %vm3295_vm10 = vweird.f32 %v3260_v38 }
 0xb8a   :  { %v3278_v62 = vsel %vm3277_vm4, %v5675_v39, %v3274_v7  ;;  %v3281_v23 = vmul.f32 %v5677_v14, %v3280_v15 }
 0xb8b   :  { %v3379_v58 = vmul.f32 %v3278_v62, %v7749_v20  ;;  %v3238_v50 = vsel %vm402_vm5, %v3211_v2, 0.0 }
 0xb8c   :  { %v3282_v0 = vmul.f32 0.5, %v3281_v23  ;;  %v3225_v5 = vpop.xlane.xlu0 %3224  ;;  %3239 = vadd.xlane.f32.xlu2 %v3238_v50  ;;  %v3170_v36 = vpop.xlane.xlu2 %3169 }
 0xb8d   :  { %v3393_v31 = vmul.f32 %v7855_v17, %v3379_v58  ;;  %v3250_v21 = vmul.f32 %v3225_v5, %v7743_v9  ;;  %v3190_v55 = vmul.f32 %v7743_v9, %v3170_v36 }
 0xb8e   :  { %v3283_v4 = vsub.f32 1.5, %v3282_v0 }
 0xb8f   :  { %v5679_v51 = vpop.eup %5678  ;;  %v7870_v41 = vadd.f32 %v7862_v46, %v3393_v31  ;;  %v3261_v48 = vadd.f32 1e-05, %v3250_v21  ;;  %v7873_v20 = vsub.f32 %v7792_v33, %v3190_v55 }
 0xb90   :  { %v3284_v49 = vmul.f32 %v5677_v14, %v3283_v4  ;;  %v3290_v61 = vmul.f32 %v5679_v51, %v3260_v38  ;;  %vm3296_vm9 = vweird.f32 %v5679_v51 }
 0xb91   :  { %5680 = vrsqrt.f32 %v3261_v48  ;;  %5278 = vmatmul.msk.f32.vlgmr.msra.gmra.mxu3 %vm402_vm5, %v7870_v41  ;;  %v3212_v42 = vmul.f32 %v7873_v20, %v7873_v20  ;;  %vm3297_vm12 = vmor %vm3295_vm10, %vm3296_vm9  ;;  %vm3305_vm14 = vweird.f32 %v3261_v48 }
 0xb92   :  { %v3288_v28 = vsel %vm3287_vm8, %v5677_v14, %v3284_v49  ;;  %v3291_v10 = vmul.f32 %v5679_v51, %v3290_v61 }
 0xb93   :  { %v3380_v1 = vmul.f32 %v3288_v28, %v7759_v43  ;;  %v3241_v11 = vsel %vm402_vm5, %v3212_v42, 0.0 }
 0xb94   :  { %v3292_v29 = vmul.f32 0.5, %v3291_v10  ;;  %v3228_v33 = vpop.xlane.xlu1 %3227  ;;  %3242 = vadd.xlane.f32.xlu1 %v3241_v11  ;;  %v3173_v19 = vpop.xlane.xlu0 %3172 }
 0xb95   :  { %v3251_v59 = vmul.f32 %v3228_v33, %v7743_v9  ;;  %v3191_v22 = vmul.f32 %v7743_v9, %v3173_v19  ;;  %v3394_v63 = vmul.f32 %v7855_v17, %v3380_v1 }
 0xb96   :  { %v3293_v57 = vsub.f32 1.5, %v3292_v29 }
 0xb97   :  { %v5681_v56 = vpop.eup %5680  ;;  %v3262_v18 = vadd.f32 1e-05, %v3251_v59  ;;  %v7885_v12 = vsub.f32 %v7805_v24, %v3191_v22  ;;  %v7888_v43 = vadd.f32 %v7862_v46, %v3394_v63 }
 0xb98   :  { %v3294_v44 = vmul.f32 %v5679_v51, %v3293_v57  ;;  %v3300_v32 = vmul.f32 %v5681_v56, %v3261_v48  ;;  %vm3306_vm13 = vweird.f32 %v5681_v56 }
 0xb99   :  { %5682 = vrsqrt.f32 %v3262_v18  ;;  %5279 = vmatmul.msk.f32.gmra.mxu3 %vm402_vm5, %v7888_v43  ;;  %v3213_v47 = vmul.f32 %v7885_v12, %v7885_v12  ;;  %vm3307_vm15 = vmor %vm3305_vm14, %vm3306_vm13  ;;  %vm3315_vm1 = vweird.f32 %v3262_v18 }
 0xb9a   :  { %v3298_v39 = vsel %vm3297_vm12, %v5679_v51, %v3294_v44  ;;  %v3301_v53 = vmul.f32 %v5681_v56, %v3300_v32 }
 0xb9b   :  { %v3381_v13 = vmul.f32 %v3298_v39, %v7774_v16  ;;  %v3244_v24 = vsel %vm402_vm5, %v3213_v47, 0.0 }
 0xb9c   :  { %v3302_v40 = vmul.f32 0.5, %v3301_v53  ;;  %v3231_v52 = vpop.xlane.xlu2 %3230  ;;  %3245 = vadd.xlane.f32.xlu0 %v3244_v24 }
 0xb9d   :  { %v3252_v8 = vmul.f32 %v3231_v52, %v7743_v9  ;;  %v3395_v6 = vmul.f32 %v7855_v17, %v3381_v13 }
 0xb9e   :  { %v3303_v54 = vsub.f32 1.5, %v3302_v40 }
 0xb9f   :  { %v5683_v25 = vpop.eup %5682  ;;  %v3263_v45 = vadd.f32 1e-05, %v3252_v8  ;;  %v7899_v35 = vadd.f32 %v7862_v46, %v3395_v6 }
 0xba0   :  { %v3304_v30 = vmul.f32 %v5681_v56, %v3303_v54  ;;  %v3310_v14 = vmul.f32 %v5683_v25, %v3262_v18  ;;  %vm3316_vm0 = vweird.f32 %v5683_v25 }
 0xba1   :  { %5684 = vrsqrt.f32 %v3263_v45  ;;  %5280 = vmatmul.msk.f32.gmra.mxu3 %vm402_vm5, %v7899_v35  ;;  %vm3317_vm2 = vmor %vm3315_vm1, %vm3316_vm0  ;;  %vm3325_vm4 = vweird.f32 %v3263_v45 }
 0xba2   :  { %v3308_v16 = vsel %vm3307_vm15, %v5681_v56, %v3304_v30  ;;  %v3311_v38 = vmul.f32 %v5683_v25, %v3310_v14 }
 0xba3   :  { %v3382_v7 = vmul.f32 %v3308_v16, %v7789_v26 }
 0xba4   :  { %v3312_v15 = vmul.f32 0.5, %v3311_v38  ;;  %v3234_v2 = vpop.xlane.xlu1 %3233 }
 0xba5   :  { %v3253_v62 = vmul.f32 %v3234_v2, %v7743_v9  ;;  %v3396_v23 = vmul.f32 %v7855_v17, %v3382_v7 }
 0xba6   :  { %v3313_v58 = vsub.f32 1.5, %v3312_v15 }
 0xba7   :  { %v5685_v50 = vpop.eup %5684  ;;  %v3264_v0 = vadd.f32 1e-05, %v3253_v62  ;;  %v7907_v5 = vadd.f32 %v7862_v46, %v3396_v23  ;;  %v7941_v23 = vld [vmem:[%s8883_s14] ss:$0 sm:$0xff] }
 0xba8   :  { %v3314_v36 = vmul.f32 %v5683_v25, %v3313_v58  ;;  %v3320_v31 = vmul.f32 %v5685_v50, %v3263_v45  ;;  %vm3326_vm3 = vweird.f32 %v5685_v50 }
 0xba9   :  { %5686 = vrsqrt.f32 %v3264_v0  ;;  %5281 = vmatmul.msk.f32.gmra.mxu3 %vm402_vm5, %v7907_v5  ;;  %vm3327_vm6 = vmor %vm3325_vm4, %vm3326_vm3  ;;  %vm3335_vm8 = vweird.f32 %v3264_v0 }
 0xbaa   :  { %v3318_v26 = vsel %vm3317_vm2, %v5683_v25, %v3314_v36  ;;  %v3321_v21 = vmul.f32 %v5685_v50, %v3320_v31 }
 0xbab   :  { %v3383_v55 = vmul.f32 %v3318_v26, %v7802_v60 }
 0xbac   :  { %v3322_v4 = vmul.f32 0.5, %v3321_v21 }
 0xbad   :  { %v3397_v51 = vmul.f32 %v7855_v17, %v3383_v55 }
 0xbae   :  { %v3323_v48 = vsub.f32 1.5, %v3322_v4 }
 0xbaf   :  { %v5687_v49 = vpop.eup %5686  ;;  %v7914_v61 = vadd.f32 %v7862_v46, %v3397_v51 }
 0xbb0   :  { %v3324_v42 = vmul.f32 %v5685_v50, %v3323_v48  ;;  %v3330_v28 = vmul.f32 %v5687_v49, %v3264_v0  ;;  %vm3336_vm7 = vweird.f32 %v5687_v49 }
 0xbb1   :  { %5282 = vmatmul.msk.f32.gmra.mxu3 %vm402_vm5, %v7914_v61  ;;  %vm3337_vm9 = vmor %vm3335_vm8, %vm3336_vm7 }
 0xbb2   :  { %v3328_v10 = vsel %vm3327_vm6, %v5685_v50, %v3324_v42  ;;  %v3331_v1 = vmul.f32 %v5687_v49, %v3330_v28 }
 0xbb3   :  { %v3384_v60 = vmul.f32 %v3328_v10, %v7814_v3 }
 0xbb4   :  { %v3332_v11 = vmul.f32 0.5, %v3331_v1 }
 0xbb5   :  { %v3398_v29 = vmul.f32 %v7855_v17, %v3384_v60 }
 0xbb6   :  { %v3333_v33 = vsub.f32 1.5, %v3332_v11 }
 0xbb7   :  { %v7921_v19 = vadd.f32 %v7862_v46, %v3398_v29 }
 0xbb8   :  { %v3334_v59 = vmul.f32 %v5687_v49, %v3333_v33 }
 0xbb9   :  { %5283 = vmatmul.msk.f32.gmra.mxu3 %vm402_vm5, %v7921_v19 }
 0xbba   :  { %v3338_v22 = vsel %vm3337_vm9, %v5687_v49, %v3334_v59 }
 0xbbb   :  { %v3385_v63 = vmul.f32 %v3338_v22, %v7821_v37 }
 0xbbd   :  { %v3399_v57 = vmul.f32 %v7855_v17, %v3385_v63 }
 0xbbf   :  { %v7928_v3 = vadd.f32 %v7862_v46, %v3399_v57 }
 0xbc1   :  { %5284 = vmatmul.msk.f32.gmra.mxu3 %vm402_vm5, %v7928_v3 }
 0xbf7   :  { %v3237_v56 = vpop.xlane.xlu0 %3236 }
 0xbf8   :  { %v3254_v18 = vmul.f32 %v3237_v56, %v7743_v9 }
 0xbfa   :  { %v3265_v44 = vadd.f32 1e-05, %v3254_v18 }
 0xbfc   :  { %5688 = vrsqrt.f32 %v3265_v44  ;;  %vm3345_vm12 = vweird.f32 %v3265_v44 }
 0xbff   :  { %v3240_v32 = vpop.xlane.xlu2 %3239 }
 0xc00   :  { %v3255_v47 = vmul.f32 %v3240_v32, %v7743_v9 }
 0xc02   :  { %v5689_v39 = vpop.eup %5688  ;;  %v3266_v53 = vadd.f32 1e-05, %v3255_v47 }
 0xc03   :  { %v3340_v13 = vmul.f32 %v5689_v39, %v3265_v44  ;;  %vm3346_vm10 = vweird.f32 %v5689_v39 }
 0xc04   :  { %5690 = vrsqrt.f32 %v3266_v53  ;;  %vm3347_vm13 = vmor %vm3345_vm12, %vm3346_vm10  ;;  %vm3355_vm15 = vweird.f32 %v3266_v53 }
 0xc05   :  { %v3341_v37 = vmul.f32 %v5689_v39, %v3340_v13 }
 0xc07   :  { %v3342_v24 = vmul.f32 0.5, %v3341_v37  ;;  %v3243_v40 = vpop.xlane.xlu1 %3242 }
 0xc08   :  { %v3256_v52 = vmul.f32 %v3243_v40, %v7743_v9 }
 0xc09   :  { %v3343_v8 = vsub.f32 1.5, %v3342_v24 }
 0xc0a   :  { %v5691_v6 = vpop.eup %5690  ;;  %v3267_v54 = vadd.f32 1e-05, %v3256_v52 }
 0xc0b   :  { %v3344_v25 = vmul.f32 %v5689_v39, %v3343_v8  ;;  %v3350_v45 = vmul.f32 %v5691_v6, %v3266_v53  ;;  %vm3356_vm14 = vweird.f32 %v5691_v6 }
 0xc0c   :  { %5692 = vrsqrt.f32 %v3267_v54  ;;  %vm3357_vm0 = vmor %vm3355_vm15, %vm3356_vm14  ;;  %vm3365_vm2 = vweird.f32 %v3267_v54 }
 0xc0d   :  { %v3348_v30 = vsel %vm3347_vm13, %v5689_v39, %v3344_v25  ;;  %v3351_v14 = vmul.f32 %v5691_v6, %v3350_v45 }
 0xc0e   :  { %v3386_v16 = vmul.f32 %v3348_v30, %v7842_v27 }
 0xc0f   :  { %v3352_v38 = vmul.f32 0.5, %v3351_v14  ;;  %v3246_v7 = vpop.xlane.xlu0 %3245 }
 0xc10   :  { %v3257_v15 = vmul.f32 %v3246_v7, %v7743_v9  ;;  %v3400_v2 = vmul.f32 %v7855_v17, %v3386_v16 }
 0xc11   :  { %v3353_v62 = vsub.f32 1.5, %v3352_v38 }
 0xc12   :  { %v5693_v58 = vpop.eup %5692  ;;  %v3268_v50 = vadd.f32 1e-05, %v3257_v15  ;;  %v7944_v0 = vadd.f32 %v7862_v46, %v3400_v2 }
 0xc13   :  { %v3354_v36 = vmul.f32 %v5691_v6, %v3353_v62  ;;  %v3360_v27 = vmul.f32 %v5693_v58, %v3267_v54  ;;  %vm3366_vm1 = vweird.f32 %v5693_v58 }
 0xc14   :  { %5694 = vrsqrt.f32 %v3268_v50  ;;  %v3476_v31 = vpop.f32.mrf.mxu3  ;;  %5285 = vmatmul.msk.f32.gmra.mxu3 %vm402_vm5, %v7944_v0  ;;  %vm3367_vm3 = vmor %vm3365_vm2, %vm3366_vm1  ;;  %vm3375_vm6 = vweird.f32 %v3268_v50 }
 0xc15   :  { %v3358_v26 = vsel %vm3357_vm0, %v5691_v6, %v3354_v36  ;;  %v3361_v21 = vmul.f32 %v5693_v58, %v3360_v27  ;;  %v7949_v55 = vadd.f32 %v7941_v23, %v3476_v31 }
 0xc16   :  { %v3387_v4 = vmul.f32 %v3358_v26, %v7850_v34 }
 0xc17   :  { %v3362_v51 = vmul.f32 0.5, %v3361_v21  ;;  %v7953_v48 = vmul.f32 0.70710677, %v7949_v55 }
 0xc18   :  { %v3401_v49 = vmul.f32 %v7855_v17, %v3387_v4 }
 0xc19   :  { %v3363_v42 = vsub.f32 1.5, %v3362_v51  ;;  %v7957_v28 = vand.u32 2147483647, %v7953_v48 }
 0xc1a   :  { %v5695_v10 = vpop.eup %5694  ;;  %v7960_v1 = vadd.f32 %v7862_v46, %v3401_v49 }
 0xc1b   :  { %v3364_v60 = vmul.f32 %v5693_v58, %v3363_v42  ;;  %v3370_v11 = vmul.f32 %v5695_v10, %v3268_v50  ;;  %v3542_v34 = vmul.f32 0.5, %v7957_v28  ;;  %vm3376_vm4 = vweird.f32 %v5695_v10 }
 0xc1c   :  { %v3479_v29 = vpop.f32.mrf.mxu3  ;;  %5286 = vmatmul.msk.f32.gmra.mxu3 %vm402_vm5, %v7960_v1  ;;  %vm3377_vm7 = vmor %vm3375_vm6, %vm3376_vm4 }
 0xc1d   :  { %v3368_v33 = vsel %vm3367_vm3, %v5693_v58, %v3364_v60  ;;  %v3371_v59 = vmul.f32 %v5695_v10, %v3370_v11  ;;  %v3553_v22 = vadd.f32 1.0, %v3542_v34  ;;  %v7966_v63 = vadd.f32 %v7941_v23, %v3479_v29 }
 0xc1e   :  { %v3388_v57 = vmul.f32 %v3368_v33, %v7873_v20 }
 0xc1f   :  { %v3372_v56 = vmul.f32 0.5, %v3371_v59  ;;  %5696 = vrcp.f32 %v3553_v22  ;;  %v7970_v18 = vmul.f32 0.70710677, %v7966_v63  ;;  %v3575_v45 = vand.u32 2147483648, %v3553_v22 }
 0xc20   :  { %v3402_v44 = vmul.f32 %v7855_v17, %v3388_v57  ;;  %v3573_v38 = vand.u32 2147483647, %v3553_v22  ;;  %vm3569_vm9 = vweird.f32 %v3553_v22 }
 0xc21   :  { %v3373_v32 = vsub.f32 1.5, %v3372_v56  ;;  %v7974_v47 = vand.u32 2147483647, %v7970_v18  ;;  %v3576_v62 = vor.u32 1.1754944e-38, %v3575_v45 }
 0xc22   :  { %v7977_v39 = vadd.f32 %v7862_v46, %v3402_v44  ;;  %vm3574_vm12 = vcmp.eq.f32.partialorder %v3573_v38, 8.507059e+37 }
 0xc23   :  { %v3374_v53 = vmul.f32 %v5695_v10, %v3373_v32  ;;  %v3543_v20 = vmul.f32 0.5, %v7974_v47 }
 0xc24   :  { %v3482_v13 = vpop.f32.mrf.mxu3  ;;  %5287 = vmatmul.msk.f32.gmra.mxu3 %vm402_vm5, %v7977_v39 }
 0xc25   :  { %v5697_v37 = vpop.eup %5696  ;;  %v3378_v24 = vsel %vm3377_vm7, %v5695_v10, %v3374_v53  ;;  %v7983_v40 = vadd.f32 %v7941_v23, %v3482_v13  ;;  %v3554_v6 = vadd.f32 1.0, %v3543_v20 }
 0xc26   :  { %v3389_v52 = vmul.f32 %v3378_v24, %v7885_v12  ;;  %v3565_v8 = vmul.f32 %v5697_v37, %v3553_v22  ;;  %vm3570_vm8 = vweird.f32 %v5697_v37 }
 0xc27   :  { %v7987_v54 = vmul.f32 0.70710677, %v7983_v40  ;;  %5698 = vrcp.f32 %v3554_v6  ;;  %vm3571_vm10 = vmor %vm3569_vm9, %vm3570_vm8  ;;  %v3590_v51 = vand.u32 2147483648, %v3554_v6  ;;  %v3588_v42 = vand.u32 2147483647, %v3554_v6 }
 0xc28   :  { %v3566_v25 = vsub.f32 1.0, %v3565_v8  ;;  %v3403_v14 = vmul.f32 %v7855_v17, %v3389_v52  ;;  %vm3584_vm14 = vweird.f32 %v3554_v6 }
 0xc29   :  { %v7990_v30 = vand.u32 2147483647, %v7987_v54  ;;  %v3591_v57 = vor.u32 1.1754944e-38, %v3590_v51  ;;  %vm3589_vm0 = vcmp.eq.f32.partialorder %v3588_v42, 8.507059e+37 }
 0xc2a   :  { %v3567_v16 = vmul.f32 %v5697_v37, %v3566_v25  ;;  %v7995_v12 = vadd.f32 %v7862_v46, %v3403_v14 }
 0xc2b   :  { %v3544_v7 = vmul.f32 0.5, %v7990_v30 }
 0xc2c   :  { %v3568_v15 = vadd.f32 %v5697_v37, %v3567_v16  ;;  %v3485_v2 = vpop.f32.mrf.mxu3  ;;  %5288 = vmatmul.msk.f32.gmra.mxu3 %vm402_vm5, %v7995_v12 }
 0xc2d   :  { %v3555_v58 = vadd.f32 1.0, %v3544_v7  ;;  %v7998_v50 = vadd.f32 %v7941_v23, %v3485_v2  ;;  %v5699_v17 = vpop.eup %5698 }
 0xc2e   :  { %v3572_v36 = vsel %vm3571_vm10, %v5697_v37, %v3568_v15  ;;  %v3580_v31 = vmul.f32 %v5699_v17, %v3554_v6  ;;  %vm3585_vm13 = vweird.f32 %v5699_v17 }
 0xc2f   :  { %v8002_v27 = vsel %vm3574_vm12, %v3576_v62, %v3572_v36  ;;  %5700 = vrcp.f32 %v3555_v58  ;;  %v8006_v21 = vmul.f32 0.70710677, %v7998_v50  ;;  %vm3586_vm15 = vmor %vm3584_vm14, %vm3585_vm13  ;;  %v3603_v52 = vand.u32 2147483647, %v3555_v58 }
 0xc30   :  { %v3729_v46 = vmul.f32 0.17087276, %v8002_v27  ;;  %v3581_v26 = vsub.f32 1.0, %v3580_v31  ;;  %v3605_v8 = vand.u32 2147483648, %v3555_v58  ;;  %vm3599_vm2 = vweird.f32 %v3555_v58 }
 0xc31   :  { %v8009_v10 = vand.u32 2147483647, %v8006_v21  ;;  %vm3604_vm4 = vcmp.eq.f32.partialorder %v3603_v52, 8.507059e+37  ;;  %v8055_v52 = vmul.f32 0.5, %v7949_v55 }
 0xc32   :  { %v3740_v4 = vadd.f32 -0.82215226, %v3729_v46  ;;  %v3582_v49 = vmul.f32 %v5699_v17, %v3581_v26  ;;  %v3606_v62 = vor.u32 1.1754944e-38, %v3605_v8  ;;  %v3927_v8 = vsub.f32 0.0, %v7957_v28 }
 0xc33   :  { %v3545_v33 = vmul.f32 0.5, %v8009_v10 }
 0xc34   :  { %v3751_v60 = vmul.f32 %v3740_v4, %v8002_v27  ;;  %v3488_v11 = vpop.f32.mrf.mxu3  ;;  %v3583_v29 = vadd.f32 %v5699_v17, %v3582_v49 }
 0xc35   :  { %v5701_v34 = vpop.eup %5700  ;;  %v8014_v59 = vadd.f32 %v7941_v23, %v3488_v11  ;;  %v8016_v32 = vadd.f32 1.0, %v3545_v33 }
 0xc36   :  { %v3762_v22 = vadd.f32 1.4885159, %v3751_v60  ;;  %v3595_v56 = vmul.f32 %v5701_v34, %v3555_v58  ;;  %v3587_v44 = vsel %vm3586_vm15, %v5699_v17, %v3583_v29  ;;  %vm3600_vm1 = vweird.f32 %v5701_v34 }
 0xc37   :  { %v8019_v20 = vsel %vm3589_vm0, %v3591_v57, %v3587_v44  ;;  %v8022_v37 = vmul.f32 0.70710677, %v8014_v59  ;;  %5702 = vrcp.f32 %v8016_v32  ;;  %vm3601_vm3 = vmor %vm3599_vm2, %vm3600_vm1  ;;  %v3618_v11 = vand.u32 2147483647, %v8016_v32  ;;  %v4066_v44 = vld [vmem:[%s8884_s15 + $0x38] sm:$0xff] }
 0xc38   :  { %v3773_v53 = vmul.f32 %v3762_v22, %v8002_v27  ;;  %v3596_v13 = vsub.f32 1.0, %v3595_v56  ;;  %v3730_v24 = vmul.f32 0.17087276, %v8019_v20  ;;  %v3620_v57 = vand.u32 2147483648, %v8016_v32  ;;  %4113 = vmatpush.msra.mxu2 %v4066_v44 }
 0xc39   :  { %v8027_v45 = vand.u32 2147483647, %v8022_v37  ;;  %vm3614_vm7 = vweird.f32 %v8016_v32  ;;  %vm3619_vm9 = vcmp.eq.f32.partialorder %v3618_v11, 8.507059e+37 }
 0xc3a   :  { %v3784_v6 = vadd.f32 -1.135204, %v3773_v53  ;;  %v3597_v25 = vmul.f32 %v5701_v34, %v3596_v13  ;;  %v3741_v14 = vadd.f32 -0.82215226, %v3730_v24 }
 0xc3b   :  { %v3546_v7 = vmul.f32 0.5, %v8027_v45 }
 0xc3c   :  { %v3795_v16 = vmul.f32 %v3784_v6, %v8002_v27  ;;  %v3598_v38 = vadd.f32 %v5701_v34, %v3597_v25  ;;  %v3491_v15 = vpop.f32.mrf.mxu3  ;;  %v3752_v2 = vmul.f32 %v3741_v14, %v8019_v20  ;;  %v4065_v14 = vld [vmem:[%s8884_s15 + $0x30] sm:$0xff] }
 0xc3d   :  { %v8032_v31 = vadd.f32 1.0, %v3546_v7  ;;  %v5703_v46 = vpop.eup %5702  ;;  %v8037_v51 = vadd.f32 %v7941_v23, %v3491_v15  ;;  %4114 = vmatpush.msra.mxu2 %v4065_v14 }
 0xc3e   :  { %v3806_v17 = vadd.f32 0.27886808, %v3795_v16  ;;  %v3602_v36 = vsel %vm3601_vm3, %v5701_v34, %v3598_v38  ;;  %v3763_v26 = vadd.f32 1.4885159, %v3752_v2  ;;  %v3610_v42 = vmul.f32 %v5703_v46, %v8016_v32 }
 0xc3f   :  { %v8034_v4 = vsel %vm3604_vm4, %v3606_v62, %v3602_v36  ;;  %5704 = vrcp.f32 %v8032_v31  ;;  %v8047_v56 = vmul.f32 0.70710677, %v8037_v51  ;;  %vm3615_vm6 = vweird.f32 %v5703_v46  ;;  %v4064_v36 = vld [vmem:[%s8884_s15 + $0x28] sm:$0xff] }
 0xc40   :  { %v3817_v58 = vmul.f32 %v3806_v17, %v8002_v27  ;;  %v3731_v49 = vmul.f32 0.17087276, %v8034_v4  ;;  %v3774_v60 = vmul.f32 %v3763_v26, %v8019_v20  ;;  %v3611_v33 = vsub.f32 1.0, %v3610_v42  ;;  %vm3616_vm8 = vmor %vm3614_vm7, %vm3615_vm6  ;;  %4115 = vmatpush.msra.mxu2 %v4064_v36 }
 0xc41   :  { %v8060_v25 = vand.u32 2147483647, %v8047_v56  ;;  %v3621_v62 = vor.u32 1.1754944e-38, %v3620_v57  ;;  %vm3629_vm12 = vweird.f32 %v8032_v31  ;;  %vm3993_vm3 = vcmp.ge.f32.partialorder %v7953_v48, 0.0 }
 0xc42   :  { %v3828_v34 = vadd.f32 -0.18628806, %v3817_v58  ;;  %v3742_v29 = vadd.f32 -0.82215226, %v3731_v49  ;;  %v3785_v22 = vadd.f32 -1.135204, %v3774_v60  ;;  %v3612_v24 = vmul.f32 %v5703_v46, %v3611_v33 }
 0xc43   :  { %v3547_v17 = vmul.f32 0.5, %v8060_v25  ;;  %vm4071_vm7 = vcmask 523264  }
 0xc44   :  { %v3839_v53 = vmul.f32 %v3828_v34, %v8002_v27  ;;  %v3753_v13 = vmul.f32 %v3742_v29, %v8034_v4  ;;  %v3796_v6 = vmul.f32 %v3785_v22, %v8019_v20  ;;  %v3613_v7 = vadd.f32 %v5703_v46, %v3612_v24  ;;  %v3494_v15 = vpop.f32.mrf.mxu3  ;;  %v4063_v29 = vld [vmem:[%s8884_s15 + $0x20] sm:$0xff]  ;;  %v4062_v24 = vld [vmem:[%s8884_s15 + $0x18] sm:$0xff] }
 0xc45   :  { %v8066_v55 = vpop.eup %5704  ;;  %v8080_v11 = vadd.f32 1.0, %v3547_v17  ;;  %v8083_v34 = vadd.f32 %v7941_v23, %v3494_v15  ;;  %4116 = vmatpush.msra.mxu2 %v4063_v29  ;;  %v4061_v15 = vld [vmem:[%s8884_s15 + $0x10] sm:$0xff] }
 0xc46   :  { %v3850_v16 = vadd.f32 0.09678418, %v3839_v53  ;;  %v3764_v38 = vadd.f32 1.4885159, %v3753_v13  ;;  %v3807_v2 = vadd.f32 0.27886808, %v3796_v6  ;;  %v3617_v32 = vsel %vm3616_vm8, %v5703_v46, %v3613_v7 }
 0xc47   :  { %v3625_v49 = vmul.f32 %v8066_v55, %v8032_v31  ;;  %v8078_v60 = vsel %vm3619_vm9, %v3621_v62, %v3617_v32  ;;  %v3938_v46 = vmul.f32 %v3927_v8, %v7957_v28  ;;  %v3633_v13 = vand.u32 2147483647, %v8032_v31  ;;  %4117 = vmatpush.msra.mxu2 %v4062_v24  ;;  %v4059_v24 = vld [vmem:[%s8884_s15] sm:$0xff] }
 0xc48   :  { %v3861_v26 = vmul.f32 %v3850_v16, %v8002_v27  ;;  %v3775_v58 = vmul.f32 %v3764_v38, %v8034_v4  ;;  %v3818_v42 = vmul.f32 %v3807_v2, %v8019_v20  ;;  %v3732_v57 = vmul.f32 0.17087276, %v8078_v60 }
 0xc49   :  { %v3626_v53 = vsub.f32 1.0, %v3625_v49  ;;  %5706 = vrcp.f32 %v8080_v11  ;;  %v3635_v28 = vand.u32 2147483648, %v8032_v31  ;;  %vm3630_vm10 = vweird.f32 %v8066_v55  ;;  %4118 = vmatpush.msra.mxu2 %v4061_v15  ;;  %v4060_v49 = vld [vmem:[%s8884_s15 + $0x8] sm:$0xff] }
 0xc4a   :  { %v3872_v33 = vadd.f32 0.37409195, %v3861_v26  ;;  %v3786_v22 = vadd.f32 -1.135204, %v3775_v58  ;;  %v3829_v44 = vadd.f32 -0.18628806, %v3818_v42  ;;  %vm3631_vm13 = vmor %vm3629_vm12, %vm3630_vm10  ;;  %vm3644_vm0 = vweird.f32 %v8080_v11 }
 0xc4b   :  { %v3743_v16 = vadd.f32 -0.82215226, %v3732_v57  ;;  %v3627_v38 = vmul.f32 %v8066_v55, %v3626_v53  ;;  %v8102_v7 = vmul.f32 0.70710677, %v8083_v34  ;;  %v3928_v62 = vsub.f32 0.0, %v7974_v47  ;;  %4119 = vmatpush.msra.mxu2 %v4060_v49 }
 0xc4c   :  { %v3883_v6 = vmul.f32 %v3872_v33, %v8002_v27  ;;  %v3797_v14 = vmul.f32 %v3786_v22, %v8034_v4  ;;  %v3840_v8 = vmul.f32 %v3829_v44, %v8019_v20  ;;  %v3636_v22 = vor.u32 1.1754944e-38, %v3635_v28 }
 0xc4d   :  { %v3754_v36 = vmul.f32 %v3743_v16, %v8078_v60  ;;  %v3628_v58 = vadd.f32 %v8066_v55, %v3627_v38  ;;  %v8112_v32 = vand.u32 2147483647, %v8102_v7  ;;  %vm3634_vm14 = vcmp.eq.f32.partialorder %v3633_v13, 8.507059e+37  ;;  %4120 = vmatpush.msra.mxu2 %v4059_v24 }
 0xc4e   :  { %v3894_v2 = vadd.f32 1.0000237, %v3883_v6  ;;  %v3808_v17 = vadd.f32 0.27886808, %v3797_v14  ;;  %v3851_v26 = vadd.f32 0.09678418, %v3840_v8 }
 0xc4f   :  { %v3765_v33 = vadd.f32 1.4885159, %v3754_v36  ;;  %v5707_v57 = vpop.eup %5706  ;;  %v3632_v44 = vsel %vm3631_vm13, %v8066_v55, %v3628_v58  ;;  %v3548_v53 = vmul.f32 0.5, %v8112_v32  ;;  %v3648_v55 = vand.u32 2147483647, %v8080_v11 }
 0xc50   :  { %v3905_v42 = vmul.f32 %v3894_v2, %v8002_v27  ;;  %v3819_v29 = vmul.f32 %v3808_v17, %v8034_v4  ;;  %v3862_v31 = vmul.f32 %v3851_v26, %v8019_v20  ;;  %v8128_v8 = vsel %vm3634_vm14, %v3636_v22, %v3632_v44 }
 0xc51   :  { %v3776_v16 = vmul.f32 %v3765_v33, %v8078_v60  ;;  %v3733_v38 = vmul.f32 0.17087276, %v8128_v8  ;;  %v3640_v15 = vmul.f32 %v5707_v57, %v8080_v11  ;;  %v8134_v36 = vadd.f32 1.0, %v3548_v53 }
 0xc52   :  { %v3916_v6 = vadd.f32 -1.2655122, %v3905_v42  ;;  %v3830_v14 = vadd.f32 -0.18628806, %v3819_v29  ;;  %v3873_v28 = vadd.f32 0.37409195, %v3862_v31  ;;  %vm3645_vm15 = vweird.f32 %v5707_v57 }
 0xc53   :  { %v3787_v17 = vadd.f32 -1.135204, %v3776_v16  ;;  %v3744_v58 = vadd.f32 -0.82215226, %v3733_v38  ;;  %v3641_v49 = vsub.f32 1.0, %v3640_v15  ;;  %v3650_v42 = vand.u32 2147483648, %v8080_v11  ;;  %vm3646_vm1 = vmor %vm3644_vm0, %vm3645_vm15 }
 0xc54   :  { %v3949_v13 = vadd.f32 %v3938_v46, %v3916_v6  ;;  %v3841_v2 = vmul.f32 %v3830_v14, %v8034_v4  ;;  %v3884_v26 = vmul.f32 %v3873_v28, %v8019_v20  ;;  %5708 = vrcp.f32 %v8134_v36 }
 0xc55   :  { %v3798_v22 = vmul.f32 %v3787_v17, %v8078_v60  ;;  %v3755_v46 = vmul.f32 %v3744_v58, %v8128_v8  ;;  %v3642_v44 = vmul.f32 %v5707_v57, %v3641_v49  ;;  %v3939_v53 = vmul.f32 %v3928_v62, %v7974_v47 }
 0xc56   :  { %v3960_v29 = vmul.f32 1.442695, %v3949_v13  ;;  %v3852_v33 = vadd.f32 0.09678418, %v3841_v2  ;;  %v3895_v31 = vadd.f32 1.0000237, %v3884_v26  ;;  %vm3659_vm6 = vweird.f32 %v8134_v36 }
 0xc57   :  { %v3809_v6 = vadd.f32 0.27886808, %v3798_v22  ;;  %v3766_v16 = vadd.f32 1.4885159, %v3755_v46  ;;  %v3643_v28 = vadd.f32 %v5707_v57, %v3642_v44  ;;  %v3929_v15 = vsub.f32 0.0, %v7990_v30 }
 0xc58   :  { %5710 = vpow2.f32 %v3960_v29  ;;  %v3863_v24 = vmul.f32 %v3852_v33, %v8034_v4  ;;  %v3906_v14 = vmul.f32 %v3895_v31, %v8019_v20  ;;  %v3651_v2 = vor.u32 1.1754944e-38, %v3650_v42 }
 0xc59   :  { %v3820_v13 = vmul.f32 %v3809_v6, %v8078_v60  ;;  %v3777_v26 = vmul.f32 %v3766_v16, %v8128_v8  ;;  %v3647_v47 = vsel %vm3646_vm1, %v5707_v57, %v3643_v28  ;;  %vm3649_vm2 = vcmp.eq.f32.partialorder %v3648_v55, 8.507059e+37 }
 0xc5a   :  { %v3874_v38 = vadd.f32 0.37409195, %v3863_v24  ;;  %v3917_v17 = vadd.f32 -1.2655122, %v3906_v14  ;;  %v5709_v62 = vpop.eup %5708  ;;  %v8150_v29 = vsel %vm3649_vm2, %v3651_v2, %v3647_v47  ;;  %v3940_v44 = vmul.f32 %v3929_v15, %v7990_v30 }
 0xc5b   :  { %v3831_v49 = vadd.f32 -0.18628806, %v3820_v13  ;;  %v3788_v33 = vadd.f32 -1.135204, %v3777_v26  ;;  %v3734_v22 = vmul.f32 0.17087276, %v8150_v29  ;;  %v3655_v31 = vmul.f32 %v5709_v62, %v8134_v36 }
 0xc5c   :  { %v3885_v58 = vmul.f32 %v3874_v38, %v8034_v4  ;;  %v3950_v11 = vadd.f32 %v3939_v53, %v3917_v17  ;;  %v3930_v55 = vsub.f32 0.0, %v8009_v10  ;;  %v3663_v13 = vand.u32 2147483647, %v8134_v36 }
 0xc5d   :  { %v3842_v57 = vmul.f32 %v3831_v49, %v8078_v60  ;;  %v3799_v14 = vmul.f32 %v3788_v33, %v8128_v8  ;;  %v3745_v16 = vadd.f32 -0.82215226, %v3734_v22  ;;  %v3656_v38 = vsub.f32 1.0, %v3655_v31 }
 0xc5e   :  { %v5711_v42 = vpop.eup %5710  ;;  %v3896_v46 = vadd.f32 1.0000237, %v3885_v58  ;;  %v3962_v6 = vmul.f32 1.442695, %v3950_v11  ;;  %vm3660_vm4 = vweird.f32 %v5709_v62  ;;  %v3665_v11 = vand.u32 2147483648, %v8134_v36 }
 0xc5f   :  { %v3982_v24 = vmul.f32 %v5711_v42, %v8002_v27  ;;  %v3853_v28 = vadd.f32 0.09678418, %v3842_v57  ;;  %v3810_v30 = vadd.f32 0.27886808, %v3799_v14  ;;  %v3756_v47 = vmul.f32 %v3745_v16, %v8150_v29  ;;  %vm3661_vm8 = vmor %vm3659_vm6, %vm3660_vm4 }
 0xc60   :  { %v3907_v53 = vmul.f32 %v3896_v46, %v8034_v4  ;;  %5712 = vpow2.f32 %v3962_v6  ;;  %v3657_v27 = vmul.f32 %v5709_v62, %v3656_v38  ;;  %vm3664_vm9 = vcmp.eq.f32.partialorder %v3663_v13, 8.507059e+37 }
 0xc61   :  { %v4004_v2 = vsub.f32 1.0, %v3982_v24  ;;  %v5289_v17 = vadd.f32 -1.0, %v3982_v24  ;;  %v3864_v26 = vmul.f32 %v3853_v28, %v8078_v60  ;;  %v3821_v49 = vmul.f32 %v3810_v30, %v8128_v8 }
 0xc62   :  { %v3918_v15 = vadd.f32 -1.2655122, %v3907_v53  ;;  %v3767_v42 = vadd.f32 1.4885159, %v3756_v47  ;;  %v3658_v57 = vadd.f32 %v5709_v62, %v3657_v27  ;;  %vm3994_vm10 = vcmp.ge.f32.partialorder %v7970_v18, 0.0 }
 0xc63   :  { %v4026_v58 = vsel %vm3993_vm3, %v4004_v2, %v5289_v17  ;;  %v3875_v31 = vadd.f32 0.37409195, %v3864_v26  ;;  %v3832_v46 = vadd.f32 -0.18628806, %v3821_v49  ;;  %vm3995_vm12 = vcmp.ge.f32.partialorder %v7987_v54, 0.0 }
 0xc64   :  { %v4037_v33 = vadd.f32 1.0, %v4026_v58  ;;  %v3951_v22 = vadd.f32 %v3940_v44, %v3918_v15  ;;  %v3778_v14 = vmul.f32 %v3767_v42, %v8150_v29  ;;  %v3662_v28 = vsel %vm3661_vm8, %v5709_v62, %v3658_v57 }
 0xc65   :  { %v3886_v48 = vmul.f32 %v3875_v31, %v8078_v60  ;;  %v3843_v53 = vmul.f32 %v3832_v46, %v8128_v8  ;;  %v3666_v44 = vor.u32 1.1754944e-38, %v3665_v11  ;;  %v3941_v58 = vmul.f32 %v3930_v55, %v8009_v10 }
 0xc66   :  { %v4048_v24 = vmul.f32 %v4037_v33, %v8055_v52  ;;  %v3964_v6 = vmul.f32 1.442695, %v3951_v22  ;;  %v5713_v16 = vpop.eup %5712  ;;  %v3789_v36 = vadd.f32 -1.135204, %v3778_v14  ;;  %v3510_v11 = vmul.f32 0.5, %v7966_v63 }
 0xc67   :  { %v3983_v38 = vmul.f32 %v5713_v16, %v8019_v20  ;;  %v3897_v2 = vadd.f32 1.0000237, %v3886_v48  ;;  %v3854_v52 = vadd.f32 0.09678418, %v3843_v53  ;;  %v8174_v17 = vsel %vm3664_vm9, %v3666_v44, %v3662_v28 }
 0xc68   :  { %5714 = vpow2.f32 %v3964_v6  ;;  %5300 = vmatmul.msk.f32.vlgmr.msra.gmra.mxu2 %vm4071_vm7, %v4048_v24  ;;  %v3800_v47 = vmul.f32 %v3789_v36, %v8150_v29  ;;  %v3735_v20 = vmul.f32 0.17087276, %v8174_v17  ;;  %v3931_v10 = vsub.f32 0.0, %v8027_v45 }
 0xc69   :  { %v4005_v30 = vsub.f32 1.0, %v3983_v38  ;;  %v5290_v15 = vadd.f32 -1.0, %v3983_v38  ;;  %v3908_v26 = vmul.f32 %v3897_v2, %v8078_v60  ;;  %v3865_v62 = vmul.f32 %v3854_v52, %v8128_v8 }
 0xc6a   :  { %v3811_v49 = vadd.f32 0.27886808, %v3800_v47  ;;  %v3746_v31 = vadd.f32 -0.82215226, %v3735_v20  ;;  %v3511_v36 = vmul.f32 0.5, %v7983_v40  ;;  %vm3996_vm13 = vcmp.ge.f32.partialorder %v8006_v21, 0.0 }
 0xc6b   :  { %v4027_v13 = vsel %vm3994_vm10, %v4005_v30, %v5290_v15  ;;  %v3919_v27 = vadd.f32 -1.2655122, %v3908_v26  ;;  %v3876_v22 = vadd.f32 0.37409195, %v3865_v62  ;;  %v3942_v26 = vmul.f32 %v3931_v10, %v8027_v45 }
 0xc6c   :  { %v4038_v33 = vadd.f32 1.0, %v4027_v13  ;;  %v3822_v57 = vmul.f32 %v3811_v49, %v8150_v29  ;;  %v3757_v48 = vmul.f32 %v3746_v31, %v8174_v17  ;;  %vm3997_vm14 = vcmp.ge.f32.partialorder %v8022_v37, 0.0 }
 0xc6d   :  { %v3952_v46 = vadd.f32 %v3941_v58, %v3919_v27  ;;  %v3887_v6 = vmul.f32 %v3876_v22, %v8128_v8  ;;  %vm3998_vm15 = vcmp.ge.f32.partialorder %v8047_v56, 0.0  ;;  %vm3999_vm0 = vcmp.ge.f32.partialorder %v8102_v7, 0.0 }
 0xc6e   :  { %v5715_v42 = vpop.eup %5714  ;;  %v4049_v24 = vmul.f32 %v4038_v33, %v3510_v11  ;;  %v3833_v55 = vadd.f32 -0.18628806, %v3822_v57  ;;  %v3768_v28 = vadd.f32 1.4885159, %v3757_v48 }
 0xc6f   :  { %v3984_v18 = vmul.f32 %v5715_v42, %v8034_v4  ;;  %v3966_v14 = vmul.f32 1.442695, %v3952_v46  ;;  %v3898_v53 = vadd.f32 1.0000237, %v3887_v6  ;;  %v3932_v46 = vsub.f32 0.0, %v8060_v25 }
 0xc70   :  { %5301 = vmatmul.msk.f32.gmra.mxu2 %vm4071_vm7, %v4049_v24  ;;  %v3844_v44 = vmul.f32 %v3833_v55, %v8150_v29  ;;  %v3779_v2 = vmul.f32 %v3768_v28, %v8174_v17 }
 0xc71   :  { %v4006_v16 = vsub.f32 1.0, %v3984_v18  ;;  %v5291_v63 = vadd.f32 -1.0, %v3984_v18  ;;  %5716 = vpow2.f32 %v3966_v14  ;;  %v3909_v38 = vmul.f32 %v3898_v53, %v8128_v8 }
 0xc72   :  { %v3855_v30 = vadd.f32 0.09678418, %v3844_v44  ;;  %v3790_v47 = vadd.f32 -1.135204, %v3779_v2  ;;  %v3943_v55 = vmul.f32 %v3932_v46, %v8060_v25 }
 0xc73   :  { %v4028_v4 = vsel %vm3995_vm12, %v4006_v16, %v5291_v63  ;;  %v3920_v15 = vadd.f32 -1.2655122, %v3909_v38 }
 0xc74   :  { %v4039_v52 = vadd.f32 1.0, %v4028_v4  ;;  %v3866_v20 = vmul.f32 %v3855_v30, %v8150_v29  ;;  %v3801_v13 = vmul.f32 %v3790_v47, %v8174_v17 }
 0xc75   :  { %v3953_v54 = vadd.f32 %v3942_v26, %v3920_v15  ;;  %v3933_v15 = vsub.f32 0.0, %v8112_v32 }
 0xc76   :  { %v4050_v62 = vmul.f32 %v4039_v52, %v3511_v36  ;;  %v3877_v58 = vadd.f32 0.37409195, %v3866_v20  ;;  %v3812_v33 = vadd.f32 0.27886808, %v3801_v13  ;;  %v3513_v36 = vmul.f32 0.5, %v8014_v59 }
 0xc77   :  { %v5717_v27 = vpop.eup %5716  ;;  %v3968_v11 = vmul.f32 1.442695, %v3953_v54  ;;  %v3944_v20 = vmul.f32 %v3933_v15, %v8112_v32 }
 0xc78   :  { %v3985_v49 = vmul.f32 %v5717_v27, %v8078_v60  ;;  %5302 = vmatmul.msk.f32.gmra.mxu2 %vm4071_vm7, %v4050_v62  ;;  %v3888_v40 = vmul.f32 %v3877_v58, %v8150_v29  ;;  %v3823_v45 = vmul.f32 %v3812_v33, %v8174_v17  ;;  %v3512_v60 = vmul.f32 0.5, %v7998_v50 }
 0xc79   :  { %5718 = vpow2.f32 %v3968_v11 }
 0xc7a   :  { %v4007_v22 = vsub.f32 1.0, %v3985_v49  ;;  %v5292_v31 = vadd.f32 -1.0, %v3985_v49  ;;  %v3899_v42 = vadd.f32 1.0000237, %v3888_v40  ;;  %v3834_v24 = vadd.f32 -0.18628806, %v3823_v45 }
 0xc7b   :  { %v3514_v49 = vmul.f32 0.5, %v8037_v51 }
 0xc7c   :  { %v4029_v57 = vsel %vm3996_vm13, %v4007_v22, %v5292_v31  ;;  %v3910_v6 = vmul.f32 %v3899_v42, %v8150_v29  ;;  %v3845_v48 = vmul.f32 %v3834_v24, %v8174_v17 }
 0xc7d   :  { %v4040_v18 = vadd.f32 1.0, %v4029_v57  ;;  %v3515_v57 = vmul.f32 0.5, %v8083_v34 }
 0xc7e   :  { %v3921_v10 = vadd.f32 -1.2655122, %v3910_v6  ;;  %v3856_v63 = vadd.f32 0.09678418, %v3845_v48 }
 0xc7f   :  { %v4051_v14 = vmul.f32 %v4040_v18, %v3512_v60  ;;  %v5719_v16 = vpop.eup %5718 }
 0xc80   :  { %v3986_v21 = vmul.f32 %v5719_v16, %v8128_v8  ;;  %v3954_v53 = vadd.f32 %v3943_v55, %v3921_v10  ;;  %v3867_v28 = vmul.f32 %v3856_v63, %v8174_v17 }
 0xc81   :  { %5303 = vmatmul.msk.f32.gmra.mxu2 %vm4071_vm7, %v4051_v14 }
 0xc82   :  { %v4008_v44 = vsub.f32 1.0, %v3986_v21  ;;  %v5293_v50 = vadd.f32 -1.0, %v3986_v21  ;;  %v3970_v4 = vmul.f32 1.442695, %v3954_v53  ;;  %v3878_v38 = vadd.f32 0.37409195, %v3867_v28 }
 0xc84   :  { %v4030_v2 = vsel %vm3997_vm14, %v4008_v44, %v5293_v50  ;;  %5720 = vpow2.f32 %v3970_v4  ;;  %v3889_v52 = vmul.f32 %v3878_v38, %v8174_v17 }
 0xc85   :  { %v4041_v25 = vadd.f32 1.0, %v4030_v2 }
 0xc86   :  { %v3900_v8 = vadd.f32 1.0000237, %v3889_v52 }
 0xc87   :  { %v4052_v30 = vmul.f32 %v4041_v25, %v3513_v36 }
 0xc88   :  { %v3911_v26 = vmul.f32 %v3900_v8, %v8174_v17 }
 0xc89   :  { %5304 = vmatmul.msk.f32.gmra.mxu2 %vm4071_vm7, %v4052_v30 }
 0xc8a   :  { %v5721_v47 = vpop.eup %5720  ;;  %v3922_v37 = vadd.f32 -1.2655122, %v3911_v26 }
 0xc8b   :  { %v3987_v62 = vmul.f32 %v5721_v47, %v8150_v29 }
 0xc8c   :  { %v3955_v59 = vadd.f32 %v3944_v20, %v3922_v37 }
 0xc8d   :  { %v4009_v54 = vsub.f32 1.0, %v3987_v62  ;;  %v5294_v13 = vadd.f32 -1.0, %v3987_v62 }
 0xc8e   :  { %v3972_v58 = vmul.f32 1.442695, %v3955_v59 }
 0xc8f   :  { %v4031_v27 = vsel %vm3998_vm15, %v4009_v54, %v5294_v13 }
 0xc90   :  { %v4042_v11 = vadd.f32 1.0, %v4031_v27  ;;  %5722 = vpow2.f32 %v3972_v58 }
 0xc92   :  { %v4053_v33 = vmul.f32 %v4042_v11, %v3514_v49 }
 0xc94   :  { %5305 = vmatmul.msk.f32.gmra.mxu2 %vm4071_vm7, %v4053_v33 }
 0xc96   :  { %v5723_v22 = vpop.eup %5722 }
 0xc97   :  { %v3497_v40 = vpop.f32.mrf.mxu3  ;;  %v3988_v32 = vmul.f32 %v5723_v22, %v8174_v17 }
 0xc98   :  { %v8222_v29 = vadd.f32 %v7941_v23, %v3497_v40 }
 0xc99   :  { %v4010_v56 = vsub.f32 1.0, %v3988_v32  ;;  %v5295_v45 = vadd.f32 -1.0, %v3988_v32 }
 0xc9a   :  { %v8226_v31 = vmul.f32 0.70710677, %v8222_v29 }
 0xc9b   :  { %v4032_v51 = vsel %vm3999_vm0, %v4010_v56, %v5295_v45 }
 0xc9c   :  { %v8229_v42 = vand.u32 2147483647, %v8226_v31  ;;  %v4043_v24 = vadd.f32 1.0, %v4032_v51 }
 0xc9e   :  { %v3549_v46 = vmul.f32 0.5, %v8229_v42  ;;  %v4054_v6 = vmul.f32 %v4043_v24, %v3515_v57 }
 0xc9f   :  { %v3500_v60 = vpop.f32.mrf.mxu3 }
 0xca0   :  { %v3560_v18 = vadd.f32 1.0, %v3549_v46  ;;  %v8235_v17 = vadd.f32 %v7941_v23, %v3500_v60  ;;  %5306 = vmatmul.msk.f32.gmra.mxu2 %vm4071_vm7, %v4054_v6 }
 0xca2   :  { %5724 = vrcp.f32 %v3560_v18  ;;  %v8239_v48 = vmul.f32 0.70710677, %v8235_v17  ;;  %v3680_v28 = vand.u32 2147483648, %v3560_v18  ;;  %v3678_v4 = vand.u32 2147483647, %v3560_v18 }
 0xca3   :  { %vm3674_vm2 = vweird.f32 %v3560_v18 }
 0xca4   :  { %v8242_v7 = vand.u32 2147483647, %v8239_v48  ;;  %v3681_v36 = vor.u32 1.1754944e-38, %v3680_v28  ;;  %vm3679_vm4 = vcmp.eq.f32.partialorder %v3678_v4, 8.507059e+37 }
 0xca6   :  { %v3550_v14 = vmul.f32 0.5, %v8242_v7 }
 0xca7   :  { %v3503_v10 = vpop.f32.mrf.mxu3 }
 0xca8   :  { %v5725_v34 = vpop.eup %5724  ;;  %v8246_v55 = vadd.f32 %v7941_v23, %v3503_v10  ;;  %v3561_v63 = vadd.f32 1.0, %v3550_v14 }
 0xca9   :  { %v3670_v16 = vmul.f32 %v5725_v34, %v3560_v18  ;;  %vm3675_vm1 = vweird.f32 %v5725_v34 }
 0xcaa   :  { %v8249_v21 = vmul.f32 0.70710677, %v8246_v55  ;;  %5726 = vrcp.f32 %v3561_v63  ;;  %vm3676_vm3 = vmor %vm3674_vm2, %vm3675_vm1  ;;  %v3695_v13 = vand.u32 2147483648, %v3561_v63  ;;  %v3693_v27 = vand.u32 2147483647, %v3561_v63 }
 0xcab   :  { %v3671_v53 = vsub.f32 1.0, %v3670_v16  ;;  %vm3689_vm8 = vweird.f32 %v3561_v63 }
 0xcac   :  { %v8252_v44 = vand.u32 2147483647, %v8249_v21  ;;  %v3696_v22 = vor.u32 1.1754944e-38, %v3695_v13  ;;  %vm3694_vm10 = vcmp.eq.f32.partialorder %v3693_v27, 8.507059e+37 }
 0xcad   :  { %v3672_v50 = vmul.f32 %v5725_v34, %v3671_v53 }
 0xcae   :  { %v3551_v38 = vmul.f32 0.5, %v8252_v44 }
 0xcaf   :  { %v3673_v2 = vadd.f32 %v5725_v34, %v3672_v50  ;;  %v3506_v52 = vpop.f32.mrf.mxu3 }
 0xcb0   :  { %v3562_v25 = vadd.f32 1.0, %v3551_v38  ;;  %v5727_v30 = vpop.eup %5726  ;;  %v8256_v15 = vadd.f32 %v7941_v23, %v3506_v52 }
 0xcb1   :  { %v3677_v8 = vsel %vm3676_vm3, %v5725_v34, %v3673_v2  ;;  %v3685_v47 = vmul.f32 %v5727_v30, %v3561_v63  ;;  %vm3690_vm6 = vweird.f32 %v5727_v30 }
 0xcb2   :  { %v8258_v26 = vsel %vm3679_vm4, %v3681_v36, %v3677_v8  ;;  %5728 = vrcp.f32 %v3562_v25  ;;  %v8262_v20 = vmul.f32 0.70710677, %v8256_v15  ;;  %vm3691_vm9 = vmor %vm3689_vm8, %vm3690_vm6  ;;  %v3710_v60 = vand.u32 2147483648, %v3562_v25 }
 0xcb3   :  { %v3736_v62 = vmul.f32 0.17087276, %v8258_v26  ;;  %v3686_v37 = vsub.f32 1.0, %v3685_v47  ;;  %v3708_v14 = vand.u32 2147483647, %v3562_v25  ;;  %vm3704_vm13 = vweird.f32 %v3562_v25 }
 0xcb4   :  { %v8265_v58 = vand.u32 2147483647, %v8262_v20  ;;  %v3711_v53 = vor.u32 1.1754944e-38, %v3710_v60  ;;  %vm4000_vm4 = vcmp.ge.f32.partialorder %v8226_v31, 0.0  ;;  %vm4001_vm6 = vcmp.ge.f32.partialorder %v8239_v48, 0.0 }
 0xcb5   :  { %v3747_v54 = vadd.f32 -0.82215226, %v3736_v62  ;;  %v3687_v59 = vmul.f32 %v5727_v30, %v3686_v37  ;;  %vm3709_vm15 = vcmp.eq.f32.partialorder %v3708_v14, 8.507059e+37  ;;  %vm4002_vm8 = vcmp.ge.f32.partialorder %v8249_v21, 0.0 }
 0xcb6   :  { %v3552_v33 = vmul.f32 0.5, %v8265_v58 }
 0xcb7   :  { %v3758_v23 = vmul.f32 %v3747_v54, %v8258_v26  ;;  %v3688_v11 = vadd.f32 %v5727_v30, %v3687_v59 }
 0xcb8   :  { %v5729_v49 = vpop.eup %5728  ;;  %v3563_v45 = vadd.f32 1.0, %v3552_v33 }
 0xcb9   :  { %v3769_v40 = vadd.f32 1.4885159, %v3758_v23  ;;  %v3700_v32 = vmul.f32 %v5729_v49, %v3562_v25  ;;  %v3692_v56 = vsel %vm3691_vm9, %v5727_v30, %v3688_v11  ;;  %vm3705_vm12 = vweird.f32 %v5729_v49 }
 0xcba   :  { %v8270_v46 = vsel %vm3694_vm10, %v3696_v22, %v3692_v56  ;;  %5730 = vrcp.f32 %v3563_v45  ;;  %vm3706_vm14 = vmor %vm3704_vm13, %vm3705_vm12  ;;  %v3723_v54 = vand.u32 2147483647, %v3563_v45  ;;  %v3725_v13 = vand.u32 2147483648, %v3563_v45 }
 0xcbb   :  { %v3780_v51 = vmul.f32 %v3769_v40, %v8258_v26  ;;  %v3701_v57 = vsub.f32 1.0, %v3700_v32  ;;  %v3737_v24 = vmul.f32 0.17087276, %v8270_v46  ;;  %vm3719_vm1 = vweird.f32 %v3563_v45 }
 0xcbc   :  { %v3726_v32 = vor.u32 1.1754944e-38, %v3725_v13  ;;  %vm3724_vm3 = vcmp.eq.f32.partialorder %v3723_v54, 8.507059e+37  ;;  %vm4003_vm9 = vcmp.ge.f32.partialorder %v8262_v20, 0.0 }
 0xcbd   :  { %v3791_v18 = vadd.f32 -1.135204, %v3780_v51  ;;  %v3702_v6 = vmul.f32 %v5729_v49, %v3701_v57  ;;  %v3748_v10 = vadd.f32 -0.82215226, %v3737_v24 }
 0xcbf   :  { %v3802_v34 = vmul.f32 %v3791_v18, %v8258_v26  ;;  %v3703_v16 = vadd.f32 %v5729_v49, %v3702_v6  ;;  %v3759_v63 = vmul.f32 %v3748_v10, %v8270_v46 }
 0xcc0   :  { %v5731_v4 = vpop.eup %5730 }
 0xcc1   :  { %v3813_v28 = vadd.f32 0.27886808, %v3802_v34  ;;  %v3707_v50 = vsel %vm3706_vm14, %v5729_v49, %v3703_v16  ;;  %v3770_v38 = vadd.f32 1.4885159, %v3759_v63  ;;  %v3715_v30 = vmul.f32 %v5731_v4, %v3563_v45 }
 0xcc2   :  { %v8275_v2 = vsel %vm3709_vm15, %v3711_v53, %v3707_v50  ;;  %vm3720_vm0 = vweird.f32 %v5731_v4 }
 0xcc3   :  { %v3824_v36 = vmul.f32 %v3813_v28, %v8258_v26  ;;  %v3738_v52 = vmul.f32 0.17087276, %v8275_v2  ;;  %v3781_v8 = vmul.f32 %v3770_v38, %v8270_v46  ;;  %v3716_v62 = vsub.f32 1.0, %v3715_v30  ;;  %vm3721_vm2 = vmor %vm3719_vm1, %vm3720_vm0 }
 0xcc4   :  { %v3934_v28 = vsub.f32 0.0, %v8229_v42 }
 0xcc5   :  { %v3835_v47 = vadd.f32 -0.18628806, %v3824_v36  ;;  %v3749_v25 = vadd.f32 -0.82215226, %v3738_v52  ;;  %v3792_v37 = vadd.f32 -1.135204, %v3781_v8  ;;  %v3717_v23 = vmul.f32 %v5731_v4, %v3716_v62 }
 0xcc7   :  { %v3846_v59 = vmul.f32 %v3835_v47, %v8258_v26  ;;  %v3760_v27 = vmul.f32 %v3749_v25, %v8275_v2  ;;  %v3803_v49 = vmul.f32 %v3792_v37, %v8270_v46  ;;  %v3718_v40 = vadd.f32 %v5731_v4, %v3717_v23 }
 0xcc8   :  { %v3945_v25 = vmul.f32 %v3934_v28, %v8229_v42 }
 0xcc9   :  { %v3857_v11 = vadd.f32 0.09678418, %v3846_v59  ;;  %v3771_v33 = vadd.f32 1.4885159, %v3760_v27  ;;  %v3814_v22 = vadd.f32 0.27886808, %v3803_v49  ;;  %v3722_v57 = vsel %vm3721_vm2, %v5731_v4, %v3718_v40 }
 0xcca   :  { %v8286_v60 = vsel %vm3724_vm3, %v3726_v32, %v3722_v57 }
 0xccb   :  { %v3868_v56 = vmul.f32 %v3857_v11, %v8258_v26  ;;  %v3782_v51 = vmul.f32 %v3771_v33, %v8275_v2  ;;  %v3825_v24 = vmul.f32 %v3814_v22, %v8270_v46  ;;  %v3739_v14 = vmul.f32 0.17087276, %v8286_v60 }
 0xccc   :  { %v3935_v22 = vsub.f32 0.0, %v8242_v7 }
 0xccd   :  { %v3879_v18 = vadd.f32 0.37409195, %v3868_v56  ;;  %v3793_v6 = vadd.f32 -1.135204, %v3782_v51  ;;  %v3836_v10 = vadd.f32 -0.18628806, %v3825_v24 }
 0xcce   :  { %v3750_v16 = vadd.f32 -0.82215226, %v3739_v14 }
 0xccf   :  { %v3890_v45 = vmul.f32 %v3879_v18, %v8258_v26  ;;  %v3804_v34 = vmul.f32 %v3793_v6, %v8275_v2  ;;  %v3847_v63 = vmul.f32 %v3836_v10, %v8270_v46  ;;  %v3946_v18 = vmul.f32 %v3935_v22, %v8242_v7 }
 0xcd0   :  { %v3761_v4 = vmul.f32 %v3750_v16, %v8286_v60  ;;  %v3936_v16 = vsub.f32 0.0, %v8252_v44 }
 0xcd1   :  { %v3901_v53 = vadd.f32 1.0000237, %v3890_v45  ;;  %v3815_v50 = vadd.f32 0.27886808, %v3804_v34  ;;  %v3858_v38 = vadd.f32 0.09678418, %v3847_v63 }
 0xcd2   :  { %v3772_v30 = vadd.f32 1.4885159, %v3761_v4 }
 0xcd3   :  { %v3912_v36 = vmul.f32 %v3901_v53, %v8258_v26  ;;  %v3826_v52 = vmul.f32 %v3815_v50, %v8275_v2  ;;  %v3869_v8 = vmul.f32 %v3858_v38, %v8270_v46 }
 0xcd4   :  { %v3783_v37 = vmul.f32 %v3772_v30, %v8286_v60 }
 0xcd5   :  { %v3923_v47 = vadd.f32 -1.2655122, %v3912_v36  ;;  %v3837_v62 = vadd.f32 -0.18628806, %v3826_v52  ;;  %v3880_v54 = vadd.f32 0.37409195, %v3869_v8  ;;  %v3947_v52 = vmul.f32 %v3936_v16, %v8252_v44 }
 0xcd6   :  { %v3794_v27 = vadd.f32 -1.135204, %v3783_v37  ;;  %v8319_v37 = vld [vmem:[%s8885_s16] ss:$0 sm:$0xff] }
 0xcd7   :  { %v3956_v13 = vadd.f32 %v3945_v25, %v3923_v47  ;;  %v3848_v59 = vmul.f32 %v3837_v62, %v8275_v2  ;;  %v3891_v23 = vmul.f32 %v3880_v54, %v8270_v46  ;;  %v3516_v47 = vmul.f32 0.5, %v8222_v29 }
 0xcd8   :  { %v3805_v33 = vmul.f32 %v3794_v27, %v8286_v60 }
 0xcd9   :  { %v3974_v49 = vmul.f32 1.442695, %v3956_v13  ;;  %v3859_v11 = vadd.f32 0.09678418, %v3848_v59  ;;  %v3902_v40 = vadd.f32 1.0000237, %v3891_v23 }
 0xcda   :  { %v3816_v32 = vadd.f32 0.27886808, %v3805_v33  ;;  %v3937_v23 = vsub.f32 0.0, %v8265_v58 }
 0xcdb   :  { %5732 = vpow2.f32 %v3974_v49  ;;  %v3870_v42 = vmul.f32 %v3859_v11, %v8275_v2  ;;  %v3913_v56 = vmul.f32 %v3902_v40, %v8270_v46 }
 0xcdc   :  { %v3827_v57 = vmul.f32 %v3816_v32, %v8286_v60  ;;  %v3948_v32 = vmul.f32 %v3937_v23, %v8265_v58 }
 0xcdd   :  { %v3881_v51 = vadd.f32 0.37409195, %v3870_v42  ;;  %v3924_v24 = vadd.f32 -1.2655122, %v3913_v56  ;;  %v3517_v56 = vmul.f32 0.5, %v8235_v17 }
 0xcde   :  { %v3838_v14 = vadd.f32 -0.18628806, %v3827_v57 }
 0xcdf   :  { %v3892_v6 = vmul.f32 %v3881_v51, %v8275_v2  ;;  %v3957_v10 = vadd.f32 %v3946_v18, %v3924_v24 }
 0xce0   :  { %v3849_v63 = vmul.f32 %v3838_v14, %v8286_v60 }
 0xce1   :  { %v5733_v45 = vpop.eup %5732  ;;  %v3903_v34 = vadd.f32 1.0000237, %v3892_v6  ;;  %v3976_v28 = vmul.f32 1.442695, %v3957_v10 }
 0xce2   :  { %v3989_v53 = vmul.f32 %v5733_v45, %v8258_v26  ;;  %v3860_v4 = vadd.f32 0.09678418, %v3849_v63 }
 0xce3   :  { %v3914_v50 = vmul.f32 %v3903_v34, %v8275_v2  ;;  %5734 = vpow2.f32 %v3976_v28  ;;  %v3518_v34 = vmul.f32 0.5, %v8246_v55 }
 0xce4   :  { %v4011_v38 = vsub.f32 1.0, %v3989_v53  ;;  %v5296_v36 = vadd.f32 -1.0, %v3989_v53  ;;  %v3871_v30 = vmul.f32 %v3860_v4, %v8286_v60 }
 0xce5   :  { %v3925_v7 = vadd.f32 -1.2655122, %v3914_v50 }
 0xce6   :  { %v4033_v8 = vsel %vm4000_vm4, %v4011_v38, %v5296_v36  ;;  %v3882_v26 = vadd.f32 0.37409195, %v3871_v30 }
 0xce7   :  { %v4044_v25 = vadd.f32 1.0, %v4033_v8  ;;  %v3958_v62 = vadd.f32 %v3947_v52, %v3925_v7  ;;  %v3519_v7 = vmul.f32 0.5, %v8256_v15 }
 0xce8   :  { %v3893_v31 = vmul.f32 %v3882_v26, %v8286_v60 }
 0xce9   :  { %v4055_v54 = vmul.f32 %v4044_v25, %v3516_v47  ;;  %v3978_v13 = vmul.f32 1.442695, %v3958_v62  ;;  %v5735_v59 = vpop.eup %5734 }
 0xcea   :  { %v3990_v44 = vmul.f32 %v5735_v59, %v8270_v46  ;;  %v3904_v27 = vadd.f32 1.0000237, %v3893_v31 }
 0xceb   :  { %5736 = vpow2.f32 %v3978_v13  ;;  %v4122_v29 = vpop.f32.mrf.mxu2  ;;  %5307 = vmatmul.msk.f32.gmra.mxu2 %vm4071_vm7, %v4055_v54 }
 0xcec   :  { %v4123_v49 = vadd.f32 %v8319_v37, %v4122_v29  ;;  %v4012_v11 = vsub.f32 1.0, %v3990_v44  ;;  %v5297_v33 = vadd.f32 -1.0, %v3990_v44  ;;  %v3915_v40 = vmul.f32 %v3904_v27, %v8286_v60 }
 0xcee   :  { %v8329_v22 = vadd.f32 %v4123_v49, %v7870_v41  ;;  %v4034_v42 = vsel %vm4001_vm6, %v4012_v11, %v5297_v33  ;;  %v3926_v46 = vadd.f32 -1.2655122, %v3915_v40 }
 0xcef   :  { %v4045_v51 = vadd.f32 1.0, %v4034_v42 }
 0xcf0   :  { %v4168_v57 = vsel %vm402_vm5, %v8329_v22, 0.0  ;;  %v3959_v18 = vadd.f32 %v3948_v32, %v3926_v46 }
 0xcf1   :  { %v5737_v24 = vpop.eup %5736  ;;  %4169 = vadd.xlane.f32.xlu1 %v4168_v57  ;;  %v4056_v6 = vmul.f32 %v4045_v51, %v3517_v56 }
 0xcf2   :  { %v3991_v14 = vmul.f32 %v5737_v24, %v8275_v2  ;;  %v3980_v48 = vmul.f32 1.442695, %v3959_v18 }
 0xcf3   :  { %v4125_v45 = vpop.f32.mrf.mxu2  ;;  %5308 = vmatmul.msk.f32.gmra.mxu2 %vm4071_vm7, %v4056_v6 }
 0xcf4   :  { %v4013_v10 = vsub.f32 1.0, %v3991_v14  ;;  %v5298_v41 = vadd.f32 -1.0, %v3991_v14  ;;  %5738 = vpow2.f32 %v3980_v48  ;;  %v4126_v17 = vadd.f32 %v8319_v37, %v4125_v45 }
 0xcf6   :  { %v4035_v58 = vsel %vm4002_vm8, %v4013_v10, %v5298_v41  ;;  %v4156_v63 = vadd.f32 %v4126_v17, %v7888_v43 }
 0xcf7   :  { %v4046_v16 = vadd.f32 1.0, %v4035_v58 }
 0xcf8   :  { %v4171_v2 = vsel %vm402_vm5, %v4156_v63, 0.0 }
 0xcf9   :  { %v4057_v53 = vmul.f32 %v4046_v16, %v3518_v34  ;;  %4172 = vadd.xlane.f32.xlu2 %v4171_v2 }
 0xcfa   :  { %v5739_v28 = vpop.eup %5738 }
 0xcfb   :  { %v3992_v50 = vmul.f32 %v5739_v28, %v8286_v60  ;;  %v4128_v4 = vpop.f32.mrf.mxu2  ;;  %5309 = vmatmul.msk.f32.gmra.mxu2 %vm4071_vm7, %v4057_v53 }
 0xcfc   :  { %v4129_v21 = vadd.f32 %v8319_v37, %v4128_v4 }
 0xcfd   :  { %v4014_v38 = vsub.f32 1.0, %v3992_v50  ;;  %v5299_v36 = vadd.f32 -1.0, %v3992_v50 }
 0xcfe   :  { %v8347_v55 = vadd.f32 %v4129_v21, %v7899_v35 }
 0xcff   :  { %v4036_v43 = vsel %vm4003_vm9, %v4014_v38, %v5299_v36 }
 0xd00   :  { %v4047_v52 = vadd.f32 1.0, %v4036_v43  ;;  %v4174_v30 = vsel %vm402_vm5, %v8347_v55, 0.0 }
 0xd01   :  { %4175 = vadd.xlane.f32.xlu0 %v4174_v30 }
 0xd02   :  { %v4058_v60 = vmul.f32 %v4047_v52, %v3519_v7 }
 0xd04   :  { %v4131_v8 = vpop.f32.mrf.mxu2  ;;  %5310 = vmatmul.msk.f32.gmra.mxu2 %vm4071_vm7, %v4058_v60 }
 0xd05   :  { %v4132_v47 = vadd.f32 %v8319_v37, %v4131_v8 }
 0xd07   :  { %v4158_v25 = vadd.f32 %v4132_v47, %v7907_v5 }
 0xd09   :  { %v4177_v20 = vsel %vm402_vm5, %v4158_v25, 0.0 }
 0xd0a   :  { %4178 = vadd.xlane.f32.xlu2 %v4177_v20 }
 0xd0c   :  { %v4134_v35 = vpop.f32.mrf.mxu2 }
 0xd0d   :  { %v4135_v62 = vadd.f32 %v8319_v37, %v4134_v35 }
 0xd0f   :  { %v4159_v15 = vadd.f32 %v4135_v62, %v7914_v61 }
 0xd11   :  { %v4180_v26 = vsel %vm402_vm5, %v4159_v15, 0.0 }
 0xd12   :  { %4181 = vadd.xlane.f32.xlu1 %v4180_v26 }
 0xd17   :  { %v4137_v54 = vpop.f32.mrf.mxu2 }
 0xd18   :  { %v4138_v13 = vadd.f32 %v8319_v37, %v4137_v54 }
 0xd1a   :  { %v4160_v31 = vadd.f32 %v4138_v13, %v7921_v19 }
 0xd1c   :  { %v4183_v59 = vsel %vm402_vm5, %v4160_v31, 0.0 }
 0xd1d   :  { %4184 = vadd.xlane.f32.xlu0 %v4183_v59 }
 0xd23   :  { %v4140_v5 = vpop.f32.mrf.mxu2 }
 0xd24   :  { %v4141_v44 = vadd.f32 %v8319_v37, %v4140_v5 }
 0xd26   :  { %v4161_v27 = vadd.f32 %v4141_v44, %v7928_v3 }
 0xd28   :  { %v4186_v23 = vsel %vm402_vm5, %v4161_v27, 0.0 }
 0xd29   :  { %4187 = vadd.xlane.f32.xlu2 %v4186_v23 }
 0xd64   :  { %v4170_v57 = vpop.xlane.xlu1 %4169 }
 0xd65   :  { %v4201_v6 = vmul.f32 %v4170_v57, %v7743_v9 }
 0xd67   :  { %v8386_v41 = vsub.f32 %v8329_v22, %v4201_v6 }
 0xd6c   :  { %v4173_v61 = vpop.xlane.xlu2 %4172 }
 0xd6d   :  { %v4202_v49 = vmul.f32 %v4173_v61, %v7743_v9 }
 0xd6e   :  { %v4143_v29 = vpop.f32.mrf.mxu2 }
 0xd6f   :  { %v4144_v11 = vadd.f32 %v8319_v37, %v4143_v29  ;;  %v8368_v19 = vsub.f32 %v4156_v63, %v4202_v49 }
 0xd71   :  { %v4162_v33 = vadd.f32 %v4144_v11, %v7944_v0  ;;  %v4224_v3 = vmul.f32 %v8368_v19, %v8368_v19 }
 0xd73   :  { %v4189_v40 = vsel %vm402_vm5, %v4162_v33, 0.0  ;;  %v4237_v56 = vsel %vm402_vm5, %v4224_v3, 0.0 }
 0xd74   :  { %4190 = vadd.xlane.f32.xlu0 %v4189_v40  ;;  %v4176_v58 = vpop.xlane.xlu0 %4175 }
 0xd75   :  { %v4203_v53 = vmul.f32 %v4176_v58, %v7743_v9 }
 0xd76   :  { %v4146_v42 = vpop.f32.mrf.mxu2 }
 0xd77   :  { %v4147_v46 = vadd.f32 %v8319_v37, %v4146_v42  ;;  %v8402_v4 = vsub.f32 %v8347_v55, %v4203_v53 }
 0xd79   :  { %v4163_v32 = vadd.f32 %v4147_v46, %v7960_v1 }
 0xd7b   :  { %v4192_v51 = vsel %vm402_vm5, %v4163_v32, 0.0 }
 0xd7c   :  { %4238 = vadd.xlane.f32.xlu0 %v4237_v56  ;;  %4193 = vadd.xlane.f32.xlu1 %v4192_v51 }
 0xd7d   :  { %v4179_v0 = vpop.xlane.xlu2 %4178 }
 0xd7e   :  { %v4204_v24 = vmul.f32 %v4179_v0, %v7743_v9  ;;  %v4149_v18 = vpop.f32.mrf.mxu2 }
 0xd7f   :  { %v4150_v14 = vadd.f32 %v8319_v37, %v4149_v18 }
 0xd80   :  { %v8380_v48 = vsub.f32 %v4158_v25, %v4204_v24 }
 0xd81   :  { %v4164_v10 = vadd.f32 %v4150_v14, %v7977_v39  ;;  %v4223_v39 = vmul.f32 %v8386_v41, %v8386_v41 }
 0xd82   :  { %v4226_v1 = vmul.f32 %v8380_v48, %v8380_v48 }
 0xd83   :  { %v4195_v45 = vsel %vm402_vm5, %v4164_v10, 0.0  ;;  %v4234_v50 = vsel %vm402_vm5, %v4223_v39, 0.0 }
 0xd84   :  { %4196 = vadd.xlane.f32.xlu2 %v4195_v45  ;;  %v4243_v17 = vsel %vm402_vm5, %v4226_v1, 0.0 }
 0xd85   :  { %4244 = vadd.xlane.f32.xlu0 %v4243_v17  ;;  %v4182_v34 = vpop.xlane.xlu1 %4181 }
 0xd86   :  { %v4205_v16 = vmul.f32 %v4182_v34, %v7743_v9  ;;  %v8452_v34 = vld [vmem:[%s8886_s17] ss:$0 sm:$0xff] }
 0xd87   :  { %v4152_v63 = vpop.f32.mrf.mxu2 }
 0xd88   :  { %v4153_v2 = vadd.f32 %v8319_v37, %v4152_v63  ;;  %v8398_v28 = vsub.f32 %v4159_v15, %v4205_v16  ;;  %v4225_v37 = vmul.f32 %v8402_v4, %v8402_v4 }
 0xd8a   :  { %v8396_v22 = vadd.f32 %v4153_v2, %v7995_v12  ;;  %v4227_v38 = vmul.f32 %v8398_v28, %v8398_v28  ;;  %v4240_v55 = vsel %vm402_vm5, %v4225_v37, 0.0  ;;  %v8460_v2 = vld [vmem:[%s8887_s18] ss:$0 sm:$0xff] }
 0xd8c   :  { %4235 = vadd.xlane.f32.xlu2 %v4234_v50  ;;  %v4198_v21 = vsel %vm402_vm5, %v8396_v22, 0.0  ;;  %v4246_v43 = vsel %vm402_vm5, %v4227_v38, 0.0 }
 0xd8d   :  { %4199 = vadd.xlane.f32.xlu1 %v4198_v21 }
 0xd90   :  { %v4185_v12 = vpop.xlane.xlu0 %4184 }
 0xd91   :  { %v4206_v36 = vmul.f32 %v4185_v12, %v7743_v9 }
 0xd93   :  { %v8412_v7 = vsub.f32 %v4160_v31, %v4206_v36 }
 0xd94   :  { %4247 = vadd.xlane.f32.xlu2 %v4246_v43 }
 0xd95   :  { %4241 = vadd.xlane.f32.xlu1 %v4240_v55  ;;  %v4228_v52 = vmul.f32 %v8412_v7, %v8412_v7 }
 0xd97   :  { %v4249_v30 = vsel %vm402_vm5, %v4228_v52, 0.0 }
 0xd9c   :  { %v4188_v60 = vpop.xlane.xlu2 %4187 }
 0xd9d   :  { %4250 = vadd.xlane.f32.xlu1 %v4249_v30  ;;  %v4207_v8 = vmul.f32 %v4188_v60, %v7743_v9 }
 0xd9f   :  { %v8419_v47 = vsub.f32 %v4161_v27, %v4207_v8 }
 0xda1   :  { %v4229_v25 = vmul.f32 %v8419_v47, %v8419_v47 }
 0xda3   :  { %v4252_v20 = vsel %vm402_vm5, %v4229_v25, 0.0 }
 0xda4   :  { %4253 = vadd.xlane.f32.xlu0 %v4252_v20 }
 0xde7   :  { %v4191_v35 = vpop.xlane.xlu0 %4190 }
 0xde8   :  { %v4208_v62 = vmul.f32 %v4191_v35, %v7743_v9 }
 0xdea   :  { %v8425_v15 = vsub.f32 %v4162_v33, %v4208_v62 }
 0xdec   :  { %v4230_v26 = vmul.f32 %v8425_v15, %v8425_v15 }
 0xdee   :  { %v4255_v54 = vsel %vm402_vm5, %v4230_v26, 0.0 }
 0xdef   :  { %4256 = vadd.xlane.f32.xlu1 %v4255_v54  ;;  %v4239_v13 = vpop.xlane.xlu0 %4238  ;;  %v4194_v31 = vpop.xlane.xlu1 %4193 }
 0xdf0   :  { %v4268_v59 = vmul.f32 %v4239_v13, %v7743_v9  ;;  %v4209_v5 = vmul.f32 %v4194_v31, %v7743_v9 }
 0xdf2   :  { %v4279_v44 = vadd.f32 1e-05, %v4268_v59  ;;  %v8432_v27 = vsub.f32 %v4163_v32, %v4209_v5 }
 0xdf4   :  { %5740 = vrsqrt.f32 %v4279_v44  ;;  %v4231_v23 = vmul.f32 %v8432_v27, %v8432_v27  ;;  %vm4305_vm10 = vweird.f32 %v4279_v44 }
 0xdf6   :  { %v4258_v61 = vsel %vm402_vm5, %v4231_v23, 0.0 }
 0xdf7   :  { %v4197_v29 = vpop.xlane.xlu2 %4196  ;;  %4259 = vadd.xlane.f32.xlu2 %v4258_v61 }
 0xdf8   :  { %v4210_v49 = vmul.f32 %v4197_v29, %v7743_v9  ;;  %v4245_v11 = vpop.xlane.xlu0 %4244 }
 0xdf9   :  { %v4270_v40 = vmul.f32 %v4245_v11, %v7743_v9 }
 0xdfa   :  { %v5741_v33 = vpop.eup %5740  ;;  %v8439_v3 = vsub.f32 %v4164_v10, %v4210_v49 }
 0xdfb   :  { %v4300_v42 = vmul.f32 %v5741_v33, %v4279_v44  ;;  %v4281_v46 = vadd.f32 1e-05, %v4270_v40  ;;  %vm4306_vm7 = vweird.f32 %v5741_v33 }
 0xdfc   :  { %v4232_v56 = vmul.f32 %v8439_v3, %v8439_v3  ;;  %vm4307_vm12 = vmor %vm4305_vm10, %vm4306_vm7 }
 0xdfd   :  { %v4301_v32 = vmul.f32 %v5741_v33, %v4300_v42  ;;  %5742 = vrsqrt.f32 %v4281_v46  ;;  %vm4325_vm14 = vweird.f32 %v4281_v46 }
 0xdfe   :  { %v4261_v57 = vsel %vm402_vm5, %v4232_v56, 0.0 }
 0xdff   :  { %v4302_v51 = vmul.f32 0.5, %v4301_v32  ;;  %v4236_v0 = vpop.xlane.xlu2 %4235  ;;  %4262 = vadd.xlane.f32.xlu0 %v4261_v57 }
 0xe00   :  { %v4267_v18 = vmul.f32 %v4236_v0, %v7743_v9  ;;  %v4200_v6 = vpop.xlane.xlu1 %4199 }
 0xe01   :  { %v4303_v24 = vsub.f32 1.5, %v4302_v51  ;;  %v4211_v14 = vmul.f32 %v4200_v6, %v7743_v9 }
 0xe02   :  { %v4278_v1 = vadd.f32 1e-05, %v4267_v18 }
 0xe03   :  { %v4304_v10 = vmul.f32 %v5741_v33, %v4303_v24  ;;  %v5743_v45 = vpop.eup %5742  ;;  %v8447_v17 = vsub.f32 %v8396_v22, %v4211_v14 }
 0xe04   :  { %v4320_v58 = vmul.f32 %v5743_v45, %v4281_v46  ;;  %5744 = vrsqrt.f32 %v4278_v1  ;;  %vm4326_vm13 = vweird.f32 %v5743_v45  ;;  %vm4295_vm1 = vweird.f32 %v4278_v1 }
 0xe05   :  { %v4233_v16 = vmul.f32 %v8447_v17, %v8447_v17  ;;  %v4308_v63 = vsel %vm4307_vm12, %v5741_v33, %v4304_v10  ;;  %vm4327_vm15 = vmor %vm4325_vm14, %vm4326_vm13 }
 0xe06   :  { %v4321_v39 = vmul.f32 %v5743_v45, %v4320_v58  ;;  %v4400_v53 = vmul.f32 %v4308_v63, %v8368_v19 }
 0xe07   :  { %v4248_v22 = vpop.xlane.xlu2 %4247  ;;  %v4264_v50 = vsel %vm402_vm5, %v4233_v16, 0.0 }
 0xe08   :  { %v4322_v21 = vmul.f32 0.5, %v4321_v39  ;;  %v4271_v38 = vmul.f32 %v4248_v22, %v7743_v9  ;;  %4265 = vadd.xlane.f32.xlu2 %v4264_v50  ;;  %v4242_v37 = vpop.xlane.xlu1 %4241  ;;  %v4414_v12 = vmul.f32 %v8452_v34, %v4400_v53 }
 0xe09   :  { %v4269_v36 = vmul.f32 %v4242_v37, %v7743_v9 }
 0xe0a   :  { %v5745_v43 = vpop.eup %5744  ;;  %v4323_v55 = vsub.f32 1.5, %v4322_v21  ;;  %v4282_v19 = vadd.f32 1e-05, %v4271_v38  ;;  %v8467_v52 = vadd.f32 %v8460_v2, %v4414_v12 }
 0xe0b   :  { %v4290_v30 = vmul.f32 %v5745_v43, %v4278_v1  ;;  %v4280_v60 = vadd.f32 1e-05, %v4269_v36  ;;  %vm4296_vm0 = vweird.f32 %v5745_v43 }
 0xe0c   :  { %v4324_v8 = vmul.f32 %v5743_v45, %v4323_v55  ;;  %5746 = vrsqrt.f32 %v4282_v19  ;;  %v4443_v25 = vsel %vm402_vm5, %v8467_v52, 0.0  ;;  %vm4297_vm2 = vmor %vm4295_vm1, %vm4296_vm0  ;;  %vm4335_vm4 = vweird.f32 %v4282_v19 }
 0xe0d   :  { %v4291_v20 = vmul.f32 %v5745_v43, %v4290_v30  ;;  %5748 = vrsqrt.f32 %v4280_v60  ;;  %4444 = vadd.xlane.f32.xlu1 %v4443_v25  ;;  %vm4315_vm9 = vweird.f32 %v4280_v60 }
 0xe0e   :  { %v4328_v35 = vsel %vm4327_vm15, %v5743_v45, %v4324_v8 }
 0xe0f   :  { %v4292_v62 = vmul.f32 0.5, %v4291_v20  ;;  %v4402_v26 = vmul.f32 %v4328_v35, %v8380_v48 }
 0xe10   :  { %v4251_v54 = vpop.xlane.xlu1 %4250 }
 0xe11   :  { %v4293_v13 = vsub.f32 1.5, %v4292_v62  ;;  %v4272_v31 = vmul.f32 %v4251_v54, %v7743_v9  ;;  %v4416_v59 = vmul.f32 %v8452_v34, %v4402_v26 }
 0xe12   :  { %v5747_v5 = vpop.eup %5746 }
 0xe13   :  { %v5749_v44 = vpop.eup %5748  ;;  %v4294_v23 = vmul.f32 %v5745_v43, %v4293_v13  ;;  %v4330_v61 = vmul.f32 %v5747_v5, %v4282_v19  ;;  %v4283_v29 = vadd.f32 1e-05, %v4272_v31  ;;  %v8475_v11 = vadd.f32 %v8460_v2, %v4416_v59 }
 0xe14   :  { %v4310_v49 = vmul.f32 %v5749_v44, %v4280_v60  ;;  %vm4336_vm3 = vweird.f32 %v5747_v5  ;;  %vm4316_vm6 = vweird.f32 %v5749_v44 }
 0xe15   :  { %v4331_v33 = vmul.f32 %v5747_v5, %v4330_v61  ;;  %5750 = vrsqrt.f32 %v4283_v29  ;;  %v4298_v48 = vsel %vm4297_vm2, %v5745_v43, %v4294_v23  ;;  %v4449_v42 = vsel %vm402_vm5, %v8475_v11, 0.0  ;;  %vm4337_vm8 = vmor %vm4335_vm4, %vm4336_vm3 }
 0xe16   :  { %v4311_v40 = vmul.f32 %v5749_v44, %v4310_v49  ;;  %v4399_v46 = vmul.f32 %v4298_v48, %v8386_v41  ;;  %4450 = vadd.xlane.f32.xlu1 %v4449_v42  ;;  %vm4317_vm7 = vmor %vm4315_vm9, %vm4316_vm6  ;;  %vm4345_vm12 = vweird.f32 %v4283_v29 }
 0xe17   :  { %v4332_v32 = vmul.f32 0.5, %v4331_v33  ;;  %v4254_v0 = vpop.xlane.xlu0 %4253 }
 0xe18   :  { %v4312_v56 = vmul.f32 0.5, %v4311_v40  ;;  %v4413_v51 = vmul.f32 %v8452_v34, %v4399_v46  ;;  %v4273_v18 = vmul.f32 %v4254_v0, %v7743_v9 }
 0xe19   :  { %v4333_v57 = vsub.f32 1.5, %v4332_v32 }
 0xe1a   :  { %v4313_v24 = vsub.f32 1.5, %v4312_v56  ;;  %v8483_v6 = vadd.f32 %v8460_v2, %v4413_v51  ;;  %v4284_v45 = vadd.f32 1e-05, %v4273_v18 }
 0xe1b   :  { %v5751_v14 = vpop.eup %5750  ;;  %v4334_v10 = vmul.f32 %v5747_v5, %v4333_v57 }
 0xe1c   :  { %v4314_v41 = vmul.f32 %v5749_v44, %v4313_v24  ;;  %v4340_v1 = vmul.f32 %v5751_v14, %v4283_v29  ;;  %v4440_v58 = vsel %vm402_vm5, %v8483_v6, 0.0  ;;  %5752 = vrsqrt.f32 %v4284_v45 }
 0xe1d   :  { %v4338_v16 = vsel %vm4337_vm8, %v5747_v5, %v4334_v10  ;;  %4441 = vadd.xlane.f32.xlu0 %v4440_v58  ;;  %vm4346_vm10 = vweird.f32 %v5751_v14  ;;  %vm4355_vm15 = vweird.f32 %v4284_v45 }
 0xe1e   :  { %v4341_v63 = vmul.f32 %v5751_v14, %v4340_v1  ;;  %v4403_v39 = vmul.f32 %v4338_v16, %v8398_v28  ;;  %v4318_v53 = vsel %vm4317_vm7, %v5749_v44, %v4314_v41  ;;  %vm4347_vm13 = vmor %vm4345_vm12, %vm4346_vm10 }
 0xe1f   :  { %v4401_v21 = vmul.f32 %v4318_v53, %v8402_v4 }
 0xe20   :  { %v4342_v22 = vmul.f32 0.5, %v4341_v63  ;;  %v4417_v50 = vmul.f32 %v8452_v34, %v4403_v39 }
 0xe21   :  { %v4415_v12 = vmul.f32 %v8452_v34, %v4401_v21 }
 0xe22   :  { %v4343_v38 = vsub.f32 1.5, %v4342_v22  ;;  %v8491_v37 = vadd.f32 %v8460_v2, %v4417_v50  ;;  %v5753_v36 = vpop.eup %5752 }
 0xe23   :  { %v8497_v28 = vadd.f32 %v8460_v2, %v4415_v12  ;;  %v4350_v19 = vmul.f32 %v5753_v36, %v4284_v45  ;;  %vm4356_vm14 = vweird.f32 %v5753_v36 }
 0xe24   :  { %v4344_v43 = vmul.f32 %v5751_v14, %v4343_v38  ;;  %v4452_v55 = vsel %vm402_vm5, %v8491_v37, 0.0  ;;  %vm4357_vm0 = vmor %vm4355_vm15, %vm4356_vm14 }
 0xe25   :  { %4453 = vadd.xlane.f32.xlu0 %v4452_v55  ;;  %v4446_v4 = vsel %vm402_vm5, %v8497_v28, 0.0  ;;  %v4351_v60 = vmul.f32 %v5753_v36, %v4350_v19 }
 0xe26   :  { %v4348_v30 = vsel %vm4347_vm13, %v5751_v14, %v4344_v43  ;;  %4447 = vadd.xlane.f32.xlu2 %v4446_v4 }
 0xe27   :  { %v4404_v8 = vmul.f32 %v4348_v30, %v8412_v7  ;;  %v4352_v25 = vmul.f32 0.5, %v4351_v60 }
 0xe29   :  { %v4418_v20 = vmul.f32 %v8452_v34, %v4404_v8  ;;  %v4353_v35 = vsub.f32 1.5, %v4352_v25 }
 0xe2b   :  { %v8504_v62 = vadd.f32 %v8460_v2, %v4418_v20  ;;  %v4354_v26 = vmul.f32 %v5753_v36, %v4353_v35 }
 0xe2d   :  { %v4455_v54 = vsel %vm402_vm5, %v8504_v62, 0.0  ;;  %v4358_v13 = vsel %vm4357_vm0, %v5753_v36, %v4354_v26 }
 0xe2e   :  { %4456 = vadd.xlane.f32.xlu2 %v4455_v54  ;;  %v4405_v31 = vmul.f32 %v4358_v13, %v8419_v47 }
 0xe30   :  { %v4419_v7 = vmul.f32 %v8452_v34, %v4405_v31 }
 0xe32   :  { %v8511_v59 = vadd.f32 %v8460_v2, %v4419_v7 }
 0xe34   :  { %v4458_v5 = vsel %vm402_vm5, %v8511_v59, 0.0 }
 0xe35   :  { %4459 = vadd.xlane.f32.xlu1 %v4458_v5 }
 0xe62   :  { %v4257_v44 = vpop.xlane.xlu1 %4256 }
 0xe63   :  { %v4274_v23 = vmul.f32 %v4257_v44, %v7743_v9 }
 0xe65   :  { %v4285_v61 = vadd.f32 1e-05, %v4274_v23 }
 0xe67   :  { %5754 = vrsqrt.f32 %v4285_v61  ;;  %vm4365_vm2 = vweird.f32 %v4285_v61 }
 0xe6a   :  { %v4260_v29 = vpop.xlane.xlu2 %4259 }
 0xe6b   :  { %v4275_v49 = vmul.f32 %v4260_v29, %v7743_v9 }
 0xe6d   :  { %v5755_v33 = vpop.eup %5754  ;;  %v4286_v47 = vadd.f32 1e-05, %v4275_v49 }
 0xe6e   :  { %v4360_v48 = vmul.f32 %v5755_v33, %v4285_v61  ;;  %vm4366_vm1 = vweird.f32 %v5755_v33 }
 0xe6f   :  { %5756 = vrsqrt.f32 %v4286_v47  ;;  %vm4367_vm3 = vmor %vm4365_vm2, %vm4366_vm1  ;;  %vm4375_vm6 = vweird.f32 %v4286_v47 }
 0xe70   :  { %v4361_v40 = vmul.f32 %v5755_v33, %v4360_v48 }
 0xe72   :  { %v4362_v42 = vmul.f32 0.5, %v4361_v40  ;;  %v4263_v46 = vpop.xlane.xlu0 %4262 }
 0xe73   :  { %v4276_v56 = vmul.f32 %v4263_v46, %v7743_v9 }
 0xe74   :  { %v4363_v32 = vsub.f32 1.5, %v4362_v42 }
 0xe75   :  { %v5757_v51 = vpop.eup %5756  ;;  %v4287_v0 = vadd.f32 1e-05, %v4276_v56 }
 0xe76   :  { %v4364_v57 = vmul.f32 %v5755_v33, %v4363_v32  ;;  %v4370_v24 = vmul.f32 %v5757_v51, %v4286_v47  ;;  %vm4376_vm4 = vweird.f32 %v5757_v51 }
 0xe77   :  { %5758 = vrsqrt.f32 %v4287_v0  ;;  %vm4377_vm8 = vmor %vm4375_vm6, %vm4376_vm4  ;;  %vm4385_vm7 = vweird.f32 %v4287_v0 }
 0xe78   :  { %v4368_v18 = vsel %vm4367_vm3, %v5755_v33, %v4364_v57  ;;  %v4371_v14 = vmul.f32 %v5757_v51, %v4370_v24 }
 0xe79   :  { %v4406_v10 = vmul.f32 %v4368_v18, %v8425_v15 }
 0xe7a   :  { %v4372_v41 = vmul.f32 0.5, %v4371_v14 }
 0xe7b   :  { %v4420_v1 = vmul.f32 %v8452_v34, %v4406_v10  ;;  %v4266_v45 = vpop.xlane.xlu2 %4265 }
 0xe7c   :  { %v4373_v58 = vsub.f32 1.5, %v4372_v41  ;;  %v4277_v16 = vmul.f32 %v4266_v45, %v7743_v9 }
 0xe7d   :  { %v8522_v63 = vadd.f32 %v8460_v2, %v4420_v1  ;;  %v5759_v39 = vpop.eup %5758 }
 0xe7e   :  { %v4374_v53 = vmul.f32 %v5757_v51, %v4373_v58  ;;  %v4380_v22 = vmul.f32 %v5759_v39, %v4287_v0  ;;  %v4288_v50 = vadd.f32 1e-05, %v4277_v16  ;;  %vm4386_vm9 = vweird.f32 %v5759_v39 }
 0xe7f   :  { %v4461_v15 = vsel %vm402_vm5, %v8522_v63, 0.0  ;;  %vm4387_vm10 = vmor %vm4385_vm7, %vm4386_vm9 }
 0xe80   :  { %v4381_v21 = vmul.f32 %v5759_v39, %v4380_v22  ;;  %5760 = vrsqrt.f32 %v4288_v50  ;;  %4462 = vadd.xlane.f32.xlu2 %v4461_v15  ;;  %v4445_v38 = vpop.xlane.xlu1 %4444  ;;  %v4378_v12 = vsel %vm4377_vm8, %v5757_v51, %v4374_v53  ;;  %vm4395_vm13 = vweird.f32 %v4288_v50 }
 0xe81   :  { %v4474_v36 = vmul.f32 %v4445_v38, %v7743_v9  ;;  %v4407_v43 = vmul.f32 %v4378_v12, %v8432_v27 }
 0xe82   :  { %v4382_v55 = vmul.f32 0.5, %v4381_v21 }
 0xe83   :  { %v8529_v19 = vsub.f32 %v8467_v52, %v4474_v36  ;;  %v4421_v4 = vmul.f32 %v8452_v34, %v4407_v43 }
 0xe84   :  { %v4383_v30 = vsub.f32 1.5, %v4382_v55 }
 0xe85   :  { %v8533_v60 = vadd.f32 %v8460_v2, %v4421_v4  ;;  %v4496_v8 = vmul.f32 %v8529_v19, %v8529_v19 }
 0xe86   :  { %v5761_v25 = vpop.eup %5760  ;;  %v4384_v20 = vmul.f32 %v5759_v39, %v4383_v30 }
 0xe87   :  { %v4390_v35 = vmul.f32 %v5761_v25, %v4288_v50  ;;  %v4464_v27 = vsel %vm402_vm5, %v8533_v60, 0.0  ;;  %v4509_v52 = vsel %vm402_vm5, %v4496_v8, 0.0  ;;  %vm4396_vm12 = vweird.f32 %v5761_v25 }
 0xe88   :  { %4465 = vadd.xlane.f32.xlu0 %v4464_v27  ;;  %4510 = vadd.xlane.f32.xlu2 %v4509_v52  ;;  %v4388_v26 = vsel %vm4387_vm10, %v5759_v39, %v4384_v20  ;;  %vm4397_vm14 = vmor %vm4395_vm13, %vm4396_vm12  ;;  %v5312_v20 = vld [vmem:[%s8890_s21 + $0x28] sm:$0xff]  ;;  %v5311_v27 = vld [vmem:[%s8890_s21 + $0x20] sm:$0xff] }
 0xe89   :  { %v4391_v54 = vmul.f32 %v5761_v25, %v4390_v35  ;;  %v4408_v13 = vmul.f32 %v4388_v26, %v8439_v3  ;;  %v4451_v31 = vpop.xlane.xlu1 %4450 }
 0xe8a   :  { %v4476_v5 = vmul.f32 %v4451_v31, %v7743_v9 }
 0xe8b   :  { %v4392_v7 = vmul.f32 0.5, %v4391_v54  ;;  %v4422_v44 = vmul.f32 %v8452_v34, %v4408_v13 }
 0xe8c   :  { %v8544_v61 = vsub.f32 %v8475_v11, %v4476_v5 }
 0xe8d   :  { %v4393_v23 = vsub.f32 1.5, %v4392_v7  ;;  %v8547_v29 = vadd.f32 %v8460_v2, %v4422_v44 }
 0xe8e   :  { %v4498_v33 = vmul.f32 %v8544_v61, %v8544_v61 }
 0xe8f   :  { %v4394_v49 = vmul.f32 %v5761_v25, %v4393_v23  ;;  %v4467_v3 = vsel %vm402_vm5, %v8547_v29, 0.0 }
 0xe90   :  { %4468 = vadd.xlane.f32.xlu1 %v4467_v3  ;;  %v4515_v48 = vsel %vm402_vm5, %v4498_v33, 0.0  ;;  %v4442_v47 = vpop.xlane.xlu0 %4441  ;;  %v4713_v3 = vld [vmem:[%s8890_s21 + $0x18] sm:$0xff] }
 0xe91   :  { %v4398_v40 = vsel %vm4397_vm14, %v5761_v25, %v4394_v49  ;;  %4516 = vadd.xlane.f32.xlu2 %v4515_v48  ;;  %v4473_v11 = vmul.f32 %v4442_v47, %v7743_v9  ;;  %4757 = vmatpush.msrb.mxu1 %v4713_v3 }
 0xe92   :  { %v4409_v42 = vmul.f32 %v4398_v40, %v8447_v17  ;;  %v4712_v40 = vld [vmem:[%s8890_s21 + $0x10] sm:$0xff] }
 0xe93   :  { %v8557_v46 = vsub.f32 %v8483_v6, %v4473_v11  ;;  %4758 = vmatpush.msrb.mxu1 %v4712_v40 }
 0xe94   :  { %v4423_v32 = vmul.f32 %v8452_v34, %v4409_v42 }
 0xe95   :  { %v4495_v51 = vmul.f32 %v8557_v46, %v8557_v46 }
 0xe96   :  { %v8561_v56 = vadd.f32 %v8460_v2, %v4423_v32 }
 0xe97   :  { %v4506_v0 = vsel %vm402_vm5, %v4495_v51, 0.0  ;;  %v4711_v51 = vld [vmem:[%s8890_s21 + $0x8] sm:$0xff] }
 0xe98   :  { %v4470_v57 = vsel %vm402_vm5, %v8561_v56, 0.0  ;;  %4507 = vadd.xlane.f32.xlu1 %v4506_v0  ;;  %v4454_v24 = vpop.xlane.xlu0 %4453  ;;  %4759 = vmatpush.msrb.mxu1 %v4711_v51 }
 0xe99   :  { %4471 = vadd.xlane.f32.xlu0 %v4470_v57  ;;  %v4448_v17 = vpop.xlane.xlu2 %4447  ;;  %v4477_v6 = vmul.f32 %v4454_v24, %v7743_v9 }
 0xe9a   :  { %v4475_v18 = vmul.f32 %v4448_v17, %v7743_v9 }
 0xe9b   :  { %v8571_v34 = vsub.f32 %v8491_v37, %v4477_v6  ;;  %v8655_v6 = vld [vmem:[%s8888_s19] ss:$0 sm:$0xff] }
 0xe9c   :  { %v8574_v2 = vsub.f32 %v8497_v28, %v4475_v18  ;;  %v4710_v18 = vld [vmem:[%s8890_s21] sm:$0xff] }
 0xe9d   :  { %v4499_v14 = vmul.f32 %v8571_v34, %v8571_v34  ;;  %4760 = vmatpush.msrb.mxu1 %v4710_v18 }
 0xe9e   :  { %v4497_v10 = vmul.f32 %v8574_v2, %v8574_v2 }
 0xe9f   :  { %v4518_v41 = vsel %vm402_vm5, %v4499_v14, 0.0 }
 0xea0   :  { %v4512_v1 = vsel %vm402_vm5, %v4497_v10, 0.0  ;;  %4519 = vadd.xlane.f32.xlu1 %v4518_v41 }
 0xea1   :  { %4513 = vadd.xlane.f32.xlu0 %v4512_v1  ;;  %v4457_v45 = vpop.xlane.xlu2 %4456 }
 0xea2   :  { %v4478_v58 = vmul.f32 %v4457_v45, %v7743_v9  ;;  %v5320_v45 = vld [vmem:[%s8890_s21 + $0x58] sm:$0xff] }
 0xea4   :  { %v8584_v37 = vsub.f32 %v8504_v62, %v4478_v58  ;;  %v5325_v58 = vld [vmem:[%s8890_s21 + $0x78] sm:$0xff] }
 0xea5   :  { %4814 = vmatpush.msra.mxu1 %v5325_v58 }
 0xea6   :  { %v4500_v28 = vmul.f32 %v8584_v37, %v8584_v37 }
 0xea8   :  { %v4521_v16 = vsel %vm402_vm5, %v4500_v28, 0.0  ;;  %v4460_v39 = vpop.xlane.xlu1 %4459 }
 0xea9   :  { %4522 = vadd.xlane.f32.xlu0 %v4521_v16  ;;  %v4479_v53 = vmul.f32 %v4460_v39, %v7743_v9 }
 0xeab   :  { %v8591_v22 = vsub.f32 %v8511_v59, %v4479_v53  ;;  %v5314_v59 = vld [vmem:[%s8890_s21 + $0x38] sm:$0xff]  ;;  %v5319_v53 = vld [vmem:[%s8890_s21 + $0x50] sm:$0xff] }
 0xeac   :  { %4734 = vmatpush.msrb.mxu0 %v5314_v59  ;;  %v5323_v59 = vld [vmem:[%s8890_s21 + $0x68] sm:$0xff] }
 0xead   :  { %v4501_v50 = vmul.f32 %v8591_v22, %v8591_v22 }
 0xeaf   :  { %v4524_v15 = vsel %vm402_vm5, %v4501_v50, 0.0  ;;  %v5324_v50 = vld [vmem:[%s8890_s21 + $0x70] sm:$0xff] }
 0xeb0   :  { %4525 = vadd.xlane.f32.xlu2 %v4524_v15  ;;  %4815 = vmatpush.msra.mxu1 %v5324_v50 }
 0xeb2   :  { %4816 = vmatpush.msra.mxu1 %v5323_v59 }
 0xef3   :  { %v4463_v62 = vpop.xlane.xlu2 %4462 }
 0xef4   :  { %v4480_v21 = vmul.f32 %v4463_v62, %v7743_v9 }
 0xef6   :  { %v8598_v38 = vsub.f32 %v8522_v63, %v4480_v21  ;;  %v5313_v63 = vld [vmem:[%s8890_s21 + $0x30] sm:$0xff] }
 0xef7   :  { %4735 = vmatpush.msrb.mxu0 %v5313_v63 }
 0xef8   :  { %v4502_v12 = vmul.f32 %v8598_v38, %v8598_v38 }
 0xef9   :  { %4736 = vmatpush.msrb.mxu0 %v5312_v20  ;;  %v5322_v20 = vld [vmem:[%s8890_s21 + $0x60] sm:$0xff] }
 0xefa   :  { %v4527_v36 = vsel %vm402_vm5, %v4502_v12, 0.0  ;;  %4817 = vmatpush.msra.mxu1 %v5322_v20 }
 0xefb   :  { %4528 = vadd.xlane.f32.xlu0 %v4527_v36  ;;  %v4511_v43 = vpop.xlane.xlu2 %4510  ;;  %v4466_v55 = vpop.xlane.xlu0 %4465  ;;  %4737 = vmatpush.msrb.mxu0 %v5311_v27  ;;  %v5318_v36 = vld [vmem:[%s8890_s21 + $0x48] sm:$0xff]  ;;  %v5330_v27 = vld [vmem:[%s8890_s21 + $0x98] sm:$0xff] }
 0xefc   :  { %v4540_v4 = vmul.f32 %v4511_v43, %v7743_v9  ;;  %v4481_v30 = vmul.f32 %v4466_v55, %v7743_v9 }
 0xefd   :  { %4785 = vmatpush.msra.mxu0 %v5320_v45 }
 0xefe   :  { %v4551_v8 = vadd.f32 1e-05, %v4540_v4  ;;  %v8612_v25 = vsub.f32 %v8533_v60, %v4481_v30 }
 0xeff   :  { %4786 = vmatpush.msra.mxu0 %v5319_v53 }
 0xf00   :  { %5762 = vrsqrt.f32 %v4551_v8  ;;  %v4503_v35 = vmul.f32 %v8612_v25, %v8612_v25  ;;  %vm4577_vm0 = vweird.f32 %v4551_v8 }
 0xf01   :  { %4787 = vmatpush.msra.mxu0 %v5318_v36 }
 0xf02   :  { %v4530_v52 = vsel %vm402_vm5, %v4503_v35, 0.0 }
 0xf03   :  { %v4469_v26 = vpop.xlane.xlu1 %4468  ;;  %4531 = vadd.xlane.f32.xlu1 %v4530_v52 }
 0xf04   :  { %v4482_v60 = vmul.f32 %v4469_v26, %v7743_v9  ;;  %v4517_v54 = vpop.xlane.xlu2 %4516 }
 0xf05   :  { %v4542_v31 = vmul.f32 %v4517_v54, %v7743_v9 }
 0xf06   :  { %v5763_v13 = vpop.eup %5762  ;;  %v8626_v7 = vsub.f32 %v8547_v29, %v4482_v60  ;;  %v5329_v60 = vld [vmem:[%s8890_s21 + $0x90] sm:$0xff] }
 0xf07   :  { %v4572_v5 = vmul.f32 %v5763_v13, %v4551_v8  ;;  %v8628_v44 = vadd.f32 1e-05, %v4542_v31  ;;  %vm4578_vm15 = vweird.f32 %v5763_v13  ;;  %v5317_v8 = vld [vmem:[%s8890_s21 + $0x40] sm:$0xff] }
 0xf08   :  { %v4504_v23 = vmul.f32 %v8626_v7, %v8626_v7  ;;  %vm4579_vm1 = vmor %vm4577_vm0, %vm4578_vm15  ;;  %4788 = vmatpush.msra.mxu0 %v5317_v8 }
 0xf09   :  { %v4573_v49 = vmul.f32 %v5763_v13, %v4572_v5  ;;  %5764 = vrsqrt.f32 %v8628_v44  ;;  %v5328_v5 = vld [vmem:[%s8890_s21 + $0x88] sm:$0xff]  ;;  %vm4597_vm8 = vweird.f32 %v8628_v44 }
 0xf0a   :  { %v4533_v33 = vsel %vm402_vm5, %v4504_v23, 0.0 }
 0xf0b   :  { %v4574_v48 = vmul.f32 0.5, %v4573_v49  ;;  %4534 = vadd.xlane.f32.xlu2 %v4533_v33  ;;  %v4508_v29 = vpop.xlane.xlu1 %4507 }
 0xf0c   :  { %v4472_v47 = vpop.xlane.xlu0 %4471  ;;  %v4539_v42 = vmul.f32 %v4508_v29, %v7743_v9  ;;  %v5327_v29 = vld [vmem:[%s8890_s21 + $0x80] sm:$0xff] }
 0xf0d   :  { %v4575_v11 = vsub.f32 1.5, %v4574_v48  ;;  %v4483_v32 = vmul.f32 %v4472_v47, %v7743_v9 }
 0xf0e   :  { %v8645_v0 = vadd.f32 1e-05, %v4539_v42 }
 0xf0f   :  { %v4576_v57 = vmul.f32 %v5763_v13, %v4575_v11  ;;  %v8648_v24 = vsub.f32 %v8561_v56, %v4483_v32  ;;  %v8650_v17 = vpop.eup %5764  ;;  %v8666_v56 = vld [vmem:[%s8889_s20] ss:$0 sm:$0xff]  ;;  %v5350_v32 = vld [vmem:[%s8890_s21 + $0x118] sm:$0xff] }
 0xf10   :  { %v4592_v10 = vmul.f32 %v8650_v17, %v8628_v44  ;;  %5766 = vrsqrt.f32 %v8645_v0  ;;  %vm4598_vm3 = vweird.f32 %v8650_v17  ;;  %vm4567_vm4 = vweird.f32 %v8645_v0  ;;  %4959 = vmatpush.msrb.mxu3 %v5350_v32  ;;  %v5349_v44 = vld [vmem:[%s8890_s21 + $0x110] sm:$0xff]  ;;  %v5345_v32 = vld [vmem:[%s8890_s21 + $0xf8] sm:$0xff] }
 0xf11   :  { %v4580_v14 = vsel %vm4579_vm1, %v5763_v13, %v4576_v57  ;;  %v4505_v1 = vmul.f32 %v8648_v24, %v8648_v24  ;;  %vm4599_vm9 = vmor %vm4597_vm8, %vm4598_vm3 }
 0xf12   :  { %v4672_v41 = vmul.f32 %v4580_v14, %v8529_v19  ;;  %v4593_v16 = vmul.f32 %v8650_v17, %v4592_v10  ;;  %4960 = vmatpush.msrb.mxu3 %v5349_v44 }
 0xf13   :  { %v4520_v39 = vpop.xlane.xlu1 %4519  ;;  %v4536_v19 = vsel %vm402_vm5, %v4505_v1, 0.0 }
 0xf14   :  { %v4686_v28 = vmul.f32 %v8655_v6, %v4672_v41  ;;  %v4543_v15 = vmul.f32 %v4520_v39, %v7743_v9  ;;  %4537 = vadd.xlane.f32.xlu1 %v4536_v19  ;;  %v4514_v62 = vpop.xlane.xlu0 %4513  ;;  %v4594_v4 = vmul.f32 0.5, %v4593_v16  ;;  %v5335_v16 = vld [vmem:[%s8890_s21 + $0xb8] sm:$0xff] }
 0xf15   :  { %v4541_v12 = vmul.f32 %v4514_v62, %v7743_v9 }
 0xf16   :  { %v4700_v21 = vadd.f32 %v8666_v56, %v4686_v28  ;;  %v5767_v43 = vpop.eup %5766  ;;  %v8695_v55 = vadd.f32 1e-05, %v4543_v15  ;;  %v4595_v52 = vsub.f32 1.5, %v4594_v4 }
 0xf17   :  { %v4562_v30 = vmul.f32 %v5767_v43, %v8645_v0  ;;  %v8698_v63 = vadd.f32 1e-05, %v4541_v12  ;;  %vm4568_vm2 = vweird.f32 %v5767_v43 }
 0xf18   :  { %5315 = vmatmul.msk.f32.vlgmr.msrb.gmra.mxu0 %vm402_vm5, %v4700_v21  ;;  %5768 = vrsqrt.f32 %v8695_v55  ;;  %v4596_v33 = vmul.f32 %v8650_v17, %v4595_v52  ;;  %vm4569_vm6 = vmor %vm4567_vm4, %vm4568_vm2  ;;  %vm4607_vm14 = vweird.f32 %v8695_v55  ;;  %v5333_v21 = vld [vmem:[%s8890_s21 + $0xa8] sm:$0xff] }
 0xf19   :  { %v4563_v35 = vmul.f32 %v5767_v43, %v4562_v30  ;;  %5770 = vrsqrt.f32 %v8698_v63  ;;  %4843 = vmatpush.msrb.mxu0 %v5330_v27  ;;  %vm4587_vm12 = vweird.f32 %v8698_v63 }
 0xf1a   :  { %v4600_v0 = vsel %vm4599_vm9, %v8650_v17, %v4596_v33 }
 0xf1b   :  { %v4564_v26 = vmul.f32 0.5, %v4563_v35  ;;  %4844 = vmatpush.msrb.mxu0 %v5329_v60  ;;  %v5340_v35 = vld [vmem:[%s8890_s21 + $0xd8] sm:$0xff] }
 0xf1c   :  { %v4523_v54 = vpop.xlane.xlu0 %4522 }
 0xf1d   :  { %v4565_v13 = vsub.f32 1.5, %v4564_v26  ;;  %v4544_v31 = vmul.f32 %v4523_v54, %v7743_v9  ;;  %4845 = vmatpush.msrb.mxu0 %v5328_v5 }
 0xf1e   :  { %v8719_v23 = vpop.eup %5768 }
 0xf1f   :  { %v5771_v49 = vpop.eup %5770  ;;  %v4566_v3 = vmul.f32 %v5767_v43, %v4565_v13  ;;  %v4602_v48 = vmul.f32 %v8719_v23, %v8695_v55  ;;  %v8730_v40 = vadd.f32 1e-05, %v4544_v31  ;;  %4846 = vmatpush.msrb.mxu0 %v5327_v29  ;;  %vm4608_vm10 = vweird.f32 %v8719_v23  ;;  %v5338_v13 = vld [vmem:[%s8890_s21 + $0xc8] sm:$0xff] }
 0xf20   :  { %v4582_v47 = vmul.f32 %v5771_v49, %v8698_v63  ;;  %vm4588_vm7 = vweird.f32 %v5771_v49  ;;  %vm4609_vm15 = vmor %vm4607_vm14, %vm4608_vm10 }
 0xf21   :  { %v4570_v11 = vsel %vm4569_vm6, %v5767_v43, %v4566_v3  ;;  %v4603_v42 = vmul.f32 %v8719_v23, %v4602_v48  ;;  %5772 = vrsqrt.f32 %v8730_v40  ;;  %vm4589_vm13 = vmor %vm4587_vm12, %vm4588_vm7  ;;  %v5332_v43 = vld [vmem:[%s8890_s21 + $0xa0] sm:$0xff]  ;;  %vm4617_vm1 = vweird.f32 %v8730_v40 }
 0xf22   :  { %v4671_v51 = vmul.f32 %v4570_v11, %v8557_v46  ;;  %v4583_v57 = vmul.f32 %v5771_v49, %v4582_v47  ;;  %v4674_v46 = vmul.f32 %v4600_v0, %v8544_v61  ;;  %v5334_v61 = vld [vmem:[%s8890_s21 + $0xb0] sm:$0xff]  ;;  %v5343_v0 = vld [vmem:[%s8890_s21 + $0xe8] sm:$0xff] }
 0xf23   :  { %v4604_v18 = vmul.f32 0.5, %v4603_v42  ;;  %v4526_v41 = vpop.xlane.xlu2 %4525  ;;  %v5348_v42 = vld [vmem:[%s8890_s21 + $0x108] sm:$0xff] }
 0xf24   :  { %v4685_v14 = vmul.f32 %v8655_v6, %v4671_v51  ;;  %v4584_v10 = vmul.f32 0.5, %v4583_v57  ;;  %v4545_v45 = vmul.f32 %v4526_v41, %v7743_v9  ;;  %v4688_v15 = vmul.f32 %v8655_v6, %v4674_v46  ;;  %4961 = vmatpush.msrb.mxu3 %v5348_v42  ;;  %v5347_v46 = vld [vmem:[%s8890_s21 + $0x100] sm:$0xff] }
 0xf25   :  { %v4605_v1 = vsub.f32 1.5, %v4604_v18  ;;  %v5342_v18 = vld [vmem:[%s8890_s21 + $0xe0] sm:$0xff] }
 0xf26   :  { %v4699_v58 = vadd.f32 %v8666_v56, %v4685_v14  ;;  %v4585_v28 = vsub.f32 1.5, %v4584_v10  ;;  %v4556_v17 = vadd.f32 1e-05, %v4545_v45  ;;  %v4702_v55 = vadd.f32 %v8666_v56, %v4688_v15  ;;  %4962 = vmatpush.msrb.mxu3 %v5347_v46  ;;  %v5353_v15 = vld [vmem:[%s8890_s21 + $0x128] sm:$0xff] }
 0xf27   :  { %v5773_v39 = vpop.eup %5772  ;;  %v4606_v19 = vmul.f32 %v8719_v23, %v4605_v1 }
 0xf28   :  { %v4586_v53 = vmul.f32 %v5771_v49, %v4585_v28  ;;  %5316 = vmatmul.msk.f32.vlgmr.msrb.gmra.mxu1 %vm402_vm5, %v4699_v58  ;;  %5774 = vrsqrt.f32 %v4556_v17  ;;  %v4612_v50 = vmul.f32 %v5773_v39, %v8730_v40  ;;  %vm4618_vm0 = vweird.f32 %v5773_v39  ;;  %v5355_v28 = vld [vmem:[%s8890_s21 + $0x138] sm:$0xff] }
 0xf29   :  { %4872 = vmatpush.msrb.mxu1 %v5335_v16  ;;  %v4610_v59 = vsel %vm4609_vm15, %v8719_v23, %v4606_v19  ;;  %vm4619_vm2 = vmor %vm4617_vm1, %vm4618_vm0  ;;  %v5337_v23 = vld [vmem:[%s8890_s21 + $0xc0] sm:$0xff]  ;;  %vm4627_vm4 = vweird.f32 %v4556_v17  ;;  %v5354_v19 = vld [vmem:[%s8890_s21 + $0x130] sm:$0xff] }
 0xf2a   :  { %v4590_v62 = vsel %vm4589_vm13, %v5771_v49, %v4586_v53  ;;  %v4613_v36 = vmul.f32 %v5773_v39, %v4612_v50  ;;  %v4675_v8 = vmul.f32 %v4610_v59, %v8571_v34  ;;  %v5339_v34 = vld [vmem:[%s8890_s21 + $0xd0] sm:$0xff] }
 0xf2b   :  { %v4673_v12 = vmul.f32 %v4590_v62, %v8574_v2  ;;  %4873 = vmatpush.msrb.mxu1 %v5334_v61 }
 0xf2c   :  { %v4614_v30 = vmul.f32 0.5, %v4613_v36  ;;  %v4689_v60 = vmul.f32 %v8655_v6, %v4675_v8  ;;  %v5360_v36 = vld [vmem:[%s8890_s21 + $0x158] sm:$0xff] }
 0xf2d   :  { %v4687_v4 = vmul.f32 %v8655_v6, %v4673_v12  ;;  %4874 = vmatpush.msrb.mxu1 %v5333_v21  ;;  %v5352_v12 = vld [vmem:[%s8890_s21 + $0x120] sm:$0xff] }
 0xf2e   :  { %v5775_v63 = vpop.eup %5774  ;;  %v4615_v2 = vsub.f32 1.5, %v4614_v30  ;;  %v4703_v3 = vadd.f32 %v8666_v56, %v4689_v60 }
 0xf2f   :  { %v4701_v20 = vadd.f32 %v8666_v56, %v4687_v4  ;;  %4875 = vmatpush.msrb.mxu1 %v5332_v43  ;;  %v4622_v27 = vmul.f32 %v5775_v63, %v4556_v17  ;;  %vm4628_vm3 = vweird.f32 %v5775_v63  ;;  %v5359_v4 = vld [vmem:[%s8890_s21 + $0x150] sm:$0xff] }
 0xf30   :  { %5326 = vmatmul.msk.f32.vlgmr.msra.gmra.mxu1 %vm402_vm5, %v4702_v55  ;;  %v4616_v52 = vmul.f32 %v5773_v39, %v4615_v2  ;;  %vm4629_vm6 = vmor %vm4627_vm4, %vm4628_vm3  ;;  %v5358_v55 = vld [vmem:[%s8890_s21 + $0x148] sm:$0xff] }
 0xf31   :  { %5321 = vmatmul.msk.f32.vlgmr.msra.gmra.mxu0 %vm402_vm5, %v4701_v20  ;;  %v4623_v26 = vmul.f32 %v5775_v63, %v4622_v27  ;;  %4930 = vmatpush.msra.mxu1 %v5345_v32  ;;  %v5357_v20 = vld [vmem:[%s8890_s21 + $0x140] sm:$0xff] }
 0xf32   :  { %4901 = vmatpush.msra.mxu0 %v5340_v35  ;;  %v4620_v54 = vsel %vm4619_vm2, %v5773_v39, %v4616_v52 }
 0xf33   :  { %v4624_v31 = vmul.f32 0.5, %v4623_v26  ;;  %v4676_v5 = vmul.f32 %v4620_v54, %v8584_v37 }
 0xf34   :  { %4902 = vmatpush.msra.mxu0 %v5339_v34 }
 0xf35   :  { %v4625_v49 = vsub.f32 1.5, %v4624_v31  ;;  %v4690_v33 = vmul.f32 %v8655_v6, %v4676_v5 }
 0xf36   :  { %4903 = vmatpush.msra.mxu0 %v5338_v13 }
 0xf37   :  { %v4626_v48 = vmul.f32 %v5775_v63, %v4625_v49  ;;  %v4704_v29 = vadd.f32 %v8666_v56, %v4690_v33 }
 0xf38   :  { %4904 = vmatpush.msra.mxu0 %v5337_v23 }
 0xf39   :  { %5331 = vmatmul.msk.f32.vlgmr.msrb.gmra.mxu0 %vm402_vm5, %v4703_v3  ;;  %v4630_v37 = vsel %vm4629_vm6, %v5775_v63, %v4626_v48  ;;  %5336 = vmatmul.msk.f32.vlgmr.msrb.gmra.mxu1 %vm402_vm5, %v4704_v29 }
 0xf3a   :  { %v4677_v47 = vmul.f32 %v4630_v37, %v8591_v22  ;;  %v5344_v22 = vld [vmem:[%s8890_s21 + $0xf0] sm:$0xff]  ;;  %4988 = vmatpush.msrb.mxu0 %v5355_v28 }
 0xf3b   :  { %4931 = vmatpush.msra.mxu1 %v5344_v22 }
 0xf3c   :  { %v4691_v40 = vmul.f32 %v8655_v6, %v4677_v47  ;;  %4989 = vmatpush.msrb.mxu0 %v5354_v19 }
 0xf3d   :  { %4932 = vmatpush.msra.mxu1 %v5343_v0 }
 0xf3e   :  { %v4705_v11 = vadd.f32 %v8666_v56, %v4691_v40  ;;  %4990 = vmatpush.msrb.mxu0 %v5353_v15 }
 0xf3f   :  { %4933 = vmatpush.msra.mxu1 %v5342_v18 }
 0xf40   :  { %4991 = vmatpush.msrb.mxu0 %v5352_v12 }
 0xf41   :  { %5341 = vmatmul.msk.f32.vlgmr.msra.gmra.mxu0 %vm402_vm5, %v4705_v11  ;;  %5017 = vmatpush.msrb.mxu1 %v5360_v36 }
 0xf43   :  { %5018 = vmatpush.msrb.mxu1 %v5359_v4 }
 0xf45   :  { %5019 = vmatpush.msrb.mxu1 %v5358_v55 }
 0xf47   :  { %5020 = vmatpush.msrb.mxu1 %v5357_v20 }
 0xf6e   :  { %v4529_v51 = vpop.xlane.xlu0 %4528 }
 0xf6f   :  { %v4546_v57 = vmul.f32 %v4529_v51, %v7743_v9 }
 0xf71   :  { %v4557_v44 = vadd.f32 1e-05, %v4546_v57 }
 0xf73   :  { %5776 = vrsqrt.f32 %v4557_v44  ;;  %vm4637_vm9 = vweird.f32 %v4557_v44 }
 0xf76   :  { %v4532_v14 = vpop.xlane.xlu1 %4531 }
 0xf77   :  { %v4547_v10 = vmul.f32 %v4532_v14, %v7743_v9 }
 0xf79   :  { %v5777_v41 = vpop.eup %5776  ;;  %v4558_v1 = vadd.f32 1e-05, %v4547_v10 }
 0xf7a   :  { %v4632_v45 = vmul.f32 %v5777_v41, %v4557_v44  ;;  %vm4638_vm8 = vweird.f32 %v5777_v41 }
 0xf7b   :  { %5778 = vrsqrt.f32 %v4558_v1  ;;  %vm4639_vm7 = vmor %vm4637_vm9, %vm4638_vm8  ;;  %vm4647_vm12 = vweird.f32 %v4558_v1 }
 0xf7c   :  { %v4633_v58 = vmul.f32 %v5777_v41, %v4632_v45 }
 0xf7e   :  { %v4634_v16 = vmul.f32 0.5, %v4633_v58  ;;  %v4535_v17 = vpop.xlane.xlu2 %4534 }
 0xf7f   :  { %v4548_v39 = vmul.f32 %v4535_v17, %v7743_v9 }
 0xf80   :  { %v4635_v53 = vsub.f32 1.5, %v4634_v16 }
 0xf81   :  { %v5779_v61 = vpop.eup %5778  ;;  %v4559_v50 = vadd.f32 1e-05, %v4548_v39 }
 0xf82   :  { %v4636_v62 = vmul.f32 %v5777_v41, %v4635_v53  ;;  %v4642_v21 = vmul.f32 %v5779_v61, %v4558_v1  ;;  %vm4648_vm10 = vweird.f32 %v5779_v61 }
 0xf83   :  { %5780 = vrsqrt.f32 %v4559_v50  ;;  %vm4649_vm13 = vmor %vm4647_vm12, %vm4648_vm10  ;;  %vm4657_vm15 = vweird.f32 %v4559_v50 }
 0xf84   :  { %v4640_v59 = vsel %vm4639_vm7, %v5777_v41, %v4636_v62  ;;  %v4643_v43 = vmul.f32 %v5779_v61, %v4642_v21 }
 0xf85   :  { %v4678_v30 = vmul.f32 %v4640_v59, %v8598_v38 }
 0xf86   :  { %v4644_v63 = vmul.f32 0.5, %v4643_v43 }
 0xf87   :  { %v4692_v8 = vmul.f32 %v8655_v6, %v4678_v30  ;;  %v4538_v35 = vpop.xlane.xlu1 %4537 }
 0xf88   :  { %v4645_v2 = vsub.f32 1.5, %v4644_v63  ;;  %v4549_v38 = vmul.f32 %v4538_v35, %v7743_v9 }
 0xf89   :  { %v5781_v27 = vpop.eup %5780  ;;  %v4706_v52 = vadd.f32 %v8666_v56, %v4692_v8 }
 0xf8a   :  { %v4646_v34 = vmul.f32 %v5779_v61, %v4645_v2  ;;  %v4652_v26 = vmul.f32 %v5781_v27, %v4559_v50  ;;  %v4560_v60 = vadd.f32 1e-05, %v4549_v38  ;;  %vm4658_vm14 = vweird.f32 %v5781_v27 }
 0xf8b   :  { %5346 = vmatmul.msk.f32.vlgmr.msra.gmra.mxu1 %vm402_vm5, %v4706_v52  ;;  %vm4659_vm0 = vmor %vm4657_vm15, %vm4658_vm14 }
 0xf8c   :  { %v4650_v54 = vsel %vm4649_vm13, %v5779_v61, %v4646_v34  ;;  %v4653_v13 = vmul.f32 %v5781_v27, %v4652_v26  ;;  %5782 = vrsqrt.f32 %v4560_v60  ;;  %vm4667_vm2 = vweird.f32 %v4560_v60  ;;  %v5487_v61 = vld [vmem:[%s8891_s22] ss:$0 sm:$0xff] }
 0xf8d   :  { %v4679_v31 = vmul.f32 %v4650_v54, %v8612_v25 }
 0xf8e   :  { %v4654_v5 = vmul.f32 0.5, %v4653_v13 }
 0xf8f   :  { %v4693_v23 = vmul.f32 %v8655_v6, %v4679_v31 }
 0xf90   :  { %v4655_v49 = vsub.f32 1.5, %v4654_v5 }
 0xf91   :  { %v4707_v9 = vadd.f32 %v8666_v56, %v4693_v23 }
 0xf92   :  { %v4656_v33 = vmul.f32 %v5781_v27, %v4655_v49  ;;  %v5783_v3 = vpop.eup %5782 }
 0xf93   :  { %5351 = vmatmul.msk.f32.vlgmr.msrb.gmra.mxu3 %vm402_vm5, %v4707_v9  ;;  %v4662_v29 = vmul.f32 %v5783_v3, %v4560_v60  ;;  %vm4668_vm1 = vweird.f32 %v5783_v3 }
 0xf94   :  { %v4660_v48 = vsel %vm4659_vm0, %v5781_v27, %v4656_v33  ;;  %vm4669_vm3 = vmor %vm4667_vm2, %vm4668_vm1 }
 0xf95   :  { %v4680_v37 = vmul.f32 %v4660_v48, %v8626_v7  ;;  %v4663_v47 = vmul.f32 %v5783_v3, %v4662_v29  ;;  %v4739_v44 = vpop.f32.mrf.mxu0 }
 0xf97   :  { %v4694_v25 = vmul.f32 %v8655_v6, %v4680_v37  ;;  %v4664_v40 = vmul.f32 0.5, %v4663_v47 }
 0xf99   :  { %v4708_v11 = vadd.f32 %v8666_v56, %v4694_v25  ;;  %v4665_v42 = vsub.f32 1.5, %v4664_v40 }
 0xf9b   :  { %5356 = vmatmul.msk.f32.vlgmr.msrb.gmra.mxu0 %vm402_vm5, %v4708_v11  ;;  %v4666_v32 = vmul.f32 %v5783_v3, %v4665_v42 }
 0xf9d   :  { %v4670_v51 = vsel %vm4669_vm3, %v5783_v3, %v4666_v32 }
 0xf9e   :  { %v4681_v57 = vmul.f32 %v4670_v51, %v8648_v24 }
 0xfa0   :  { %v4695_v22 = vmul.f32 %v8655_v6, %v4681_v57 }
 0xfa2   :  { %v4709_v7 = vadd.f32 %v8666_v56, %v4695_v22 }
 0xfa4   :  { %5361 = vmatmul.msk.f32.vlgmr.msrb.gmra.mxu1 %vm402_vm5, %v4709_v7 }
 0xfa5   :  { %v4762_v0 = vpop.f32.mrf.mxu1 }
 0xfa6   :  { %v4763_v10 = vadd.f32 %v4762_v0, %v4739_v44 }
 0xfad   :  { %v4819_v14 = vpop.f32.mrf.mxu1 }
 0xfae   :  { %v4790_v18 = vpop.f32.mrf.mxu0 }
 0xfaf   :  { %v4793_v1 = vadd.f32 %v4790_v18, %v4763_v10 }
 0xfb1   :  { %v4822_v46 = vadd.f32 %v4819_v14, %v4793_v1 }
 0xfb6   :  { %v4848_v41 = vpop.f32.mrf.mxu0  ;;  %v4877_v45 = vpop.f32.mrf.mxu1 }
 0xfb7   :  { %v4851_v58 = vadd.f32 %v4848_v41, %v4822_v46 }
 0xfb9   :  { %v4880_v16 = vadd.f32 %v4877_v45, %v4851_v58 }
 0xfbe   :  { %v4906_v28 = vpop.f32.mrf.mxu0 }
 0xfbf   :  { %v4909_v24 = vadd.f32 %v4906_v28, %v4880_v16 }
0x1008   :  { %v4935_v17 = vpop.f32.mrf.mxu1 }
0x1009   :  { %v4938_v6 = vadd.f32 %v4935_v17, %v4909_v24 }
0x1016   :  { %v4964_v39 = vpop.f32.mrf.mxu3 }
0x1017   :  { %v4967_v19 = vadd.f32 %v4964_v39, %v4938_v6 }
0x1018   :  { %v4993_v56 = vpop.f32.mrf.mxu0 }
0x1019   :  { %v4996_v53 = vadd.f32 %v4993_v56, %v4967_v19 }
0x1021   :  { %v5022_v50 = vpop.f32.mrf.mxu1 }
0x1022   :  { %v5025_v15 = vadd.f32 %v5022_v50, %v4996_v53 }
0x1024   :  { %v5030_v62 = vadd.f32 %v5487_v61, %v5025_v15 }
0x1026   :  { %5031 = vst.msk [vmem:[#allocation2] sm:$0xff] %vm438_vm11, %v5030_v62 }
0x1027   :  { %5042 = dma.vmem_to_hbm [thread:$0]  %s5038_s9, 128, %s5040_s24, [#allocation3]  }
0x1028   :  { %5808 = dma.done.wait [#allocation3], 128  }
0x1029   :  { %5809 = vsyncadd [#allocation3], 4294967168 }
0x102a   :  { %5047 = vsyncpa [#allocation3], 1 }

</bundles_post_ra>
